<compile_context>
chip_gen: v7x
topology: tpu7x:2x2x1
jax: 0.10.0
libtpu: 0.0.40
codegen_flags: <defaults>
</compile_context>

<pallas_src>
import jax
import jax.numpy as jnp
import numpy as np
from jax.experimental import pallas as pl
from jax.experimental.pallas import tpu as pltpu


# ---------------------------------------------------------------------------
# Geometry (dictated by fc1 = 64 * 7 * 7  ->  28x28x1 input).
# ---------------------------------------------------------------------------
WG1 = 32            # conv1 output-grid width incl. 4 garbage cols (=> Wh1 = 16)
R1 = 28 * WG1       # conv1 conv rows per image (896)
SLAB_DEAD = 7       # dead prefix rows of conv2's input slab (keeps stores aligned)
SLAB_ROWS = 280     # conv2 input slab rows/image: 7 dead + 16*16 padded + 17 tail
WP2 = 16            # conv2 padded width (== conv1 pooled row-group width)
R2 = 14 * WP2       # conv2 conv rows per image (224)
OUT2_ROWS = 7 * 8   # conv2 pooled rows per image (incl. the garbage width column)


def _pick_batch_block(n, cap):
    """Largest b <= cap dividing n (leading block dim: no (8,128) constraint)."""
    b = min(n, cap)
    while n % b:
        b -= 1
    return b


def _pick_m_block(n, cap=256):
    """M-tile for the MLP head: a multiple of 8, or the full batch."""
    if n <= cap:
        return n
    b = (cap // 8) * 8
    while b >= 8:
        if n % b == 0:
            return b
        b -= 8
    return n


# ---------------------------------------------------------------------------
# conv1: 3x3 conv (one MXU dot over wrapper-built 9-tap patches) + bias + ReLU
#        + 2x2 maxpool, emitted directly as conv2's zero-padded flat slab.
# ---------------------------------------------------------------------------
def _conv1_kernel(x_ref, w_ref, b_ref, o_ref, acc_ref):
    B = x_ref.shape[0]
    # One MXU dot for the whole image block: (B*896, 9) @ (9, 32) + bias.
    x = x_ref[...].reshape(B * R1, 9)
    acc_ref[...] = (jnp.dot(x, w_ref[...], preferred_element_type=jnp.float32)
                    + b_ref[...])

    # 2x2 maxpool.  W-pool: even/odd conv rows via stride-2 sublane slices.
    half = B * (R1 // 2)
    p1 = jnp.maximum(acc_ref[pl.ds(0, half, stride=2), :],
                     acc_ref[pl.ds(1, half, stride=2), :])            # (B*448, 32)
    # H-pool: rows h*16+wq pair up 16 apart inside aligned 32-row groups.
    p1 = p1.reshape(B * 14, 2 * WP2, 32)
    p2 = jnp.maximum(p1[:, 0:WP2, :], p1[:, WP2:2 * WP2, :])          # (B*14, 16, 32)
    # ReLU + zero the two garbage width columns: they become conv2's zero pad.
    wq = jax.lax.broadcasted_iota(jnp.int32, p2.shape, 1)
    p2 = jnp.where(wq < 14, jnp.maximum(p2, 0.0), 0.0)

    # Emit conv2's zero-padded flat slab with three ALIGNED stores:
    #   rows [0,24)   : dead prefix + top pad + first left-pad element (zeros)
    #   rows [24,248) : pooled data (left/right pads fall on the zeroed columns)
    #   rows [248,280): bottom pad + tap-overrun tail (zeros)
    o_ref[:, 0:24, :] = jnp.zeros((B, 24, 32), jnp.float32)
    o_ref[:, 248:SLAB_ROWS, :] = jnp.zeros((B, SLAB_ROWS - 248, 32), jnp.float32)
    o_ref[:, 24:248, :] = p2.reshape(B, 224, 32)


def conv1_layer(patches, w, b, *, block_b):
    n = patches.shape[0]
    return pl.pallas_call(
        _conv1_kernel,
        out_shape=jax.ShapeDtypeStruct((n, SLAB_ROWS, 32), jnp.float32),
        grid=(n // block_b,),
        in_specs=[
            pl.BlockSpec((block_b, R1, 9), lambda i: (i, 0, 0)),
            pl.BlockSpec((9, 32), lambda i: (0, 0)),
            pl.BlockSpec((1, 32), lambda i: (0, 0)),
        ],
        out_specs=pl.BlockSpec((block_b, SLAB_ROWS, 32), lambda i: (i, 0, 0)),
        scratch_shapes=[pltpu.VMEM((block_b * R1, 32), jnp.float32)],
        compiler_params=pltpu.CompilerParams(dimension_semantics=("parallel",)),
    )(patches, w, b)


# ---------------------------------------------------------------------------
# conv2: 3x3 conv (3 MXU dots with K=96) + bias + ReLU + 2x2 maxpool.
# ---------------------------------------------------------------------------
def _conv2_kernel(x_ref, w_ref, b_ref, o_ref, acc_ref):
    B = x_ref.shape[0]
    # Fused im2col: the 3 dw taps of each dh are lane-concatenated -> K=96.
    acc = None
    for dh in range(3):
        base = SLAB_DEAD + dh * WP2
        patch = jnp.concatenate(
            [x_ref[:, base + dw: base + dw + R2, :].reshape(B * R2, 32)
             for dw in range(3)], axis=-1)                            # (B*224, 96)
        part = jnp.dot(patch, w_ref[dh * 96:(dh + 1) * 96, :],
                       preferred_element_type=jnp.float32)
        acc = part if acc is None else acc + part
    acc_ref[...] = acc + b_ref[...]

    # Fused ReLU + 2x2 maxpool (garbage width column kept; fc1 rows are zero there).
    half = B * (R2 // 2)
    p1 = jnp.maximum(acc_ref[pl.ds(0, half, stride=2), :],
                     acc_ref[pl.ds(1, half, stride=2), :])            # (B*112, 64)
    p1 = p1.reshape(B * 7, 16, 64)
    p2 = jnp.maximum(jnp.maximum(p1[:, 0:8, :], p1[:, 8:16, :]), 0.0)  # (B*7, 8, 64)
    o_ref[...] = p2.reshape(B, OUT2_ROWS, 64)                         # one aligned store


def conv2_layer(slab, w, b, *, block_b):
    n = slab.shape[0]
    return pl.pallas_call(
        _conv2_kernel,
        out_shape=jax.ShapeDtypeStruct((n, OUT2_ROWS, 64), jnp.float32),
        grid=(n // block_b,),
        in_specs=[
            pl.BlockSpec((block_b, SLAB_ROWS, 32), lambda i: (i, 0, 0)),
            pl.BlockSpec((288, 64), lambda i: (0, 0)),
            pl.BlockSpec((1, 64), lambda i: (0, 0)),
        ],
        out_specs=pl.BlockSpec((block_b, OUT2_ROWS, 64), lambda i: (i, 0, 0)),
        scratch_shapes=[pltpu.VMEM((block_b * R2, 64), jnp.float32)],
        compiler_params=pltpu.CompilerParams(dimension_semantics=("parallel",)),
    )(slab, w, b)


# ---------------------------------------------------------------------------
# Fused fc1 + ReLU + fc2 (fc2 zero-padded to 128 lanes for dense stores).
# ---------------------------------------------------------------------------
def _mlp_kernel(h_ref, w1_ref, b1_ref, w2_ref, b2_ref, o_ref):
    h1 = jnp.dot(h_ref[...], w1_ref[...], preferred_element_type=jnp.float32)
    h1 = jnp.maximum(h1 + b1_ref[...], 0.0)
    o_ref[...] = (jnp.dot(h1, w2_ref[...], preferred_element_type=jnp.float32)
                  + b2_ref[...])


def mlp_head(h, w1, b1, w2, b2):
    n, k = h.shape
    kh = w1.shape[1]
    no = w2.shape[1]
    bm = _pick_m_block(n)
    return pl.pallas_call(
        _mlp_kernel,
        out_shape=jax.ShapeDtypeStruct((n, no), jnp.float32),
        grid=(n // bm,),
        in_specs=[
            pl.BlockSpec((bm, k), lambda i: (i, 0)),
            pl.BlockSpec((k, kh), lambda i: (0, 0)),
            pl.BlockSpec((1, kh), lambda i: (0, 0)),
            pl.BlockSpec((kh, no), lambda i: (0, 0)),
            pl.BlockSpec((1, no), lambda i: (0, 0)),
        ],
        out_specs=pl.BlockSpec((bm, no), lambda i: (i, 0)),
        compiler_params=pltpu.CompilerParams(dimension_semantics=("parallel",)),
    )(h, w1, b1, w2, b2)


# ---------------------------------------------------------------------------
# Parameters: canonical (PyTorch-equivalent) init + one-time Pallas re-layout.
# ---------------------------------------------------------------------------
def init_params(key):
    ks = jax.random.split(key, 8)

    def u(k, shape, fan_in):
        bound = 1.0 / np.sqrt(fan_in)
        return jax.random.uniform(k, shape, jnp.float32, -bound, bound)

    return {
        "conv1_w": u(ks[0], (3, 3, 1, 32), 9 * 1),          # HWIO
        "conv1_b": u(ks[1], (32,), 9 * 1),
        "conv2_w": u(ks[2], (3, 3, 32, 64), 9 * 32),        # HWIO
        "conv2_b": u(ks[3], (64,), 9 * 32),
        "fc1_w": u(ks[4], (64 * 7 * 7, 128), 64 * 7 * 7),   # rows in PyTorch CHW order
        "fc1_b": u(ks[5], (128,), 64 * 7 * 7),
        "fc2_w": u(ks[6], (128, 10), 128),
        "fc2_b": u(ks[7], (10,), 128),
    }


def prepare_pallas_params(p):
    """One-time static re-layout of the canonical parameters for the Pallas path."""
    # fc1: remap rows from PyTorch's CHW flatten (c*49 + h*7 + w) to the kernel's
    # (ho, wq, c) layout; the wq==7 garbage column gets all-zero weight rows.
    c = np.arange(64)
    ho = np.arange(7)
    wq = np.arange(7)
    src = (c[None, None, :] * 49 + ho[:, None, None] * 7 + wq[None, :, None]).reshape(-1)
    dst = (ho[:, None, None] * 512 + wq[None, :, None] * 64 + c[None, None, :]).reshape(-1)
    fc1_w = jnp.zeros((7 * 8 * 64, 128), jnp.float32).at[dst].set(p["fc1_w"][src])
    # fc2: zero-pad the 10 output columns to 128 for a lane-dense store.
    fc2_w = jnp.zeros((128, 128), jnp.float32).at[:, :10].set(p["fc2_w"])
    fc2_b = jnp.zeros((1, 128), jnp.float32).at[0, :10].set(p["fc2_b"])
    return {
        "conv1_w": p["conv1_w"].reshape(9, 32),              # row = dh*3 + dw
        "conv1_b": p["conv1_b"].reshape(1, 32),
        "conv2_w": p["conv2_w"].reshape(9 * 32, 64),         # row = dh*96 + dw*32 + cin
        "conv2_b": p["conv2_b"].reshape(1, 64),
        "fc1_w": fc1_w,
        "fc1_b": p["fc1_b"].reshape(1, 128),
        "fc2_w": fc2_w,
        "fc2_b": fc2_b,
    }


# ---------------------------------------------------------------------------
# Forward passes.
# ---------------------------------------------------------------------------
def cnn_forward(x_nchw, pp):
    n = x_nchw.shape[0]
    x = x_nchw.reshape(n, 28, 28, 1).astype(jnp.float32)     # C==1: pure reshape to NHWC
    # conv1 im2col over a width-32 output grid (the 4 garbage cols keep the pooled
    # layout congruent with conv2's padded slab): patches (n, 896, 9).
    xp = jnp.pad(x, ((0, 0), (1, 1), (1, 5), (0, 0)))        # (n, 30, 34, 1)
    pats = jnp.concatenate(
        [xp[:, dh:dh + 28, dw:dw + 32, :] for dh in range(3) for dw in range(3)],
        axis=-1).reshape(n, R1, 9)

    b1 = _pick_batch_block(n, 4)
    h = conv1_layer(pats, pp["conv1_w"], pp["conv1_b"], block_b=b1)   # (n, 280, 32)
    b2 = _pick_batch_block(n, 8)
    h = conv2_layer(h, pp["conv2_w"], pp["conv2_b"], block_b=b2)      # (n, 56, 64)
    h = h.reshape(n, OUT2_ROWS * 64)                                  # free contiguous reshape
    logits = mlp_head(h, pp["fc1_w"], pp["fc1_b"], pp["fc2_w"], pp["fc2_b"])
    return logits[:, :10]


# Pure-JAX f32 reference (matches the PyTorch module semantics).
def reference_forward(x_nchw, params):
    x = jnp.transpose(x_nchw, (0, 2, 3, 1)).astype(jnp.float32)
    dn = ("NHWC", "HWIO", "NHWC")

    def pool(h):
        return jax.lax.reduce_window(h, -jnp.inf, jax.lax.max,
                                     (1, 2, 2, 1), (1, 2, 2, 1), "VALID")

    h = jax.lax.conv_general_dilated(x, params["conv1_w"], (1, 1), "SAME",
                                     dimension_numbers=dn)
    h = pool(jax.nn.relu(h + params["conv1_b"]))
    h = jax.lax.conv_general_dilated(h, params["conv2_w"], (1, 1), "SAME",
                                     dimension_numbers=dn)
    h = pool(jax.nn.relu(h + params["conv2_b"]))
    h = jnp.transpose(h, (0, 3, 1, 2)).reshape(x.shape[0], -1)   # PyTorch x.view(N, -1)
    h = jax.nn.relu(h @ params["fc1_w"] + params["fc1_b"])
    return h @ params["fc2_w"] + params["fc2_b"]


if __name__ == "__main__":
    key = jax.random.PRNGKey(0)
    k_param, k_x = jax.random.split(key)
    params = init_params(k_param)
    pp = prepare_pallas_params(params)

    # batch=2; 28x28 with 1 input channel is dictated by fc1 = 64*7*7
    x = jax.random.normal(k_x, (2, 1, 28, 28), dtype=jnp.float32)

    out = jax.block_until_ready(jax.jit(cnn_forward)(x, pp))
    assert out.shape == (2, 10) and out.dtype == jnp.float32

    ref = jax.block_until_ready(jax.jit(reference_forward)(x, params))
    if not np.allclose(np.asarray(out), np.asarray(ref), rtol=5e-2, atol=5e-2):
        raise AssertionError("Pallas CNN output does not match JAX reference")

    print("KERNEL_OK")
</pallas_src>

<mosaic_0001>
module attributes {stable_mosaic.version = 11 : i64} {
  func.func @_conv1_kernel(%arg0: i32, %arg1: memref<2x896x9xf32, #tpu.memory_space<vmem>>, %arg2: memref<9x32xf32, #tpu.memory_space<vmem>>, %arg3: memref<1x32xf32, #tpu.memory_space<vmem>>, %arg4: memref<2x280x32xf32, #tpu.memory_space<vmem>>, %arg5: memref<1792x32xf32, #tpu.memory_space<vmem>>) attributes {dimension_semantics = [#tpu.dimension_semantics<parallel>], iteration_bounds = array<i64: 1>, scalar_prefetch = 0 : i64, scratch_operands = 1 : i64, tpu.core_type = #tpu.core_type<tc>, window_params = [{transform_indices = @transform_0, window_bounds = array<i64: 2, 896, 9>}, {pipeline_mode = #tpu.pipeline_mode<synchronous>, transform_indices = @transform_1, window_bounds = array<i64: 9, 32>}, {pipeline_mode = #tpu.pipeline_mode<synchronous>, transform_indices = @transform_2, window_bounds = array<i64: 1, 32>}, {transform_indices = @transform_3, window_bounds = array<i64: 2, 280, 32>}]} {
    %c0 = arith.constant 0 : index
    %c0_0 = arith.constant 0 : index
    %c0_1 = arith.constant 0 : index
    %0 = vector.load %arg1[%c0, %c0_0, %c0_1] : memref<2x896x9xf32, #tpu.memory_space<vmem>>, vector<2x896x9xf32>
    %1 = vector.shape_cast %0 : vector<2x896x9xf32> to vector<1792x9xf32>
    %c0_2 = arith.constant 0 : index
    %c0_3 = arith.constant 0 : index
    %2 = vector.load %arg2[%c0_2, %c0_3] : memref<9x32xf32, #tpu.memory_space<vmem>>, vector<9x32xf32>
    %cst = arith.constant dense<0.000000e+00> : vector<1792x32xf32>
    %3 = tpu.matmul %1, %2, %cst {dimension_numbers = #tpu.dot_dimension_numbers<[1], [0], [0], [1], [0, 0, 1, 1], [], []>} : vector<1792x9xf32>, vector<9x32xf32>, vector<1792x32xf32> -> vector<1792x32xf32>
    %c0_4 = arith.constant 0 : index
    %c0_5 = arith.constant 0 : index
    %4 = vector.load %arg3[%c0_4, %c0_5] : memref<1x32xf32, #tpu.memory_space<vmem>>, vector<1x32xf32>
    %5 = vector.broadcast %4 : vector<1x32xf32> to vector<1792x32xf32>
    %6 = arith.addf %3, %5 : vector<1792x32xf32>
    %c0_6 = arith.constant 0 : index
    %c0_7 = arith.constant 0 : index
    %7 = vector.load %arg5[%c0_6, %c0_7] : memref<1792x32xf32, #tpu.memory_space<vmem>>, vector<1792x32xf32>
    tpu.vector_store %arg5[%c0_6, %c0_7], %6 {strides = array<i32>} : memref<1792x32xf32, #tpu.memory_space<vmem>>, vector<1792x32xf32>,
    %c0_8 = arith.constant 0 : index
    %c0_9 = arith.constant 0 : index
    %8 = tpu.strided_load %arg5[%c0_8, %c0_9] {strides = array<i32: 2, 1>} : memref<1792x32xf32, #tpu.memory_space<vmem>>, vector<896x32xf32>
    %c1 = arith.constant 1 : index
    %c0_10 = arith.constant 0 : index
    %9 = tpu.strided_load %arg5[%c1, %c0_10] {strides = array<i32: 2, 1>} : memref<1792x32xf32, #tpu.memory_space<vmem>>, vector<896x32xf32>
    %10 = arith.maximumf %8, %9 : vector<896x32xf32>
    %11 = vector.shape_cast %10 : vector<896x32xf32> to vector<28x32x32xf32>
    %12 = vector.extract_strided_slice %11 {offsets = [0, 0, 0], sizes = [28, 16, 32], strides = [1, 1, 1]} : vector<28x32x32xf32> to vector<28x16x32xf32>
    %13 = vector.extract_strided_slice %11 {offsets = [0, 16, 0], sizes = [28, 16, 32], strides = [1, 1, 1]} : vector<28x32x32xf32> to vector<28x16x32xf32>
    %14 = arith.maximumf %12, %13 : vector<28x16x32xf32>
    %15 = tpu.iota {dimensions = array<i32: 1>} : vector<28x16x32xi32>
    %c14_i32 = arith.constant 14 : i32
    %16 = vector.broadcast %c14_i32 : i32 to vector<28x16x32xi32>
    %17 = arith.cmpi slt, %15, %16 : vector<28x16x32xi32>
    %cst_11 = arith.constant 0.000000e+00 : f32
    %18 = vector.broadcast %cst_11 : f32 to vector<28x16x32xf32>
    %19 = arith.maximumf %14, %18 : vector<28x16x32xf32>
    %cst_12 = arith.constant 0.000000e+00 : f32
    %20 = vector.broadcast %cst_12 : f32 to vector<28x16x32xf32>
    %21 = arith.select %17, %19, %20 : vector<28x16x32xi1>, vector<28x16x32xf32>
    %cst_13 = arith.constant 0.000000e+00 : f32
    %22 = vector.broadcast %cst_13 : f32 to vector<2x24x32xf32>
    %c0_14 = arith.constant 0 : index
    %c0_15 = arith.constant 0 : index
    %c0_16 = arith.constant 0 : index
    %23 = vector.load %arg4[%c0_14, %c0_15, %c0_16] : memref<2x280x32xf32, #tpu.memory_space<vmem>>, vector<2x24x32xf32>
    tpu.vector_store %arg4[%c0_14, %c0_15, %c0_16], %22 {strides = array<i32>} : memref<2x280x32xf32, #tpu.memory_space<vmem>>, vector<2x24x32xf32>,
    %cst_17 = arith.constant 0.000000e+00 : f32
    %24 = vector.broadcast %cst_17 : f32 to vector<2x32x32xf32>
    %c0_18 = arith.constant 0 : index
    %c248 = arith.constant 248 : index
    %c0_19 = arith.constant 0 : index
    %25 = vector.load %arg4[%c0_18, %c248, %c0_19] : memref<2x280x32xf32, #tpu.memory_space<vmem>>, vector<2x32x32xf32>
    tpu.vector_store %arg4[%c0_18, %c248, %c0_19], %24 {strides = array<i32>} : memref<2x280x32xf32, #tpu.memory_space<vmem>>, vector<2x32x32xf32>,
    %26 = vector.shape_cast %21 : vector<28x16x32xf32> to vector<2x224x32xf32>
    %c0_20 = arith.constant 0 : index
    %c24 = arith.constant 24 : index
    %c0_21 = arith.constant 0 : index
    %27 = vector.load %arg4[%c0_20, %c24, %c0_21] : memref<2x280x32xf32, #tpu.memory_space<vmem>>, vector<2x224x32xf32>
    tpu.vector_store %arg4[%c0_20, %c24, %c0_21], %26 {strides = array<i32>} : memref<2x280x32xf32, #tpu.memory_space<vmem>>, vector<2x224x32xf32>,
    return
  }
  func.func @transform_0(%arg0: i32) -> (i32, i32, i32) {
    %c0_i32 = arith.constant 0 : i32
    %c0_i32_0 = arith.constant 0 : i32
    %c0_i32_1 = arith.constant 0 : i32
    return %arg0, %c0_i32, %c0_i32_0 : i32, i32, i32
  }
  func.func @transform_1(%arg0: i32) -> (i32, i32) {
    %c0_i32 = arith.constant 0 : i32
    %c0_i32_0 = arith.constant 0 : i32
    %c0_i32_1 = arith.constant 0 : i32
    return %c0_i32, %c0_i32_0 : i32, i32
  }
  func.func @transform_2(%arg0: i32) -> (i32, i32) {
    %c0_i32 = arith.constant 0 : i32
    %c0_i32_0 = arith.constant 0 : i32
    %c0_i32_1 = arith.constant 0 : i32
    return %c0_i32, %c0_i32_0 : i32, i32
  }
  func.func @transform_3(%arg0: i32) -> (i32, i32, i32) {
    %c0_i32 = arith.constant 0 : i32
    %c0_i32_0 = arith.constant 0 : i32
    %c0_i32_1 = arith.constant 0 : i32
    return %arg0, %c0_i32, %c0_i32_0 : i32, i32, i32
  }
}

module attributes {stable_mosaic.version = 11 : i64} {
  func.func @_conv2_kernel(%arg0: i32, %arg1: memref<2x280x32xf32, #tpu.memory_space<vmem>>, %arg2: memref<288x64xf32, #tpu.memory_space<vmem>>, %arg3: memref<1x64xf32, #tpu.memory_space<vmem>>, %arg4: memref<2x56x64xf32, #tpu.memory_space<vmem>>, %arg5: memref<448x64xf32, #tpu.memory_space<vmem>>) attributes {dimension_semantics = [#tpu.dimension_semantics<parallel>], iteration_bounds = array<i64: 1>, scalar_prefetch = 0 : i64, scratch_operands = 1 : i64, tpu.core_type = #tpu.core_type<tc>, window_params = [{transform_indices = @transform_0, window_bounds = array<i64: 2, 280, 32>}, {pipeline_mode = #tpu.pipeline_mode<synchronous>, transform_indices = @transform_1, window_bounds = array<i64: 288, 64>}, {pipeline_mode = #tpu.pipeline_mode<synchronous>, transform_indices = @transform_2, window_bounds = array<i64: 1, 64>}, {transform_indices = @transform_3, window_bounds = array<i64: 2, 56, 64>}]} {
    %c0 = arith.constant 0 : index
    %c7 = arith.constant 7 : index
    %c0_0 = arith.constant 0 : index
    %0 = vector.load %arg1[%c0, %c7, %c0_0] : memref<2x280x32xf32, #tpu.memory_space<vmem>>, vector<2x224x32xf32>
    %1 = vector.shape_cast %0 : vector<2x224x32xf32> to vector<448x32xf32>
    %c0_1 = arith.constant 0 : index
    %c8 = arith.constant 8 : index
    %c0_2 = arith.constant 0 : index
    %2 = vector.load %arg1[%c0_1, %c8, %c0_2] : memref<2x280x32xf32, #tpu.memory_space<vmem>>, vector<2x224x32xf32>
    %3 = vector.shape_cast %2 : vector<2x224x32xf32> to vector<448x32xf32>
    %c0_3 = arith.constant 0 : index
    %c9 = arith.constant 9 : index
    %c0_4 = arith.constant 0 : index
    %4 = vector.load %arg1[%c0_3, %c9, %c0_4] : memref<2x280x32xf32, #tpu.memory_space<vmem>>, vector<2x224x32xf32>
    %5 = vector.shape_cast %4 : vector<2x224x32xf32> to vector<448x32xf32>
    %6 = tpu.concatenate %1, %3, %5 in 1 : vector<448x32xf32>, vector<448x32xf32>, vector<448x32xf32> -> vector<448x96xf32>
    %c0_5 = arith.constant 0 : index
    %c0_6 = arith.constant 0 : index
    %7 = vector.load %arg2[%c0_5, %c0_6] : memref<288x64xf32, #tpu.memory_space<vmem>>, vector<96x64xf32>
    %cst = arith.constant dense<0.000000e+00> : vector<448x64xf32>
    %8 = tpu.matmul %6, %7, %cst {dimension_numbers = #tpu.dot_dimension_numbers<[1], [0], [0], [1], [0, 0, 1, 1], [], []>} : vector<448x96xf32>, vector<96x64xf32>, vector<448x64xf32> -> vector<448x64xf32>
    %c0_7 = arith.constant 0 : index
    %c23 = arith.constant 23 : index
    %c0_8 = arith.constant 0 : index
    %9 = vector.load %arg1[%c0_7, %c23, %c0_8] : memref<2x280x32xf32, #tpu.memory_space<vmem>>, vector<2x224x32xf32>
    %10 = vector.shape_cast %9 : vector<2x224x32xf32> to vector<448x32xf32>
    %c0_9 = arith.constant 0 : index
    %c24 = arith.constant 24 : index
    %c0_10 = arith.constant 0 : index
    %11 = vector.load %arg1[%c0_9, %c24, %c0_10] : memref<2x280x32xf32, #tpu.memory_space<vmem>>, vector<2x224x32xf32>
    %12 = vector.shape_cast %11 : vector<2x224x32xf32> to vector<448x32xf32>
    %c0_11 = arith.constant 0 : index
    %c25 = arith.constant 25 : index
    %c0_12 = arith.constant 0 : index
    %13 = vector.load %arg1[%c0_11, %c25, %c0_12] : memref<2x280x32xf32, #tpu.memory_space<vmem>>, vector<2x224x32xf32>
    %14 = vector.shape_cast %13 : vector<2x224x32xf32> to vector<448x32xf32>
    %15 = tpu.concatenate %10, %12, %14 in 1 : vector<448x32xf32>, vector<448x32xf32>, vector<448x32xf32> -> vector<448x96xf32>
    %c96 = arith.constant 96 : index
    %c0_13 = arith.constant 0 : index
    %16 = vector.load %arg2[%c96, %c0_13] : memref<288x64xf32, #tpu.memory_space<vmem>>, vector<96x64xf32>
    %cst_14 = arith.constant dense<0.000000e+00> : vector<448x64xf32>
    %17 = tpu.matmul %15, %16, %cst_14 {dimension_numbers = #tpu.dot_dimension_numbers<[1], [0], [0], [1], [0, 0, 1, 1], [], []>} : vector<448x96xf32>, vector<96x64xf32>, vector<448x64xf32> -> vector<448x64xf32>
    %18 = arith.addf %8, %17 : vector<448x64xf32>
    %c0_15 = arith.constant 0 : index
    %c39 = arith.constant 39 : index
    %c0_16 = arith.constant 0 : index
    %19 = vector.load %arg1[%c0_15, %c39, %c0_16] : memref<2x280x32xf32, #tpu.memory_space<vmem>>, vector<2x224x32xf32>
    %20 = vector.shape_cast %19 : vector<2x224x32xf32> to vector<448x32xf32>
    %c0_17 = arith.constant 0 : index
    %c40 = arith.constant 40 : index
    %c0_18 = arith.constant 0 : index
    %21 = vector.load %arg1[%c0_17, %c40, %c0_18] : memref<2x280x32xf32, #tpu.memory_space<vmem>>, vector<2x224x32xf32>
    %22 = vector.shape_cast %21 : vector<2x224x32xf32> to vector<448x32xf32>
    %c0_19 = arith.constant 0 : index
    %c41 = arith.constant 41 : index
    %c0_20 = arith.constant 0 : index
    %23 = vector.load %arg1[%c0_19, %c41, %c0_20] : memref<2x280x32xf32, #tpu.memory_space<vmem>>, vector<2x224x32xf32>
    %24 = vector.shape_cast %23 : vector<2x224x32xf32> to vector<448x32xf32>
    %25 = tpu.concatenate %20, %22, %24 in 1 : vector<448x32xf32>, vector<448x32xf32>, vector<448x32xf32> -> vector<448x96xf32>
    %c192 = arith.constant 192 : index
    %c0_21 = arith.constant 0 : index
    %26 = vector.load %arg2[%c192, %c0_21] : memref<288x64xf32, #tpu.memory_space<vmem>>, vector<96x64xf32>
    %cst_22 = arith.constant dense<0.000000e+00> : vector<448x64xf32>
    %27 = tpu.matmul %25, %26, %cst_22 {dimension_numbers = #tpu.dot_dimension_numbers<[1], [0], [0], [1], [0, 0, 1, 1], [], []>} : vector<448x96xf32>, vector<96x64xf32>, vector<448x64xf32> -> vector<448x64xf32>
    %28 = arith.addf %18, %27 : vector<448x64xf32>
    %c0_23 = arith.constant 0 : index
    %c0_24 = arith.constant 0 : index
    %29 = vector.load %arg3[%c0_23, %c0_24] : memref<1x64xf32, #tpu.memory_space<vmem>>, vector<1x64xf32>
    %30 = vector.broadcast %29 : vector<1x64xf32> to vector<448x64xf32>
    %31 = arith.addf %28, %30 : vector<448x64xf32>
    %c0_25 = arith.constant 0 : index
    %c0_26 = arith.constant 0 : index
    %32 = vector.load %arg5[%c0_25, %c0_26] : memref<448x64xf32, #tpu.memory_space<vmem>>, vector<448x64xf32>
    tpu.vector_store %arg5[%c0_25, %c0_26], %31 {strides = array<i32>} : memref<448x64xf32, #tpu.memory_space<vmem>>, vector<448x64xf32>,
    %c0_27 = arith.constant 0 : index
    %c0_28 = arith.constant 0 : index
    %33 = tpu.strided_load %arg5[%c0_27, %c0_28] {strides = array<i32: 2, 1>} : memref<448x64xf32, #tpu.memory_space<vmem>>, vector<224x64xf32>
    %c1 = arith.constant 1 : index
    %c0_29 = arith.constant 0 : index
    %34 = tpu.strided_load %arg5[%c1, %c0_29] {strides = array<i32: 2, 1>} : memref<448x64xf32, #tpu.memory_space<vmem>>, vector<224x64xf32>
    %35 = arith.maximumf %33, %34 : vector<224x64xf32>
    %36 = vector.shape_cast %35 : vector<224x64xf32> to vector<14x16x64xf32>
    %37 = vector.extract_strided_slice %36 {offsets = [0, 0, 0], sizes = [14, 8, 64], strides = [1, 1, 1]} : vector<14x16x64xf32> to vector<14x8x64xf32>
    %38 = vector.extract_strided_slice %36 {offsets = [0, 8, 0], sizes = [14, 8, 64], strides = [1, 1, 1]} : vector<14x16x64xf32> to vector<14x8x64xf32>
    %39 = arith.maximumf %37, %38 : vector<14x8x64xf32>
    %cst_30 = arith.constant 0.000000e+00 : f32
    %40 = vector.broadcast %cst_30 : f32 to vector<14x8x64xf32>
    %41 = arith.maximumf %39, %40 : vector<14x8x64xf32>
    %42 = vector.shape_cast %41 : vector<14x8x64xf32> to vector<2x56x64xf32>
    %c0_31 = arith.constant 0 : index
    %c0_32 = arith.constant 0 : index
    %c0_33 = arith.constant 0 : index
    %43 = vector.load %arg4[%c0_31, %c0_32, %c0_33] : memref<2x56x64xf32, #tpu.memory_space<vmem>>, vector<2x56x64xf32>
    tpu.vector_store %arg4[%c0_31, %c0_32, %c0_33], %42 {strides = array<i32>} : memref<2x56x64xf32, #tpu.memory_space<vmem>>, vector<2x56x64xf32>,
    return
  }
  func.func @transform_0(%arg0: i32) -> (i32, i32, i32) {
    %c0_i32 = arith.constant 0 : i32
    %c0_i32_0 = arith.constant 0 : i32
    %c0_i32_1 = arith.constant 0 : i32
    return %arg0, %c0_i32, %c0_i32_0 : i32, i32, i32
  }
  func.func @transform_1(%arg0: i32) -> (i32, i32) {
    %c0_i32 = arith.constant 0 : i32
    %c0_i32_0 = arith.constant 0 : i32
    %c0_i32_1 = arith.constant 0 : i32
    return %c0_i32, %c0_i32_0 : i32, i32
  }
  func.func @transform_2(%arg0: i32) -> (i32, i32) {
    %c0_i32 = arith.constant 0 : i32
    %c0_i32_0 = arith.constant 0 : i32
    %c0_i32_1 = arith.constant 0 : i32
    return %c0_i32, %c0_i32_0 : i32, i32
  }
  func.func @transform_3(%arg0: i32) -> (i32, i32, i32) {
    %c0_i32 = arith.constant 0 : i32
    %c0_i32_0 = arith.constant 0 : i32
    %c0_i32_1 = arith.constant 0 : i32
    return %arg0, %c0_i32, %c0_i32_0 : i32, i32, i32
  }
}

module attributes {stable_mosaic.version = 11 : i64} {
  func.func @_mlp_kernel(%arg0: i32, %arg1: memref<2x3584xf32, #tpu.memory_space<vmem>>, %arg2: memref<3584x128xf32, #tpu.memory_space<vmem>>, %arg3: memref<1x128xf32, #tpu.memory_space<vmem>>, %arg4: memref<128x128xf32, #tpu.memory_space<vmem>>, %arg5: memref<1x128xf32, #tpu.memory_space<vmem>>, %arg6: memref<2x128xf32, #tpu.memory_space<vmem>>) attributes {dimension_semantics = [#tpu.dimension_semantics<parallel>], iteration_bounds = array<i64: 1>, scalar_prefetch = 0 : i64, scratch_operands = 0 : i64, tpu.core_type = #tpu.core_type<tc>, window_params = [{transform_indices = @transform_0, window_bounds = array<i64: 2, 3584>}, {pipeline_mode = #tpu.pipeline_mode<synchronous>, transform_indices = @transform_1, window_bounds = array<i64: 3584, 128>}, {pipeline_mode = #tpu.pipeline_mode<synchronous>, transform_indices = @transform_2, window_bounds = array<i64: 1, 128>}, {pipeline_mode = #tpu.pipeline_mode<synchronous>, transform_indices = @transform_3, window_bounds = array<i64: 128, 128>}, {pipeline_mode = #tpu.pipeline_mode<synchronous>, transform_indices = @transform_4, window_bounds = array<i64: 1, 128>}, {transform_indices = @transform_5, window_bounds = array<i64: 2, 128>}]} {
    %c0 = arith.constant 0 : index
    %c0_0 = arith.constant 0 : index
    %0 = vector.load %arg1[%c0, %c0_0] : memref<2x3584xf32, #tpu.memory_space<vmem>>, vector<2x3584xf32>
    %c0_1 = arith.constant 0 : index
    %c0_2 = arith.constant 0 : index
    %1 = vector.load %arg2[%c0_1, %c0_2] : memref<3584x128xf32, #tpu.memory_space<vmem>>, vector<3584x128xf32>
    %cst = arith.constant dense<0.000000e+00> : vector<2x128xf32>
    %2 = tpu.matmul %0, %1, %cst {dimension_numbers = #tpu.dot_dimension_numbers<[1], [0], [0], [1], [0, 0, 1, 1], [], []>} : vector<2x3584xf32>, vector<3584x128xf32>, vector<2x128xf32> -> vector<2x128xf32>
    %c0_3 = arith.constant 0 : index
    %c0_4 = arith.constant 0 : index
    %3 = vector.load %arg3[%c0_3, %c0_4] : memref<1x128xf32, #tpu.memory_space<vmem>>, vector<1x128xf32>
    %4 = vector.broadcast %3 : vector<1x128xf32> to vector<2x128xf32>
    %5 = arith.addf %2, %4 : vector<2x128xf32>
    %cst_5 = arith.constant 0.000000e+00 : f32
    %6 = vector.broadcast %cst_5 : f32 to vector<2x128xf32>
    %7 = arith.maximumf %5, %6 : vector<2x128xf32>
    %c0_6 = arith.constant 0 : index
    %c0_7 = arith.constant 0 : index
    %8 = vector.load %arg4[%c0_6, %c0_7] : memref<128x128xf32, #tpu.memory_space<vmem>>, vector<128x128xf32>
    %cst_8 = arith.constant dense<0.000000e+00> : vector<2x128xf32>
    %9 = tpu.matmul %7, %8, %cst_8 {dimension_numbers = #tpu.dot_dimension_numbers<[1], [0], [0], [1], [0, 0, 1, 1], [], []>} : vector<2x128xf32>, vector<128x128xf32>, vector<2x128xf32> -> vector<2x128xf32>
    %c0_9 = arith.constant 0 : index
    %c0_10 = arith.constant 0 : index
    %10 = vector.load %arg5[%c0_9, %c0_10] : memref<1x128xf32, #tpu.memory_space<vmem>>, vector<1x128xf32>
    %11 = vector.broadcast %10 : vector<1x128xf32> to vector<2x128xf32>
    %12 = arith.addf %9, %11 : vector<2x128xf32>
    %c0_11 = arith.constant 0 : index
    %c0_12 = arith.constant 0 : index
    %13 = vector.load %arg6[%c0_11, %c0_12] : memref<2x128xf32, #tpu.memory_space<vmem>>, vector<2x128xf32>
    tpu.vector_store %arg6[%c0_11, %c0_12], %12 {strides = array<i32>} : memref<2x128xf32, #tpu.memory_space<vmem>>, vector<2x128xf32>,
    return
  }
  func.func @transform_0(%arg0: i32) -> (i32, i32) {
    %c0_i32 = arith.constant 0 : i32
    %c0_i32_0 = arith.constant 0 : i32
    return %arg0, %c0_i32 : i32, i32
  }
  func.func @transform_1(%arg0: i32) -> (i32, i32) {
    %c0_i32 = arith.constant 0 : i32
    %c0_i32_0 = arith.constant 0 : i32
    %c0_i32_1 = arith.constant 0 : i32
    return %c0_i32, %c0_i32_0 : i32, i32
  }
  func.func @transform_2(%arg0: i32) -> (i32, i32) {
    %c0_i32 = arith.constant 0 : i32
    %c0_i32_0 = arith.constant 0 : i32
    %c0_i32_1 = arith.constant 0 : i32
    return %c0_i32, %c0_i32_0 : i32, i32
  }
  func.func @transform_3(%arg0: i32) -> (i32, i32) {
    %c0_i32 = arith.constant 0 : i32
    %c0_i32_0 = arith.constant 0 : i32
    %c0_i32_1 = arith.constant 0 : i32
    return %c0_i32, %c0_i32_0 : i32, i32
  }
  func.func @transform_4(%arg0: i32) -> (i32, i32) {
    %c0_i32 = arith.constant 0 : i32
    %c0_i32_0 = arith.constant 0 : i32
    %c0_i32_1 = arith.constant 0 : i32
    return %c0_i32, %c0_i32_0 : i32, i32
  }
  func.func @transform_5(%arg0: i32) -> (i32, i32) {
    %c0_i32 = arith.constant 0 : i32
    %c0_i32_0 = arith.constant 0 : i32
    return %arg0, %c0_i32 : i32, i32
  }
}

</mosaic_0001>

<bundles_post_ra>
// kernel: cnn_forward.3
= control target key start
LH: loop header
LB: loop body
LE: loop exit
PB: predicated region body
PF: predicated region fallthrough
CT: control target
= control target key end

     0   :  { %vm920_vm0 = vcmask 1040384   ;;  %vm247_vm1 = vcmask 72704   ;;  %vm3944_vm2 = vmmov 1   ;;  %vm2109_vm4 = vcmask 261120   ;;  %s5670_s1 = inlined_call_operand.vmem [shape: f32[9,32], index: 1, kind: input, shape index: {}]   ;;  %s5671_s0 = inlined_call_operand.vmem [shape: f32[2,896,9], index: 0, kind: input, shape index: {}]   ;;  %s5672_s2 = inlined_call_operand.vmem [shape: f32[1,32], index: 2, kind: input, shape index: {}]   ;;  %s5673_s3 = inlined_call_operand.vmem [shape: f32[2,280,32], index: 3, kind: output, shape index: {}]  }
   0x1   :  { %v238_v0 = vld [vmem:[%s5670_s1] sm:$0xff]  ;;  %v239_v1 = vld [vmem:[%s5670_s1 + $0x8] sm:$0x1]  ;;  %vm3933_vm3 = vmpackc.low %vm920_vm0, %vm3944_vm2 }
   0x2   :  { %v3932_v2 = vpack.c.bf16 %v239_v1, %v238_v0  ;;  %v14_v3 = vld [vmem:[%s5671_s0] sm:$0xff]  ;;  %v15_v5 = vld [vmem:[%s5671_s0 + $0x8] sm:$0xff]  ;;  %v16_v7 = vld [vmem:[%s5671_s0 + $0x10] sm:$0xff] }
   0x3   :  { %v126_v4 = vld [vmem:[%s5671_s0 + $0x380] sm:$0xff]  ;;  %3596 = vmatprep.mubr.msk.f32.mxu0 %vm247_vm1, %v14_v3  ;;  %v127_v6 = vld [vmem:[%s5671_s0 + $0x388] sm:$0xff]  ;;  %v128_v8 = vld [vmem:[%s5671_s0 + $0x390] sm:$0xff] }
   0x4   :  { %3764 = vmatprep.mubr.msk.f32.mxu1 %vm247_vm1, %v126_v4  ;;  %3934 = vmatprep.subr.msk.bf16.mxu0 %vm3933_vm3, %v3932_v2  ;;  %v17_v9 = vld [vmem:[%s5671_s0 + $0x18] sm:$0xff]  ;;  %v18_v11 = vld [vmem:[%s5671_s0 + $0x20] sm:$0xff]  ;;  %v19_v13 = vld [vmem:[%s5671_s0 + $0x28] sm:$0xff] }
   0x5   :  { %3938 = vmatprep.subr.msk.bf16.mxu1 %vm3933_vm3, %v3932_v2  ;;  %3937 = vmatpush3.bf16.msk.msra.mxu0 %vm3933_vm3, %v3932_v2  ;;  %v129_v10 = vld [vmem:[%s5671_s0 + $0x398] sm:$0xff]  ;;  %v130_v12 = vld [vmem:[%s5671_s0 + $0x3a0] sm:$0xff]  ;;  %v131_v14 = vld [vmem:[%s5671_s0 + $0x3a8] sm:$0xff] }
   0x6   :  { %3939 = vmatpush3.bf16.msk.msra.mxu1 %vm3933_vm3, %v3932_v2  ;;  %v20_v15 = vld [vmem:[%s5671_s0 + $0x30] sm:$0xff]  ;;  %v21_v17 = vld [vmem:[%s5671_s0 + $0x38] sm:$0xff]  ;;  %v22_v19 = vld [vmem:[%s5671_s0 + $0x40] sm:$0xff] }
   0x7   :  { %v132_v16 = vld [vmem:[%s5671_s0 + $0x3b0] sm:$0xff]  ;;  %v133_v18 = vld [vmem:[%s5671_s0 + $0x3b8] sm:$0xff]  ;;  %v134_v20 = vld [vmem:[%s5671_s0 + $0x3c0] sm:$0xff] }
   0x8   :  { %3597 = vmatmul.mubr.msk.f32.vlgmr.msra.gmra.mrb[0].mxu0 %vm247_vm1, %v15_v5  ;;  %v23_v21 = vld [vmem:[%s5671_s0 + $0x48] sm:$0xff]  ;;  %v24_v23 = vld [vmem:[%s5671_s0 + $0x50] sm:$0xff]  ;;  %v25_v25 = vld [vmem:[%s5671_s0 + $0x58] sm:$0xff] }
   0x9   :  { %3765 = vmatmul.mubr.msk.f32.vlgmr.msra.gmra.mrb[0].mxu1 %vm247_vm1, %v127_v6  ;;  %3599 = vmatprep.mubr.msk.f32.mxu0 %vm247_vm1, %v16_v7  ;;  %v135_v22 = vld [vmem:[%s5671_s0 + $0x3c8] sm:$0xff]  ;;  %v136_v24 = vld [vmem:[%s5671_s0 + $0x3d0] sm:$0xff]  ;;  %v137_v26 = vld [vmem:[%s5671_s0 + $0x3d8] sm:$0xff] }
   0xa   :  { %3767 = vmatprep.mubr.msk.f32.mxu1 %vm247_vm1, %v128_v8  ;;  %v26_v27 = vld [vmem:[%s5671_s0 + $0x60] sm:$0xff]  ;;  %v27_v29 = vld [vmem:[%s5671_s0 + $0x68] sm:$0xff]  ;;  %v28_v31 = vld [vmem:[%s5671_s0 + $0x70] sm:$0xff] }
   0xb   :  { %v138_v28 = vld [vmem:[%s5671_s0 + $0x3e0] sm:$0xff]  ;;  %v139_v30 = vld [vmem:[%s5671_s0 + $0x3e8] sm:$0xff]  ;;  %v140_v32 = vld [vmem:[%s5671_s0 + $0x3f0] sm:$0xff] }
   0xc   :  { %3600 = vmatmul.mubr.msk.f32.gmra.mrb[2].mxu0 %vm247_vm1, %v17_v9  ;;  %v29_v33 = vld [vmem:[%s5671_s0 + $0x78] sm:$0xff]  ;;  %v30_v35 = vld [vmem:[%s5671_s0 + $0x80] sm:$0xff]  ;;  %v31_v37 = vld [vmem:[%s5671_s0 + $0x88] sm:$0xff] }
   0xd   :  { %3768 = vmatmul.mubr.msk.f32.gmra.mrb[2].mxu1 %vm247_vm1, %v129_v10  ;;  %3602 = vmatprep.mubr.msk.f32.mxu0 %vm247_vm1, %v18_v11  ;;  %v141_v34 = vld [vmem:[%s5671_s0 + $0x3f8] sm:$0xff]  ;;  %v142_v36 = vld [vmem:[%s5671_s0 + $0x400] sm:$0xff]  ;;  %v143_v38 = vld [vmem:[%s5671_s0 + $0x408] sm:$0xff] }
   0xe   :  { %3770 = vmatprep.mubr.msk.f32.mxu1 %vm247_vm1, %v130_v12  ;;  %v32_v39 = vld [vmem:[%s5671_s0 + $0x90] sm:$0xff]  ;;  %v33_v41 = vld [vmem:[%s5671_s0 + $0x98] sm:$0xff]  ;;  %v34_v43 = vld [vmem:[%s5671_s0 + $0xa0] sm:$0xff] }
   0xf   :  { %v144_v40 = vld [vmem:[%s5671_s0 + $0x410] sm:$0xff]  ;;  %v145_v42 = vld [vmem:[%s5671_s0 + $0x418] sm:$0xff]  ;;  %v146_v44 = vld [vmem:[%s5671_s0 + $0x420] sm:$0xff] }
  0x10   :  { %3603 = vmatmul.mubr.msk.f32.gmra.mrb[4].mxu0 %vm247_vm1, %v19_v13  ;;  %v35_v45 = vld [vmem:[%s5671_s0 + $0xa8] sm:$0xff]  ;;  %v36_v47 = vld [vmem:[%s5671_s0 + $0xb0] sm:$0xff]  ;;  %v37_v49 = vld [vmem:[%s5671_s0 + $0xb8] sm:$0xff] }
  0x11   :  { %3771 = vmatmul.mubr.msk.f32.gmra.mrb[4].mxu1 %vm247_vm1, %v131_v14  ;;  %3605 = vmatprep.mubr.msk.f32.mxu0 %vm247_vm1, %v20_v15  ;;  %v147_v46 = vld [vmem:[%s5671_s0 + $0x428] sm:$0xff]  ;;  %v148_v48 = vld [vmem:[%s5671_s0 + $0x430] sm:$0xff]  ;;  %v149_v50 = vld [vmem:[%s5671_s0 + $0x438] sm:$0xff] }
  0x12   :  { %3773 = vmatprep.mubr.msk.f32.mxu1 %vm247_vm1, %v132_v16  ;;  %v38_v51 = vld [vmem:[%s5671_s0 + $0xc0] sm:$0xff]  ;;  %v39_v53 = vld [vmem:[%s5671_s0 + $0xc8] sm:$0xff]  ;;  %v40_v55 = vld [vmem:[%s5671_s0 + $0xd0] sm:$0xff] }
  0x13   :  { %v150_v52 = vld [vmem:[%s5671_s0 + $0x440] sm:$0xff]  ;;  %v151_v54 = vld [vmem:[%s5671_s0 + $0x448] sm:$0xff]  ;;  %v152_v56 = vld [vmem:[%s5671_s0 + $0x450] sm:$0xff] }
  0x14   :  { %3606 = vmatmul.mubr.msk.f32.gmra.mrb[6].mxu0 %vm247_vm1, %v21_v17  ;;  %v41_v57 = vld [vmem:[%s5671_s0 + $0xd8] sm:$0xff]  ;;  %v42_v59 = vld [vmem:[%s5671_s0 + $0xe0] sm:$0xff]  ;;  %v43_v61 = vld [vmem:[%s5671_s0 + $0xe8] sm:$0xff] }
  0x15   :  { %3774 = vmatmul.mubr.msk.f32.gmra.mrb[6].mxu1 %vm247_vm1, %v133_v18  ;;  %3608 = vmatprep.mubr.msk.f32.mxu0 %vm247_vm1, %v22_v19  ;;  %v153_v58 = vld [vmem:[%s5671_s0 + $0x458] sm:$0xff]  ;;  %v154_v60 = vld [vmem:[%s5671_s0 + $0x460] sm:$0xff]  ;;  %v155_v62 = vld [vmem:[%s5671_s0 + $0x468] sm:$0xff] }
  0x16   :  { %3776 = vmatprep.mubr.msk.f32.mxu1 %vm247_vm1, %v134_v20  ;;  %v44_v63 = vld [vmem:[%s5671_s0 + $0xf0] sm:$0xff]  ;;  %v45_v1 = vld [vmem:[%s5671_s0 + $0xf8] sm:$0xff]  ;;  %v46_v3 = vld [vmem:[%s5671_s0 + $0x100] sm:$0xff] }
  0x17   :  { %v156_v0 = vld [vmem:[%s5671_s0 + $0x470] sm:$0xff]  ;;  %v157_v2 = vld [vmem:[%s5671_s0 + $0x478] sm:$0xff]  ;;  %v158_v4 = vld [vmem:[%s5671_s0 + $0x480] sm:$0xff] }
  0x18   :  { %3609 = vmatmul.mubr.msk.f32.gmra.mrb[8].mxu0 %vm247_vm1, %v23_v21  ;;  %v47_v5 = vld [vmem:[%s5671_s0 + $0x108] sm:$0xff]  ;;  %v48_v7 = vld [vmem:[%s5671_s0 + $0x110] sm:$0xff]  ;;  %v49_v9 = vld [vmem:[%s5671_s0 + $0x118] sm:$0xff] }
  0x19   :  { %3777 = vmatmul.mubr.msk.f32.gmra.mrb[8].mxu1 %vm247_vm1, %v135_v22  ;;  %3611 = vmatprep.mubr.msk.f32.mxu0 %vm247_vm1, %v24_v23  ;;  %v159_v6 = vld [vmem:[%s5671_s0 + $0x488] sm:$0xff]  ;;  %v160_v8 = vld [vmem:[%s5671_s0 + $0x490] sm:$0xff]  ;;  %v161_v10 = vld [vmem:[%s5671_s0 + $0x498] sm:$0xff] }
  0x1a   :  { %3779 = vmatprep.mubr.msk.f32.mxu1 %vm247_vm1, %v136_v24  ;;  %v50_v11 = vld [vmem:[%s5671_s0 + $0x120] sm:$0xff]  ;;  %v51_v13 = vld [vmem:[%s5671_s0 + $0x128] sm:$0xff]  ;;  %v52_v15 = vld [vmem:[%s5671_s0 + $0x130] sm:$0xff] }
  0x1b   :  { %v162_v12 = vld [vmem:[%s5671_s0 + $0x4a0] sm:$0xff]  ;;  %v163_v14 = vld [vmem:[%s5671_s0 + $0x4a8] sm:$0xff]  ;;  %v164_v16 = vld [vmem:[%s5671_s0 + $0x4b0] sm:$0xff] }
  0x1c   :  { %3612 = vmatmul.mubr.msk.f32.gmra.mrb[10].mxu0 %vm247_vm1, %v25_v25  ;;  %v53_v17 = vld [vmem:[%s5671_s0 + $0x138] sm:$0xff]  ;;  %v54_v19 = vld [vmem:[%s5671_s0 + $0x140] sm:$0xff]  ;;  %v55_v21 = vld [vmem:[%s5671_s0 + $0x148] sm:$0xff] }
  0x1d   :  { %3780 = vmatmul.mubr.msk.f32.gmra.mrb[10].mxu1 %vm247_vm1, %v137_v26  ;;  %3614 = vmatprep.mubr.msk.f32.mxu0 %vm247_vm1, %v26_v27  ;;  %v165_v18 = vld [vmem:[%s5671_s0 + $0x4b8] sm:$0xff]  ;;  %v166_v20 = vld [vmem:[%s5671_s0 + $0x4c0] sm:$0xff]  ;;  %v167_v22 = vld [vmem:[%s5671_s0 + $0x4c8] sm:$0xff] }
  0x1e   :  { %3782 = vmatprep.mubr.msk.f32.mxu1 %vm247_vm1, %v138_v28  ;;  %v56_v23 = vld [vmem:[%s5671_s0 + $0x150] sm:$0xff]  ;;  %v57_v25 = vld [vmem:[%s5671_s0 + $0x158] sm:$0xff]  ;;  %v58_v27 = vld [vmem:[%s5671_s0 + $0x160] sm:$0xff] }
  0x1f   :  { %v168_v24 = vld [vmem:[%s5671_s0 + $0x4d0] sm:$0xff]  ;;  %v169_v26 = vld [vmem:[%s5671_s0 + $0x4d8] sm:$0xff]  ;;  %v170_v28 = vld [vmem:[%s5671_s0 + $0x4e0] sm:$0xff] }
  0x20   :  { %3615 = vmatmul.mubr.msk.f32.gmra.mrb[12].mxu0 %vm247_vm1, %v27_v29  ;;  %v59_v29 = vld [vmem:[%s5671_s0 + $0x168] sm:$0xff] }
  0x21   :  { %3783 = vmatmul.mubr.msk.f32.gmra.mrb[12].mxu1 %vm247_vm1, %v139_v30  ;;  %3617 = vmatprep.mubr.msk.f32.mxu0 %vm247_vm1, %v28_v31  ;;  %v171_v30 = vld [vmem:[%s5671_s0 + $0x4e8] sm:$0xff]  ;;  %v60_v31 = vld [vmem:[%s5671_s0 + $0x170] sm:$0xff] }
  0x22   :  { %3785 = vmatprep.mubr.msk.f32.mxu1 %vm247_vm1, %v140_v32  ;;  %v172_v32 = vld [vmem:[%s5671_s0 + $0x4f0] sm:$0xff] }
  0x24   :  { %3618 = vmatmul.mubr.msk.f32.gmra.mrb[14].mxu0 %vm247_vm1, %v29_v33  ;;  %v61_v33 = vld [vmem:[%s5671_s0 + $0x178] sm:$0xff] }
  0x25   :  { %3786 = vmatmul.mubr.msk.f32.gmra.mrb[14].mxu1 %vm247_vm1, %v141_v34  ;;  %3620 = vmatprep.mubr.msk.f32.mxu0 %vm247_vm1, %v30_v35  ;;  %v173_v34 = vld [vmem:[%s5671_s0 + $0x4f8] sm:$0xff]  ;;  %v62_v35 = vld [vmem:[%s5671_s0 + $0x180] sm:$0xff] }
  0x26   :  { %3788 = vmatprep.mubr.msk.f32.mxu1 %vm247_vm1, %v142_v36  ;;  %v174_v36 = vld [vmem:[%s5671_s0 + $0x500] sm:$0xff] }
  0x28   :  { %3621 = vmatmul.mubr.msk.f32.gmra.mrb[16].mxu0 %vm247_vm1, %v31_v37  ;;  %v63_v37 = vld [vmem:[%s5671_s0 + $0x188] sm:$0xff] }
  0x29   :  { %3789 = vmatmul.mubr.msk.f32.gmra.mrb[16].mxu1 %vm247_vm1, %v143_v38  ;;  %3623 = vmatprep.mubr.msk.f32.mxu0 %vm247_vm1, %v32_v39  ;;  %v175_v38 = vld [vmem:[%s5671_s0 + $0x508] sm:$0xff]  ;;  %v64_v39 = vld [vmem:[%s5671_s0 + $0x190] sm:$0xff] }
  0x2a   :  { %3791 = vmatprep.mubr.msk.f32.mxu1 %vm247_vm1, %v144_v40  ;;  %v176_v40 = vld [vmem:[%s5671_s0 + $0x510] sm:$0xff] }
  0x2c   :  { %3624 = vmatmul.mubr.msk.f32.gmra.mrb[18].mxu0 %vm247_vm1, %v33_v41  ;;  %v65_v41 = vld [vmem:[%s5671_s0 + $0x198] sm:$0xff] }
  0x2d   :  { %3792 = vmatmul.mubr.msk.f32.gmra.mrb[18].mxu1 %vm247_vm1, %v145_v42  ;;  %3626 = vmatprep.mubr.msk.f32.mxu0 %vm247_vm1, %v34_v43  ;;  %v177_v42 = vld [vmem:[%s5671_s0 + $0x518] sm:$0xff]  ;;  %v66_v43 = vld [vmem:[%s5671_s0 + $0x1a0] sm:$0xff] }
  0x2e   :  { %3794 = vmatprep.mubr.msk.f32.mxu1 %vm247_vm1, %v146_v44  ;;  %v178_v44 = vld [vmem:[%s5671_s0 + $0x520] sm:$0xff] }
  0x30   :  { %3627 = vmatmul.mubr.msk.f32.gmra.mrb[20].mxu0 %vm247_vm1, %v35_v45  ;;  %v67_v45 = vld [vmem:[%s5671_s0 + $0x1a8] sm:$0xff] }
  0x31   :  { %3795 = vmatmul.mubr.msk.f32.gmra.mrb[20].mxu1 %vm247_vm1, %v147_v46  ;;  %3629 = vmatprep.mubr.msk.f32.mxu0 %vm247_vm1, %v36_v47  ;;  %v179_v46 = vld [vmem:[%s5671_s0 + $0x528] sm:$0xff]  ;;  %v68_v47 = vld [vmem:[%s5671_s0 + $0x1b0] sm:$0xff] }
  0x32   :  { %3797 = vmatprep.mubr.msk.f32.mxu1 %vm247_vm1, %v148_v48  ;;  %v180_v48 = vld [vmem:[%s5671_s0 + $0x530] sm:$0xff] }
  0x34   :  { %3630 = vmatmul.mubr.msk.f32.gmra.mrb[22].mxu0 %vm247_vm1, %v37_v49  ;;  %v69_v49 = vld [vmem:[%s5671_s0 + $0x1b8] sm:$0xff] }
  0x35   :  { %3798 = vmatmul.mubr.msk.f32.gmra.mrb[22].mxu1 %vm247_vm1, %v149_v50  ;;  %3632 = vmatprep.mubr.msk.f32.mxu0 %vm247_vm1, %v38_v51  ;;  %v181_v50 = vld [vmem:[%s5671_s0 + $0x538] sm:$0xff]  ;;  %v70_v51 = vld [vmem:[%s5671_s0 + $0x1c0] sm:$0xff] }
  0x36   :  { %3800 = vmatprep.mubr.msk.f32.mxu1 %vm247_vm1, %v150_v52  ;;  %v182_v52 = vld [vmem:[%s5671_s0 + $0x540] sm:$0xff] }
  0x38   :  { %3633 = vmatmul.mubr.msk.f32.gmra.mrb[24].mxu0 %vm247_vm1, %v39_v53  ;;  %v71_v53 = vld [vmem:[%s5671_s0 + $0x1c8] sm:$0xff] }
  0x39   :  { %3801 = vmatmul.mubr.msk.f32.gmra.mrb[24].mxu1 %vm247_vm1, %v151_v54  ;;  %3635 = vmatprep.mubr.msk.f32.mxu0 %vm247_vm1, %v40_v55  ;;  %v183_v54 = vld [vmem:[%s5671_s0 + $0x548] sm:$0xff]  ;;  %v72_v55 = vld [vmem:[%s5671_s0 + $0x1d0] sm:$0xff] }
  0x3a   :  { %3803 = vmatprep.mubr.msk.f32.mxu1 %vm247_vm1, %v152_v56  ;;  %v184_v56 = vld [vmem:[%s5671_s0 + $0x550] sm:$0xff] }
  0x3c   :  { %3636 = vmatmul.mubr.msk.f32.gmra.mrb[26].mxu0 %vm247_vm1, %v41_v57  ;;  %v73_v57 = vld [vmem:[%s5671_s0 + $0x1d8] sm:$0xff] }
  0x3d   :  { %3804 = vmatmul.mubr.msk.f32.gmra.mrb[26].mxu1 %vm247_vm1, %v153_v58  ;;  %3638 = vmatprep.mubr.msk.f32.mxu0 %vm247_vm1, %v42_v59  ;;  %v185_v58 = vld [vmem:[%s5671_s0 + $0x558] sm:$0xff]  ;;  %v74_v59 = vld [vmem:[%s5671_s0 + $0x1e0] sm:$0xff] }
  0x3e   :  { %3806 = vmatprep.mubr.msk.f32.mxu1 %vm247_vm1, %v154_v60  ;;  %v186_v60 = vld [vmem:[%s5671_s0 + $0x560] sm:$0xff] }
  0x40   :  { %3639 = vmatmul.mubr.msk.f32.gmra.mrb[28].mxu0 %vm247_vm1, %v43_v61  ;;  %v75_v61 = vld [vmem:[%s5671_s0 + $0x1e8] sm:$0xff] }
  0x41   :  { %3807 = vmatmul.mubr.msk.f32.gmra.mrb[28].mxu1 %vm247_vm1, %v155_v62  ;;  %3641 = vmatprep.mubr.msk.f32.mxu0 %vm247_vm1, %v44_v63  ;;  %v187_v62 = vld [vmem:[%s5671_s0 + $0x568] sm:$0xff]  ;;  %v76_v63 = vld [vmem:[%s5671_s0 + $0x1f0] sm:$0xff] }
  0x42   :  { %3809 = vmatprep.mubr.msk.f32.mxu1 %vm247_vm1, %v156_v0  ;;  %v188_v0 = vld [vmem:[%s5671_s0 + $0x570] sm:$0xff] }
  0x44   :  { %3642 = vmatmul.mubr.msk.f32.gmra.mrb[30].mxu0 %vm247_vm1, %v45_v1  ;;  %v77_v1 = vld [vmem:[%s5671_s0 + $0x1f8] sm:$0xff] }
  0x45   :  { %3810 = vmatmul.mubr.msk.f32.gmra.mrb[30].mxu1 %vm247_vm1, %v157_v2  ;;  %3644 = vmatprep.mubr.msk.f32.mxu0 %vm247_vm1, %v46_v3  ;;  %v189_v2 = vld [vmem:[%s5671_s0 + $0x578] sm:$0xff]  ;;  %v78_v3 = vld [vmem:[%s5671_s0 + $0x200] sm:$0xff] }
  0x46   :  { %3812 = vmatprep.mubr.msk.f32.mxu1 %vm247_vm1, %v158_v4  ;;  %v190_v4 = vld [vmem:[%s5671_s0 + $0x580] sm:$0xff] }
  0x48   :  { %3645 = vmatmul.mubr.msk.f32.gmra.mrb[32].mxu0 %vm247_vm1, %v47_v5  ;;  %v79_v5 = vld [vmem:[%s5671_s0 + $0x208] sm:$0xff] }
  0x49   :  { %3813 = vmatmul.mubr.msk.f32.gmra.mrb[32].mxu1 %vm247_vm1, %v159_v6  ;;  %3647 = vmatprep.mubr.msk.f32.mxu0 %vm247_vm1, %v48_v7  ;;  %v191_v6 = vld [vmem:[%s5671_s0 + $0x588] sm:$0xff]  ;;  %v80_v7 = vld [vmem:[%s5671_s0 + $0x210] sm:$0xff] }
  0x4a   :  { %3815 = vmatprep.mubr.msk.f32.mxu1 %vm247_vm1, %v160_v8  ;;  %v192_v8 = vld [vmem:[%s5671_s0 + $0x590] sm:$0xff] }
  0x4c   :  { %3648 = vmatmul.mubr.msk.f32.gmra.mrb[34].mxu0 %vm247_vm1, %v49_v9  ;;  %v81_v9 = vld [vmem:[%s5671_s0 + $0x218] sm:$0xff] }
  0x4d   :  { %3816 = vmatmul.mubr.msk.f32.gmra.mrb[34].mxu1 %vm247_vm1, %v161_v10  ;;  %3650 = vmatprep.mubr.msk.f32.mxu0 %vm247_vm1, %v50_v11  ;;  %v193_v10 = vld [vmem:[%s5671_s0 + $0x598] sm:$0xff]  ;;  %v82_v11 = vld [vmem:[%s5671_s0 + $0x220] sm:$0xff] }
  0x4e   :  { %3818 = vmatprep.mubr.msk.f32.mxu1 %vm247_vm1, %v162_v12  ;;  %v194_v12 = vld [vmem:[%s5671_s0 + $0x5a0] sm:$0xff] }
  0x50   :  { %3651 = vmatmul.mubr.msk.f32.gmra.mrb[36].mxu0 %vm247_vm1, %v51_v13  ;;  %v83_v13 = vld [vmem:[%s5671_s0 + $0x228] sm:$0xff] }
  0x51   :  { %3819 = vmatmul.mubr.msk.f32.gmra.mrb[36].mxu1 %vm247_vm1, %v163_v14  ;;  %3653 = vmatprep.mubr.msk.f32.mxu0 %vm247_vm1, %v52_v15  ;;  %v195_v14 = vld [vmem:[%s5671_s0 + $0x5a8] sm:$0xff]  ;;  %v84_v15 = vld [vmem:[%s5671_s0 + $0x230] sm:$0xff] }
  0x52   :  { %3821 = vmatprep.mubr.msk.f32.mxu1 %vm247_vm1, %v164_v16  ;;  %v196_v16 = vld [vmem:[%s5671_s0 + $0x5b0] sm:$0xff] }
  0x54   :  { %3654 = vmatmul.mubr.msk.f32.gmra.mrb[38].mxu0 %vm247_vm1, %v53_v17  ;;  %v85_v17 = vld [vmem:[%s5671_s0 + $0x238] sm:$0xff] }
  0x55   :  { %3822 = vmatmul.mubr.msk.f32.gmra.mrb[38].mxu1 %vm247_vm1, %v165_v18  ;;  %3656 = vmatprep.mubr.msk.f32.mxu0 %vm247_vm1, %v54_v19  ;;  %v197_v18 = vld [vmem:[%s5671_s0 + $0x5b8] sm:$0xff]  ;;  %v86_v19 = vld [vmem:[%s5671_s0 + $0x240] sm:$0xff] }
  0x56   :  { %3824 = vmatprep.mubr.msk.f32.mxu1 %vm247_vm1, %v166_v20  ;;  %v198_v20 = vld [vmem:[%s5671_s0 + $0x5c0] sm:$0xff] }
  0x58   :  { %3657 = vmatmul.mubr.msk.f32.gmra.mrb[40].mxu0 %vm247_vm1, %v55_v21  ;;  %v87_v21 = vld [vmem:[%s5671_s0 + $0x248] sm:$0xff] }
  0x59   :  { %3825 = vmatmul.mubr.msk.f32.gmra.mrb[40].mxu1 %vm247_vm1, %v167_v22  ;;  %3659 = vmatprep.mubr.msk.f32.mxu0 %vm247_vm1, %v56_v23  ;;  %v199_v22 = vld [vmem:[%s5671_s0 + $0x5c8] sm:$0xff]  ;;  %v88_v23 = vld [vmem:[%s5671_s0 + $0x250] sm:$0xff] }
  0x5a   :  { %3827 = vmatprep.mubr.msk.f32.mxu1 %vm247_vm1, %v168_v24  ;;  %v200_v24 = vld [vmem:[%s5671_s0 + $0x5d0] sm:$0xff] }
  0x5c   :  { %3660 = vmatmul.mubr.msk.f32.gmra.mrb[42].mxu0 %vm247_vm1, %v57_v25  ;;  %v89_v25 = vld [vmem:[%s5671_s0 + $0x258] sm:$0xff] }
  0x5d   :  { %3828 = vmatmul.mubr.msk.f32.gmra.mrb[42].mxu1 %vm247_vm1, %v169_v26  ;;  %3662 = vmatprep.mubr.msk.f32.mxu0 %vm247_vm1, %v58_v27  ;;  %v201_v26 = vld [vmem:[%s5671_s0 + $0x5d8] sm:$0xff]  ;;  %v90_v27 = vld [vmem:[%s5671_s0 + $0x260] sm:$0xff] }
  0x5e   :  { %3830 = vmatprep.mubr.msk.f32.mxu1 %vm247_vm1, %v170_v28  ;;  %v202_v28 = vld [vmem:[%s5671_s0 + $0x5e0] sm:$0xff] }
  0x60   :  { %3663 = vmatmul.mubr.msk.f32.gmra.mrb[44].mxu0 %vm247_vm1, %v59_v29  ;;  %v91_v29 = vld [vmem:[%s5671_s0 + $0x268] sm:$0xff] }
  0x61   :  { %3831 = vmatmul.mubr.msk.f32.gmra.mrb[44].mxu1 %vm247_vm1, %v171_v30  ;;  %3665 = vmatprep.mubr.msk.f32.mxu0 %vm247_vm1, %v60_v31  ;;  %v203_v30 = vld [vmem:[%s5671_s0 + $0x5e8] sm:$0xff]  ;;  %v92_v31 = vld [vmem:[%s5671_s0 + $0x270] sm:$0xff] }
  0x62   :  { %3833 = vmatprep.mubr.msk.f32.mxu1 %vm247_vm1, %v172_v32  ;;  %v204_v32 = vld [vmem:[%s5671_s0 + $0x5f0] sm:$0xff] }
  0x64   :  { %3666 = vmatmul.mubr.msk.f32.gmra.mrb[46].mxu0 %vm247_vm1, %v61_v33  ;;  %v93_v33 = vld [vmem:[%s5671_s0 + $0x278] sm:$0xff] }
  0x65   :  { %3834 = vmatmul.mubr.msk.f32.gmra.mrb[46].mxu1 %vm247_vm1, %v173_v34  ;;  %3668 = vmatprep.mubr.msk.f32.mxu0 %vm247_vm1, %v62_v35  ;;  %v205_v34 = vld [vmem:[%s5671_s0 + $0x5f8] sm:$0xff]  ;;  %v94_v35 = vld [vmem:[%s5671_s0 + $0x280] sm:$0xff] }
  0x66   :  { %3836 = vmatprep.mubr.msk.f32.mxu1 %vm247_vm1, %v174_v36  ;;  %v206_v36 = vld [vmem:[%s5671_s0 + $0x600] sm:$0xff] }
  0x68   :  { %3669 = vmatmul.mubr.msk.f32.gmra.mrb[48].mxu0 %vm247_vm1, %v63_v37  ;;  %v95_v37 = vld [vmem:[%s5671_s0 + $0x288] sm:$0xff] }
  0x69   :  { %3837 = vmatmul.mubr.msk.f32.gmra.mrb[48].mxu1 %vm247_vm1, %v175_v38  ;;  %3671 = vmatprep.mubr.msk.f32.mxu0 %vm247_vm1, %v64_v39  ;;  %v207_v38 = vld [vmem:[%s5671_s0 + $0x608] sm:$0xff]  ;;  %v96_v39 = vld [vmem:[%s5671_s0 + $0x290] sm:$0xff] }
  0x6a   :  { %3839 = vmatprep.mubr.msk.f32.mxu1 %vm247_vm1, %v176_v40  ;;  %v208_v40 = vld [vmem:[%s5671_s0 + $0x610] sm:$0xff] }
  0x6c   :  { %3672 = vmatmul.mubr.msk.f32.gmra.mrb[50].mxu0 %vm247_vm1, %v65_v41  ;;  %v97_v41 = vld [vmem:[%s5671_s0 + $0x298] sm:$0xff] }
  0x6d   :  { %3840 = vmatmul.mubr.msk.f32.gmra.mrb[50].mxu1 %vm247_vm1, %v177_v42  ;;  %3674 = vmatprep.mubr.msk.f32.mxu0 %vm247_vm1, %v66_v43  ;;  %v209_v42 = vld [vmem:[%s5671_s0 + $0x618] sm:$0xff]  ;;  %v98_v43 = vld [vmem:[%s5671_s0 + $0x2a0] sm:$0xff] }
  0x6e   :  { %3842 = vmatprep.mubr.msk.f32.mxu1 %vm247_vm1, %v178_v44  ;;  %v210_v44 = vld [vmem:[%s5671_s0 + $0x620] sm:$0xff] }
  0x70   :  { %3675 = vmatmul.mubr.msk.f32.gmra.mrb[52].mxu0 %vm247_vm1, %v67_v45  ;;  %v99_v45 = vld [vmem:[%s5671_s0 + $0x2a8] sm:$0xff] }
  0x71   :  { %3843 = vmatmul.mubr.msk.f32.gmra.mrb[52].mxu1 %vm247_vm1, %v179_v46  ;;  %3677 = vmatprep.mubr.msk.f32.mxu0 %vm247_vm1, %v68_v47  ;;  %v211_v46 = vld [vmem:[%s5671_s0 + $0x628] sm:$0xff]  ;;  %v100_v47 = vld [vmem:[%s5671_s0 + $0x2b0] sm:$0xff] }
  0x72   :  { %3845 = vmatprep.mubr.msk.f32.mxu1 %vm247_vm1, %v180_v48  ;;  %v212_v48 = vld [vmem:[%s5671_s0 + $0x630] sm:$0xff] }
  0x74   :  { %3678 = vmatmul.mubr.msk.f32.gmra.mrb[54].mxu0 %vm247_vm1, %v69_v49  ;;  %v101_v49 = vld [vmem:[%s5671_s0 + $0x2b8] sm:$0xff] }
  0x75   :  { %3846 = vmatmul.mubr.msk.f32.gmra.mrb[54].mxu1 %vm247_vm1, %v181_v50  ;;  %3680 = vmatprep.mubr.msk.f32.mxu0 %vm247_vm1, %v70_v51  ;;  %v213_v50 = vld [vmem:[%s5671_s0 + $0x638] sm:$0xff]  ;;  %v102_v51 = vld [vmem:[%s5671_s0 + $0x2c0] sm:$0xff] }
  0x76   :  { %3848 = vmatprep.mubr.msk.f32.mxu1 %vm247_vm1, %v182_v52  ;;  %v214_v52 = vld [vmem:[%s5671_s0 + $0x640] sm:$0xff] }
  0x78   :  { %3681 = vmatmul.mubr.msk.f32.gmra.mrb[56].mxu0 %vm247_vm1, %v71_v53  ;;  %v103_v53 = vld [vmem:[%s5671_s0 + $0x2c8] sm:$0xff] }
  0x79   :  { %3849 = vmatmul.mubr.msk.f32.gmra.mrb[56].mxu1 %vm247_vm1, %v183_v54  ;;  %3683 = vmatprep.mubr.msk.f32.mxu0 %vm247_vm1, %v72_v55  ;;  %v215_v54 = vld [vmem:[%s5671_s0 + $0x648] sm:$0xff]  ;;  %v104_v55 = vld [vmem:[%s5671_s0 + $0x2d0] sm:$0xff] }
  0x7a   :  { %3851 = vmatprep.mubr.msk.f32.mxu1 %vm247_vm1, %v184_v56  ;;  %v216_v56 = vld [vmem:[%s5671_s0 + $0x650] sm:$0xff] }
  0x7c   :  { %3684 = vmatmul.mubr.msk.f32.gmra.mrb[58].mxu0 %vm247_vm1, %v73_v57  ;;  %v105_v57 = vld [vmem:[%s5671_s0 + $0x2d8] sm:$0xff] }
  0x7d   :  { %3852 = vmatmul.mubr.msk.f32.gmra.mrb[58].mxu1 %vm247_vm1, %v185_v58  ;;  %3686 = vmatprep.mubr.msk.f32.mxu0 %vm247_vm1, %v74_v59  ;;  %v217_v58 = vld [vmem:[%s5671_s0 + $0x658] sm:$0xff]  ;;  %v106_v59 = vld [vmem:[%s5671_s0 + $0x2e0] sm:$0xff] }
  0x7e   :  { %3854 = vmatprep.mubr.msk.f32.mxu1 %vm247_vm1, %v186_v60  ;;  %v218_v60 = vld [vmem:[%s5671_s0 + $0x660] sm:$0xff] }
  0x80   :  { %3687 = vmatmul.mubr.msk.f32.gmra.mrb[60].mxu0 %vm247_vm1, %v75_v61  ;;  %v107_v61 = vld [vmem:[%s5671_s0 + $0x2e8] sm:$0xff] }
  0x81   :  { %3855 = vmatmul.mubr.msk.f32.gmra.mrb[60].mxu1 %vm247_vm1, %v187_v62  ;;  %3689 = vmatprep.mubr.msk.f32.mxu0 %vm247_vm1, %v76_v63  ;;  %v219_v62 = vld [vmem:[%s5671_s0 + $0x668] sm:$0xff]  ;;  %v108_v63 = vld [vmem:[%s5671_s0 + $0x2f0] sm:$0xff] }
  0x82   :  { %3857 = vmatprep.mubr.msk.f32.mxu1 %vm247_vm1, %v188_v0  ;;  %v220_v0 = vld [vmem:[%s5671_s0 + $0x670] sm:$0xff] }
  0x84   :  { %3690 = vmatmul.mubr.msk.f32.gmra.mrb[62].mxu0 %vm247_vm1, %v77_v1  ;;  %v109_v1 = vld [vmem:[%s5671_s0 + $0x2f8] sm:$0xff] }
  0x85   :  { %3858 = vmatmul.mubr.msk.f32.gmra.mrb[62].mxu1 %vm247_vm1, %v189_v2  ;;  %3692 = vmatprep.mubr.msk.f32.mxu0 %vm247_vm1, %v78_v3  ;;  %v221_v2 = vld [vmem:[%s5671_s0 + $0x678] sm:$0xff]  ;;  %v110_v3 = vld [vmem:[%s5671_s0 + $0x300] sm:$0xff] }
  0x86   :  { %3860 = vmatprep.mubr.msk.f32.mxu1 %vm247_vm1, %v190_v4  ;;  %v222_v4 = vld [vmem:[%s5671_s0 + $0x680] sm:$0xff] }
  0x88   :  { %3693 = vmatmul.mubr.msk.f32.gmra.mrb[64].mxu0 %vm247_vm1, %v79_v5  ;;  %v111_v5 = vld [vmem:[%s5671_s0 + $0x308] sm:$0xff] }
  0x89   :  { %3861 = vmatmul.mubr.msk.f32.gmra.mrb[64].mxu1 %vm247_vm1, %v191_v6  ;;  %3695 = vmatprep.mubr.msk.f32.mxu0 %vm247_vm1, %v80_v7  ;;  %v223_v6 = vld [vmem:[%s5671_s0 + $0x688] sm:$0xff]  ;;  %v112_v7 = vld [vmem:[%s5671_s0 + $0x310] sm:$0xff] }
  0x8a   :  { %3863 = vmatprep.mubr.msk.f32.mxu1 %vm247_vm1, %v192_v8  ;;  %v224_v8 = vld [vmem:[%s5671_s0 + $0x690] sm:$0xff] }
  0x8c   :  { %3696 = vmatmul.mubr.msk.f32.gmra.mrb[66].mxu0 %vm247_vm1, %v81_v9  ;;  %v113_v9 = vld [vmem:[%s5671_s0 + $0x318] sm:$0xff] }
  0x8d   :  { %3864 = vmatmul.mubr.msk.f32.gmra.mrb[66].mxu1 %vm247_vm1, %v193_v10  ;;  %3698 = vmatprep.mubr.msk.f32.mxu0 %vm247_vm1, %v82_v11  ;;  %v225_v10 = vld [vmem:[%s5671_s0 + $0x698] sm:$0xff]  ;;  %v114_v11 = vld [vmem:[%s5671_s0 + $0x320] sm:$0xff] }
  0x8e   :  { %3866 = vmatprep.mubr.msk.f32.mxu1 %vm247_vm1, %v194_v12  ;;  %v226_v12 = vld [vmem:[%s5671_s0 + $0x6a0] sm:$0xff] }
  0x90   :  { %3699 = vmatmul.mubr.msk.f32.gmra.mrb[68].mxu0 %vm247_vm1, %v83_v13  ;;  %v115_v13 = vld [vmem:[%s5671_s0 + $0x328] sm:$0xff] }
  0x91   :  { %3867 = vmatmul.mubr.msk.f32.gmra.mrb[68].mxu1 %vm247_vm1, %v195_v14  ;;  %3701 = vmatprep.mubr.msk.f32.mxu0 %vm247_vm1, %v84_v15  ;;  %v227_v14 = vld [vmem:[%s5671_s0 + $0x6a8] sm:$0xff]  ;;  %v116_v15 = vld [vmem:[%s5671_s0 + $0x330] sm:$0xff] }
  0x92   :  { %3869 = vmatprep.mubr.msk.f32.mxu1 %vm247_vm1, %v196_v16  ;;  %v228_v16 = vld [vmem:[%s5671_s0 + $0x6b0] sm:$0xff] }
  0x94   :  { %3702 = vmatmul.mubr.msk.f32.gmra.mrb[70].mxu0 %vm247_vm1, %v85_v17  ;;  %v117_v17 = vld [vmem:[%s5671_s0 + $0x338] sm:$0xff] }
  0x95   :  { %3870 = vmatmul.mubr.msk.f32.gmra.mrb[70].mxu1 %vm247_vm1, %v197_v18  ;;  %3704 = vmatprep.mubr.msk.f32.mxu0 %vm247_vm1, %v86_v19  ;;  %v229_v18 = vld [vmem:[%s5671_s0 + $0x6b8] sm:$0xff]  ;;  %v118_v19 = vld [vmem:[%s5671_s0 + $0x340] sm:$0xff] }
  0x96   :  { %3872 = vmatprep.mubr.msk.f32.mxu1 %vm247_vm1, %v198_v20  ;;  %v230_v20 = vld [vmem:[%s5671_s0 + $0x6c0] sm:$0xff] }
  0x98   :  { %3705 = vmatmul.mubr.msk.f32.gmra.mrb[72].mxu0 %vm247_vm1, %v87_v21  ;;  %v119_v21 = vld [vmem:[%s5671_s0 + $0x348] sm:$0xff] }
  0x99   :  { %3873 = vmatmul.mubr.msk.f32.gmra.mrb[72].mxu1 %vm247_vm1, %v199_v22  ;;  %3707 = vmatprep.mubr.msk.f32.mxu0 %vm247_vm1, %v88_v23  ;;  %v231_v22 = vld [vmem:[%s5671_s0 + $0x6c8] sm:$0xff]  ;;  %v120_v23 = vld [vmem:[%s5671_s0 + $0x350] sm:$0xff] }
  0x9a   :  { %3875 = vmatprep.mubr.msk.f32.mxu1 %vm247_vm1, %v200_v24  ;;  %v232_v24 = vld [vmem:[%s5671_s0 + $0x6d0] sm:$0xff] }
  0x9c   :  { %3708 = vmatmul.mubr.msk.f32.gmra.mrb[74].mxu0 %vm247_vm1, %v89_v25  ;;  %v4829_v25 = vld [vmem:[%s5672_s2] ss:$0 sm:$0xff] }
  0x9d   :  { %3876 = vmatmul.mubr.msk.f32.gmra.mrb[74].mxu1 %vm247_vm1, %v201_v26  ;;  %3710 = vmatprep.mubr.msk.f32.mxu0 %vm247_vm1, %v90_v27  ;;  %v121_v26 = vld [vmem:[%s5671_s0 + $0x358] sm:$0xff] }
  0x9e   :  { %3878 = vmatprep.mubr.msk.f32.mxu1 %vm247_vm1, %v202_v28  ;;  %v233_v27 = vld [vmem:[%s5671_s0 + $0x6d8] sm:$0xff]  ;;  %v122_v28 = vld [vmem:[%s5671_s0 + $0x360] sm:$0xff] }
  0xa0   :  { %3711 = vmatmul.mubr.msk.f32.gmra.mrb[76].mxu0 %vm247_vm1, %v91_v29  ;;  %v234_v29 = vld [vmem:[%s5671_s0 + $0x6e0] sm:$0xff] }
  0xa1   :  { %3879 = vmatmul.mubr.msk.f32.gmra.mrb[76].mxu1 %vm247_vm1, %v203_v30  ;;  %3713 = vmatprep.mubr.msk.f32.mxu0 %vm247_vm1, %v92_v31 }
  0xa2   :  { %3881 = vmatprep.mubr.msk.f32.mxu1 %vm247_vm1, %v204_v32 }
  0xa4   :  { %3714 = vmatmul.mubr.msk.f32.gmra.mrb[78].mxu0 %vm247_vm1, %v93_v33 }
  0xa5   :  { %3882 = vmatmul.mubr.msk.f32.gmra.mrb[78].mxu1 %vm247_vm1, %v205_v34  ;;  %3716 = vmatprep.mubr.msk.f32.mxu0 %vm247_vm1, %v94_v35 }
  0xa6   :  { %3884 = vmatprep.mubr.msk.f32.mxu1 %vm247_vm1, %v206_v36 }
  0xa8   :  { %3717 = vmatmul.mubr.msk.f32.gmra.mrb[80].mxu0 %vm247_vm1, %v95_v37 }
  0xa9   :  { %3885 = vmatmul.mubr.msk.f32.gmra.mrb[80].mxu1 %vm247_vm1, %v207_v38  ;;  %3719 = vmatprep.mubr.msk.f32.mxu0 %vm247_vm1, %v96_v39  ;;  %v123_v38 = vld [vmem:[%s5671_s0 + $0x368] sm:$0xff] }
  0xaa   :  { %3887 = vmatprep.mubr.msk.f32.mxu1 %vm247_vm1, %v208_v40  ;;  %v235_v39 = vld [vmem:[%s5671_s0 + $0x6e8] sm:$0xff]  ;;  %v124_v40 = vld [vmem:[%s5671_s0 + $0x370] sm:$0xff] }
  0xac   :  { %3720 = vmatmul.mubr.msk.f32.gmra.mrb[82].mxu0 %vm247_vm1, %v97_v41  ;;  %v236_v41 = vld [vmem:[%s5671_s0 + $0x6f0] sm:$0xff] }
  0xad   :  { %3888 = vmatmul.mubr.msk.f32.gmra.mrb[82].mxu1 %vm247_vm1, %v209_v42  ;;  %3722 = vmatprep.mubr.msk.f32.mxu0 %vm247_vm1, %v98_v43 }
  0xae   :  { %3890 = vmatprep.mubr.msk.f32.mxu1 %vm247_vm1, %v210_v44 }
  0xb0   :  { %3723 = vmatmul.mubr.msk.f32.gmra.mrb[84].mxu0 %vm247_vm1, %v99_v45 }
  0xb1   :  { %3891 = vmatmul.mubr.msk.f32.gmra.mrb[84].mxu1 %vm247_vm1, %v211_v46  ;;  %3725 = vmatprep.mubr.msk.f32.mxu0 %vm247_vm1, %v100_v47 }
  0xb2   :  { %3893 = vmatprep.mubr.msk.f32.mxu1 %vm247_vm1, %v212_v48 }
  0xb4   :  { %3726 = vmatmul.mubr.msk.f32.gmra.mrb[86].mxu0 %vm247_vm1, %v101_v49 }
  0xb5   :  { %3894 = vmatmul.mubr.msk.f32.gmra.mrb[86].mxu1 %vm247_vm1, %v213_v50  ;;  %3728 = vmatprep.mubr.msk.f32.mxu0 %vm247_vm1, %v102_v51  ;;  %v125_v50 = vld [vmem:[%s5671_s0 + $0x378] sm:$0xff] }
  0xb6   :  { %3896 = vmatprep.mubr.msk.f32.mxu1 %vm247_vm1, %v214_v52  ;;  %v237_v51 = vld [vmem:[%s5671_s0 + $0x6f8] sm:$0xff] }
  0xb8   :  { %3729 = vmatmul.mubr.msk.f32.gmra.mrb[88].mxu0 %vm247_vm1, %v103_v53 }
  0xb9   :  { %3897 = vmatmul.mubr.msk.f32.gmra.mrb[88].mxu1 %vm247_vm1, %v215_v54  ;;  %3731 = vmatprep.mubr.msk.f32.mxu0 %vm247_vm1, %v104_v55 }
  0xba   :  { %3899 = vmatprep.mubr.msk.f32.mxu1 %vm247_vm1, %v216_v56 }
  0xbc   :  { %3732 = vmatmul.mubr.msk.f32.gmra.mrb[90].mxu0 %vm247_vm1, %v105_v57 }
  0xbd   :  { %3900 = vmatmul.mubr.msk.f32.gmra.mrb[90].mxu1 %vm247_vm1, %v217_v58  ;;  %3734 = vmatprep.mubr.msk.f32.mxu0 %vm247_vm1, %v106_v59 }
  0xbe   :  { %3902 = vmatprep.mubr.msk.f32.mxu1 %vm247_vm1, %v218_v60 }
  0xc0   :  { %3735 = vmatmul.mubr.msk.f32.gmra.mrb[92].mxu0 %vm247_vm1, %v107_v61 }
  0xc1   :  { %3903 = vmatmul.mubr.msk.f32.gmra.mrb[92].mxu1 %vm247_vm1, %v219_v62  ;;  %3737 = vmatprep.mubr.msk.f32.mxu0 %vm247_vm1, %v108_v63 }
  0xc2   :  { %3905 = vmatprep.mubr.msk.f32.mxu1 %vm247_vm1, %v220_v0 }
  0xc4   :  { %3738 = vmatmul.mubr.msk.f32.gmra.mrb[94].mxu0 %vm247_vm1, %v109_v1 }
  0xc5   :  { %3906 = vmatmul.mubr.msk.f32.gmra.mrb[94].mxu1 %vm247_vm1, %v221_v2  ;;  %3740 = vmatprep.mubr.msk.f32.mxu0 %vm247_vm1, %v110_v3  ;;  %v2949_v3 = vlaneseq }
  0xc6   :  { %3908 = vmatprep.mubr.msk.f32.mxu1 %vm247_vm1, %v222_v4 }
  0xc8   :  { %3741 = vmatmul.mubr.msk.f32.gmra.mrb[96].mxu0 %vm247_vm1, %v111_v5 }
  0xc9   :  { %3909 = vmatmul.mubr.msk.f32.gmra.mrb[96].mxu1 %vm247_vm1, %v223_v6  ;;  %3743 = vmatprep.mubr.msk.f32.mxu0 %vm247_vm1, %v112_v7 }
  0xca   :  { %3911 = vmatprep.mubr.msk.f32.mxu1 %vm247_vm1, %v224_v8 }
  0xcc   :  { %3744 = vmatmul.mubr.msk.f32.gmra.mrb[98].mxu0 %vm247_vm1, %v113_v9 }
  0xcd   :  { %3912 = vmatmul.mubr.msk.f32.gmra.mrb[98].mxu1 %vm247_vm1, %v225_v10  ;;  %3746 = vmatprep.mubr.msk.f32.mxu0 %vm247_vm1, %v114_v11 }
  0xce   :  { %3914 = vmatprep.mubr.msk.f32.mxu1 %vm247_vm1, %v226_v12 }
  0xd0   :  { %3747 = vmatmul.mubr.msk.f32.gmra.mrb[100].mxu0 %vm247_vm1, %v115_v13 }
  0xd1   :  { %3915 = vmatmul.mubr.msk.f32.gmra.mrb[100].mxu1 %vm247_vm1, %v227_v14  ;;  %3749 = vmatprep.mubr.msk.f32.mxu0 %vm247_vm1, %v116_v15  ;;  %v2950_v15 = vshrl.u32 %v2949_v3, 7 }
  0xd2   :  { %3917 = vmatprep.mubr.msk.f32.mxu1 %vm247_vm1, %v228_v16 }
  0xd4   :  { %3750 = vmatmul.mubr.msk.f32.gmra.mrb[102].mxu0 %vm247_vm1, %v117_v17 }
  0xd5   :  { %3918 = vmatmul.mubr.msk.f32.gmra.mrb[102].mxu1 %vm247_vm1, %v229_v18  ;;  %3752 = vmatprep.mubr.msk.f32.mxu0 %vm247_vm1, %v118_v19 }
  0xd6   :  { %3920 = vmatprep.mubr.msk.f32.mxu1 %vm247_vm1, %v230_v20 }
  0xd8   :  { %3753 = vmatmul.mubr.msk.f32.gmra.mrb[104].mxu0 %vm247_vm1, %v119_v21 }
  0xd9   :  { %3921 = vmatmul.mubr.msk.f32.gmra.mrb[104].mxu1 %vm247_vm1, %v231_v22  ;;  %3755 = vmatprep.mubr.msk.f32.mxu0 %vm247_vm1, %v120_v23 }
  0xda   :  { %3923 = vmatprep.mubr.msk.f32.mxu1 %vm247_vm1, %v232_v24 }
  0xdb   :  { %v3598_v30 = vpop.f32.mrb[0].mxu0 }
  0xdc   :  { %v3766_v31 = vpop.f32.mrb[0].mxu1  ;;  %v996_v32 = vadd.f32 %v3598_v30, %v4829_v25  ;;  %v990_v34 = vpop.f32.mrb[1].mxu0  ;;  %3756 = vmatmul.mubr.msk.f32.gmra.mrb[106].mxu0 %vm247_vm1, %v121_v26 }
  0xdd   :  { %v1556_v33 = vadd.f32 %v3766_v31, %v4829_v25  ;;  %v1550_v35 = vpop.f32.mrb[1].mxu1  ;;  %3924 = vmatmul.mubr.msk.f32.gmra.mrb[106].mxu1 %vm247_vm1, %v233_v27  ;;  %v991_v36 = vadd.f32 %v4829_v25, %v990_v34  ;;  %3758 = vmatprep.mubr.msk.f32.mxu0 %vm247_vm1, %v122_v28 }
  0xde   :  { %v1551_v37 = vadd.f32 %v4829_v25, %v1550_v35  ;;  %3926 = vmatprep.mubr.msk.f32.mxu1 %vm247_vm1, %v234_v29  ;;  %2111 = vst.msk [vmem:[#allocation2 + $0x8] sm:$0xff] %vm2109_vm4, %v996_v32 }
  0xdf   :  { %2223 = vst.msk [vmem:[#allocation2 + $0x388] sm:$0xff] %vm2109_vm4, %v1556_v33  ;;  %2110 = vst.msk [vmem:[#allocation2] sm:$0xff] %vm2109_vm4, %v991_v36  ;;  %v3601_v42 = vpop.f32.mrb[2].mxu0 }
  0xe0   :  { %2222 = vst.msk [vmem:[#allocation2 + $0x380] sm:$0xff] %vm2109_vm4, %v1551_v37  ;;  %v3769_v43 = vpop.f32.mrb[2].mxu1  ;;  %v1006_v44 = vadd.f32 %v3601_v42, %v4829_v25  ;;  %v1000_v46 = vpop.f32.mrb[3].mxu0  ;;  %3759 = vmatmul.mubr.msk.f32.gmra.mrb[108].mxu0 %vm247_vm1, %v123_v38  ;;  %v4915_v38 = vadd.s32 8, %v2950_v15 }
  0xe1   :  { %v1566_v45 = vadd.f32 %v3769_v43, %v4829_v25  ;;  %v1560_v47 = vpop.f32.mrb[3].mxu1  ;;  %3927 = vmatmul.mubr.msk.f32.gmra.mrb[108].mxu1 %vm247_vm1, %v235_v39  ;;  %v1001_v48 = vadd.f32 %v4829_v25, %v1000_v46  ;;  %3761 = vmatprep.mubr.msk.f32.mxu0 %vm247_vm1, %v124_v40 }
  0xe2   :  { %v1561_v49 = vadd.f32 %v4829_v25, %v1560_v47  ;;  %3929 = vmatprep.mubr.msk.f32.mxu1 %vm247_vm1, %v236_v41  ;;  %2113 = vst.msk [vmem:[#allocation2 + $0x18] sm:$0xff] %vm2109_vm4, %v1006_v44  ;;  %vm2953_vm5 = vcmp.lt.s32.totalorder %v4915_v38, 14 }
  0xe3   :  { %2225 = vst.msk [vmem:[#allocation2 + $0x398] sm:$0xff] %vm2109_vm4, %v1566_v45  ;;  %2112 = vst.msk [vmem:[#allocation2 + $0x10] sm:$0xff] %vm2109_vm4, %v1001_v48  ;;  %v3604_v52 = vpop.f32.mrb[4].mxu0 }
  0xe4   :  { %2224 = vst.msk [vmem:[#allocation2 + $0x390] sm:$0xff] %vm2109_vm4, %v1561_v49  ;;  %v3772_v53 = vpop.f32.mrb[4].mxu1  ;;  %v1016_v54 = vadd.f32 %v3604_v52, %v4829_v25  ;;  %v1010_v56 = vpop.f32.mrb[5].mxu0  ;;  %3762 = vmatmul.mubr.msk.f32.gmra.mrb[110].mxu0 %vm247_vm1, %v125_v50 }
  0xe5   :  { %v1576_v55 = vadd.f32 %v3772_v53, %v4829_v25  ;;  %v1570_v57 = vpop.f32.mrb[5].mxu1  ;;  %3930 = vmatmul.mubr.msk.f32.gmra.mrb[110].mxu1 %vm247_vm1, %v237_v51  ;;  %v1011_v58 = vadd.f32 %v4829_v25, %v1010_v56 }
  0xe6   :  { %v1571_v59 = vadd.f32 %v4829_v25, %v1570_v57  ;;  %2115 = vst.msk [vmem:[#allocation2 + $0x28] sm:$0xff] %vm2109_vm4, %v1016_v54  ;;  %v2334_v7 = vld [vmem:[#allocation2] ss:$2 sm:$0xff]  ;;  %v2558_v8 = vld [vmem:[#allocation2 + $0x1] ss:$2 sm:$0xff] }
  0xe7   :  { %2227 = vst.msk [vmem:[#allocation2 + $0x3a8] sm:$0xff] %vm2109_vm4, %v1576_v55  ;;  %2114 = vst.msk [vmem:[#allocation2 + $0x20] sm:$0xff] %vm2109_vm4, %v1011_v58  ;;  %v3607_v60 = vpop.f32.mrb[6].mxu0  ;;  %v2446_v13 = vld [vmem:[#allocation2 + $0x380] ss:$2 sm:$0xff]  ;;  %v2781_v22 = vmax.f32 %v2334_v7, %v2558_v8 }
  0xe8   :  { %2226 = vst.msk [vmem:[#allocation2 + $0x3a0] sm:$0xff] %vm2109_vm4, %v1571_v59  ;;  %v3775_v61 = vpop.f32.mrb[6].mxu1  ;;  %v1026_v62 = vadd.f32 %v3607_v60, %v4829_v25  ;;  %v1020_v0 = vpop.f32.mrb[7].mxu0  ;;  %v2670_v14 = vld [vmem:[#allocation2 + $0x381] ss:$2 sm:$0xff] }
  0xe9   :  { %v1586_v63 = vadd.f32 %v3775_v61, %v4829_v25  ;;  %v1580_v1 = vpop.f32.mrb[7].mxu1  ;;  %v1021_v2 = vadd.f32 %v4829_v25, %v1020_v0  ;;  %v2837_v29 = vmax.f32 %v2446_v13, %v2670_v14 }
  0xea   :  { %v1581_v4 = vadd.f32 %v4829_v25, %v1580_v1  ;;  %2117 = vst.msk [vmem:[#allocation2 + $0x38] sm:$0xff] %vm2109_vm4, %v1026_v62  ;;  %v2336_v18 = vld [vmem:[#allocation2 + $0x10] ss:$2 sm:$0xff]  ;;  %v2560_v23 = vld [vmem:[#allocation2 + $0x11] ss:$2 sm:$0xff] }
  0xeb   :  { %2229 = vst.msk [vmem:[#allocation2 + $0x3b8] sm:$0xff] %vm2109_vm4, %v1586_v63  ;;  %2116 = vst.msk [vmem:[#allocation2 + $0x30] sm:$0xff] %vm2109_vm4, %v1021_v2  ;;  %v3610_v5 = vpop.f32.mrb[8].mxu0  ;;  %v2448_v30 = vld [vmem:[#allocation2 + $0x390] ss:$2 sm:$0xff]  ;;  %v2782_v45 = vmax.f32 %v2336_v18, %v2560_v23 }
  0xec   :  { %2228 = vst.msk [vmem:[#allocation2 + $0x3b0] sm:$0xff] %vm2109_vm4, %v1581_v4  ;;  %v3778_v6 = vpop.f32.mrb[8].mxu1  ;;  %v1036_v9 = vadd.f32 %v3610_v5, %v4829_v25  ;;  %v1030_v11 = vpop.f32.mrb[9].mxu0  ;;  %v2672_v31 = vld [vmem:[#allocation2 + $0x391] ss:$2 sm:$0xff] }
  0xed   :  { %v1596_v10 = vadd.f32 %v3778_v6, %v4829_v25  ;;  %v1590_v12 = vpop.f32.mrb[9].mxu1  ;;  %v1031_v16 = vadd.f32 %v4829_v25, %v1030_v11  ;;  %v2838_v46 = vmax.f32 %v2448_v30, %v2672_v31 }
  0xee   :  { %v1591_v17 = vadd.f32 %v4829_v25, %v1590_v12  ;;  %v2338_v19 = vld [vmem:[#allocation2 + $0x20] ss:$2 sm:$0xff]  ;;  %v2562_v20 = vld [vmem:[#allocation2 + $0x21] ss:$2 sm:$0xff]  ;;  %2119 = vst.msk [vmem:[#allocation2 + $0x48] sm:$0xff] %vm2109_vm4, %v1036_v9 }
  0xef   :  { %v2450_v21 = vld [vmem:[#allocation2 + $0x3a0] ss:$2 sm:$0xff]  ;;  %2231 = vst.msk [vmem:[#allocation2 + $0x3c8] sm:$0xff] %vm2109_vm4, %v1596_v10  ;;  %v2783_v24 = vmax.f32 %v2338_v19, %v2562_v20  ;;  %v2674_v26 = vld [vmem:[#allocation2 + $0x3a1] ss:$2 sm:$0xff]  ;;  %2118 = vst.msk [vmem:[#allocation2 + $0x40] sm:$0xff] %vm2109_vm4, %v1031_v16 }
  0xf0   :  { %2230 = vst.msk [vmem:[#allocation2 + $0x3c0] sm:$0xff] %vm2109_vm4, %v1591_v17  ;;  %v3613_v27 = vpop.f32.mrb[10].mxu0  ;;  %v3781_v28 = vpop.f32.mrb[10].mxu1  ;;  %v2839_v32 = vmax.f32 %v2450_v21, %v2674_v26 }
  0xf1   :  { %v1046_v33 = vadd.f32 %v3613_v27, %v4829_v25  ;;  %v1606_v34 = vadd.f32 %v3781_v28, %v4829_v25  ;;  %v1040_v35 = vpop.f32.mrb[11].mxu0  ;;  %v1600_v36 = vpop.f32.mrb[11].mxu1  ;;  %v2893_v37 = vmax.f32 %v2781_v22, %v2783_v24 }
  0xf2   :  { %v1041_v39 = vadd.f32 %v4829_v25, %v1040_v35  ;;  %v1601_v40 = vadd.f32 %v4829_v25, %v1600_v36  ;;  %v2921_v41 = vmax.f32 %v2837_v29, %v2839_v32  ;;  %v2340_v42 = vld [vmem:[#allocation2 + $0x30] ss:$2 sm:$0xff]  ;;  %v2564_v43 = vld [vmem:[#allocation2 + $0x31] ss:$2 sm:$0xff] }
  0xf3   :  { %v2452_v44 = vld [vmem:[#allocation2 + $0x3b0] ss:$2 sm:$0xff]  ;;  %2121 = vst.msk [vmem:[#allocation2 + $0x58] sm:$0xff] %vm2109_vm4, %v1046_v33  ;;  %2233 = vst.msk [vmem:[#allocation2 + $0x3d8] sm:$0xff] %vm2109_vm4, %v1606_v34  ;;  %v2954_v47 = vmax.f32 %v2893_v37, 0.0  ;;  %v2784_v48 = vmax.f32 %v2340_v42, %v2564_v43  ;;  %v3616_v50 = vpop.f32.mrb[12].mxu0 }
  0xf4   :  { %v2676_v49 = vld [vmem:[#allocation2 + $0x3b1] ss:$2 sm:$0xff]  ;;  %2120 = vst.msk [vmem:[#allocation2 + $0x50] sm:$0xff] %vm2109_vm4, %v1041_v39  ;;  %2232 = vst.msk [vmem:[#allocation2 + $0x3d0] sm:$0xff] %vm2109_vm4, %v1601_v40  ;;  %v3784_v51 = vpop.f32.mrb[12].mxu1  ;;  %v2982_v52 = vmax.f32 %v2921_v41, 0.0  ;;  %v1056_v54 = vadd.f32 %v3616_v50, %v4829_v25 }
  0xf5   :  { %v2840_v53 = vmax.f32 %v2452_v44, %v2676_v49  ;;  %v1616_v55 = vadd.f32 %v3784_v51, %v4829_v25  ;;  %v1050_v56 = vpop.f32.mrb[13].mxu0  ;;  %v1610_v57 = vpop.f32.mrb[13].mxu1  ;;  %3080 = vst.msk [vmem:[%s5673_s3 + $0x18] sm:$0xff] %vm2109_vm4, %v2954_v47  ;;  %v2894_v58 = vmax.f32 %v2782_v45, %v2784_v48 }
  0xf6   :  { %v1051_v59 = vadd.f32 %v4829_v25, %v1050_v56  ;;  %v1611_v60 = vadd.f32 %v4829_v25, %v1610_v57  ;;  %3108 = vst.msk [vmem:[%s5673_s3 + $0x130] sm:$0xff] %vm2109_vm4, %v2982_v52  ;;  %2123 = vst.msk [vmem:[#allocation2 + $0x68] sm:$0xff] %vm2109_vm4, %v1056_v54  ;;  %v2342_v12 = vld [vmem:[#allocation2 + $0x40] ss:$2 sm:$0xff]  ;;  %v2566_v13 = vld [vmem:[#allocation2 + $0x41] ss:$2 sm:$0xff] }
  0xf7   :  { %v2922_v61 = vmax.f32 %v2838_v46, %v2840_v53  ;;  %2235 = vst.msk [vmem:[#allocation2 + $0x3e8] sm:$0xff] %vm2109_vm4, %v1616_v55  ;;  %v2955_v62 = vmax.f32 %v2894_v58, 0.0  ;;  %v3619_v63 = vpop.f32.mrb[14].mxu0  ;;  %v2454_v18 = vld [vmem:[#allocation2 + $0x3c0] ss:$2 sm:$0xff]  ;;  %v2785_v27 = vmax.f32 %v2342_v12, %v2566_v13 }
  0xf8   :  { %2122 = vst.msk [vmem:[#allocation2 + $0x60] sm:$0xff] %vm2109_vm4, %v1051_v59  ;;  %2234 = vst.msk [vmem:[#allocation2 + $0x3e0] sm:$0xff] %vm2109_vm4, %v1611_v60  ;;  %v3787_v0 = vpop.f32.mrb[14].mxu1  ;;  %v1066_v2 = vadd.f32 %v3619_v63, %v4829_v25  ;;  %v1060_v4 = vpop.f32.mrb[15].mxu0  ;;  %v2678_v19 = vld [vmem:[#allocation2 + $0x3c1] ss:$2 sm:$0xff] }
  0xf9   :  { %v2983_v1 = vmax.f32 %v2922_v61, 0.0  ;;  %v1626_v3 = vadd.f32 %v3787_v0, %v4829_v25  ;;  %v1620_v5 = vpop.f32.mrb[15].mxu1  ;;  %v3011_v6 = vsel %vm2953_vm5, %v2955_v62, 0.0  ;;  %v1061_v7 = vadd.f32 %v4829_v25, %v1060_v4 }
  0xfa   :  { %v1621_v8 = vadd.f32 %v4829_v25, %v1620_v5  ;;  %3081 = vst.msk [vmem:[%s5673_s3 + $0x20] sm:$0xff] %vm2109_vm4, %v3011_v6  ;;  %2125 = vst.msk [vmem:[#allocation2 + $0x78] sm:$0xff] %vm2109_vm4, %v1066_v2  ;;  %v2841_v33 = vmax.f32 %v2454_v18, %v2678_v19 }
  0xfb   :  { %v3039_v9 = vsel %vm2953_vm5, %v2983_v1, 0.0  ;;  %2237 = vst.msk [vmem:[#allocation2 + $0x3f8] sm:$0xff] %vm2109_vm4, %v1626_v3  ;;  %2124 = vst.msk [vmem:[#allocation2 + $0x70] sm:$0xff] %vm2109_vm4, %v1061_v7  ;;  %v3622_v10 = vpop.f32.mrb[16].mxu0  ;;  %v2344_v22 = vld [vmem:[#allocation2 + $0x50] ss:$2 sm:$0xff] }
  0xfc   :  { %3109 = vst.msk [vmem:[%s5673_s3 + $0x138] sm:$0xff] %vm2109_vm4, %v3039_v9  ;;  %2236 = vst.msk [vmem:[#allocation2 + $0x3f0] sm:$0xff] %vm2109_vm4, %v1621_v8  ;;  %v3790_v11 = vpop.f32.mrb[16].mxu1  ;;  %v1076_v14 = vadd.f32 %v3622_v10, %v4829_v25  ;;  %v1070_v16 = vpop.f32.mrb[17].mxu0  ;;  %v2568_v28 = vld [vmem:[#allocation2 + $0x51] ss:$2 sm:$0xff] }
  0xfd   :  { %v1636_v15 = vadd.f32 %v3790_v11, %v4829_v25  ;;  %v1630_v17 = vpop.f32.mrb[17].mxu1  ;;  %v1071_v20 = vadd.f32 %v4829_v25, %v1070_v16  ;;  %v2456_v34 = vld [vmem:[#allocation2 + $0x3d0] ss:$2 sm:$0xff]  ;;  %v2680_v35 = vld [vmem:[#allocation2 + $0x3d1] ss:$2 sm:$0xff]  ;;  %v2786_v49 = vmax.f32 %v2344_v22, %v2568_v28 }
  0xfe   :  { %v1631_v21 = vadd.f32 %v4829_v25, %v1630_v17  ;;  %2127 = vst.msk [vmem:[#allocation2 + $0x88] sm:$0xff] %vm2109_vm4, %v1076_v14  ;;  %v2842_v50 = vmax.f32 %v2456_v34, %v2680_v35 }
  0xff   :  { %v2346_v23 = vld [vmem:[#allocation2 + $0x60] ss:$2 sm:$0xff]  ;;  %v2570_v24 = vld [vmem:[#allocation2 + $0x61] ss:$2 sm:$0xff]  ;;  %2239 = vst.msk [vmem:[#allocation2 + $0x408] sm:$0xff] %vm2109_vm4, %v1636_v15  ;;  %2126 = vst.msk [vmem:[#allocation2 + $0x80] sm:$0xff] %vm2109_vm4, %v1071_v20 }
 0x100   :  { %v2458_v26 = vld [vmem:[#allocation2 + $0x3e0] ss:$2 sm:$0xff]  ;;  %v2787_v29 = vmax.f32 %v2346_v23, %v2570_v24  ;;  %v2682_v30 = vld [vmem:[#allocation2 + $0x3e1] ss:$2 sm:$0xff]  ;;  %2238 = vst.msk [vmem:[#allocation2 + $0x400] sm:$0xff] %vm2109_vm4, %v1631_v21  ;;  %v3625_v31 = vpop.f32.mrb[18].mxu0 }
 0x101   :  { %v3793_v32 = vpop.f32.mrb[18].mxu1  ;;  %v2843_v36 = vmax.f32 %v2458_v26, %v2682_v30  ;;  %v1086_v37 = vadd.f32 %v3625_v31, %v4829_v25  ;;  %v1080_v40 = vpop.f32.mrb[19].mxu0 }
 0x102   :  { %v1646_v39 = vadd.f32 %v3793_v32, %v4829_v25  ;;  %v1640_v41 = vpop.f32.mrb[19].mxu1  ;;  %v2895_v42 = vmax.f32 %v2785_v27, %v2787_v29  ;;  %v1081_v43 = vadd.f32 %v4829_v25, %v1080_v40  ;;  %v2348_v46 = vld [vmem:[#allocation2 + $0x70] ss:$2 sm:$0xff]  ;;  %v2572_v47 = vld [vmem:[#allocation2 + $0x71] ss:$2 sm:$0xff] }
 0x103   :  { %v1641_v44 = vadd.f32 %v4829_v25, %v1640_v41  ;;  %v2923_v45 = vmax.f32 %v2841_v33, %v2843_v36  ;;  %v2460_v48 = vld [vmem:[#allocation2 + $0x3f0] ss:$2 sm:$0xff]  ;;  %2129 = vst.msk [vmem:[#allocation2 + $0x98] sm:$0xff] %vm2109_vm4, %v1086_v37  ;;  %v2788_v52 = vmax.f32 %v2348_v46, %v2572_v47  ;;  %v2684_v53 = vld [vmem:[#allocation2 + $0x3f1] ss:$2 sm:$0xff]  ;;  %v3628_v54 = vpop.f32.mrb[20].mxu0 }
 0x104   :  { %2241 = vst.msk [vmem:[#allocation2 + $0x418] sm:$0xff] %vm2109_vm4, %v1646_v39  ;;  %v2956_v51 = vmax.f32 %v2895_v42, 0.0  ;;  %2128 = vst.msk [vmem:[#allocation2 + $0x90] sm:$0xff] %vm2109_vm4, %v1081_v43  ;;  %v3796_v55 = vpop.f32.mrb[20].mxu1  ;;  %v2844_v57 = vmax.f32 %v2460_v48, %v2684_v53  ;;  %v1096_v58 = vadd.f32 %v3628_v54, %v4829_v25  ;;  %v1090_v60 = vpop.f32.mrb[21].mxu0 }
 0x105   :  { %2240 = vst.msk [vmem:[#allocation2 + $0x410] sm:$0xff] %vm2109_vm4, %v1641_v44  ;;  %v2984_v56 = vmax.f32 %v2923_v45, 0.0  ;;  %v1656_v59 = vadd.f32 %v3796_v55, %v4829_v25  ;;  %v1650_v61 = vpop.f32.mrb[21].mxu1  ;;  %v2896_v62 = vmax.f32 %v2786_v49, %v2788_v52  ;;  %v1091_v63 = vadd.f32 %v4829_v25, %v1090_v60 }
 0x106   :  { %3082 = vst.msk [vmem:[%s5673_s3 + $0x28] sm:$0xff] %vm2109_vm4, %v2956_v51  ;;  %v1651_v0 = vadd.f32 %v4829_v25, %v1650_v61  ;;  %v2924_v1 = vmax.f32 %v2842_v50, %v2844_v57  ;;  %2131 = vst.msk [vmem:[#allocation2 + $0xa8] sm:$0xff] %vm2109_vm4, %v1096_v58  ;;  %v2350_v16 = vld [vmem:[#allocation2 + $0x80] ss:$2 sm:$0xff]  ;;  %v2574_v17 = vld [vmem:[#allocation2 + $0x81] ss:$2 sm:$0xff] }
 0x107   :  { %3110 = vst.msk [vmem:[%s5673_s3 + $0x140] sm:$0xff] %vm2109_vm4, %v2984_v56  ;;  %2243 = vst.msk [vmem:[#allocation2 + $0x428] sm:$0xff] %vm2109_vm4, %v1656_v59  ;;  %v2957_v2 = vmax.f32 %v2896_v62, 0.0  ;;  %v3631_v3 = vpop.f32.mrb[22].mxu0  ;;  %v2462_v22 = vld [vmem:[#allocation2 + $0x400] ss:$2 sm:$0xff]  ;;  %v2789_v31 = vmax.f32 %v2350_v16, %v2574_v17 }
 0x108   :  { %2130 = vst.msk [vmem:[#allocation2 + $0xa0] sm:$0xff] %vm2109_vm4, %v1091_v63  ;;  %2242 = vst.msk [vmem:[#allocation2 + $0x420] sm:$0xff] %vm2109_vm4, %v1651_v0  ;;  %v3799_v4 = vpop.f32.mrb[22].mxu1  ;;  %v2985_v5 = vmax.f32 %v2924_v1, 0.0  ;;  %v1106_v6 = vadd.f32 %v3631_v3, %v4829_v25  ;;  %v1100_v8 = vpop.f32.mrb[23].mxu0 }
 0x109   :  { %v1666_v7 = vadd.f32 %v3799_v4, %v4829_v25  ;;  %v1660_v9 = vpop.f32.mrb[23].mxu1  ;;  %v3013_v10 = vsel %vm2953_vm5, %v2957_v2, 0.0  ;;  %v1101_v11 = vadd.f32 %v4829_v25, %v1100_v8  ;;  %v2686_v23 = vld [vmem:[#allocation2 + $0x401] ss:$2 sm:$0xff] }
 0x10a   :  { %v1661_v12 = vadd.f32 %v4829_v25, %v1660_v9  ;;  %3083 = vst.msk [vmem:[%s5673_s3 + $0x30] sm:$0xff] %vm2109_vm4, %v3013_v10  ;;  %v3041_v13 = vsel %vm2953_vm5, %v2985_v5, 0.0  ;;  %2133 = vst.msk [vmem:[#allocation2 + $0xb8] sm:$0xff] %vm2109_vm4, %v1106_v6  ;;  %v2845_v37 = vmax.f32 %v2462_v22, %v2686_v23 }
 0x10b   :  { %2245 = vst.msk [vmem:[#allocation2 + $0x438] sm:$0xff] %vm2109_vm4, %v1666_v7  ;;  %3111 = vst.msk [vmem:[%s5673_s3 + $0x148] sm:$0xff] %vm2109_vm4, %v3041_v13  ;;  %v3634_v14 = vpop.f32.mrb[24].mxu0  ;;  %v2352_v27 = vld [vmem:[#allocation2 + $0x90] ss:$2 sm:$0xff] }
 0x10c   :  { %2132 = vst.msk [vmem:[#allocation2 + $0xb0] sm:$0xff] %vm2109_vm4, %v1101_v11  ;;  %2244 = vst.msk [vmem:[#allocation2 + $0x430] sm:$0xff] %vm2109_vm4, %v1661_v12  ;;  %v3802_v15 = vpop.f32.mrb[24].mxu1  ;;  %v1116_v18 = vadd.f32 %v3634_v14, %v4829_v25  ;;  %v1110_v20 = vpop.f32.mrb[25].mxu0  ;;  %v2576_v32 = vld [vmem:[#allocation2 + $0x91] ss:$2 sm:$0xff] }
 0x10d   :  { %v1676_v19 = vadd.f32 %v3802_v15, %v4829_v25  ;;  %v1670_v21 = vpop.f32.mrb[25].mxu1  ;;  %v1111_v24 = vadd.f32 %v4829_v25, %v1110_v20  ;;  %v2464_v39 = vld [vmem:[#allocation2 + $0x410] ss:$2 sm:$0xff]  ;;  %v2688_v40 = vld [vmem:[#allocation2 + $0x411] ss:$2 sm:$0xff]  ;;  %v2790_v53 = vmax.f32 %v2352_v27, %v2576_v32 }
 0x10e   :  { %v1671_v26 = vadd.f32 %v4829_v25, %v1670_v21  ;;  %2135 = vst.msk [vmem:[#allocation2 + $0xc8] sm:$0xff] %vm2109_vm4, %v1116_v18  ;;  %v2846_v54 = vmax.f32 %v2464_v39, %v2688_v40 }
 0x10f   :  { %v2354_v28 = vld [vmem:[#allocation2 + $0xa0] ss:$2 sm:$0xff]  ;;  %v2578_v29 = vld [vmem:[#allocation2 + $0xa1] ss:$2 sm:$0xff]  ;;  %2247 = vst.msk [vmem:[#allocation2 + $0x448] sm:$0xff] %vm2109_vm4, %v1676_v19  ;;  %2134 = vst.msk [vmem:[#allocation2 + $0xc0] sm:$0xff] %vm2109_vm4, %v1111_v24 }
 0x110   :  { %v2466_v30 = vld [vmem:[#allocation2 + $0x420] ss:$2 sm:$0xff]  ;;  %v2791_v33 = vmax.f32 %v2354_v28, %v2578_v29  ;;  %v2690_v34 = vld [vmem:[#allocation2 + $0x421] ss:$2 sm:$0xff]  ;;  %2246 = vst.msk [vmem:[#allocation2 + $0x440] sm:$0xff] %vm2109_vm4, %v1671_v26  ;;  %v3637_v35 = vpop.f32.mrb[26].mxu0 }
 0x111   :  { %v3805_v36 = vpop.f32.mrb[26].mxu1  ;;  %v2847_v41 = vmax.f32 %v2466_v30, %v2690_v34  ;;  %v1126_v42 = vadd.f32 %v3637_v35, %v4829_v25  ;;  %v1120_v44 = vpop.f32.mrb[27].mxu0 }
 0x112   :  { %v1686_v43 = vadd.f32 %v3805_v36, %v4829_v25  ;;  %v1680_v45 = vpop.f32.mrb[27].mxu1  ;;  %v2897_v46 = vmax.f32 %v2789_v31, %v2791_v33  ;;  %v1121_v47 = vadd.f32 %v4829_v25, %v1120_v44 }
 0x113   :  { %v1681_v48 = vadd.f32 %v4829_v25, %v1680_v45  ;;  %v2925_v49 = vmax.f32 %v2845_v37, %v2847_v41  ;;  %v2356_v50 = vld [vmem:[#allocation2 + $0xb0] ss:$2 sm:$0xff]  ;;  %v2580_v51 = vld [vmem:[#allocation2 + $0xb1] ss:$2 sm:$0xff]  ;;  %2137 = vst.msk [vmem:[#allocation2 + $0xd8] sm:$0xff] %vm2109_vm4, %v1126_v42  ;;  %v3640_v58 = vpop.f32.mrb[28].mxu0 }
 0x114   :  { %v2468_v52 = vld [vmem:[#allocation2 + $0x430] ss:$2 sm:$0xff]  ;;  %2249 = vst.msk [vmem:[#allocation2 + $0x458] sm:$0xff] %vm2109_vm4, %v1686_v43  ;;  %v2958_v55 = vmax.f32 %v2897_v46, 0.0  ;;  %v2792_v56 = vmax.f32 %v2356_v50, %v2580_v51  ;;  %v2692_v57 = vld [vmem:[#allocation2 + $0x431] ss:$2 sm:$0xff]  ;;  %v1136_v62 = vadd.f32 %v3640_v58, %v4829_v25 }
 0x115   :  { %2136 = vst.msk [vmem:[#allocation2 + $0xd0] sm:$0xff] %vm2109_vm4, %v1121_v47  ;;  %2248 = vst.msk [vmem:[#allocation2 + $0x450] sm:$0xff] %vm2109_vm4, %v1681_v48  ;;  %v3808_v59 = vpop.f32.mrb[28].mxu1  ;;  %v2986_v60 = vmax.f32 %v2925_v49, 0.0  ;;  %v2848_v61 = vmax.f32 %v2468_v52, %v2692_v57  ;;  %v1130_v0 = vpop.f32.mrb[29].mxu0 }
 0x116   :  { %v1696_v63 = vadd.f32 %v3808_v59, %v4829_v25  ;;  %v1690_v1 = vpop.f32.mrb[29].mxu1  ;;  %3084 = vst.msk [vmem:[%s5673_s3 + $0x38] sm:$0xff] %vm2109_vm4, %v2958_v55  ;;  %v2898_v2 = vmax.f32 %v2790_v53, %v2792_v56  ;;  %v1131_v3 = vadd.f32 %v4829_v25, %v1130_v0  ;;  %2139 = vst.msk [vmem:[#allocation2 + $0xe8] sm:$0xff] %vm2109_vm4, %v1136_v62  ;;  %v2358_v20 = vld [vmem:[#allocation2 + $0xc0] ss:$2 sm:$0xff] }
 0x117   :  { %v1691_v4 = vadd.f32 %v4829_v25, %v1690_v1  ;;  %3112 = vst.msk [vmem:[%s5673_s3 + $0x150] sm:$0xff] %vm2109_vm4, %v2986_v60  ;;  %v2926_v5 = vmax.f32 %v2846_v54, %v2848_v61  ;;  %v3643_v7 = vpop.f32.mrb[30].mxu0  ;;  %v2582_v21 = vld [vmem:[#allocation2 + $0xc1] ss:$2 sm:$0xff]  ;;  %v2470_v27 = vld [vmem:[#allocation2 + $0x440] ss:$2 sm:$0xff] }
 0x118   :  { %2251 = vst.msk [vmem:[#allocation2 + $0x468] sm:$0xff] %vm2109_vm4, %v1696_v63  ;;  %v2959_v6 = vmax.f32 %v2898_v2, 0.0  ;;  %2138 = vst.msk [vmem:[#allocation2 + $0xe0] sm:$0xff] %vm2109_vm4, %v1131_v3  ;;  %v3811_v8 = vpop.f32.mrb[30].mxu1  ;;  %v1146_v10 = vadd.f32 %v3643_v7, %v4829_v25  ;;  %v1140_v12 = vpop.f32.mrb[31].mxu0  ;;  %v2793_v35 = vmax.f32 %v2358_v20, %v2582_v21 }
 0x119   :  { %2250 = vst.msk [vmem:[#allocation2 + $0x460] sm:$0xff] %vm2109_vm4, %v1691_v4  ;;  %v2987_v9 = vmax.f32 %v2926_v5, 0.0  ;;  %v1706_v11 = vadd.f32 %v3811_v8, %v4829_v25  ;;  %v1700_v13 = vpop.f32.mrb[31].mxu1  ;;  %v1141_v15 = vadd.f32 %v4829_v25, %v1140_v12  ;;  %v2694_v28 = vld [vmem:[#allocation2 + $0x441] ss:$2 sm:$0xff] }
 0x11a   :  { %v3015_v14 = vsel %vm2953_vm5, %v2959_v6, 0.0  ;;  %v1701_v16 = vadd.f32 %v4829_v25, %v1700_v13  ;;  %2141 = vst.msk [vmem:[#allocation2 + $0xf8] sm:$0xff] %vm2109_vm4, %v1146_v10  ;;  %v2849_v42 = vmax.f32 %v2470_v27, %v2694_v28 }
 0x11b   :  { %3085 = vst.msk [vmem:[%s5673_s3 + $0x40] sm:$0xff] %vm2109_vm4, %v3015_v14  ;;  %v3043_v17 = vsel %vm2953_vm5, %v2987_v9, 0.0  ;;  %2253 = vst.msk [vmem:[#allocation2 + $0x478] sm:$0xff] %vm2109_vm4, %v1706_v11  ;;  %v3646_v18 = vpop.f32.mrb[32].mxu0 }
 0x11c   :  { %3113 = vst.msk [vmem:[%s5673_s3 + $0x158] sm:$0xff] %vm2109_vm4, %v3043_v17  ;;  %2140 = vst.msk [vmem:[#allocation2 + $0xf0] sm:$0xff] %vm2109_vm4, %v1141_v15  ;;  %v3814_v19 = vpop.f32.mrb[32].mxu1  ;;  %v1156_v22 = vadd.f32 %v3646_v18, %v4829_v25  ;;  %v1150_v24 = vpop.f32.mrb[33].mxu0  ;;  %v2360_v31 = vld [vmem:[#allocation2 + $0xd0] ss:$2 sm:$0xff] }
 0x11d   :  { %2252 = vst.msk [vmem:[#allocation2 + $0x470] sm:$0xff] %vm2109_vm4, %v1701_v16  ;;  %v1716_v23 = vadd.f32 %v3814_v19, %v4829_v25  ;;  %v1710_v26 = vpop.f32.mrb[33].mxu1  ;;  %v1151_v29 = vadd.f32 %v4829_v25, %v1150_v24  ;;  %v2584_v36 = vld [vmem:[#allocation2 + $0xd1] ss:$2 sm:$0xff]  ;;  %v2472_v43 = vld [vmem:[#allocation2 + $0x450] ss:$2 sm:$0xff] }
 0x11e   :  { %v1711_v30 = vadd.f32 %v4829_v25, %v1710_v26  ;;  %2143 = vst.msk [vmem:[#allocation2 + $0x108] sm:$0xff] %vm2109_vm4, %v1156_v22  ;;  %v2696_v44 = vld [vmem:[#allocation2 + $0x451] ss:$2 sm:$0xff]  ;;  %v2794_v57 = vmax.f32 %v2360_v31, %v2584_v36 }
 0x11f   :  { %v2362_v32 = vld [vmem:[#allocation2 + $0xe0] ss:$2 sm:$0xff]  ;;  %v2586_v33 = vld [vmem:[#allocation2 + $0xe1] ss:$2 sm:$0xff]  ;;  %2255 = vst.msk [vmem:[#allocation2 + $0x488] sm:$0xff] %vm2109_vm4, %v1716_v23  ;;  %2142 = vst.msk [vmem:[#allocation2 + $0x100] sm:$0xff] %vm2109_vm4, %v1151_v29  ;;  %v2850_v58 = vmax.f32 %v2472_v43, %v2696_v44 }
 0x120   :  { %v2474_v34 = vld [vmem:[#allocation2 + $0x460] ss:$2 sm:$0xff]  ;;  %v2795_v37 = vmax.f32 %v2362_v32, %v2586_v33  ;;  %v2698_v39 = vld [vmem:[#allocation2 + $0x461] ss:$2 sm:$0xff]  ;;  %2254 = vst.msk [vmem:[#allocation2 + $0x480] sm:$0xff] %vm2109_vm4, %v1711_v30  ;;  %v3649_v40 = vpop.f32.mrb[34].mxu0 }
 0x121   :  { %v3817_v41 = vpop.f32.mrb[34].mxu1  ;;  %v2851_v45 = vmax.f32 %v2474_v34, %v2698_v39  ;;  %v1166_v46 = vadd.f32 %v3649_v40, %v4829_v25  ;;  %v1160_v48 = vpop.f32.mrb[35].mxu0 }
 0x122   :  { %v1726_v47 = vadd.f32 %v3817_v41, %v4829_v25  ;;  %v1720_v49 = vpop.f32.mrb[35].mxu1  ;;  %v2899_v50 = vmax.f32 %v2793_v35, %v2795_v37  ;;  %v1161_v51 = vadd.f32 %v4829_v25, %v1160_v48 }
 0x123   :  { %v1721_v52 = vadd.f32 %v4829_v25, %v1720_v49  ;;  %v2927_v53 = vmax.f32 %v2849_v42, %v2851_v45  ;;  %v2364_v54 = vld [vmem:[#allocation2 + $0xf0] ss:$2 sm:$0xff]  ;;  %v2588_v55 = vld [vmem:[#allocation2 + $0xf1] ss:$2 sm:$0xff]  ;;  %2145 = vst.msk [vmem:[#allocation2 + $0x118] sm:$0xff] %vm2109_vm4, %v1166_v46  ;;  %v3652_v62 = vpop.f32.mrb[36].mxu0 }
 0x124   :  { %v2476_v56 = vld [vmem:[#allocation2 + $0x470] ss:$2 sm:$0xff]  ;;  %2257 = vst.msk [vmem:[#allocation2 + $0x498] sm:$0xff] %vm2109_vm4, %v1726_v47  ;;  %v2960_v59 = vmax.f32 %v2899_v50, 0.0  ;;  %v2796_v60 = vmax.f32 %v2364_v54, %v2588_v55  ;;  %v2700_v61 = vld [vmem:[#allocation2 + $0x471] ss:$2 sm:$0xff]  ;;  %v1176_v2 = vadd.f32 %v3652_v62, %v4829_v25 }
 0x125   :  { %2144 = vst.msk [vmem:[#allocation2 + $0x110] sm:$0xff] %vm2109_vm4, %v1161_v51  ;;  %2256 = vst.msk [vmem:[#allocation2 + $0x490] sm:$0xff] %vm2109_vm4, %v1721_v52  ;;  %v3820_v63 = vpop.f32.mrb[36].mxu1  ;;  %v2988_v0 = vmax.f32 %v2927_v53, 0.0  ;;  %v2852_v1 = vmax.f32 %v2476_v56, %v2700_v61  ;;  %v1170_v4 = vpop.f32.mrb[37].mxu0 }
 0x126   :  { %v1736_v3 = vadd.f32 %v3820_v63, %v4829_v25  ;;  %v1730_v5 = vpop.f32.mrb[37].mxu1  ;;  %3086 = vst.msk [vmem:[%s5673_s3 + $0x48] sm:$0xff] %vm2109_vm4, %v2960_v59  ;;  %v2900_v6 = vmax.f32 %v2794_v57, %v2796_v60  ;;  %v1171_v7 = vadd.f32 %v4829_v25, %v1170_v4  ;;  %2147 = vst.msk [vmem:[#allocation2 + $0x128] sm:$0xff] %vm2109_vm4, %v1176_v2  ;;  %v2366_v24 = vld [vmem:[#allocation2 + $0x100] ss:$2 sm:$0xff] }
 0x127   :  { %v1731_v8 = vadd.f32 %v4829_v25, %v1730_v5  ;;  %3114 = vst.msk [vmem:[%s5673_s3 + $0x160] sm:$0xff] %vm2109_vm4, %v2988_v0  ;;  %v2928_v9 = vmax.f32 %v2850_v58, %v2852_v1  ;;  %v3655_v11 = vpop.f32.mrb[38].mxu0  ;;  %v2590_v26 = vld [vmem:[#allocation2 + $0x101] ss:$2 sm:$0xff]  ;;  %v2478_v31 = vld [vmem:[#allocation2 + $0x480] ss:$2 sm:$0xff] }
 0x128   :  { %2259 = vst.msk [vmem:[#allocation2 + $0x4a8] sm:$0xff] %vm2109_vm4, %v1736_v3  ;;  %v2961_v10 = vmax.f32 %v2900_v6, 0.0  ;;  %2146 = vst.msk [vmem:[#allocation2 + $0x120] sm:$0xff] %vm2109_vm4, %v1171_v7  ;;  %v3823_v12 = vpop.f32.mrb[38].mxu1  ;;  %v1186_v14 = vadd.f32 %v3655_v11, %v4829_v25  ;;  %v1180_v16 = vpop.f32.mrb[39].mxu0  ;;  %v2797_v40 = vmax.f32 %v2366_v24, %v2590_v26 }
 0x129   :  { %2258 = vst.msk [vmem:[#allocation2 + $0x4a0] sm:$0xff] %vm2109_vm4, %v1731_v8  ;;  %v2989_v13 = vmax.f32 %v2928_v9, 0.0  ;;  %v1746_v15 = vadd.f32 %v3823_v12, %v4829_v25  ;;  %v1740_v17 = vpop.f32.mrb[39].mxu1  ;;  %v1181_v19 = vadd.f32 %v4829_v25, %v1180_v16  ;;  %v2702_v32 = vld [vmem:[#allocation2 + $0x481] ss:$2 sm:$0xff] }
 0x12a   :  { %v3017_v18 = vsel %vm2953_vm5, %v2961_v10, 0.0  ;;  %v1741_v20 = vadd.f32 %v4829_v25, %v1740_v17  ;;  %2149 = vst.msk [vmem:[#allocation2 + $0x138] sm:$0xff] %vm2109_vm4, %v1186_v14  ;;  %v2853_v46 = vmax.f32 %v2478_v31, %v2702_v32  ;;  %v5172_v32 = vld [vmem:[%s5672_s2] ss:$0 sm:$0xff] }
 0x12b   :  { %3087 = vst.msk [vmem:[%s5673_s3 + $0x50] sm:$0xff] %vm2109_vm4, %v3017_v18  ;;  %v3045_v21 = vsel %vm2953_vm5, %v2989_v13, 0.0  ;;  %2261 = vst.msk [vmem:[#allocation2 + $0x4b8] sm:$0xff] %vm2109_vm4, %v1746_v15  ;;  %v3658_v22 = vpop.f32.mrb[40].mxu0 }
 0x12c   :  { %3115 = vst.msk [vmem:[%s5673_s3 + $0x168] sm:$0xff] %vm2109_vm4, %v3045_v21  ;;  %2148 = vst.msk [vmem:[#allocation2 + $0x130] sm:$0xff] %vm2109_vm4, %v1181_v19  ;;  %v3826_v23 = vpop.f32.mrb[40].mxu1  ;;  %v1196_v27 = vadd.f32 %v3658_v22, %v4829_v25  ;;  %v1190_v29 = vpop.f32.mrb[41].mxu0  ;;  %v2368_v35 = vld [vmem:[#allocation2 + $0x110] ss:$2 sm:$0xff] }
 0x12d   :  { %2260 = vst.msk [vmem:[#allocation2 + $0x4b0] sm:$0xff] %vm2109_vm4, %v1741_v20  ;;  %v1756_v28 = vadd.f32 %v3826_v23, %v4829_v25  ;;  %v1750_v30 = vpop.f32.mrb[41].mxu1  ;;  %v1191_v33 = vadd.f32 %v4829_v25, %v1190_v29  ;;  %v2592_v41 = vld [vmem:[#allocation2 + $0x111] ss:$2 sm:$0xff]  ;;  %v2480_v47 = vld [vmem:[#allocation2 + $0x490] ss:$2 sm:$0xff] }
 0x12e   :  { %v1751_v34 = vadd.f32 %v4829_v25, %v1750_v30  ;;  %2151 = vst.msk [vmem:[#allocation2 + $0x148] sm:$0xff] %vm2109_vm4, %v1196_v27  ;;  %v2704_v48 = vld [vmem:[#allocation2 + $0x491] ss:$2 sm:$0xff]  ;;  %v2798_v61 = vmax.f32 %v2368_v35, %v2592_v41 }
 0x12f   :  { %v2370_v36 = vld [vmem:[#allocation2 + $0x120] ss:$2 sm:$0xff]  ;;  %v2594_v37 = vld [vmem:[#allocation2 + $0x121] ss:$2 sm:$0xff]  ;;  %2263 = vst.msk [vmem:[#allocation2 + $0x4c8] sm:$0xff] %vm2109_vm4, %v1756_v28  ;;  %2150 = vst.msk [vmem:[#allocation2 + $0x140] sm:$0xff] %vm2109_vm4, %v1191_v33  ;;  %v2854_v62 = vmax.f32 %v2480_v47, %v2704_v48 }
 0x130   :  { %v2482_v39 = vld [vmem:[#allocation2 + $0x4a0] ss:$2 sm:$0xff]  ;;  %v2799_v42 = vmax.f32 %v2370_v36, %v2594_v37  ;;  %v2706_v43 = vld [vmem:[#allocation2 + $0x4a1] ss:$2 sm:$0xff]  ;;  %2262 = vst.msk [vmem:[#allocation2 + $0x4c0] sm:$0xff] %vm2109_vm4, %v1751_v34  ;;  %v3661_v44 = vpop.f32.mrb[42].mxu0 }
 0x131   :  { %v3829_v45 = vpop.f32.mrb[42].mxu1  ;;  %v2855_v49 = vmax.f32 %v2482_v39, %v2706_v43  ;;  %v1206_v50 = vadd.f32 %v3661_v44, %v4829_v25  ;;  %v1200_v52 = vpop.f32.mrb[43].mxu0 }
 0x132   :  { %v1766_v51 = vadd.f32 %v3829_v45, %v4829_v25  ;;  %v1760_v53 = vpop.f32.mrb[43].mxu1  ;;  %v2901_v54 = vmax.f32 %v2797_v40, %v2799_v42  ;;  %v1201_v55 = vadd.f32 %v4829_v25, %v1200_v52 }
 0x133   :  { %v1761_v56 = vadd.f32 %v4829_v25, %v1760_v53  ;;  %v2929_v57 = vmax.f32 %v2853_v46, %v2855_v49  ;;  %v2372_v58 = vld [vmem:[#allocation2 + $0x130] ss:$2 sm:$0xff]  ;;  %v2596_v59 = vld [vmem:[#allocation2 + $0x131] ss:$2 sm:$0xff]  ;;  %2153 = vst.msk [vmem:[#allocation2 + $0x158] sm:$0xff] %vm2109_vm4, %v1206_v50  ;;  %v3664_v2 = vpop.f32.mrb[44].mxu0 }
 0x134   :  { %v2484_v60 = vld [vmem:[#allocation2 + $0x4b0] ss:$2 sm:$0xff]  ;;  %2265 = vst.msk [vmem:[#allocation2 + $0x4d8] sm:$0xff] %vm2109_vm4, %v1766_v51  ;;  %v2962_v63 = vmax.f32 %v2901_v54, 0.0  ;;  %v2800_v0 = vmax.f32 %v2372_v58, %v2596_v59  ;;  %v2708_v1 = vld [vmem:[#allocation2 + $0x4b1] ss:$2 sm:$0xff]  ;;  %v1216_v6 = vadd.f32 %v3664_v2, %v4829_v25 }
 0x135   :  { %2152 = vst.msk [vmem:[#allocation2 + $0x150] sm:$0xff] %vm2109_vm4, %v1201_v55  ;;  %2264 = vst.msk [vmem:[#allocation2 + $0x4d0] sm:$0xff] %vm2109_vm4, %v1761_v56  ;;  %v3832_v3 = vpop.f32.mrb[44].mxu1  ;;  %v2990_v4 = vmax.f32 %v2929_v57, 0.0  ;;  %v2856_v5 = vmax.f32 %v2484_v60, %v2708_v1  ;;  %v1210_v8 = vpop.f32.mrb[45].mxu0 }
 0x136   :  { %v1776_v7 = vadd.f32 %v3832_v3, %v4829_v25  ;;  %v1770_v9 = vpop.f32.mrb[45].mxu1  ;;  %3088 = vst.msk [vmem:[%s5673_s3 + $0x58] sm:$0xff] %vm2109_vm4, %v2962_v63  ;;  %v2902_v10 = vmax.f32 %v2798_v61, %v2800_v0  ;;  %v1211_v11 = vadd.f32 %v4829_v25, %v1210_v8  ;;  %2155 = vst.msk [vmem:[#allocation2 + $0x168] sm:$0xff] %vm2109_vm4, %v1216_v6  ;;  %v2374_v29 = vld [vmem:[#allocation2 + $0x140] ss:$2 sm:$0xff] }
 0x137   :  { %v1771_v12 = vadd.f32 %v4829_v25, %v1770_v9  ;;  %3116 = vst.msk [vmem:[%s5673_s3 + $0x170] sm:$0xff] %vm2109_vm4, %v2990_v4  ;;  %v2930_v13 = vmax.f32 %v2854_v62, %v2856_v5  ;;  %v3667_v15 = vpop.f32.mrb[46].mxu0  ;;  %v2598_v30 = vld [vmem:[#allocation2 + $0x141] ss:$2 sm:$0xff]  ;;  %v2486_v36 = vld [vmem:[#allocation2 + $0x4c0] ss:$2 sm:$0xff] }
 0x138   :  { %2267 = vst.msk [vmem:[#allocation2 + $0x4e8] sm:$0xff] %vm2109_vm4, %v1776_v7  ;;  %v2963_v14 = vmax.f32 %v2902_v10, 0.0  ;;  %2154 = vst.msk [vmem:[#allocation2 + $0x160] sm:$0xff] %vm2109_vm4, %v1211_v11  ;;  %v3835_v16 = vpop.f32.mrb[46].mxu1  ;;  %v1226_v18 = vadd.f32 %v3667_v15, %v4829_v25  ;;  %v1220_v20 = vpop.f32.mrb[47].mxu0 }
 0x139   :  { %2266 = vst.msk [vmem:[#allocation2 + $0x4e0] sm:$0xff] %vm2109_vm4, %v1771_v12  ;;  %v2991_v17 = vmax.f32 %v2930_v13, 0.0  ;;  %v1786_v19 = vadd.f32 %v3835_v16, %v4829_v25  ;;  %v1780_v21 = vpop.f32.mrb[47].mxu1  ;;  %v1221_v23 = vadd.f32 %v4829_v25, %v1220_v20  ;;  %v2710_v37 = vld [vmem:[#allocation2 + $0x4c1] ss:$2 sm:$0xff] }
 0x13a   :  { %v3019_v22 = vsel %vm2953_vm5, %v2963_v14, 0.0  ;;  %v1781_v24 = vadd.f32 %v4829_v25, %v1780_v21  ;;  %2157 = vst.msk [vmem:[#allocation2 + $0x178] sm:$0xff] %vm2109_vm4, %v1226_v18  ;;  %v2857_v50 = vmax.f32 %v2486_v36, %v2710_v37 }
 0x13b   :  { %3089 = vst.msk [vmem:[%s5673_s3 + $0x60] sm:$0xff] %vm2109_vm4, %v3019_v22  ;;  %v3047_v26 = vsel %vm2953_vm5, %v2991_v17, 0.0  ;;  %2269 = vst.msk [vmem:[#allocation2 + $0x4f8] sm:$0xff] %vm2109_vm4, %v1786_v19  ;;  %v3670_v27 = vpop.f32.mrb[48].mxu0 }
 0x13c   :  { %3117 = vst.msk [vmem:[%s5673_s3 + $0x178] sm:$0xff] %vm2109_vm4, %v3047_v26  ;;  %2156 = vst.msk [vmem:[#allocation2 + $0x170] sm:$0xff] %vm2109_vm4, %v1221_v23  ;;  %v3838_v28 = vpop.f32.mrb[48].mxu1  ;;  %v1236_v31 = vadd.f32 %v3670_v27, %v4829_v25  ;;  %v1230_v34 = vpop.f32.mrb[49].mxu0  ;;  %v2376_v41 = vld [vmem:[#allocation2 + $0x150] ss:$2 sm:$0xff]  ;;  %v2801_v25 = vmax.f32 %v2374_v29, %v2598_v30 }
 0x13d   :  { %2268 = vst.msk [vmem:[#allocation2 + $0x4f0] sm:$0xff] %vm2109_vm4, %v1781_v24  ;;  %v1796_v33 = vadd.f32 %v5172_v32, %v3838_v28  ;;  %v1790_v35 = vpop.f32.mrb[49].mxu1  ;;  %v1231_v39 = vadd.f32 %v5172_v32, %v1230_v34  ;;  %v2600_v45 = vld [vmem:[#allocation2 + $0x151] ss:$2 sm:$0xff]  ;;  %v2488_v51 = vld [vmem:[#allocation2 + $0x4d0] ss:$2 sm:$0xff] }
 0x13e   :  { %v1791_v40 = vadd.f32 %v5172_v32, %v1790_v35  ;;  %2159 = vst.msk [vmem:[#allocation2 + $0x188] sm:$0xff] %vm2109_vm4, %v1236_v31  ;;  %v2712_v52 = vld [vmem:[#allocation2 + $0x4d1] ss:$2 sm:$0xff]  ;;  %v2802_v1 = vmax.f32 %v2376_v41, %v2600_v45  ;;  %v3945_v34 = vmov 0.0  }
 0x13f   :  { %v2378_v42 = vld [vmem:[#allocation2 + $0x160] ss:$2 sm:$0xff]  ;;  %v2602_v43 = vld [vmem:[#allocation2 + $0x161] ss:$2 sm:$0xff]  ;;  %2271 = vst.msk [vmem:[#allocation2 + $0x508] sm:$0xff] %vm2109_vm4, %v1796_v33  ;;  %2158 = vst.msk [vmem:[#allocation2 + $0x180] sm:$0xff] %vm2109_vm4, %v1231_v39  ;;  %v2858_v2 = vmax.f32 %v2488_v51, %v2712_v52 }
 0x140   :  { %v2490_v44 = vld [vmem:[#allocation2 + $0x4e0] ss:$2 sm:$0xff]  ;;  %v2803_v46 = vmax.f32 %v2378_v42, %v2602_v43  ;;  %v2714_v47 = vld [vmem:[#allocation2 + $0x4e1] ss:$2 sm:$0xff]  ;;  %2270 = vst.msk [vmem:[#allocation2 + $0x500] sm:$0xff] %vm2109_vm4, %v1791_v40  ;;  %v3673_v48 = vpop.f32.mrb[50].mxu0 }
 0x141   :  { %v3841_v49 = vpop.f32.mrb[50].mxu1  ;;  %v2859_v53 = vmax.f32 %v2490_v44, %v2714_v47  ;;  %v1246_v54 = vadd.f32 %v5172_v32, %v3673_v48  ;;  %v1240_v56 = vpop.f32.mrb[51].mxu0  ;;  %3066 = vst.msk [vmem:[%s5673_s3] sm:$0xff] %vm2109_vm4, %v3945_v34  ;;  %3067 = vst.msk [vmem:[%s5673_s3 + $0x8] sm:$0xff] %vm2109_vm4, %v3945_v34 }
 0x142   :  { %v1806_v55 = vadd.f32 %v5172_v32, %v3841_v49  ;;  %v1800_v57 = vpop.f32.mrb[51].mxu1  ;;  %v2903_v58 = vmax.f32 %v2801_v25, %v2803_v46  ;;  %v1241_v59 = vadd.f32 %v5172_v32, %v1240_v56  ;;  %3068 = vst.msk [vmem:[%s5673_s3 + $0x10] sm:$0xff] %vm2109_vm4, %v3945_v34  ;;  %3069 = vst.msk [vmem:[%s5673_s3 + $0x118] sm:$0xff] %vm2109_vm4, %v3945_v34 }
 0x143   :  { %v1801_v60 = vadd.f32 %v5172_v32, %v1800_v57  ;;  %v2931_v61 = vmax.f32 %v2857_v50, %v2859_v53  ;;  %v2380_v62 = vld [vmem:[#allocation2 + $0x170] ss:$2 sm:$0xff]  ;;  %v2604_v63 = vld [vmem:[#allocation2 + $0x171] ss:$2 sm:$0xff]  ;;  %2161 = vst.msk [vmem:[#allocation2 + $0x198] sm:$0xff] %vm2109_vm4, %v1246_v54  ;;  %v3676_v6 = vpop.f32.mrb[52].mxu0 }
 0x144   :  { %v2492_v0 = vld [vmem:[#allocation2 + $0x4f0] ss:$2 sm:$0xff]  ;;  %2273 = vst.msk [vmem:[#allocation2 + $0x518] sm:$0xff] %vm2109_vm4, %v1806_v55  ;;  %v2964_v3 = vmax.f32 %v2903_v58, 0.0  ;;  %v2804_v4 = vmax.f32 %v2380_v62, %v2604_v63  ;;  %v2716_v5 = vld [vmem:[#allocation2 + $0x4f1] ss:$2 sm:$0xff]  ;;  %v1256_v10 = vadd.f32 %v5172_v32, %v3676_v6 }
 0x145   :  { %2160 = vst.msk [vmem:[#allocation2 + $0x190] sm:$0xff] %vm2109_vm4, %v1241_v59  ;;  %2272 = vst.msk [vmem:[#allocation2 + $0x510] sm:$0xff] %vm2109_vm4, %v1801_v60  ;;  %v3844_v7 = vpop.f32.mrb[52].mxu1  ;;  %v2992_v8 = vmax.f32 %v2931_v61, 0.0  ;;  %v2860_v9 = vmax.f32 %v2492_v0, %v2716_v5  ;;  %v1250_v12 = vpop.f32.mrb[53].mxu0 }
 0x146   :  { %v1816_v11 = vadd.f32 %v5172_v32, %v3844_v7  ;;  %v1810_v13 = vpop.f32.mrb[53].mxu1  ;;  %3090 = vst.msk [vmem:[%s5673_s3 + $0x68] sm:$0xff] %vm2109_vm4, %v2964_v3  ;;  %v2904_v14 = vmax.f32 %v2802_v1, %v2804_v4  ;;  %v1251_v15 = vadd.f32 %v5172_v32, %v1250_v12  ;;  %2163 = vst.msk [vmem:[#allocation2 + $0x1a8] sm:$0xff] %vm2109_vm4, %v1256_v10  ;;  %v2382_v35 = vld [vmem:[#allocation2 + $0x180] ss:$2 sm:$0xff] }
 0x147   :  { %v1811_v16 = vadd.f32 %v5172_v32, %v1810_v13  ;;  %3118 = vst.msk [vmem:[%s5673_s3 + $0x180] sm:$0xff] %vm2109_vm4, %v2992_v8  ;;  %v2932_v17 = vmax.f32 %v2858_v2, %v2860_v9  ;;  %v3679_v19 = vpop.f32.mrb[54].mxu0  ;;  %3070 = vst.msk [vmem:[%s5673_s3 + $0x120] sm:$0xff] %vm2109_vm4, %v3945_v34  ;;  %v2606_v36 = vld [vmem:[#allocation2 + $0x181] ss:$2 sm:$0xff] }
 0x148   :  { %2275 = vst.msk [vmem:[#allocation2 + $0x528] sm:$0xff] %vm2109_vm4, %v1816_v11  ;;  %v2965_v18 = vmax.f32 %v2904_v14, 0.0  ;;  %2162 = vst.msk [vmem:[#allocation2 + $0x1a0] sm:$0xff] %vm2109_vm4, %v1251_v15  ;;  %v3847_v20 = vpop.f32.mrb[54].mxu1  ;;  %v1266_v22 = vadd.f32 %v5172_v32, %v3679_v19  ;;  %v1260_v24 = vpop.f32.mrb[55].mxu0  ;;  %v2805_v49 = vmax.f32 %v2382_v35, %v2606_v36 }
 0x149   :  { %2274 = vst.msk [vmem:[#allocation2 + $0x520] sm:$0xff] %vm2109_vm4, %v1811_v16  ;;  %v2993_v21 = vmax.f32 %v2932_v17, 0.0  ;;  %v1826_v23 = vadd.f32 %v5172_v32, %v3847_v20  ;;  %v1820_v26 = vpop.f32.mrb[55].mxu1  ;;  %v1261_v28 = vadd.f32 %v5172_v32, %v1260_v24  ;;  %3071 = vst.msk [vmem:[%s5673_s3 + $0x128] sm:$0xff] %vm2109_vm4, %v3945_v34  ;;  %v2494_v42 = vld [vmem:[#allocation2 + $0x500] ss:$2 sm:$0xff] }
 0x14a   :  { %v3021_v27 = vsel %vm2953_vm5, %v2965_v18, 0.0  ;;  %v1821_v29 = vadd.f32 %v5172_v32, %v1820_v26  ;;  %2165 = vst.msk [vmem:[#allocation2 + $0x1b8] sm:$0xff] %vm2109_vm4, %v1266_v22  ;;  %3072 = vst.msk [vmem:[%s5673_s3 + $0xf8] sm:$0xff] %vm2109_vm4, %v3945_v34  ;;  %v2718_v43 = vld [vmem:[#allocation2 + $0x501] ss:$2 sm:$0xff] }
 0x14b   :  { %3091 = vst.msk [vmem:[%s5673_s3 + $0x70] sm:$0xff] %vm2109_vm4, %v3021_v27  ;;  %v3049_v30 = vsel %vm2953_vm5, %v2993_v21, 0.0  ;;  %2277 = vst.msk [vmem:[#allocation2 + $0x538] sm:$0xff] %vm2109_vm4, %v1826_v23  ;;  %v3682_v31 = vpop.f32.mrb[56].mxu0  ;;  %v2861_v55 = vmax.f32 %v2494_v42, %v2718_v43 }
 0x14c   :  { %3119 = vst.msk [vmem:[%s5673_s3 + $0x188] sm:$0xff] %vm2109_vm4, %v3049_v30  ;;  %2164 = vst.msk [vmem:[#allocation2 + $0x1b0] sm:$0xff] %vm2109_vm4, %v1261_v28  ;;  %v3850_v33 = vpop.f32.mrb[56].mxu1  ;;  %v1276_v37 = vadd.f32 %v5172_v32, %v3682_v31  ;;  %v1270_v40 = vpop.f32.mrb[57].mxu0  ;;  %v2384_v45 = vld [vmem:[#allocation2 + $0x190] ss:$2 sm:$0xff] }
 0x14d   :  { %2276 = vst.msk [vmem:[#allocation2 + $0x530] sm:$0xff] %vm2109_vm4, %v1821_v29  ;;  %3073 = vst.msk [vmem:[%s5673_s3 + $0x100] sm:$0xff] %vm2109_vm4, %v3945_v34  ;;  %v1836_v39 = vadd.f32 %v5172_v32, %v3850_v33  ;;  %v1830_v41 = vpop.f32.mrb[57].mxu1  ;;  %v1271_v44 = vadd.f32 %v5172_v32, %v1270_v40  ;;  %v2608_v50 = vld [vmem:[#allocation2 + $0x191] ss:$2 sm:$0xff] }
 0x14e   :  { %3074 = vst.msk [vmem:[%s5673_s3 + $0x108] sm:$0xff] %vm2109_vm4, %v3945_v34  ;;  %3075 = vst.msk [vmem:[%s5673_s3 + $0x110] sm:$0xff] %vm2109_vm4, %v3945_v34  ;;  %v1831_v25 = vadd.f32 %v5172_v32, %v1830_v41  ;;  %v2496_v56 = vld [vmem:[#allocation2 + $0x510] ss:$2 sm:$0xff]  ;;  %v2720_v57 = vld [vmem:[#allocation2 + $0x511] ss:$2 sm:$0xff]  ;;  %v2806_v6 = vmax.f32 %v2384_v45, %v2608_v50 }
 0x14f   :  { %3076 = vst.msk [vmem:[%s5673_s3 + $0x210] sm:$0xff] %vm2109_vm4, %v3945_v34  ;;  %3077 = vst.msk [vmem:[%s5673_s3 + $0x218] sm:$0xff] %vm2109_vm4, %v3945_v34  ;;  %v2386_v46 = vld [vmem:[#allocation2 + $0x1a0] ss:$2 sm:$0xff]  ;;  %v2610_v47 = vld [vmem:[#allocation2 + $0x1a1] ss:$2 sm:$0xff]  ;;  %v2862_v7 = vmax.f32 %v2496_v56, %v2720_v57 }
 0x150   :  { %3078 = vst.msk [vmem:[%s5673_s3 + $0x220] sm:$0xff] %vm2109_vm4, %v3945_v34  ;;  %3079 = vst.msk [vmem:[%s5673_s3 + $0x228] sm:$0xff] %vm2109_vm4, %v3945_v34  ;;  %v2498_v48 = vld [vmem:[#allocation2 + $0x520] ss:$2 sm:$0xff]  ;;  %v2807_v51 = vmax.f32 %v2386_v46, %v2610_v47  ;;  %v2722_v52 = vld [vmem:[#allocation2 + $0x521] ss:$2 sm:$0xff] }
 0x151   :  { %2167 = vst.msk [vmem:[#allocation2 + $0x1c8] sm:$0xff] %vm2109_vm4, %v1276_v37  ;;  %2279 = vst.msk [vmem:[#allocation2 + $0x548] sm:$0xff] %vm2109_vm4, %v1836_v39  ;;  %v3685_v53 = vpop.f32.mrb[58].mxu0  ;;  %v3853_v54 = vpop.f32.mrb[58].mxu1  ;;  %v2863_v58 = vmax.f32 %v2498_v48, %v2722_v52 }
 0x152   :  { %2166 = vst.msk [vmem:[#allocation2 + $0x1c0] sm:$0xff] %vm2109_vm4, %v1271_v44  ;;  %2278 = vst.msk [vmem:[#allocation2 + $0x540] sm:$0xff] %vm2109_vm4, %v1831_v25  ;;  %v1286_v59 = vadd.f32 %v5172_v32, %v3685_v53  ;;  %v1846_v60 = vadd.f32 %v5172_v32, %v3853_v54  ;;  %v1280_v61 = vpop.f32.mrb[59].mxu0  ;;  %v1840_v62 = vpop.f32.mrb[59].mxu1  ;;  %v2905_v63 = vmax.f32 %v2805_v49, %v2807_v51 }
 0x153   :  { %v1281_v0 = vadd.f32 %v5172_v32, %v1280_v61  ;;  %v1841_v1 = vadd.f32 %v5172_v32, %v1840_v62  ;;  %v2933_v2 = vmax.f32 %v2861_v55, %v2863_v58  ;;  %v2388_v3 = vld [vmem:[#allocation2 + $0x1b0] ss:$2 sm:$0xff]  ;;  %v2612_v4 = vld [vmem:[#allocation2 + $0x1b1] ss:$2 sm:$0xff]  ;;  %v3688_v11 = vpop.f32.mrb[60].mxu0 }
 0x154   :  { %v2500_v5 = vld [vmem:[#allocation2 + $0x530] ss:$2 sm:$0xff]  ;;  %2169 = vst.msk [vmem:[#allocation2 + $0x1d8] sm:$0xff] %vm2109_vm4, %v1286_v59  ;;  %2281 = vst.msk [vmem:[#allocation2 + $0x558] sm:$0xff] %vm2109_vm4, %v1846_v60  ;;  %v2966_v8 = vmax.f32 %v2905_v63, 0.0  ;;  %v2808_v9 = vmax.f32 %v2388_v3, %v2612_v4  ;;  %v3856_v12 = vpop.f32.mrb[60].mxu1  ;;  %v1296_v15 = vadd.f32 %v5172_v32, %v3688_v11 }
 0x155   :  { %v2724_v10 = vld [vmem:[#allocation2 + $0x531] ss:$2 sm:$0xff]  ;;  %2168 = vst.msk [vmem:[#allocation2 + $0x1d0] sm:$0xff] %vm2109_vm4, %v1281_v0  ;;  %2280 = vst.msk [vmem:[#allocation2 + $0x550] sm:$0xff] %vm2109_vm4, %v1841_v1  ;;  %v2994_v13 = vmax.f32 %v2933_v2, 0.0  ;;  %v1856_v16 = vadd.f32 %v5172_v32, %v3856_v12  ;;  %v1290_v17 = vpop.f32.mrb[61].mxu0 }
 0x156   :  { %v2864_v14 = vmax.f32 %v2500_v5, %v2724_v10  ;;  %v1850_v18 = vpop.f32.mrb[61].mxu1  ;;  %3092 = vst.msk [vmem:[%s5673_s3 + $0x78] sm:$0xff] %vm2109_vm4, %v2966_v8  ;;  %v2906_v19 = vmax.f32 %v2806_v6, %v2808_v9  ;;  %v1291_v20 = vadd.f32 %v5172_v32, %v1290_v17  ;;  %2171 = vst.msk [vmem:[#allocation2 + $0x1e8] sm:$0xff] %vm2109_vm4, %v1296_v15 }
 0x157   :  { %v1851_v21 = vadd.f32 %v5172_v32, %v1850_v18  ;;  %3120 = vst.msk [vmem:[%s5673_s3 + $0x190] sm:$0xff] %vm2109_vm4, %v2994_v13  ;;  %2283 = vst.msk [vmem:[#allocation2 + $0x568] sm:$0xff] %vm2109_vm4, %v1856_v16  ;;  %v3691_v24 = vpop.f32.mrb[62].mxu0 }
 0x158   :  { %v2934_v22 = vmax.f32 %v2862_v7, %v2864_v14  ;;  %v2967_v23 = vmax.f32 %v2906_v19, 0.0  ;;  %2170 = vst.msk [vmem:[#allocation2 + $0x1e0] sm:$0xff] %vm2109_vm4, %v1291_v20  ;;  %v3859_v26 = vpop.f32.mrb[62].mxu1  ;;  %v1306_v28 = vadd.f32 %v5172_v32, %v3691_v24  ;;  %v1300_v30 = vpop.f32.mrb[63].mxu0 }
 0x159   :  { %2282 = vst.msk [vmem:[#allocation2 + $0x560] sm:$0xff] %vm2109_vm4, %v1851_v21  ;;  %v1866_v29 = vadd.f32 %v5172_v32, %v3859_v26  ;;  %v1860_v31 = vpop.f32.mrb[63].mxu1  ;;  %v1301_v34 = vadd.f32 %v5172_v32, %v1300_v30  ;;  %v2390_v40 = vld [vmem:[#allocation2 + $0x1c0] ss:$2 sm:$0xff]  ;;  %v2614_v41 = vld [vmem:[#allocation2 + $0x1c1] ss:$2 sm:$0xff] }
 0x15a   :  { %v2995_v27 = vmax.f32 %v2934_v22, 0.0  ;;  %v3023_v33 = vsel %vm2953_vm5, %v2967_v23, 0.0  ;;  %v1861_v35 = vadd.f32 %v5172_v32, %v1860_v31  ;;  %2173 = vst.msk [vmem:[#allocation2 + $0x1f8] sm:$0xff] %vm2109_vm4, %v1306_v28  ;;  %v2502_v45 = vld [vmem:[#allocation2 + $0x540] ss:$2 sm:$0xff]  ;;  %v2809_v53 = vmax.f32 %v2390_v40, %v2614_v41 }
 0x15b   :  { %3093 = vst.msk [vmem:[%s5673_s3 + $0x80] sm:$0xff] %vm2109_vm4, %v3023_v33  ;;  %2285 = vst.msk [vmem:[#allocation2 + $0x578] sm:$0xff] %vm2109_vm4, %v1866_v29  ;;  %v3694_v37 = vpop.f32.mrb[64].mxu0  ;;  %v2726_v46 = vld [vmem:[#allocation2 + $0x541] ss:$2 sm:$0xff] }
 0x15c   :  { %v3051_v36 = vsel %vm2953_vm5, %v2995_v27, 0.0  ;;  %2172 = vst.msk [vmem:[#allocation2 + $0x1f0] sm:$0xff] %vm2109_vm4, %v1301_v34  ;;  %2284 = vst.msk [vmem:[#allocation2 + $0x570] sm:$0xff] %vm2109_vm4, %v1861_v35  ;;  %v3862_v39 = vpop.f32.mrb[64].mxu1  ;;  %v1316_v42 = vadd.f32 %v5172_v32, %v3694_v37  ;;  %v1310_v44 = vpop.f32.mrb[65].mxu0  ;;  %v2865_v59 = vmax.f32 %v2502_v45, %v2726_v46 }
 0x15d   :  { %3121 = vst.msk [vmem:[%s5673_s3 + $0x198] sm:$0xff] %vm2109_vm4, %v3051_v36  ;;  %v1876_v43 = vadd.f32 %v5172_v32, %v3862_v39  ;;  %v1870_v25 = vpop.f32.mrb[65].mxu1  ;;  %v1311_v47 = vadd.f32 %v5172_v32, %v1310_v44  ;;  %v2392_v49 = vld [vmem:[#allocation2 + $0x1d0] ss:$2 sm:$0xff]  ;;  %v2616_v54 = vld [vmem:[#allocation2 + $0x1d1] ss:$2 sm:$0xff] }
 0x15e   :  { %v1871_v48 = vadd.f32 %v5172_v32, %v1870_v25  ;;  %2175 = vst.msk [vmem:[#allocation2 + $0x208] sm:$0xff] %vm2109_vm4, %v1316_v42  ;;  %v2504_v60 = vld [vmem:[#allocation2 + $0x550] ss:$2 sm:$0xff]  ;;  %v2728_v61 = vld [vmem:[#allocation2 + $0x551] ss:$2 sm:$0xff]  ;;  %v2810_v10 = vmax.f32 %v2392_v49, %v2616_v54 }
 0x15f   :  { %v2394_v50 = vld [vmem:[#allocation2 + $0x1e0] ss:$2 sm:$0xff]  ;;  %v2618_v51 = vld [vmem:[#allocation2 + $0x1e1] ss:$2 sm:$0xff]  ;;  %2287 = vst.msk [vmem:[#allocation2 + $0x588] sm:$0xff] %vm2109_vm4, %v1876_v43  ;;  %2174 = vst.msk [vmem:[#allocation2 + $0x200] sm:$0xff] %vm2109_vm4, %v1311_v47  ;;  %v2866_v11 = vmax.f32 %v2504_v60, %v2728_v61 }
 0x160   :  { %v2506_v52 = vld [vmem:[#allocation2 + $0x560] ss:$2 sm:$0xff]  ;;  %v2811_v55 = vmax.f32 %v2394_v50, %v2618_v51  ;;  %v2730_v56 = vld [vmem:[#allocation2 + $0x561] ss:$2 sm:$0xff]  ;;  %2286 = vst.msk [vmem:[#allocation2 + $0x580] sm:$0xff] %vm2109_vm4, %v1871_v48  ;;  %v3697_v57 = vpop.f32.mrb[66].mxu0 }
 0x161   :  { %v3865_v58 = vpop.f32.mrb[66].mxu1  ;;  %v2867_v62 = vmax.f32 %v2506_v52, %v2730_v56  ;;  %v1326_v63 = vadd.f32 %v5172_v32, %v3697_v57  ;;  %v1320_v1 = vpop.f32.mrb[67].mxu0 }
 0x162   :  { %v1886_v0 = vadd.f32 %v5172_v32, %v3865_v58  ;;  %v1880_v2 = vpop.f32.mrb[67].mxu1  ;;  %v2907_v3 = vmax.f32 %v2809_v53, %v2811_v55  ;;  %v1321_v4 = vadd.f32 %v5172_v32, %v1320_v1 }
 0x163   :  { %v1881_v5 = vadd.f32 %v5172_v32, %v1880_v2  ;;  %v2935_v6 = vmax.f32 %v2865_v59, %v2867_v62  ;;  %v2396_v7 = vld [vmem:[#allocation2 + $0x1f0] ss:$2 sm:$0xff]  ;;  %v2620_v8 = vld [vmem:[#allocation2 + $0x1f1] ss:$2 sm:$0xff]  ;;  %2177 = vst.msk [vmem:[#allocation2 + $0x218] sm:$0xff] %vm2109_vm4, %v1326_v63  ;;  %v3700_v15 = vpop.f32.mrb[68].mxu0 }
 0x164   :  { %v2508_v9 = vld [vmem:[#allocation2 + $0x570] ss:$2 sm:$0xff]  ;;  %2289 = vst.msk [vmem:[#allocation2 + $0x598] sm:$0xff] %vm2109_vm4, %v1886_v0  ;;  %v2968_v12 = vmax.f32 %v2907_v3, 0.0  ;;  %v2812_v13 = vmax.f32 %v2396_v7, %v2620_v8  ;;  %v2732_v14 = vld [vmem:[#allocation2 + $0x571] ss:$2 sm:$0xff]  ;;  %v1336_v19 = vadd.f32 %v5172_v32, %v3700_v15 }
 0x165   :  { %2176 = vst.msk [vmem:[#allocation2 + $0x210] sm:$0xff] %vm2109_vm4, %v1321_v4  ;;  %2288 = vst.msk [vmem:[#allocation2 + $0x590] sm:$0xff] %vm2109_vm4, %v1881_v5  ;;  %v3868_v16 = vpop.f32.mrb[68].mxu1  ;;  %v2996_v17 = vmax.f32 %v2935_v6, 0.0  ;;  %v2868_v18 = vmax.f32 %v2508_v9, %v2732_v14  ;;  %v1330_v21 = vpop.f32.mrb[69].mxu0 }
 0x166   :  { %v1896_v20 = vadd.f32 %v5172_v32, %v3868_v16  ;;  %v1890_v22 = vpop.f32.mrb[69].mxu1  ;;  %3094 = vst.msk [vmem:[%s5673_s3 + $0x88] sm:$0xff] %vm2109_vm4, %v2968_v12  ;;  %v2908_v23 = vmax.f32 %v2810_v10, %v2812_v13  ;;  %v1331_v24 = vadd.f32 %v5172_v32, %v1330_v21  ;;  %2179 = vst.msk [vmem:[#allocation2 + $0x228] sm:$0xff] %vm2109_vm4, %v1336_v19  ;;  %v2398_v44 = vld [vmem:[#allocation2 + $0x200] ss:$2 sm:$0xff] }
 0x167   :  { %v1891_v26 = vadd.f32 %v5172_v32, %v1890_v22  ;;  %3122 = vst.msk [vmem:[%s5673_s3 + $0x1a0] sm:$0xff] %vm2109_vm4, %v2996_v17  ;;  %v2936_v27 = vmax.f32 %v2866_v11, %v2868_v18  ;;  %v3703_v29 = vpop.f32.mrb[70].mxu0  ;;  %v2622_v25 = vld [vmem:[#allocation2 + $0x201] ss:$2 sm:$0xff]  ;;  %v2510_v49 = vld [vmem:[#allocation2 + $0x580] ss:$2 sm:$0xff] }
 0x168   :  { %2291 = vst.msk [vmem:[#allocation2 + $0x5a8] sm:$0xff] %vm2109_vm4, %v1896_v20  ;;  %v2969_v28 = vmax.f32 %v2908_v23, 0.0  ;;  %2178 = vst.msk [vmem:[#allocation2 + $0x220] sm:$0xff] %vm2109_vm4, %v1331_v24  ;;  %v3871_v30 = vpop.f32.mrb[70].mxu1  ;;  %v1346_v33 = vadd.f32 %v5172_v32, %v3703_v29  ;;  %v1340_v35 = vpop.f32.mrb[71].mxu0  ;;  %v2813_v57 = vmax.f32 %v2398_v44, %v2622_v25 }
 0x169   :  { %2290 = vst.msk [vmem:[#allocation2 + $0x5a0] sm:$0xff] %vm2109_vm4, %v1891_v26  ;;  %v2997_v31 = vmax.f32 %v2936_v27, 0.0  ;;  %v1906_v34 = vadd.f32 %v5172_v32, %v3871_v30  ;;  %v1900_v36 = vpop.f32.mrb[71].mxu1  ;;  %v1341_v39 = vadd.f32 %v5172_v32, %v1340_v35  ;;  %v2734_v50 = vld [vmem:[#allocation2 + $0x581] ss:$2 sm:$0xff] }
 0x16a   :  { %v3025_v37 = vsel %vm2953_vm5, %v2969_v28, 0.0  ;;  %v1901_v40 = vadd.f32 %v5172_v32, %v1900_v36  ;;  %2181 = vst.msk [vmem:[#allocation2 + $0x238] sm:$0xff] %vm2109_vm4, %v1346_v33  ;;  %v2869_v63 = vmax.f32 %v2510_v49, %v2734_v50 }
 0x16b   :  { %3095 = vst.msk [vmem:[%s5673_s3 + $0x90] sm:$0xff] %vm2109_vm4, %v3025_v37  ;;  %v3053_v41 = vsel %vm2953_vm5, %v2997_v31, 0.0  ;;  %2293 = vst.msk [vmem:[#allocation2 + $0x5b8] sm:$0xff] %vm2109_vm4, %v1906_v34  ;;  %v3706_v42 = vpop.f32.mrb[72].mxu0 }
 0x16c   :  { %3123 = vst.msk [vmem:[%s5673_s3 + $0x1a8] sm:$0xff] %vm2109_vm4, %v3053_v41  ;;  %2180 = vst.msk [vmem:[#allocation2 + $0x230] sm:$0xff] %vm2109_vm4, %v1341_v39  ;;  %v3874_v43 = vpop.f32.mrb[72].mxu1  ;;  %v1356_v45 = vadd.f32 %v5172_v32, %v3706_v42  ;;  %v1350_v47 = vpop.f32.mrb[73].mxu0  ;;  %v2400_v53 = vld [vmem:[#allocation2 + $0x210] ss:$2 sm:$0xff] }
 0x16d   :  { %2292 = vst.msk [vmem:[#allocation2 + $0x5b0] sm:$0xff] %vm2109_vm4, %v1901_v40  ;;  %v1916_v46 = vadd.f32 %v5172_v32, %v3874_v43  ;;  %v1910_v48 = vpop.f32.mrb[73].mxu1  ;;  %v1351_v51 = vadd.f32 %v5172_v32, %v1350_v47  ;;  %v2624_v58 = vld [vmem:[#allocation2 + $0x211] ss:$2 sm:$0xff]  ;;  %v2512_v0 = vld [vmem:[#allocation2 + $0x590] ss:$2 sm:$0xff] }
 0x16e   :  { %v1911_v52 = vadd.f32 %v5172_v32, %v1910_v48  ;;  %2183 = vst.msk [vmem:[#allocation2 + $0x248] sm:$0xff] %vm2109_vm4, %v1356_v45  ;;  %v2736_v1 = vld [vmem:[#allocation2 + $0x591] ss:$2 sm:$0xff]  ;;  %v2814_v14 = vmax.f32 %v2400_v53, %v2624_v58 }
 0x16f   :  { %v2402_v54 = vld [vmem:[#allocation2 + $0x220] ss:$2 sm:$0xff]  ;;  %v2626_v55 = vld [vmem:[#allocation2 + $0x221] ss:$2 sm:$0xff]  ;;  %2295 = vst.msk [vmem:[#allocation2 + $0x5c8] sm:$0xff] %vm2109_vm4, %v1916_v46  ;;  %2182 = vst.msk [vmem:[#allocation2 + $0x240] sm:$0xff] %vm2109_vm4, %v1351_v51  ;;  %v2870_v15 = vmax.f32 %v2512_v0, %v2736_v1 }
 0x170   :  { %v2514_v56 = vld [vmem:[#allocation2 + $0x5a0] ss:$2 sm:$0xff]  ;;  %v2815_v59 = vmax.f32 %v2402_v54, %v2626_v55  ;;  %v2738_v60 = vld [vmem:[#allocation2 + $0x5a1] ss:$2 sm:$0xff]  ;;  %2294 = vst.msk [vmem:[#allocation2 + $0x5c0] sm:$0xff] %vm2109_vm4, %v1911_v52  ;;  %v3709_v61 = vpop.f32.mrb[74].mxu0 }
 0x171   :  { %v3877_v62 = vpop.f32.mrb[74].mxu1  ;;  %v2871_v2 = vmax.f32 %v2514_v56, %v2738_v60  ;;  %v1366_v3 = vadd.f32 %v5172_v32, %v3709_v61  ;;  %v1360_v5 = vpop.f32.mrb[75].mxu0 }
 0x172   :  { %v1926_v4 = vadd.f32 %v5172_v32, %v3877_v62  ;;  %v1920_v6 = vpop.f32.mrb[75].mxu1  ;;  %v2909_v7 = vmax.f32 %v2813_v57, %v2815_v59  ;;  %v1361_v8 = vadd.f32 %v5172_v32, %v1360_v5 }
 0x173   :  { %v1921_v9 = vadd.f32 %v5172_v32, %v1920_v6  ;;  %v2937_v10 = vmax.f32 %v2869_v63, %v2871_v2  ;;  %v2404_v11 = vld [vmem:[#allocation2 + $0x230] ss:$2 sm:$0xff]  ;;  %v2628_v12 = vld [vmem:[#allocation2 + $0x231] ss:$2 sm:$0xff]  ;;  %2185 = vst.msk [vmem:[#allocation2 + $0x258] sm:$0xff] %vm2109_vm4, %v1366_v3  ;;  %v3712_v19 = vpop.f32.mrb[76].mxu0 }
 0x174   :  { %v2516_v13 = vld [vmem:[#allocation2 + $0x5b0] ss:$2 sm:$0xff]  ;;  %2297 = vst.msk [vmem:[#allocation2 + $0x5d8] sm:$0xff] %vm2109_vm4, %v1926_v4  ;;  %v2970_v16 = vmax.f32 %v2909_v7, 0.0  ;;  %v2816_v17 = vmax.f32 %v2404_v11, %v2628_v12  ;;  %v2740_v18 = vld [vmem:[#allocation2 + $0x5b1] ss:$2 sm:$0xff]  ;;  %v1376_v23 = vadd.f32 %v5172_v32, %v3712_v19 }
 0x175   :  { %2184 = vst.msk [vmem:[#allocation2 + $0x250] sm:$0xff] %vm2109_vm4, %v1361_v8  ;;  %2296 = vst.msk [vmem:[#allocation2 + $0x5d0] sm:$0xff] %vm2109_vm4, %v1921_v9  ;;  %v3880_v20 = vpop.f32.mrb[76].mxu1  ;;  %v2998_v21 = vmax.f32 %v2937_v10, 0.0  ;;  %v2872_v22 = vmax.f32 %v2516_v13, %v2740_v18  ;;  %v1370_v26 = vpop.f32.mrb[77].mxu0 }
 0x176   :  { %v1936_v24 = vadd.f32 %v5172_v32, %v3880_v20  ;;  %v1930_v27 = vpop.f32.mrb[77].mxu1  ;;  %3096 = vst.msk [vmem:[%s5673_s3 + $0x98] sm:$0xff] %vm2109_vm4, %v2970_v16  ;;  %v2910_v28 = vmax.f32 %v2814_v14, %v2816_v17  ;;  %v1371_v29 = vadd.f32 %v5172_v32, %v1370_v26  ;;  %2187 = vst.msk [vmem:[#allocation2 + $0x268] sm:$0xff] %vm2109_vm4, %v1376_v23  ;;  %v2406_v47 = vld [vmem:[#allocation2 + $0x240] ss:$2 sm:$0xff] }
 0x177   :  { %v1931_v30 = vadd.f32 %v5172_v32, %v1930_v27  ;;  %3124 = vst.msk [vmem:[%s5673_s3 + $0x1b0] sm:$0xff] %vm2109_vm4, %v2998_v21  ;;  %v2938_v31 = vmax.f32 %v2870_v15, %v2872_v22  ;;  %v3715_v34 = vpop.f32.mrb[78].mxu0  ;;  %v2630_v48 = vld [vmem:[#allocation2 + $0x241] ss:$2 sm:$0xff]  ;;  %v2518_v53 = vld [vmem:[#allocation2 + $0x5c0] ss:$2 sm:$0xff] }
 0x178   :  { %2299 = vst.msk [vmem:[#allocation2 + $0x5e8] sm:$0xff] %vm2109_vm4, %v1936_v24  ;;  %v2971_v33 = vmax.f32 %v2910_v28, 0.0  ;;  %2186 = vst.msk [vmem:[#allocation2 + $0x260] sm:$0xff] %vm2109_vm4, %v1371_v29  ;;  %v3883_v35 = vpop.f32.mrb[78].mxu1  ;;  %v1386_v37 = vadd.f32 %v5172_v32, %v3715_v34  ;;  %v1380_v40 = vpop.f32.mrb[79].mxu0  ;;  %v2817_v61 = vmax.f32 %v2406_v47, %v2630_v48 }
 0x179   :  { %2298 = vst.msk [vmem:[#allocation2 + $0x5e0] sm:$0xff] %vm2109_vm4, %v1931_v30  ;;  %v2999_v36 = vmax.f32 %v2938_v31, 0.0  ;;  %v1946_v39 = vadd.f32 %v5172_v32, %v3883_v35  ;;  %v1940_v41 = vpop.f32.mrb[79].mxu1  ;;  %v1381_v43 = vadd.f32 %v5172_v32, %v1380_v40  ;;  %v2742_v54 = vld [vmem:[#allocation2 + $0x5c1] ss:$2 sm:$0xff] }
 0x17a   :  { %v3027_v42 = vsel %vm2953_vm5, %v2971_v33, 0.0  ;;  %v1941_v44 = vadd.f32 %v5172_v32, %v1940_v41  ;;  %2189 = vst.msk [vmem:[#allocation2 + $0x278] sm:$0xff] %vm2109_vm4, %v1386_v37  ;;  %v2873_v3 = vmax.f32 %v2518_v53, %v2742_v54 }
 0x17b   :  { %3097 = vst.msk [vmem:[%s5673_s3 + $0xa0] sm:$0xff] %vm2109_vm4, %v3027_v42  ;;  %v3055_v25 = vsel %vm2953_vm5, %v2999_v36, 0.0  ;;  %2301 = vst.msk [vmem:[#allocation2 + $0x5f8] sm:$0xff] %vm2109_vm4, %v1946_v39  ;;  %v3718_v45 = vpop.f32.mrb[80].mxu0 }
 0x17c   :  { %3125 = vst.msk [vmem:[%s5673_s3 + $0x1b8] sm:$0xff] %vm2109_vm4, %v3055_v25  ;;  %2188 = vst.msk [vmem:[#allocation2 + $0x270] sm:$0xff] %vm2109_vm4, %v1381_v43  ;;  %v3886_v46 = vpop.f32.mrb[80].mxu1  ;;  %v1396_v49 = vadd.f32 %v5172_v32, %v3718_v45  ;;  %v1390_v51 = vpop.f32.mrb[81].mxu0  ;;  %v2408_v57 = vld [vmem:[#allocation2 + $0x250] ss:$2 sm:$0xff] }
 0x17d   :  { %2300 = vst.msk [vmem:[#allocation2 + $0x5f0] sm:$0xff] %vm2109_vm4, %v1941_v44  ;;  %v1956_v50 = vadd.f32 %v5172_v32, %v3886_v46  ;;  %v1950_v52 = vpop.f32.mrb[81].mxu1  ;;  %v1391_v55 = vadd.f32 %v5172_v32, %v1390_v51  ;;  %v2632_v62 = vld [vmem:[#allocation2 + $0x251] ss:$2 sm:$0xff]  ;;  %v2520_v4 = vld [vmem:[#allocation2 + $0x5d0] ss:$2 sm:$0xff] }
 0x17e   :  { %v1951_v56 = vadd.f32 %v5172_v32, %v1950_v52  ;;  %2191 = vst.msk [vmem:[#allocation2 + $0x288] sm:$0xff] %vm2109_vm4, %v1396_v49  ;;  %v2744_v5 = vld [vmem:[#allocation2 + $0x5d1] ss:$2 sm:$0xff]  ;;  %v2818_v18 = vmax.f32 %v2408_v57, %v2632_v62 }
 0x17f   :  { %v2410_v58 = vld [vmem:[#allocation2 + $0x260] ss:$2 sm:$0xff]  ;;  %v2634_v59 = vld [vmem:[#allocation2 + $0x261] ss:$2 sm:$0xff]  ;;  %2303 = vst.msk [vmem:[#allocation2 + $0x608] sm:$0xff] %vm2109_vm4, %v1956_v50  ;;  %2190 = vst.msk [vmem:[#allocation2 + $0x280] sm:$0xff] %vm2109_vm4, %v1391_v55  ;;  %v2874_v19 = vmax.f32 %v2520_v4, %v2744_v5 }
 0x180   :  { %v2522_v60 = vld [vmem:[#allocation2 + $0x5e0] ss:$2 sm:$0xff]  ;;  %v2819_v63 = vmax.f32 %v2410_v58, %v2634_v59  ;;  %v2746_v0 = vld [vmem:[#allocation2 + $0x5e1] ss:$2 sm:$0xff]  ;;  %2302 = vst.msk [vmem:[#allocation2 + $0x600] sm:$0xff] %vm2109_vm4, %v1951_v56  ;;  %v3721_v1 = vpop.f32.mrb[82].mxu0 }
 0x181   :  { %v3889_v2 = vpop.f32.mrb[82].mxu1  ;;  %v2875_v6 = vmax.f32 %v2522_v60, %v2746_v0  ;;  %v1406_v7 = vadd.f32 %v5172_v32, %v3721_v1  ;;  %v1400_v9 = vpop.f32.mrb[83].mxu0 }
 0x182   :  { %v1966_v8 = vadd.f32 %v5172_v32, %v3889_v2  ;;  %v1960_v10 = vpop.f32.mrb[83].mxu1  ;;  %v2911_v11 = vmax.f32 %v2817_v61, %v2819_v63  ;;  %v1401_v12 = vadd.f32 %v5172_v32, %v1400_v9 }
 0x183   :  { %v1961_v13 = vadd.f32 %v5172_v32, %v1960_v10  ;;  %v2939_v14 = vmax.f32 %v2873_v3, %v2875_v6  ;;  %v2412_v15 = vld [vmem:[#allocation2 + $0x270] ss:$2 sm:$0xff]  ;;  %v2636_v16 = vld [vmem:[#allocation2 + $0x271] ss:$2 sm:$0xff]  ;;  %2193 = vst.msk [vmem:[#allocation2 + $0x298] sm:$0xff] %vm2109_vm4, %v1406_v7  ;;  %v3724_v23 = vpop.f32.mrb[84].mxu0 }
 0x184   :  { %v2524_v17 = vld [vmem:[#allocation2 + $0x5f0] ss:$2 sm:$0xff]  ;;  %2305 = vst.msk [vmem:[#allocation2 + $0x618] sm:$0xff] %vm2109_vm4, %v1966_v8  ;;  %v2972_v20 = vmax.f32 %v2911_v11, 0.0  ;;  %v2820_v21 = vmax.f32 %v2412_v15, %v2636_v16  ;;  %v2748_v22 = vld [vmem:[#allocation2 + $0x5f1] ss:$2 sm:$0xff]  ;;  %v1416_v28 = vadd.f32 %v5172_v32, %v3724_v23 }
 0x185   :  { %2192 = vst.msk [vmem:[#allocation2 + $0x290] sm:$0xff] %vm2109_vm4, %v1401_v12  ;;  %2304 = vst.msk [vmem:[#allocation2 + $0x610] sm:$0xff] %vm2109_vm4, %v1961_v13  ;;  %v3892_v24 = vpop.f32.mrb[84].mxu1  ;;  %v3000_v26 = vmax.f32 %v2939_v14, 0.0  ;;  %v2876_v27 = vmax.f32 %v2524_v17, %v2748_v22  ;;  %v1410_v30 = vpop.f32.mrb[85].mxu0 }
 0x186   :  { %v1976_v29 = vadd.f32 %v5172_v32, %v3892_v24  ;;  %v1970_v31 = vpop.f32.mrb[85].mxu1  ;;  %3098 = vst.msk [vmem:[%s5673_s3 + $0xa8] sm:$0xff] %vm2109_vm4, %v2972_v20  ;;  %v2912_v33 = vmax.f32 %v2818_v18, %v2820_v21  ;;  %v1411_v34 = vadd.f32 %v5172_v32, %v1410_v30  ;;  %2195 = vst.msk [vmem:[#allocation2 + $0x2a8] sm:$0xff] %vm2109_vm4, %v1416_v28  ;;  %v2414_v51 = vld [vmem:[#allocation2 + $0x280] ss:$2 sm:$0xff] }
 0x187   :  { %v1971_v35 = vadd.f32 %v5172_v32, %v1970_v31  ;;  %3126 = vst.msk [vmem:[%s5673_s3 + $0x1c0] sm:$0xff] %vm2109_vm4, %v3000_v26  ;;  %v2940_v36 = vmax.f32 %v2874_v19, %v2876_v27  ;;  %v3727_v39 = vpop.f32.mrb[86].mxu0  ;;  %v2638_v52 = vld [vmem:[#allocation2 + $0x281] ss:$2 sm:$0xff]  ;;  %v2526_v57 = vld [vmem:[#allocation2 + $0x600] ss:$2 sm:$0xff] }
 0x188   :  { %2307 = vst.msk [vmem:[#allocation2 + $0x628] sm:$0xff] %vm2109_vm4, %v1976_v29  ;;  %v2973_v37 = vmax.f32 %v2912_v33, 0.0  ;;  %2194 = vst.msk [vmem:[#allocation2 + $0x2a0] sm:$0xff] %vm2109_vm4, %v1411_v34  ;;  %v3895_v40 = vpop.f32.mrb[86].mxu1  ;;  %v1426_v42 = vadd.f32 %v5172_v32, %v3727_v39  ;;  %v1420_v44 = vpop.f32.mrb[87].mxu0  ;;  %v2821_v1 = vmax.f32 %v2414_v51, %v2638_v52 }
 0x189   :  { %2306 = vst.msk [vmem:[#allocation2 + $0x620] sm:$0xff] %vm2109_vm4, %v1971_v35  ;;  %v3001_v41 = vmax.f32 %v2940_v36, 0.0  ;;  %v1986_v43 = vadd.f32 %v5172_v32, %v3895_v40  ;;  %v1980_v25 = vpop.f32.mrb[87].mxu1  ;;  %v1421_v46 = vadd.f32 %v5172_v32, %v1420_v44  ;;  %v2750_v58 = vld [vmem:[#allocation2 + $0x601] ss:$2 sm:$0xff] }
 0x18a   :  { %v3029_v45 = vsel %vm2953_vm5, %v2973_v37, 0.0  ;;  %v1981_v47 = vadd.f32 %v5172_v32, %v1980_v25  ;;  %2197 = vst.msk [vmem:[#allocation2 + $0x2b8] sm:$0xff] %vm2109_vm4, %v1426_v42  ;;  %v2877_v7 = vmax.f32 %v2526_v57, %v2750_v58 }
 0x18b   :  { %3099 = vst.msk [vmem:[%s5673_s3 + $0xb0] sm:$0xff] %vm2109_vm4, %v3029_v45  ;;  %v3057_v48 = vsel %vm2953_vm5, %v3001_v41, 0.0  ;;  %2309 = vst.msk [vmem:[#allocation2 + $0x638] sm:$0xff] %vm2109_vm4, %v1986_v43  ;;  %v3730_v49 = vpop.f32.mrb[88].mxu0 }
 0x18c   :  { %3127 = vst.msk [vmem:[%s5673_s3 + $0x1c8] sm:$0xff] %vm2109_vm4, %v3057_v48  ;;  %2196 = vst.msk [vmem:[#allocation2 + $0x2b0] sm:$0xff] %vm2109_vm4, %v1421_v46  ;;  %v3898_v50 = vpop.f32.mrb[88].mxu1  ;;  %v1436_v53 = vadd.f32 %v5172_v32, %v3730_v49  ;;  %v1430_v55 = vpop.f32.mrb[89].mxu0  ;;  %v2416_v61 = vld [vmem:[#allocation2 + $0x290] ss:$2 sm:$0xff] }
 0x18d   :  { %2308 = vst.msk [vmem:[#allocation2 + $0x630] sm:$0xff] %vm2109_vm4, %v1981_v47  ;;  %v1996_v54 = vadd.f32 %v5172_v32, %v3898_v50  ;;  %v1990_v56 = vpop.f32.mrb[89].mxu1  ;;  %v1431_v59 = vadd.f32 %v5172_v32, %v1430_v55  ;;  %v2640_v2 = vld [vmem:[#allocation2 + $0x291] ss:$2 sm:$0xff]  ;;  %v2528_v8 = vld [vmem:[#allocation2 + $0x610] ss:$2 sm:$0xff] }
 0x18e   :  { %v1991_v60 = vadd.f32 %v5172_v32, %v1990_v56  ;;  %2199 = vst.msk [vmem:[#allocation2 + $0x2c8] sm:$0xff] %vm2109_vm4, %v1436_v53  ;;  %v2752_v9 = vld [vmem:[#allocation2 + $0x611] ss:$2 sm:$0xff]  ;;  %v2822_v22 = vmax.f32 %v2416_v61, %v2640_v2 }
 0x18f   :  { %v2418_v62 = vld [vmem:[#allocation2 + $0x2a0] ss:$2 sm:$0xff]  ;;  %v2642_v63 = vld [vmem:[#allocation2 + $0x2a1] ss:$2 sm:$0xff]  ;;  %2311 = vst.msk [vmem:[#allocation2 + $0x648] sm:$0xff] %vm2109_vm4, %v1996_v54  ;;  %2198 = vst.msk [vmem:[#allocation2 + $0x2c0] sm:$0xff] %vm2109_vm4, %v1431_v59  ;;  %v2878_v23 = vmax.f32 %v2528_v8, %v2752_v9 }
 0x190   :  { %v2530_v0 = vld [vmem:[#allocation2 + $0x620] ss:$2 sm:$0xff]  ;;  %v2823_v3 = vmax.f32 %v2418_v62, %v2642_v63  ;;  %v2754_v4 = vld [vmem:[#allocation2 + $0x621] ss:$2 sm:$0xff]  ;;  %2310 = vst.msk [vmem:[#allocation2 + $0x640] sm:$0xff] %vm2109_vm4, %v1991_v60  ;;  %v3733_v5 = vpop.f32.mrb[90].mxu0 }
 0x191   :  { %v3901_v6 = vpop.f32.mrb[90].mxu1  ;;  %v2879_v10 = vmax.f32 %v2530_v0, %v2754_v4  ;;  %v1446_v11 = vadd.f32 %v5172_v32, %v3733_v5  ;;  %v1440_v13 = vpop.f32.mrb[91].mxu0 }
 0x192   :  { %v2006_v12 = vadd.f32 %v5172_v32, %v3901_v6  ;;  %v2000_v14 = vpop.f32.mrb[91].mxu1  ;;  %v2913_v15 = vmax.f32 %v2821_v1, %v2823_v3  ;;  %v1441_v16 = vadd.f32 %v5172_v32, %v1440_v13 }
 0x193   :  { %v2001_v17 = vadd.f32 %v5172_v32, %v2000_v14  ;;  %v2941_v18 = vmax.f32 %v2877_v7, %v2879_v10  ;;  %v2420_v19 = vld [vmem:[#allocation2 + $0x2b0] ss:$2 sm:$0xff]  ;;  %v2644_v20 = vld [vmem:[#allocation2 + $0x2b1] ss:$2 sm:$0xff]  ;;  %2201 = vst.msk [vmem:[#allocation2 + $0x2d8] sm:$0xff] %vm2109_vm4, %v1446_v11  ;;  %v3736_v28 = vpop.f32.mrb[92].mxu0 }
 0x194   :  { %v2532_v21 = vld [vmem:[#allocation2 + $0x630] ss:$2 sm:$0xff]  ;;  %2313 = vst.msk [vmem:[#allocation2 + $0x658] sm:$0xff] %vm2109_vm4, %v2006_v12  ;;  %v2974_v24 = vmax.f32 %v2913_v15, 0.0  ;;  %v2824_v26 = vmax.f32 %v2420_v19, %v2644_v20  ;;  %v2756_v27 = vld [vmem:[#allocation2 + $0x631] ss:$2 sm:$0xff]  ;;  %v1456_v33 = vadd.f32 %v5172_v32, %v3736_v28 }
 0x195   :  { %2200 = vst.msk [vmem:[#allocation2 + $0x2d0] sm:$0xff] %vm2109_vm4, %v1441_v16  ;;  %2312 = vst.msk [vmem:[#allocation2 + $0x650] sm:$0xff] %vm2109_vm4, %v2001_v17  ;;  %v3904_v29 = vpop.f32.mrb[92].mxu1  ;;  %v3002_v30 = vmax.f32 %v2941_v18, 0.0  ;;  %v2880_v31 = vmax.f32 %v2532_v21, %v2756_v27  ;;  %v1450_v35 = vpop.f32.mrb[93].mxu0 }
 0x196   :  { %v2016_v34 = vadd.f32 %v5172_v32, %v3904_v29  ;;  %v2010_v36 = vpop.f32.mrb[93].mxu1  ;;  %3100 = vst.msk [vmem:[%s5673_s3 + $0xb8] sm:$0xff] %vm2109_vm4, %v2974_v24  ;;  %v2914_v37 = vmax.f32 %v2822_v22, %v2824_v26  ;;  %v1451_v39 = vadd.f32 %v5172_v32, %v1450_v35  ;;  %2203 = vst.msk [vmem:[#allocation2 + $0x2e8] sm:$0xff] %vm2109_vm4, %v1456_v33  ;;  %v2422_v55 = vld [vmem:[#allocation2 + $0x2c0] ss:$2 sm:$0xff] }
 0x197   :  { %v2011_v40 = vadd.f32 %v5172_v32, %v2010_v36  ;;  %3128 = vst.msk [vmem:[%s5673_s3 + $0x1d0] sm:$0xff] %vm2109_vm4, %v3002_v30  ;;  %v2942_v41 = vmax.f32 %v2878_v23, %v2880_v31  ;;  %v3739_v43 = vpop.f32.mrb[94].mxu0  ;;  %v5524_v32 = vld [vmem:[%s5672_s2] ss:$0 sm:$0xff]  ;;  %v2646_v56 = vld [vmem:[#allocation2 + $0x2c1] ss:$2 sm:$0xff] }
 0x198   :  { %2315 = vst.msk [vmem:[#allocation2 + $0x668] sm:$0xff] %vm2109_vm4, %v2016_v34  ;;  %v2975_v42 = vmax.f32 %v2914_v37, 0.0  ;;  %2202 = vst.msk [vmem:[#allocation2 + $0x2e0] sm:$0xff] %vm2109_vm4, %v1451_v39  ;;  %v3907_v44 = vpop.f32.mrb[94].mxu1  ;;  %v1466_v45 = vadd.f32 %v5524_v32, %v3739_v43  ;;  %v1460_v47 = vpop.f32.mrb[95].mxu0  ;;  %v2825_v5 = vmax.f32 %v2422_v55, %v2646_v56 }
 0x199   :  { %2314 = vst.msk [vmem:[#allocation2 + $0x660] sm:$0xff] %vm2109_vm4, %v2011_v40  ;;  %v3003_v25 = vmax.f32 %v2942_v41, 0.0  ;;  %v2026_v46 = vadd.f32 %v5524_v32, %v3907_v44  ;;  %v2020_v48 = vpop.f32.mrb[95].mxu1  ;;  %v1461_v50 = vadd.f32 %v5524_v32, %v1460_v47  ;;  %v2534_v61 = vld [vmem:[#allocation2 + $0x640] ss:$2 sm:$0xff] }
 0x19a   :  { %v3031_v49 = vsel %vm2953_vm5, %v2975_v42, 0.0  ;;  %v2021_v51 = vadd.f32 %v5524_v32, %v2020_v48  ;;  %2205 = vst.msk [vmem:[#allocation2 + $0x2f8] sm:$0xff] %vm2109_vm4, %v1466_v45  ;;  %v2758_v62 = vld [vmem:[#allocation2 + $0x641] ss:$2 sm:$0xff] }
 0x19b   :  { %3101 = vst.msk [vmem:[%s5673_s3 + $0xc0] sm:$0xff] %vm2109_vm4, %v3031_v49  ;;  %v3059_v52 = vsel %vm2953_vm5, %v3003_v25, 0.0  ;;  %2317 = vst.msk [vmem:[#allocation2 + $0x678] sm:$0xff] %vm2109_vm4, %v2026_v46  ;;  %v3742_v53 = vpop.f32.mrb[96].mxu0  ;;  %v2881_v11 = vmax.f32 %v2534_v61, %v2758_v62 }
 0x19c   :  { %3129 = vst.msk [vmem:[%s5673_s3 + $0x1d8] sm:$0xff] %vm2109_vm4, %v3059_v52  ;;  %2204 = vst.msk [vmem:[#allocation2 + $0x2f0] sm:$0xff] %vm2109_vm4, %v1461_v50  ;;  %v3910_v54 = vpop.f32.mrb[96].mxu1  ;;  %v1476_v57 = vadd.f32 %v5524_v32, %v3742_v53  ;;  %v1470_v59 = vpop.f32.mrb[97].mxu0  ;;  %v2424_v1 = vld [vmem:[#allocation2 + $0x2d0] ss:$2 sm:$0xff] }
 0x19d   :  { %2316 = vst.msk [vmem:[#allocation2 + $0x670] sm:$0xff] %vm2109_vm4, %v2021_v51  ;;  %v2036_v58 = vadd.f32 %v5524_v32, %v3910_v54  ;;  %v2030_v60 = vpop.f32.mrb[97].mxu1  ;;  %v1471_v63 = vadd.f32 %v5524_v32, %v1470_v59  ;;  %v2648_v6 = vld [vmem:[#allocation2 + $0x2d1] ss:$2 sm:$0xff]  ;;  %v2536_v12 = vld [vmem:[#allocation2 + $0x650] ss:$2 sm:$0xff] }
 0x19e   :  { %v2031_v0 = vadd.f32 %v5524_v32, %v2030_v60  ;;  %2207 = vst.msk [vmem:[#allocation2 + $0x308] sm:$0xff] %vm2109_vm4, %v1476_v57  ;;  %v2760_v13 = vld [vmem:[#allocation2 + $0x651] ss:$2 sm:$0xff]  ;;  %v2826_v27 = vmax.f32 %v2424_v1, %v2648_v6 }
 0x19f   :  { %v2426_v2 = vld [vmem:[#allocation2 + $0x2e0] ss:$2 sm:$0xff]  ;;  %v2650_v3 = vld [vmem:[#allocation2 + $0x2e1] ss:$2 sm:$0xff]  ;;  %2319 = vst.msk [vmem:[#allocation2 + $0x688] sm:$0xff] %vm2109_vm4, %v2036_v58  ;;  %2206 = vst.msk [vmem:[#allocation2 + $0x300] sm:$0xff] %vm2109_vm4, %v1471_v63  ;;  %v2882_v28 = vmax.f32 %v2536_v12, %v2760_v13 }
 0x1a0   :  { %v2538_v4 = vld [vmem:[#allocation2 + $0x660] ss:$2 sm:$0xff]  ;;  %v2827_v7 = vmax.f32 %v2426_v2, %v2650_v3  ;;  %v2762_v8 = vld [vmem:[#allocation2 + $0x661] ss:$2 sm:$0xff]  ;;  %2318 = vst.msk [vmem:[#allocation2 + $0x680] sm:$0xff] %vm2109_vm4, %v2031_v0  ;;  %v3745_v9 = vpop.f32.mrb[98].mxu0 }
 0x1a1   :  { %v3913_v10 = vpop.f32.mrb[98].mxu1  ;;  %v2883_v14 = vmax.f32 %v2538_v4, %v2762_v8  ;;  %v1486_v15 = vadd.f32 %v5524_v32, %v3745_v9  ;;  %v1480_v17 = vpop.f32.mrb[99].mxu0 }
 0x1a2   :  { %v2046_v16 = vadd.f32 %v5524_v32, %v3913_v10  ;;  %v2040_v18 = vpop.f32.mrb[99].mxu1  ;;  %v2915_v19 = vmax.f32 %v2825_v5, %v2827_v7  ;;  %v1481_v20 = vadd.f32 %v5524_v32, %v1480_v17 }
 0x1a3   :  { %v2041_v21 = vadd.f32 %v5524_v32, %v2040_v18  ;;  %v2943_v22 = vmax.f32 %v2881_v11, %v2883_v14  ;;  %v2428_v23 = vld [vmem:[#allocation2 + $0x2f0] ss:$2 sm:$0xff]  ;;  %v2652_v24 = vld [vmem:[#allocation2 + $0x2f1] ss:$2 sm:$0xff]  ;;  %2209 = vst.msk [vmem:[#allocation2 + $0x318] sm:$0xff] %vm2109_vm4, %v1486_v15  ;;  %v3748_v33 = vpop.f32.mrb[100].mxu0 }
 0x1a4   :  { %v2540_v26 = vld [vmem:[#allocation2 + $0x670] ss:$2 sm:$0xff]  ;;  %2321 = vst.msk [vmem:[#allocation2 + $0x698] sm:$0xff] %vm2109_vm4, %v2046_v16  ;;  %v2976_v29 = vmax.f32 %v2915_v19, 0.0  ;;  %v2828_v30 = vmax.f32 %v2428_v23, %v2652_v24  ;;  %v2764_v31 = vld [vmem:[#allocation2 + $0x671] ss:$2 sm:$0xff]  ;;  %v1496_v37 = vadd.f32 %v5524_v32, %v3748_v33 }
 0x1a5   :  { %2208 = vst.msk [vmem:[#allocation2 + $0x310] sm:$0xff] %vm2109_vm4, %v1481_v20  ;;  %2320 = vst.msk [vmem:[#allocation2 + $0x690] sm:$0xff] %vm2109_vm4, %v2041_v21  ;;  %v3916_v34 = vpop.f32.mrb[100].mxu1  ;;  %v3004_v35 = vmax.f32 %v2943_v22, 0.0  ;;  %v2884_v36 = vmax.f32 %v2540_v26, %v2764_v31  ;;  %v1490_v40 = vpop.f32.mrb[101].mxu0 }
 0x1a6   :  { %v2056_v39 = vadd.f32 %v5524_v32, %v3916_v34  ;;  %v2050_v41 = vpop.f32.mrb[101].mxu1  ;;  %3102 = vst.msk [vmem:[%s5673_s3 + $0xc8] sm:$0xff] %vm2109_vm4, %v2976_v29  ;;  %v2916_v42 = vmax.f32 %v2826_v27, %v2828_v30  ;;  %v1491_v43 = vadd.f32 %v5524_v32, %v1490_v40  ;;  %2211 = vst.msk [vmem:[#allocation2 + $0x328] sm:$0xff] %vm2109_vm4, %v1496_v37  ;;  %v2430_v59 = vld [vmem:[#allocation2 + $0x300] ss:$2 sm:$0xff] }
 0x1a7   :  { %v2051_v44 = vadd.f32 %v5524_v32, %v2050_v41  ;;  %3130 = vst.msk [vmem:[%s5673_s3 + $0x1e0] sm:$0xff] %vm2109_vm4, %v3004_v35  ;;  %v2944_v25 = vmax.f32 %v2882_v28, %v2884_v36  ;;  %v3751_v46 = vpop.f32.mrb[102].mxu0  ;;  %v2654_v60 = vld [vmem:[#allocation2 + $0x301] ss:$2 sm:$0xff]  ;;  %v2542_v1 = vld [vmem:[#allocation2 + $0x680] ss:$2 sm:$0xff] }
 0x1a8   :  { %2323 = vst.msk [vmem:[#allocation2 + $0x6a8] sm:$0xff] %vm2109_vm4, %v2056_v39  ;;  %v2977_v45 = vmax.f32 %v2916_v42, 0.0  ;;  %2210 = vst.msk [vmem:[#allocation2 + $0x320] sm:$0xff] %vm2109_vm4, %v1491_v43  ;;  %v3919_v47 = vpop.f32.mrb[102].mxu1  ;;  %v1506_v49 = vadd.f32 %v5524_v32, %v3751_v46  ;;  %v1500_v51 = vpop.f32.mrb[103].mxu0  ;;  %v2829_v9 = vmax.f32 %v2430_v59, %v2654_v60 }
 0x1a9   :  { %2322 = vst.msk [vmem:[#allocation2 + $0x6a0] sm:$0xff] %vm2109_vm4, %v2051_v44  ;;  %v3005_v48 = vmax.f32 %v2944_v25, 0.0  ;;  %v2066_v50 = vadd.f32 %v5524_v32, %v3919_v47  ;;  %v2060_v52 = vpop.f32.mrb[103].mxu1  ;;  %v1501_v54 = vadd.f32 %v5524_v32, %v1500_v51  ;;  %v2766_v2 = vld [vmem:[#allocation2 + $0x681] ss:$2 sm:$0xff] }
 0x1aa   :  { %v3033_v53 = vsel %vm2953_vm5, %v2977_v45, 0.0  ;;  %v2061_v55 = vadd.f32 %v5524_v32, %v2060_v52  ;;  %2213 = vst.msk [vmem:[#allocation2 + $0x338] sm:$0xff] %vm2109_vm4, %v1506_v49  ;;  %v2885_v15 = vmax.f32 %v2542_v1, %v2766_v2 }
 0x1ab   :  { %3103 = vst.msk [vmem:[%s5673_s3 + $0xd0] sm:$0xff] %vm2109_vm4, %v3033_v53  ;;  %v3061_v56 = vsel %vm2953_vm5, %v3005_v48, 0.0  ;;  %2325 = vst.msk [vmem:[#allocation2 + $0x6b8] sm:$0xff] %vm2109_vm4, %v2066_v50  ;;  %v3754_v57 = vpop.f32.mrb[104].mxu0 }
 0x1ac   :  { %3131 = vst.msk [vmem:[%s5673_s3 + $0x1e8] sm:$0xff] %vm2109_vm4, %v3061_v56  ;;  %2212 = vst.msk [vmem:[#allocation2 + $0x330] sm:$0xff] %vm2109_vm4, %v1501_v54  ;;  %v3922_v58 = vpop.f32.mrb[104].mxu1  ;;  %v1516_v61 = vadd.f32 %v5524_v32, %v3754_v57  ;;  %v1510_v63 = vpop.f32.mrb[105].mxu0  ;;  %v2432_v5 = vld [vmem:[#allocation2 + $0x310] ss:$2 sm:$0xff] }
 0x1ad   :  { %2324 = vst.msk [vmem:[#allocation2 + $0x6b0] sm:$0xff] %vm2109_vm4, %v2061_v55  ;;  %v2076_v62 = vadd.f32 %v5524_v32, %v3922_v58  ;;  %v2070_v0 = vpop.f32.mrb[105].mxu1  ;;  %v1511_v3 = vadd.f32 %v5524_v32, %v1510_v63  ;;  %v2656_v10 = vld [vmem:[#allocation2 + $0x311] ss:$2 sm:$0xff]  ;;  %v2544_v16 = vld [vmem:[#allocation2 + $0x690] ss:$2 sm:$0xff] }
 0x1ae   :  { %v2071_v4 = vadd.f32 %v5524_v32, %v2070_v0  ;;  %2215 = vst.msk [vmem:[#allocation2 + $0x348] sm:$0xff] %vm2109_vm4, %v1516_v61  ;;  %v2768_v17 = vld [vmem:[#allocation2 + $0x691] ss:$2 sm:$0xff]  ;;  %v2830_v31 = vmax.f32 %v2432_v5, %v2656_v10 }
 0x1af   :  { %v2434_v6 = vld [vmem:[#allocation2 + $0x320] ss:$2 sm:$0xff]  ;;  %v2658_v7 = vld [vmem:[#allocation2 + $0x321] ss:$2 sm:$0xff]  ;;  %2327 = vst.msk [vmem:[#allocation2 + $0x6c8] sm:$0xff] %vm2109_vm4, %v2076_v62  ;;  %2214 = vst.msk [vmem:[#allocation2 + $0x340] sm:$0xff] %vm2109_vm4, %v1511_v3  ;;  %v2886_v33 = vmax.f32 %v2544_v16, %v2768_v17 }
 0x1b0   :  { %v2546_v8 = vld [vmem:[#allocation2 + $0x6a0] ss:$2 sm:$0xff]  ;;  %v2831_v11 = vmax.f32 %v2434_v6, %v2658_v7  ;;  %v2770_v12 = vld [vmem:[#allocation2 + $0x6a1] ss:$2 sm:$0xff]  ;;  %2326 = vst.msk [vmem:[#allocation2 + $0x6c0] sm:$0xff] %vm2109_vm4, %v2071_v4  ;;  %v3757_v13 = vpop.f32.mrb[106].mxu0 }
 0x1b1   :  { %v3925_v14 = vpop.f32.mrb[106].mxu1  ;;  %v2887_v18 = vmax.f32 %v2546_v8, %v2770_v12  ;;  %v1526_v19 = vadd.f32 %v5524_v32, %v3757_v13  ;;  %v1520_v21 = vpop.f32.mrb[107].mxu0 }
 0x1b2   :  { %v2086_v20 = vadd.f32 %v5524_v32, %v3925_v14  ;;  %v2080_v22 = vpop.f32.mrb[107].mxu1  ;;  %v2917_v23 = vmax.f32 %v2829_v9, %v2831_v11  ;;  %v1521_v24 = vadd.f32 %v5524_v32, %v1520_v21 }
 0x1b3   :  { %v2081_v26 = vadd.f32 %v5524_v32, %v2080_v22  ;;  %v2945_v27 = vmax.f32 %v2885_v15, %v2887_v18  ;;  %v2436_v28 = vld [vmem:[#allocation2 + $0x330] ss:$2 sm:$0xff]  ;;  %v2660_v29 = vld [vmem:[#allocation2 + $0x331] ss:$2 sm:$0xff]  ;;  %2217 = vst.msk [vmem:[#allocation2 + $0x358] sm:$0xff] %vm2109_vm4, %v1526_v19  ;;  %v3760_v37 = vpop.f32.mrb[108].mxu0 }
 0x1b4   :  { %v2548_v30 = vld [vmem:[#allocation2 + $0x6b0] ss:$2 sm:$0xff]  ;;  %2329 = vst.msk [vmem:[#allocation2 + $0x6d8] sm:$0xff] %vm2109_vm4, %v2086_v20  ;;  %v2978_v34 = vmax.f32 %v2917_v23, 0.0  ;;  %v2832_v35 = vmax.f32 %v2436_v28, %v2660_v29  ;;  %v2772_v36 = vld [vmem:[#allocation2 + $0x6b1] ss:$2 sm:$0xff]  ;;  %v1536_v42 = vadd.f32 %v5524_v32, %v3760_v37 }
 0x1b5   :  { %2216 = vst.msk [vmem:[#allocation2 + $0x350] sm:$0xff] %vm2109_vm4, %v1521_v24  ;;  %2328 = vst.msk [vmem:[#allocation2 + $0x6d0] sm:$0xff] %vm2109_vm4, %v2081_v26  ;;  %v3928_v39 = vpop.f32.mrb[108].mxu1  ;;  %v3006_v40 = vmax.f32 %v2945_v27, 0.0  ;;  %v2888_v41 = vmax.f32 %v2548_v30, %v2772_v36  ;;  %v1530_v44 = vpop.f32.mrb[109].mxu0 }
 0x1b6   :  { %v2096_v43 = vadd.f32 %v5524_v32, %v3928_v39  ;;  %v2090_v25 = vpop.f32.mrb[109].mxu1  ;;  %3104 = vst.msk [vmem:[%s5673_s3 + $0xd8] sm:$0xff] %vm2109_vm4, %v2978_v34  ;;  %v2918_v45 = vmax.f32 %v2830_v31, %v2832_v35  ;;  %v1531_v46 = vadd.f32 %v5524_v32, %v1530_v44  ;;  %2219 = vst.msk [vmem:[#allocation2 + $0x368] sm:$0xff] %vm2109_vm4, %v1536_v42  ;;  %v2662_v61 = vld [vmem:[#allocation2 + $0x341] ss:$2 sm:$0xff] }
 0x1b7   :  { %v2091_v47 = vadd.f32 %v5524_v32, %v2090_v25  ;;  %3132 = vst.msk [vmem:[%s5673_s3 + $0x1f0] sm:$0xff] %vm2109_vm4, %v3006_v40  ;;  %v2946_v48 = vmax.f32 %v2886_v33, %v2888_v41  ;;  %v3763_v50 = vpop.f32.mrb[110].mxu0  ;;  %v2550_v62 = vld [vmem:[#allocation2 + $0x6c0] ss:$2 sm:$0xff]  ;;  %v2774_v63 = vld [vmem:[#allocation2 + $0x6c1] ss:$2 sm:$0xff] }
 0x1b8   :  { %2331 = vst.msk [vmem:[#allocation2 + $0x6e8] sm:$0xff] %vm2109_vm4, %v2096_v43  ;;  %v2979_v49 = vmax.f32 %v2918_v45, 0.0  ;;  %2218 = vst.msk [vmem:[#allocation2 + $0x360] sm:$0xff] %vm2109_vm4, %v1531_v46  ;;  %v3931_v51 = vpop.f32.mrb[110].mxu1  ;;  %v1546_v53 = vadd.f32 %v5524_v32, %v3763_v50  ;;  %v1540_v55 = vpop.f32.mrb[111].mxu0  ;;  %v2889_v6 = vmax.f32 %v2550_v62, %v2774_v63 }
 0x1b9   :  { %2330 = vst.msk [vmem:[#allocation2 + $0x6e0] sm:$0xff] %vm2109_vm4, %v2091_v47  ;;  %v3007_v52 = vmax.f32 %v2946_v48, 0.0  ;;  %v2106_v54 = vadd.f32 %v5524_v32, %v3931_v51  ;;  %v2100_v56 = vpop.f32.mrb[111].mxu1  ;;  %v1541_v58 = vadd.f32 %v5524_v32, %v1540_v55 }
 0x1ba   :  { %v3035_v57 = vsel %vm2953_vm5, %v2979_v49, 0.0  ;;  %v2101_v59 = vadd.f32 %v5524_v32, %v2100_v56  ;;  %2221 = vst.msk [vmem:[#allocation2 + $0x378] sm:$0xff] %vm2109_vm4, %v1546_v53  ;;  %v2438_v32 = vld [vmem:[#allocation2 + $0x340] ss:$2 sm:$0xff] }
 0x1bb   :  { %3105 = vst.msk [vmem:[%s5673_s3 + $0xe0] sm:$0xff] %vm2109_vm4, %v3035_v57  ;;  %v3063_v60 = vsel %vm2953_vm5, %v3007_v52, 0.0  ;;  %2333 = vst.msk [vmem:[#allocation2 + $0x6f8] sm:$0xff] %vm2109_vm4, %v2106_v54  ;;  %v2833_v3 = vmax.f32 %v2438_v32, %v2662_v61 }
 0x1bc   :  { %3133 = vst.msk [vmem:[%s5673_s3 + $0x1f8] sm:$0xff] %vm2109_vm4, %v3063_v60  ;;  %2220 = vst.msk [vmem:[#allocation2 + $0x370] sm:$0xff] %vm2109_vm4, %v1541_v58  ;;  %v2440_v7 = vld [vmem:[#allocation2 + $0x350] ss:$2 sm:$0xff]  ;;  %v2664_v8 = vld [vmem:[#allocation2 + $0x351] ss:$2 sm:$0xff] }
 0x1bd   :  { %2332 = vst.msk [vmem:[#allocation2 + $0x6f0] sm:$0xff] %vm2109_vm4, %v2101_v59  ;;  %v2552_v10 = vld [vmem:[#allocation2 + $0x6d0] ss:$2 sm:$0xff]  ;;  %v2776_v11 = vld [vmem:[#allocation2 + $0x6d1] ss:$2 sm:$0xff]  ;;  %v2834_v17 = vmax.f32 %v2440_v7, %v2664_v8 }
 0x1be   :  { %v2890_v21 = vmax.f32 %v2552_v10, %v2776_v11 }
 0x1bf   :  { %v2442_v0 = vld [vmem:[#allocation2 + $0x360] ss:$2 sm:$0xff]  ;;  %v2666_v1 = vld [vmem:[#allocation2 + $0x361] ss:$2 sm:$0xff] }
 0x1c0   :  { %v2554_v2 = vld [vmem:[#allocation2 + $0x6e0] ss:$2 sm:$0xff]  ;;  %v2835_v4 = vmax.f32 %v2442_v0, %v2666_v1  ;;  %v2778_v5 = vld [vmem:[#allocation2 + $0x6e1] ss:$2 sm:$0xff] }
 0x1c1   :  { %v2891_v9 = vmax.f32 %v2554_v2, %v2778_v5 }
 0x1c2   :  { %v2919_v12 = vmax.f32 %v2833_v3, %v2835_v4 }
 0x1c3   :  { %v2947_v13 = vmax.f32 %v2889_v6, %v2891_v9  ;;  %v2444_v14 = vld [vmem:[#allocation2 + $0x370] ss:$2 sm:$0xff]  ;;  %v2668_v15 = vld [vmem:[#allocation2 + $0x371] ss:$2 sm:$0xff] }
 0x1c4   :  { %v2556_v16 = vld [vmem:[#allocation2 + $0x6f0] ss:$2 sm:$0xff]  ;;  %v2980_v18 = vmax.f32 %v2919_v12, 0.0  ;;  %v2836_v19 = vmax.f32 %v2444_v14, %v2668_v15  ;;  %v2780_v20 = vld [vmem:[#allocation2 + $0x6f1] ss:$2 sm:$0xff] }
 0x1c5   :  { %v3008_v22 = vmax.f32 %v2947_v13, 0.0  ;;  %v2892_v23 = vmax.f32 %v2556_v16, %v2780_v20 }
 0x1c6   :  { %3106 = vst.msk [vmem:[%s5673_s3 + $0xe8] sm:$0xff] %vm2109_vm4, %v2980_v18  ;;  %v2920_v24 = vmax.f32 %v2834_v17, %v2836_v19 }
 0x1c7   :  { %3134 = vst.msk [vmem:[%s5673_s3 + $0x200] sm:$0xff] %vm2109_vm4, %v3008_v22  ;;  %v2948_v26 = vmax.f32 %v2890_v21, %v2892_v23 }
 0x1c8   :  { %v2981_v27 = vmax.f32 %v2920_v24, 0.0 }
 0x1c9   :  { %v3009_v28 = vmax.f32 %v2948_v26, 0.0 }
 0x1ca   :  { %v3037_v29 = vsel %vm2953_vm5, %v2981_v27, 0.0 }
 0x1cb   :  { %3107 = vst.msk [vmem:[%s5673_s3 + $0xf0] sm:$0xff] %vm2109_vm4, %v3037_v29  ;;  %v3065_v30 = vsel %vm2953_vm5, %v3009_v28, 0.0 }
 0x1cc   :  { %3135 = vst.msk [vmem:[%s5673_s3 + $0x208] sm:$0xff] %vm2109_vm4, %v3065_v30 }

// kernel: cnn_forward.5
= control target key start
LH: loop header
LB: loop body
LE: loop exit
PB: predicated region body
PF: predicated region fallthrough
CT: control target
= control target key end

     0   :  { %v2778_v47 = vmov 1983009808   ;;  %v494_v49 = vlaneseq  ;;  %s4320_s0 = inlined_call_operand.vmem [shape: f32[2,3584], index: 0, kind: input, shape index: {}]   ;;  %s4321_s1 = inlined_call_operand.vmem [shape: f32[3584,128], index: 1, kind: input, shape index: {}]   ;;  %s4322_s2 = inlined_call_operand.vmem [shape: f32[1,128], index: 2, kind: input, shape index: {}]   ;;  %s4323_s3 = inlined_call_operand.vmem [shape: f32[128,128], index: 3, kind: input, shape index: {}]   ;;  %s4324_s4 = inlined_call_operand.vmem [shape: f32[1,128], index: 4, kind: input, shape index: {}]   ;;  %s4325_s5 = inlined_call_operand.hbm [shape: f32[2,128], index: 5, kind: output, shape index: {}]  }
   0x1   :  { %v44_v0 = vld [vmem:[%s4321_s1 + $0x80] sm:$0xff]  ;;  %v45_v1 = vld [vmem:[%s4321_s1 + $0x88] sm:$0xff]  ;;  %v46_v11 = vld [vmem:[%s4321_s1 + $0x90] sm:$0xff]  ;;  %v492_v48 = vunpack.c.l.s4 %v2778_v47 }
   0x2   :  { %v28_v2 = vld [vmem:[%s4321_s1] sm:$0xff]  ;;  %v2270_v3 = vpack.c.bf16 %v45_v1, %v44_v0  ;;  %v29_v4 = vld [vmem:[%s4321_s1 + $0x8] sm:$0xff]  ;;  %v47_v13 = vld [vmem:[%s4321_s1 + $0x98] sm:$0xff]  ;;  %v495_v0 = vshrl.u32 %v494_v49, 7 }
   0x3   :  { %v76_v5 = vld [vmem:[%s4321_s1 + $0x180] sm:$0xff]  ;;  %v77_v6 = vld [vmem:[%s4321_s1 + $0x188] sm:$0xff]  ;;  %v2272_v7 = vpack.c.bf16 %v29_v4, %v28_v2  ;;  %v30_v14 = vld [vmem:[%s4321_s1 + $0x10] sm:$0xff]  ;;  %v2274_v16 = vpack.c.bf16 %v47_v13, %v46_v11  ;;  %v493_v63 = vunpack.c.0.s8 %v492_v48 }
   0x4   :  { %v2302_v8 = vpack.c.bf16 %v77_v6, %v76_v5  ;;  %v60_v9 = vld [vmem:[%s4321_s1 + $0x100] sm:$0xff]  ;;  %v61_v10 = vld [vmem:[%s4321_s1 + $0x108] sm:$0xff]  ;;  %2271 = vmatprep.subr.bf16.mxu0 %v2270_v3  ;;  %v31_v15 = vld [vmem:[%s4321_s1 + $0x18] sm:$0xff] }
   0x5   :  { %v2304_v12 = vpack.c.bf16 %v61_v10, %v60_v9  ;;  %2273 = vmatpush3.bf16.msra.mxu0 %v2272_v7  ;;  %v2276_v17 = vpack.c.bf16 %v31_v15, %v30_v14  ;;  %v78_v18 = vld [vmem:[%s4321_s1 + $0x190] sm:$0xff]  ;;  %v79_v19 = vld [vmem:[%s4321_s1 + $0x198] sm:$0xff]  ;;  %v48_v23 = vld [vmem:[%s4321_s1 + $0xa0] sm:$0xff]  ;;  %v2963_v13 = vsub.s32 %v493_v63, %v495_v0 }
   0x6   :  { %2303 = vmatprep.subr.bf16.mxu1 %v2302_v8  ;;  %v62_v20 = vld [vmem:[%s4321_s1 + $0x110] sm:$0xff]  ;;  %v2306_v21 = vpack.c.bf16 %v79_v19, %v78_v18  ;;  %v63_v22 = vld [vmem:[%s4321_s1 + $0x118] sm:$0xff]  ;;  %v49_v24 = vld [vmem:[%s4321_s1 + $0xa8] sm:$0xff]  ;;  %2275 = vmatprep.subr.bf16.mxu0 %v2274_v16 }
   0x7   :  { %2305 = vmatpush3.bf16.msra.mxu1 %v2304_v12  ;;  %v2308_v25 = vpack.c.bf16 %v63_v22, %v62_v20  ;;  %v2278_v26 = vpack.c.bf16 %v49_v24, %v48_v23  ;;  %v32_v27 = vld [vmem:[%s4321_s1 + $0x20] sm:$0xff]  ;;  %v33_v28 = vld [vmem:[%s4321_s1 + $0x28] sm:$0xff]  ;;  %v50_v35 = vld [vmem:[%s4321_s1 + $0xb0] sm:$0xff] }
   0x8   :  { %v80_v29 = vld [vmem:[%s4321_s1 + $0x1a0] sm:$0xff]  ;;  %2307 = vmatprep.subr.bf16.mxu1 %v2306_v21  ;;  %v81_v30 = vld [vmem:[%s4321_s1 + $0x1a8] sm:$0xff]  ;;  %v2280_v33 = vpack.c.bf16 %v33_v28, %v32_v27  ;;  %v51_v36 = vld [vmem:[%s4321_s1 + $0xb8] sm:$0xff] }
   0x9   :  { %v64_v31 = vld [vmem:[%s4321_s1 + $0x120] sm:$0xff]  ;;  %v65_v32 = vld [vmem:[%s4321_s1 + $0x128] sm:$0xff]  ;;  %2277 = vmatpush3.bf16.msra.mxu0 %v2276_v17  ;;  %v2310_v34 = vpack.c.bf16 %v81_v30, %v80_v29  ;;  %v34_v37 = vld [vmem:[%s4321_s1 + $0x30] sm:$0xff]  ;;  %v2282_v39 = vpack.c.bf16 %v51_v36, %v50_v35 }
   0xa   :  { %2279 = vmatprep.subr.bf16.mxu0 %v2278_v26  ;;  %v2312_v38 = vpack.c.bf16 %v65_v32, %v64_v31  ;;  %v35_v40 = vld [vmem:[%s4321_s1 + $0x38] sm:$0xff]  ;;  %v82_v41 = vld [vmem:[%s4321_s1 + $0x1b0] sm:$0xff]  ;;  %v52_v46 = vld [vmem:[%s4321_s1 + $0xc0] sm:$0xff] }
   0xb   :  { %2309 = vmatpush3.bf16.msra.mxu1 %v2308_v25  ;;  %v83_v42 = vld [vmem:[%s4321_s1 + $0x1b8] sm:$0xff]  ;;  %v66_v44 = vld [vmem:[%s4321_s1 + $0x130] sm:$0xff]  ;;  %v53_v50 = vld [vmem:[%s4321_s1 + $0xc8] sm:$0xff]  ;;  %v2284_v51 = vpack.c.bf16 %v35_v40, %v34_v37 }
   0xc   :  { %2311 = vmatprep.subr.bf16.mxu1 %v2310_v34  ;;  %v2314_v43 = vpack.c.bf16 %v83_v42, %v82_v41  ;;  %v67_v45 = vld [vmem:[%s4321_s1 + $0x138] sm:$0xff]  ;;  %v84_v52 = vld [vmem:[%s4321_s1 + $0x1c0] sm:$0xff]  ;;  %v85_v53 = vld [vmem:[%s4321_s1 + $0x1c8] sm:$0xff]  ;;  %v2286_v55 = vpack.c.bf16 %v53_v50, %v52_v46 }
   0xd   :  { %2281 = vmatpush3.bf16.msra.mxu0 %v2280_v33  ;;  %v2316_v54 = vpack.c.bf16 %v67_v45, %v66_v44  ;;  %v36_v56 = vld [vmem:[%s4321_s1 + $0x40] sm:$0xff]  ;;  %v37_v57 = vld [vmem:[%s4321_s1 + $0x48] sm:$0xff]  ;;  %v2318_v59 = vpack.c.bf16 %v85_v53, %v84_v52  ;;  %v54_v61 = vld [vmem:[%s4321_s1 + $0xd0] sm:$0xff] }
   0xe   :  { %2283 = vmatprep.subr.bf16.mxu0 %v2282_v39  ;;  %v68_v58 = vld [vmem:[%s4321_s1 + $0x140] sm:$0xff]  ;;  %v69_v60 = vld [vmem:[%s4321_s1 + $0x148] sm:$0xff]  ;;  %v55_v62 = vld [vmem:[%s4321_s1 + $0xd8] sm:$0xff]  ;;  %v2288_v3 = vpack.c.bf16 %v37_v57, %v36_v56 }
   0xf   :  { %2313 = vmatpush3.bf16.msra.mxu1 %v2312_v38  ;;  %v86_v1 = vld [vmem:[%s4321_s1 + $0x1d0] sm:$0xff]  ;;  %v87_v2 = vld [vmem:[%s4321_s1 + $0x1d8] sm:$0xff]  ;;  %v2320_v4 = vpack.c.bf16 %v69_v60, %v68_v58  ;;  %v2290_v5 = vpack.c.bf16 %v55_v62, %v54_v61  ;;  %v56_v11 = vld [vmem:[%s4321_s1 + $0xe0] sm:$0xff] }
  0x10   :  { %2315 = vmatprep.subr.bf16.mxu1 %v2314_v43  ;;  %v38_v6 = vld [vmem:[%s4321_s1 + $0x50] sm:$0xff]  ;;  %v39_v7 = vld [vmem:[%s4321_s1 + $0x58] sm:$0xff]  ;;  %v2322_v9 = vpack.c.bf16 %v87_v2, %v86_v1  ;;  %v57_v12 = vld [vmem:[%s4321_s1 + $0xe8] sm:$0xff] }
  0x11   :  { %2285 = vmatpush3.bf16.msra.mxu0 %v2284_v51  ;;  %v70_v8 = vld [vmem:[%s4321_s1 + $0x150] sm:$0xff]  ;;  %v71_v10 = vld [vmem:[%s4321_s1 + $0x158] sm:$0xff]  ;;  %v88_v14 = vld [vmem:[%s4321_s1 + $0x1e0] sm:$0xff]  ;;  %v2292_v16 = vpack.c.bf16 %v39_v7, %v38_v6  ;;  %v2294_v19 = vpack.c.bf16 %v57_v12, %v56_v11 }
  0x12   :  { %2287 = vmatprep.subr.bf16.mxu0 %v2286_v55  ;;  %v89_v15 = vld [vmem:[%s4321_s1 + $0x1e8] sm:$0xff]  ;;  %v40_v17 = vld [vmem:[%s4321_s1 + $0x60] sm:$0xff]  ;;  %v2324_v18 = vpack.c.bf16 %v71_v10, %v70_v8  ;;  %v58_v25 = vld [vmem:[%s4321_s1 + $0xf0] sm:$0xff] }
  0x13   :  { %2317 = vmatpush3.bf16.msra.mxu1 %v2316_v54  ;;  %v41_v20 = vld [vmem:[%s4321_s1 + $0x68] sm:$0xff]  ;;  %v72_v21 = vld [vmem:[%s4321_s1 + $0x160] sm:$0xff]  ;;  %v2326_v23 = vpack.c.bf16 %v89_v15, %v88_v14  ;;  %v59_v26 = vld [vmem:[%s4321_s1 + $0xf8] sm:$0xff] }
  0x14   :  { %2319 = vmatprep.subr.bf16.mxu1 %v2318_v59  ;;  %v21_v22 = vld [vmem:[%s4320_s0] sm:$0xff]  ;;  %v73_v24 = vld [vmem:[%s4321_s1 + $0x168] sm:$0xff]  ;;  %v90_v29 = vld [vmem:[%s4321_s1 + $0x1f0] sm:$0xff]  ;;  %v2296_v31 = vpack.c.bf16 %v41_v20, %v40_v17  ;;  %v2298_v35 = vpack.c.bf16 %v59_v26, %v58_v25 }
  0x15   :  { %2289 = vmatpush3.bf16.msra.mxu0 %v2288_v3  ;;  %v497_v27 = vrot.slane %v21_v22, %v2963_v13  ;;  %v490_v28 = vcombine.high %v21_v22, %v21_v22  ;;  %v91_v30 = vld [vmem:[%s4321_s1 + $0x1f8] sm:$0xff]  ;;  %v2328_v34 = vpack.c.bf16 %v73_v24, %v72_v21  ;;  %v42_v36 = vld [vmem:[%s4321_s1 + $0x70] sm:$0xff]  ;;  %v108_v41 = vld [vmem:[%s4321_s1 + $0x280] sm:$0xff] }
  0x16   :  { %2291 = vmatprep.subr.bf16.mxu0 %v2290_v5  ;;  %v43_v37 = vld [vmem:[%s4321_s1 + $0x78] sm:$0xff]  ;;  %v74_v38 = vld [vmem:[%s4321_s1 + $0x170] sm:$0xff]  ;;  %v2330_v39 = vpack.c.bf16 %v91_v30, %v90_v29  ;;  %v109_v42 = vld [vmem:[%s4321_s1 + $0x288] sm:$0xff] }
  0x17   :  { %2321 = vmatpush3.bf16.msra.mxu1 %v2320_v4  ;;  %v505_v32 = vcombine.high %v497_v27, %v497_v27  ;;  %v504_v33 = vrot.slane %v490_v28, %v2963_v13  ;;  %v75_v40 = vld [vmem:[%s4321_s1 + $0x178] sm:$0xff]  ;;  %v140_v44 = vld [vmem:[%s4321_s1 + $0x380] sm:$0xff]  ;;  %v141_v45 = vld [vmem:[%s4321_s1 + $0x388] sm:$0xff]  ;;  %v2300_v46 = vpack.c.bf16 %v43_v37, %v42_v36  ;;  %v2334_v48 = vpack.c.bf16 %v109_v42, %v108_v41 }
  0x18   :  { %2323 = vmatprep.subr.bf16.mxu1 %v2322_v9  ;;  %v2332_v47 = vpack.c.bf16 %v75_v40, %v74_v38  ;;  %v92_v49 = vld [vmem:[%s4321_s1 + $0x200] sm:$0xff]  ;;  %v93_v50 = vld [vmem:[%s4321_s1 + $0x208] sm:$0xff]  ;;  %v2366_v52 = vpack.c.bf16 %v141_v45, %v140_v44  ;;  %v110_v54 = vld [vmem:[%s4321_s1 + $0x290] sm:$0xff] }
  0x19   :  { %2293 = vmatpush3.bf16.msra.mxu0 %v2292_v16  ;;  %701 = vmatprep.mubr.f32.mxu0 %v505_v32  ;;  %v506_v43 = vcombine.high %v504_v33, %v504_v33  ;;  %v124_v51 = vld [vmem:[%s4321_s1 + $0x300] sm:$0xff]  ;;  %v125_v53 = vld [vmem:[%s4321_s1 + $0x308] sm:$0xff]  ;;  %v111_v55 = vld [vmem:[%s4321_s1 + $0x298] sm:$0xff]  ;;  %v2336_v58 = vpack.c.bf16 %v93_v50, %v92_v49 }
  0x1a   :  { %2295 = vmatprep.subr.bf16.mxu0 %v2294_v19  ;;  %v142_v56 = vld [vmem:[%s4321_s1 + $0x390] sm:$0xff]  ;;  %v143_v57 = vld [vmem:[%s4321_s1 + $0x398] sm:$0xff]  ;;  %v2368_v59 = vpack.c.bf16 %v125_v53, %v124_v51  ;;  %v2338_v60 = vpack.c.bf16 %v111_v55, %v110_v54  ;;  %v112_v2 = vld [vmem:[%s4321_s1 + $0x2a0] sm:$0xff] }
  0x1b   :  { %2325 = vmatpush3.bf16.msra.mxu1 %v2324_v18  ;;  %771 = vmatprep.mubr.f32.mxu1 %v506_v43  ;;  %v94_v61 = vld [vmem:[%s4321_s1 + $0x210] sm:$0xff]  ;;  %v95_v62 = vld [vmem:[%s4321_s1 + $0x218] sm:$0xff]  ;;  %v2370_v0 = vpack.c.bf16 %v143_v57, %v142_v56  ;;  %v113_v3 = vld [vmem:[%s4321_s1 + $0x2a8] sm:$0xff] }
  0x1c   :  { %2327 = vmatprep.subr.bf16.mxu1 %v2326_v23  ;;  %v126_v63 = vld [vmem:[%s4321_s1 + $0x310] sm:$0xff]  ;;  %v127_v1 = vld [vmem:[%s4321_s1 + $0x318] sm:$0xff]  ;;  %v144_v4 = vld [vmem:[%s4321_s1 + $0x3a0] sm:$0xff]  ;;  %v2340_v6 = vpack.c.bf16 %v95_v62, %v94_v61  ;;  %v2342_v8 = vpack.c.bf16 %v113_v3, %v112_v2 }
  0x1d   :  { %2297 = vmatpush3.bf16.msra.mxu0 %v2296_v31  ;;  %v145_v5 = vld [vmem:[%s4321_s1 + $0x3a8] sm:$0xff]  ;;  %v2372_v7 = vpack.c.bf16 %v127_v1, %v126_v63  ;;  %v96_v9 = vld [vmem:[%s4321_s1 + $0x220] sm:$0xff]  ;;  %v114_v15 = vld [vmem:[%s4321_s1 + $0x2b0] sm:$0xff] }
  0x1e   :  { %2299 = vmatprep.subr.bf16.mxu0 %v2298_v35  ;;  %v97_v10 = vld [vmem:[%s4321_s1 + $0x228] sm:$0xff]  ;;  %v128_v11 = vld [vmem:[%s4321_s1 + $0x320] sm:$0xff]  ;;  %v2374_v12 = vpack.c.bf16 %v145_v5, %v144_v4  ;;  %v115_v16 = vld [vmem:[%s4321_s1 + $0x2b8] sm:$0xff] }
  0x1f   :  { %2329 = vmatpush3.bf16.msra.mxu1 %v2328_v34  ;;  %v129_v14 = vld [vmem:[%s4321_s1 + $0x328] sm:$0xff]  ;;  %v146_v17 = vld [vmem:[%s4321_s1 + $0x3b0] sm:$0xff]  ;;  %v147_v18 = vld [vmem:[%s4321_s1 + $0x3b8] sm:$0xff]  ;;  %v2344_v19 = vpack.c.bf16 %v97_v10, %v96_v9  ;;  %v2346_v21 = vpack.c.bf16 %v115_v16, %v114_v15 }
  0x20   :  { %2331 = vmatprep.subr.bf16.mxu1 %v2330_v39  ;;  %v2376_v20 = vpack.c.bf16 %v129_v14, %v128_v11  ;;  %v98_v22 = vld [vmem:[%s4321_s1 + $0x230] sm:$0xff]  ;;  %v99_v23 = vld [vmem:[%s4321_s1 + $0x238] sm:$0xff]  ;;  %v2378_v25 = vpack.c.bf16 %v147_v18, %v146_v17  ;;  %v117_v28 = vld [vmem:[%s4321_s1 + $0x2c8] sm:$0xff] }
  0x21   :  { %2301 = vmatpush3.bf16.msra.mxu0 %v2300_v46  ;;  %v130_v24 = vld [vmem:[%s4321_s1 + $0x330] sm:$0xff]  ;;  %v131_v26 = vld [vmem:[%s4321_s1 + $0x338] sm:$0xff]  ;;  %v148_v29 = vld [vmem:[%s4321_s1 + $0x3c0] sm:$0xff]  ;;  %v2348_v32 = vpack.c.bf16 %v99_v23, %v98_v22 }
  0x22   :  { %2335 = vmatprep.subr.bf16.mxu0 %v2334_v48  ;;  %v149_v30 = vld [vmem:[%s4321_s1 + $0x3c8] sm:$0xff]  ;;  %v2380_v35 = vpack.c.bf16 %v131_v26, %v130_v24  ;;  %v100_v37 = vld [vmem:[%s4321_s1 + $0x240] sm:$0xff]  ;;  %v118_v42 = vld [vmem:[%s4321_s1 + $0x2d0] sm:$0xff] }
  0x23   :  { %2333 = vmatpush3.bf16.msra.mxu1 %v2332_v47  ;;  %v22_v31 = vld [vmem:[%s4320_s0 + $0x8] sm:$0xff]  ;;  %v132_v39 = vld [vmem:[%s4321_s1 + $0x340] sm:$0xff]  ;;  %v2382_v40 = vpack.c.bf16 %v149_v30, %v148_v29  ;;  %v119_v43 = vld [vmem:[%s4321_s1 + $0x2d8] sm:$0xff] }
  0x24   :  { %2367 = vmatprep.subr.bf16.mxu1 %v2366_v52  ;;  %702 = vmatmul.mubr.f32.vlgmr.msra.gmra.mrb[0].mxu0 %v497_v27  ;;  %v116_v27 = vld [vmem:[%s4321_s1 + $0x2c0] sm:$0xff]  ;;  %v507_v34 = vcombine.high %v22_v31, %v22_v31  ;;  %v101_v38 = vld [vmem:[%s4321_s1 + $0x248] sm:$0xff]  ;;  %v150_v46 = vld [vmem:[%s4321_s1 + $0x3d0] sm:$0xff]  ;;  %v2354_v51 = vpack.c.bf16 %v119_v43, %v118_v42 }
  0x25   :  { %2337 = vmatpush3.bf16.msra.mxu0 %v2336_v58  ;;  %v2350_v36 = vpack.c.bf16 %v117_v28, %v116_v27  ;;  %v133_v41 = vld [vmem:[%s4321_s1 + $0x348] sm:$0xff]  ;;  %v151_v47 = vld [vmem:[%s4321_s1 + $0x3d8] sm:$0xff]  ;;  %v2352_v48 = vpack.c.bf16 %v101_v38, %v100_v37  ;;  %v102_v52 = vld [vmem:[%s4321_s1 + $0x250] sm:$0xff] }
  0x26   :  { %772 = vmatmul.mubr.f32.vlgmr.msra.gmra.mrb[0].mxu1 %v504_v33  ;;  %2339 = vmatprep.subr.bf16.mxu0 %v2338_v60  ;;  %v3124_v33 = vrot.slane %v22_v31, %v2963_v13  ;;  %v3147_v45 = vrot.slane %v507_v34, %v2963_v13  ;;  %v2384_v50 = vpack.c.bf16 %v133_v41, %v132_v39  ;;  %v103_v53 = vld [vmem:[%s4321_s1 + $0x258] sm:$0xff]  ;;  %v134_v54 = vld [vmem:[%s4321_s1 + $0x350] sm:$0xff]  ;;  %v120_v57 = vld [vmem:[%s4321_s1 + $0x2e0] sm:$0xff] }
  0x27   :  { %2369 = vmatpush3.bf16.msra.mxu1 %v2368_v59  ;;  %v2386_v55 = vpack.c.bf16 %v151_v47, %v150_v46  ;;  %v135_v56 = vld [vmem:[%s4321_s1 + $0x358] sm:$0xff]  ;;  %v121_v58 = vld [vmem:[%s4321_s1 + $0x2e8] sm:$0xff]  ;;  %v152_v59 = vld [vmem:[%s4321_s1 + $0x3e0] sm:$0xff]  ;;  %v2356_v61 = vpack.c.bf16 %v103_v53, %v102_v52 }
  0x28   :  { %2371 = vmatprep.subr.bf16.mxu1 %v2370_v0  ;;  %v522_v44 = vcombine.high %v3124_v33, %v3124_v33  ;;  %v523_v49 = vcombine.high %v3147_v45, %v3147_v45  ;;  %v153_v60 = vld [vmem:[%s4321_s1 + $0x3e8] sm:$0xff]  ;;  %v2388_v62 = vpack.c.bf16 %v135_v56, %v134_v54  ;;  %v2358_v63 = vpack.c.bf16 %v121_v58, %v120_v57  ;;  %v104_v0 = vld [vmem:[%s4321_s1 + $0x260] sm:$0xff]  ;;  %v122_v5 = vld [vmem:[%s4321_s1 + $0x2f0] sm:$0xff] }
  0x29   :  { %2341 = vmatpush3.bf16.msra.mxu0 %v2340_v6  ;;  %v105_v1 = vld [vmem:[%s4321_s1 + $0x268] sm:$0xff]  ;;  %v136_v2 = vld [vmem:[%s4321_s1 + $0x360] sm:$0xff]  ;;  %v2390_v3 = vpack.c.bf16 %v153_v60, %v152_v59  ;;  %v123_v6 = vld [vmem:[%s4321_s1 + $0x2f8] sm:$0xff] }
  0x2a   :  { %2343 = vmatprep.subr.bf16.mxu0 %v2342_v8  ;;  %841 = vmatprep.mubr.f32.mxu0 %v522_v44  ;;  %v137_v4 = vld [vmem:[%s4321_s1 + $0x368] sm:$0xff]  ;;  %v155_v8 = vld [vmem:[%s4321_s1 + $0x3f8] sm:$0xff]  ;;  %v2360_v9 = vpack.c.bf16 %v105_v1, %v104_v0  ;;  %v2362_v11 = vpack.c.bf16 %v123_v6, %v122_v5  ;;  %v138_v15 = vld [vmem:[%s4321_s1 + $0x370] sm:$0xff] }
  0x2b   :  { %2373 = vmatpush3.bf16.msra.mxu1 %v2372_v7  ;;  %911 = vmatprep.mubr.f32.mxu1 %v523_v49  ;;  %v154_v7 = vld [vmem:[%s4321_s1 + $0x3f0] sm:$0xff]  ;;  %v2392_v10 = vpack.c.bf16 %v137_v4, %v136_v2  ;;  %v107_v14 = vld [vmem:[%s4321_s1 + $0x278] sm:$0xff]  ;;  %v172_v18 = vld [vmem:[%s4321_s1 + $0x480] sm:$0xff] }
  0x2c   :  { %2375 = vmatprep.subr.bf16.mxu1 %v2374_v12  ;;  %v106_v12 = vld [vmem:[%s4321_s1 + $0x270] sm:$0xff]  ;;  %v2394_v16 = vpack.c.bf16 %v155_v8, %v154_v7  ;;  %v139_v17 = vld [vmem:[%s4321_s1 + $0x378] sm:$0xff]  ;;  %v156_v23 = vld [vmem:[%s4321_s1 + $0x400] sm:$0xff] }
  0x2d   :  { %2345 = vmatpush3.bf16.msra.mxu0 %v2344_v19  ;;  %v173_v19 = vld [vmem:[%s4321_s1 + $0x488] sm:$0xff]  ;;  %v2364_v22 = vpack.c.bf16 %v107_v14, %v106_v12  ;;  %v2396_v24 = vpack.c.bf16 %v139_v17, %v138_v15  ;;  %v188_v27 = vld [vmem:[%s4321_s1 + $0x500] sm:$0xff]  ;;  %v174_v30 = vld [vmem:[%s4321_s1 + $0x490] sm:$0xff] }
  0x2e   :  { %2347 = vmatprep.subr.bf16.mxu0 %v2346_v21  ;;  %v205_v21 = vld [vmem:[%s4321_s1 + $0x588] sm:$0xff]  ;;  %v175_v31 = vld [vmem:[%s4321_s1 + $0x498] sm:$0xff]  ;;  %v23_v37 = vld [vmem:[%s4320_s0 + $0x10] sm:$0xff] }
  0x2f   :  { %2377 = vmatpush3.bf16.msra.mxu1 %v2376_v20  ;;  %v204_v20 = vld [vmem:[%s4321_s1 + $0x580] sm:$0xff]  ;;  %v157_v26 = vld [vmem:[%s4321_s1 + $0x408] sm:$0xff]  ;;  %v207_v34 = vld [vmem:[%s4321_s1 + $0x598] sm:$0xff]  ;;  %v2402_v38 = vpack.c.bf16 %v175_v31, %v174_v30  ;;  %v3266_v42 = vrot.slane %v23_v37, %v2963_v13  ;;  %v524_v43 = vcombine.high %v23_v37, %v23_v37 }
  0x30   :  { %2379 = vmatprep.subr.bf16.mxu1 %v2378_v25  ;;  %v2398_v25 = vpack.c.bf16 %v173_v19, %v172_v18  ;;  %v189_v28 = vld [vmem:[%s4321_s1 + $0x508] sm:$0xff]  ;;  %v2430_v29 = vpack.c.bf16 %v205_v21, %v204_v20  ;;  %v158_v39 = vld [vmem:[%s4321_s1 + $0x410] sm:$0xff]  ;;  %v191_v46 = vld [vmem:[%s4321_s1 + $0x518] sm:$0xff] }
  0x31   :  { %2349 = vmatpush3.bf16.msra.mxu0 %v2348_v32  ;;  %v206_v32 = vld [vmem:[%s4321_s1 + $0x590] sm:$0xff]  ;;  %v176_v47 = vld [vmem:[%s4321_s1 + $0x4a0] sm:$0xff]  ;;  %v3287_v52 = vrot.slane %v524_v43, %v2963_v13  ;;  %v161_v56 = vld [vmem:[%s4321_s1 + $0x428] sm:$0xff] }
  0x32   :  { %2351 = vmatprep.subr.bf16.mxu0 %v2350_v36  ;;  %v2432_v36 = vpack.c.bf16 %v189_v28, %v188_v27  ;;  %v190_v41 = vld [vmem:[%s4321_s1 + $0x510] sm:$0xff]  ;;  %v2434_v44 = vpack.c.bf16 %v207_v34, %v206_v32  ;;  %v208_v49 = vld [vmem:[%s4321_s1 + $0x5a0] sm:$0xff]  ;;  %v193_v59 = vld [vmem:[%s4321_s1 + $0x528] sm:$0xff] }
  0x33   :  { %2381 = vmatpush3.bf16.msra.mxu1 %v2380_v35  ;;  %v2400_v35 = vpack.c.bf16 %v157_v26, %v156_v23  ;;  %v192_v57 = vld [vmem:[%s4321_s1 + $0x520] sm:$0xff]  ;;  %v178_v60 = vld [vmem:[%s4321_s1 + $0x4b0] sm:$0xff]  ;;  %v163_v4 = vld [vmem:[%s4321_s1 + $0x438] sm:$0xff] }
  0x34   :  { %2383 = vmatprep.subr.bf16.mxu1 %v2382_v40  ;;  %v159_v40 = vld [vmem:[%s4321_s1 + $0x418] sm:$0xff]  ;;  %v2440_v1 = vpack.c.bf16 %v193_v59, %v192_v57  ;;  %v194_v5 = vld [vmem:[%s4321_s1 + $0x530] sm:$0xff]  ;;  %v180_v8 = vld [vmem:[%s4321_s1 + $0x4c0] sm:$0xff] }
  0x35   :  { %2353 = vmatpush3.bf16.msra.mxu0 %v2352_v48  ;;  %v177_v48 = vld [vmem:[%s4321_s1 + $0x4a8] sm:$0xff]  ;;  %v2404_v53 = vpack.c.bf16 %v159_v40, %v158_v39  ;;  %v195_v7 = vld [vmem:[%s4321_s1 + $0x538] sm:$0xff]  ;;  %v196_v18 = vld [vmem:[%s4321_s1 + $0x540] sm:$0xff] }
  0x36   :  { %2355 = vmatprep.subr.bf16.mxu0 %v2354_v51  ;;  %v539_v51 = vcombine.high %v3266_v42, %v3266_v42  ;;  %v2406_v54 = vpack.c.bf16 %v177_v48, %v176_v47  ;;  %v2444_v14 = vpack.c.bf16 %v195_v7, %v194_v5  ;;  %v165_v17 = vld [vmem:[%s4321_s1 + $0x448] sm:$0xff]  ;;  %v182_v21 = vld [vmem:[%s4321_s1 + $0x4d0] sm:$0xff]  ;;  %v199_v32 = vld [vmem:[%s4321_s1 + $0x558] sm:$0xff] }
  0x37   :  { %2385 = vmatpush3.bf16.msra.mxu1 %v2384_v50  ;;  %v209_v50 = vld [vmem:[%s4321_s1 + $0x5a8] sm:$0xff]  ;;  %v214_v23 = vld [vmem:[%s4321_s1 + $0x5d0] sm:$0xff]  ;;  %v184_v34 = vld [vmem:[%s4321_s1 + $0x4e0] sm:$0xff] }
  0x38   :  { %2387 = vmatprep.subr.bf16.mxu1 %v2386_v55  ;;  %v160_v55 = vld [vmem:[%s4321_s1 + $0x420] sm:$0xff]  ;;  %v2438_v58 = vpack.c.bf16 %v209_v50, %v208_v49  ;;  %v197_v20 = vld [vmem:[%s4321_s1 + $0x548] sm:$0xff]  ;;  %v166_v28 = vld [vmem:[%s4321_s1 + $0x450] sm:$0xff] }
  0x39   :  { %2357 = vmatpush3.bf16.msra.mxu0 %v2356_v61  ;;  %v179_v61 = vld [vmem:[%s4321_s1 + $0x4b8] sm:$0xff]  ;;  %v2408_v0 = vpack.c.bf16 %v161_v56, %v160_v55  ;;  %v2448_v26 = vpack.c.bf16 %v197_v20, %v196_v18  ;;  %v198_v30 = vld [vmem:[%s4321_s1 + $0x550] sm:$0xff]  ;;  %v217_v37 = vld [vmem:[%s4321_s1 + $0x5e8] sm:$0xff] }
  0x3a   :  { %2359 = vmatprep.subr.bf16.mxu0 %v2358_v63  ;;  %v211_v63 = vld [vmem:[%s4321_s1 + $0x5b8] sm:$0xff]  ;;  %v2410_v2 = vpack.c.bf16 %v179_v61, %v178_v60  ;;  %v2452_v39 = vpack.c.bf16 %v199_v32, %v198_v30  ;;  %v169_v43 = vld [vmem:[%s4321_s1 + $0x468] sm:$0xff]  ;;  %v186_v48 = vld [vmem:[%s4321_s1 + $0x4f0] sm:$0xff] }
  0x3b   :  { %2389 = vmatpush3.bf16.msra.mxu1 %v2388_v62  ;;  %v210_v62 = vld [vmem:[%s4321_s1 + $0x5b0] sm:$0xff]  ;;  %v201_v47 = vld [vmem:[%s4321_s1 + $0x568] sm:$0xff]  ;;  %v187_v49 = vld [vmem:[%s4321_s1 + $0x4f8] sm:$0xff] }
  0x3c   :  { %2391 = vmatprep.subr.bf16.mxu1 %v2390_v3  ;;  %v162_v3 = vld [vmem:[%s4321_s1 + $0x430] sm:$0xff]  ;;  %v2442_v6 = vpack.c.bf16 %v211_v63, %v210_v62  ;;  %v2426_v55 = vpack.c.bf16 %v187_v49, %v186_v48  ;;  %v171_v57 = vld [vmem:[%s4321_s1 + $0x478] sm:$0xff]  ;;  %v236_v60 = vld [vmem:[%s4321_s1 + $0x680] sm:$0xff] }
  0x3d   :  { %2361 = vmatpush3.bf16.msra.mxu0 %v2360_v9  ;;  %v181_v9 = vld [vmem:[%s4321_s1 + $0x4c8] sm:$0xff]  ;;  %v2412_v12 = vpack.c.bf16 %v163_v4, %v162_v3  ;;  %v218_v50 = vld [vmem:[%s4321_s1 + $0x5f0] sm:$0xff]  ;;  %v203_v59 = vld [vmem:[%s4321_s1 + $0x578] sm:$0xff] }
  0x3e   :  { %2363 = vmatprep.subr.bf16.mxu0 %v2362_v11  ;;  %v213_v11 = vld [vmem:[%s4321_s1 + $0x5c8] sm:$0xff]  ;;  %v2414_v15 = vpack.c.bf16 %v181_v9, %v180_v8  ;;  %v170_v56 = vld [vmem:[%s4321_s1 + $0x470] sm:$0xff]  ;;  %v268_v62 = vld [vmem:[%s4321_s1 + $0x780] sm:$0xff] }
  0x3f   :  { %2393 = vmatpush3.bf16.msra.mxu1 %v2392_v10  ;;  %v212_v10 = vld [vmem:[%s4321_s1 + $0x5c0] sm:$0xff]  ;;  %v237_v61 = vld [vmem:[%s4321_s1 + $0x688] sm:$0xff]  ;;  %v238_v9 = vld [vmem:[%s4321_s1 + $0x690] sm:$0xff] }
  0x40   :  { %2395 = vmatprep.subr.bf16.mxu1 %v2394_v16  ;;  %v164_v16 = vld [vmem:[%s4321_s1 + $0x440] sm:$0xff]  ;;  %v2446_v19 = vpack.c.bf16 %v213_v11, %v212_v10  ;;  %v269_v63 = vld [vmem:[%s4321_s1 + $0x788] sm:$0xff]  ;;  %v2462_v3 = vpack.c.bf16 %v237_v61, %v236_v60  ;;  %v239_v10 = vld [vmem:[%s4321_s1 + $0x698] sm:$0xff] }
  0x41   :  { %2365 = vmatpush3.bf16.msra.mxu0 %v2364_v22  ;;  %v183_v22 = vld [vmem:[%s4321_s1 + $0x4d8] sm:$0xff]  ;;  %v220_v4 = vld [vmem:[%s4321_s1 + $0x600] sm:$0xff]  ;;  %v221_v5 = vld [vmem:[%s4321_s1 + $0x608] sm:$0xff]  ;;  %v2494_v7 = vpack.c.bf16 %v269_v63, %v268_v62  ;;  %v2466_v18 = vpack.c.bf16 %v239_v10, %v238_v9 }
  0x42   :  { %2399 = vmatprep.subr.bf16.mxu0 %v2398_v25  ;;  %v2416_v25 = vpack.c.bf16 %v165_v17, %v164_v16  ;;  %v2418_v27 = vpack.c.bf16 %v183_v22, %v182_v21  ;;  %v253_v8 = vld [vmem:[%s4321_s1 + $0x708] sm:$0xff]  ;;  %v2464_v16 = vpack.c.bf16 %v221_v5, %v220_v4  ;;  %v223_v20 = vld [vmem:[%s4321_s1 + $0x618] sm:$0xff]  ;;  %v254_v21 = vld [vmem:[%s4321_s1 + $0x710] sm:$0xff] }
  0x43   :  { %2397 = vmatpush3.bf16.msra.mxu1 %v2396_v24  ;;  %v215_v24 = vld [vmem:[%s4321_s1 + $0x5d8] sm:$0xff]  ;;  %v258_v48 = vld [vmem:[%s4321_s1 + $0x730] sm:$0xff]  ;;  %v261_v61 = vld [vmem:[%s4321_s1 + $0x748] sm:$0xff] }
  0x44   :  { %2431 = vmatprep.subr.bf16.mxu1 %v2430_v29  ;;  %842 = vmatmul.mubr.f32.vlgmr.msra.gmra.mrb[2].mxu0 %v3124_v33  ;;  %v2436_v33 = vpack.c.bf16 %v191_v46, %v190_v41  ;;  %v167_v29 = vld [vmem:[%s4321_s1 + $0x458] sm:$0xff]  ;;  %v2450_v31 = vpack.c.bf16 %v215_v24, %v214_v23  ;;  %v168_v41 = vld [vmem:[%s4321_s1 + $0x460] sm:$0xff]  ;;  %v246_v62 = vld [vmem:[%s4321_s1 + $0x6d0] sm:$0xff] }
  0x45   :  { %2401 = vmatpush3.bf16.msra.mxu0 %v2400_v35  ;;  %981 = vmatprep.mubr.f32.mxu0 %v539_v51  ;;  %v185_v35 = vld [vmem:[%s4321_s1 + $0x4e8] sm:$0xff]  ;;  %v219_v51 = vld [vmem:[%s4321_s1 + $0x5f8] sm:$0xff]  ;;  %v240_v24 = vld [vmem:[%s4321_s1 + $0x6a0] sm:$0xff] }
  0x46   :  { %912 = vmatmul.mubr.f32.vlgmr.msra.gmra.mrb[2].mxu1 %v3147_v45  ;;  %2403 = vmatprep.subr.bf16.mxu0 %v2402_v38  ;;  %v540_v45 = vcombine.high %v3287_v52, %v3287_v52  ;;  %v2420_v38 = vpack.c.bf16 %v167_v29, %v166_v28  ;;  %v2422_v40 = vpack.c.bf16 %v185_v35, %v184_v34  ;;  %v255_v23 = vld [vmem:[%s4321_s1 + $0x718] sm:$0xff]  ;;  %v273_v28 = vld [vmem:[%s4321_s1 + $0x7a8] sm:$0xff]  ;;  %v256_v35 = vld [vmem:[%s4321_s1 + $0x720] sm:$0xff] }
  0x47   :  { %2433 = vmatpush3.bf16.msra.mxu1 %v2432_v36  ;;  %v216_v36 = vld [vmem:[%s4321_s1 + $0x5e0] sm:$0xff]  ;;  %v225_v34 = vld [vmem:[%s4321_s1 + $0x628] sm:$0xff]  ;;  %v247_v63 = vld [vmem:[%s4321_s1 + $0x6d8] sm:$0xff] }
  0x48   :  { %2435 = vmatprep.subr.bf16.mxu1 %v2434_v44  ;;  %1051 = vmatprep.mubr.f32.mxu1 %v540_v45  ;;  %v200_v44 = vld [vmem:[%s4321_s1 + $0x560] sm:$0xff]  ;;  %v2454_v46 = vpack.c.bf16 %v217_v37, %v216_v36  ;;  %v202_v45 = vld [vmem:[%s4321_s1 + $0x570] sm:$0xff]  ;;  %v2482_v4 = vpack.c.bf16 %v247_v63, %v246_v62  ;;  %v263_v9 = vld [vmem:[%s4321_s1 + $0x758] sm:$0xff] }
  0x49   :  { %2405 = vmatpush3.bf16.msra.mxu0 %v2404_v53  ;;  %v2424_v53 = vpack.c.bf16 %v169_v43, %v168_v41  ;;  %v242_v37 = vld [vmem:[%s4321_s1 + $0x6b0] sm:$0xff]  ;;  %v248_v10 = vld [vmem:[%s4321_s1 + $0x6e0] sm:$0xff] }
  0x4a   :  { %2407 = vmatprep.subr.bf16.mxu0 %v2406_v54  ;;  %v2456_v54 = vpack.c.bf16 %v201_v47, %v200_v44  ;;  %v227_v47 = vld [vmem:[%s4321_s1 + $0x638] sm:$0xff]  ;;  %v230_v5 = vld [vmem:[%s4321_s1 + $0x650] sm:$0xff] }
  0x4b   :  { %2437 = vmatpush3.bf16.msra.mxu1 %v2436_v33  ;;  %v24_v33 = vld [vmem:[%s4320_s0 + $0x18] sm:$0xff]  ;;  %v318_v62 = vld [vmem:[%s4321_s1 + $0x910] sm:$0xff] }
  0x4c   :  { %2439 = vmatprep.subr.bf16.mxu1 %v2438_v58  ;;  %v2458_v58 = vpack.c.bf16 %v219_v51, %v218_v50  ;;  %v3458_v11 = vrot.slane %v24_v33, %v2963_v13  ;;  %v259_v50 = vld [vmem:[%s4321_s1 + $0x738] sm:$0xff]  ;;  %v244_v51 = vld [vmem:[%s4321_s1 + $0x6c0] sm:$0xff] }
  0x4d   :  { %2409 = vmatpush3.bf16.msra.mxu0 %v2408_v0  ;;  %v541_v0 = vcombine.high %v24_v33, %v24_v33  ;;  %v276_v33 = vld [vmem:[%s4321_s1 + $0x7c0] sm:$0xff] }
  0x4e   :  { %2411 = vmatprep.subr.bf16.mxu0 %v2410_v2  ;;  %v2460_v2 = vpack.c.bf16 %v203_v59, %v202_v45  ;;  %v228_v45 = vld [vmem:[%s4321_s1 + $0x640] sm:$0xff] }
  0x4f   :  { %2441 = vmatpush3.bf16.msra.mxu1 %v2440_v1  ;;  %v2428_v1 = vpack.c.bf16 %v171_v57, %v170_v56  ;;  %v2508_v56 = vpack.c.bf16 %v259_v50, %v258_v48  ;;  %v260_v59 = vld [vmem:[%s4321_s1 + $0x740] sm:$0xff]  ;;  %v285_v48 = vld [vmem:[%s4321_s1 + $0x808] sm:$0xff] }
  0x50   :  { %2443 = vmatprep.subr.bf16.mxu1 %v2442_v6  ;;  %v252_v6 = vld [vmem:[%s4321_s1 + $0x700] sm:$0xff] }
  0x51   :  { %2413 = vmatpush3.bf16.msra.mxu0 %v2412_v12  ;;  %v270_v12 = vld [vmem:[%s4321_s1 + $0x790] sm:$0xff]  ;;  %v2496_v17 = vpack.c.bf16 %v253_v8, %v252_v6  ;;  %v231_v6 = vld [vmem:[%s4321_s1 + $0x658] sm:$0xff] }
  0x52   :  { %2415 = vmatprep.subr.bf16.mxu0 %v2414_v15  ;;  %v3467_v15 = vrot.slane %v541_v0, %v2963_v13  ;;  %v278_v0 = vld [vmem:[%s4321_s1 + $0x7d0] sm:$0xff] }
  0x53   :  { %2445 = vmatpush3.bf16.msra.mxu1 %v2444_v14  ;;  %v271_v14 = vld [vmem:[%s4321_s1 + $0x798] sm:$0xff] }
  0x54   :  { %2447 = vmatprep.subr.bf16.mxu1 %v2446_v19  ;;  %v222_v19 = vld [vmem:[%s4321_s1 + $0x610] sm:$0xff]  ;;  %v2498_v22 = vpack.c.bf16 %v271_v14, %v270_v12  ;;  %v557_v29 = vcombine.high %v3467_v15, %v3467_v15  ;;  %v249_v12 = vld [vmem:[%s4321_s1 + $0x6e8] sm:$0xff]  ;;  %v280_v14 = vld [vmem:[%s4321_s1 + $0x7e0] sm:$0xff] }
  0x55   :  { %2417 = vmatpush3.bf16.msra.mxu0 %v2416_v25  ;;  %v241_v25 = vld [vmem:[%s4321_s1 + $0x6a8] sm:$0xff]  ;;  %v2468_v30 = vpack.c.bf16 %v223_v20, %v222_v19  ;;  %v2486_v19 = vpack.c.bf16 %v249_v12, %v248_v10  ;;  %v232_v20 = vld [vmem:[%s4321_s1 + $0x660] sm:$0xff] }
  0x56   :  { %2419 = vmatprep.subr.bf16.mxu0 %v2418_v27  ;;  %v272_v27 = vld [vmem:[%s4321_s1 + $0x7a0] sm:$0xff]  ;;  %v2470_v32 = vpack.c.bf16 %v241_v25, %v240_v24  ;;  %v265_v24 = vld [vmem:[%s4321_s1 + $0x768] sm:$0xff]  ;;  %v250_v25 = vld [vmem:[%s4321_s1 + $0x6f0] sm:$0xff] }
  0x57   :  { %2449 = vmatpush3.bf16.msra.mxu1 %v2448_v26  ;;  %v556_v26 = vcombine.high %v3458_v11, %v3458_v11  ;;  %v2502_v36 = vpack.c.bf16 %v273_v28, %v272_v27  ;;  %v282_v27 = vld [vmem:[%s4321_s1 + $0x7f0] sm:$0xff]  ;;  %v283_v28 = vld [vmem:[%s4321_s1 + $0x7f8] sm:$0xff]  ;;  %v289_v10 = vld [vmem:[%s4321_s1 + $0x828] sm:$0xff] }
  0x58   :  { %2451 = vmatprep.subr.bf16.mxu1 %v2450_v31  ;;  %v2500_v31 = vpack.c.bf16 %v255_v23, %v254_v21  ;;  %v233_v21 = vld [vmem:[%s4321_s1 + $0x668] sm:$0xff]  ;;  %v320_v12 = vld [vmem:[%s4321_s1 + $0x920] sm:$0xff] }
  0x59   :  { %2421 = vmatpush3.bf16.msra.mxu0 %v2420_v38  ;;  %v243_v38 = vld [vmem:[%s4321_s1 + $0x6b8] sm:$0xff] }
  0x5a   :  { %2423 = vmatprep.subr.bf16.mxu0 %v2422_v40  ;;  %v275_v40 = vld [vmem:[%s4321_s1 + $0x7b8] sm:$0xff]  ;;  %v2474_v44 = vpack.c.bf16 %v243_v38, %v242_v37  ;;  %v300_v37 = vld [vmem:[%s4321_s1 + $0x880] sm:$0xff]  ;;  %v301_v38 = vld [vmem:[%s4321_s1 + $0x888] sm:$0xff] }
  0x5b   :  { %2453 = vmatpush3.bf16.msra.mxu1 %v2452_v39  ;;  %v274_v39 = vld [vmem:[%s4321_s1 + $0x7b0] sm:$0xff] }
  0x5c   :  { %2455 = vmatprep.subr.bf16.mxu1 %v2454_v46  ;;  %v226_v46 = vld [vmem:[%s4321_s1 + $0x630] sm:$0xff]  ;;  %v2506_v49 = vpack.c.bf16 %v275_v40, %v274_v39  ;;  %v332_v39 = vld [vmem:[%s4321_s1 + $0x980] sm:$0xff]  ;;  %v333_v40 = vld [vmem:[%s4321_s1 + $0x988] sm:$0xff] }
  0x5d   :  { %2425 = vmatpush3.bf16.msra.mxu0 %v2424_v53  ;;  %v245_v53 = vld [vmem:[%s4321_s1 + $0x6c8] sm:$0xff]  ;;  %v2558_v50 = vpack.c.bf16 %v333_v40, %v332_v39  ;;  %v310_v39 = vld [vmem:[%s4321_s1 + $0x8d0] sm:$0xff]  ;;  %v311_v40 = vld [vmem:[%s4321_s1 + $0x8d8] sm:$0xff] }
  0x5e   :  { %2427 = vmatprep.subr.bf16.mxu0 %v2426_v55  ;;  %v2476_v55 = vpack.c.bf16 %v227_v47, %v226_v46  ;;  %v2478_v57 = vpack.c.bf16 %v245_v53, %v244_v51  ;;  %v2526_v46 = vpack.c.bf16 %v301_v38, %v300_v37  ;;  %v284_v47 = vld [vmem:[%s4321_s1 + $0x800] sm:$0xff]  ;;  %v317_v51 = vld [vmem:[%s4321_s1 + $0x908] sm:$0xff]  ;;  %v302_v53 = vld [vmem:[%s4321_s1 + $0x890] sm:$0xff] }
  0x5f   :  { %2457 = vmatpush3.bf16.msra.mxu1 %v2456_v54  ;;  %v277_v54 = vld [vmem:[%s4321_s1 + $0x7c8] sm:$0xff] }
  0x60   :  { %2459 = vmatprep.subr.bf16.mxu1 %v2458_v58  ;;  %v229_v58 = vld [vmem:[%s4321_s1 + $0x648] sm:$0xff]  ;;  %v2510_v60 = vpack.c.bf16 %v277_v54, %v276_v33  ;;  %v303_v33 = vld [vmem:[%s4321_s1 + $0x898] sm:$0xff] }
  0x61   :  { %2429 = vmatpush3.bf16.msra.mxu0 %v2428_v1  ;;  %v279_v1 = vld [vmem:[%s4321_s1 + $0x7d8] sm:$0xff]  ;;  %v325_v38 = vld [vmem:[%s4321_s1 + $0x948] sm:$0xff] }
  0x62   :  { %2463 = vmatprep.subr.bf16.mxu0 %v2462_v3  ;;  %v2512_v3 = vpack.c.bf16 %v261_v61, %v260_v59  ;;  %v2514_v8 = vpack.c.bf16 %v279_v1, %v278_v0  ;;  %v2530_v59 = vpack.c.bf16 %v303_v33, %v302_v53  ;;  %v287_v61 = vld [vmem:[%s4321_s1 + $0x818] sm:$0xff]  ;;  %v304_v1 = vld [vmem:[%s4321_s1 + $0x8a0] sm:$0xff] }
  0x63   :  { %2461 = vmatpush3.bf16.msra.mxu1 %v2460_v2  ;;  %v2480_v2 = vpack.c.bf16 %v229_v58, %v228_v45  ;;  %v2528_v45 = vpack.c.bf16 %v285_v48, %v284_v47  ;;  %v319_v0 = vld [vmem:[%s4321_s1 + $0x918] sm:$0xff]  ;;  %v2546_v47 = vpack.c.bf16 %v311_v40, %v310_v39  ;;  %v294_v48 = vld [vmem:[%s4321_s1 + $0x850] sm:$0xff]  ;;  %v312_v33 = vld [vmem:[%s4321_s1 + $0x8e0] sm:$0xff] }
  0x64   :  { %2495 = vmatprep.subr.bf16.mxu1 %v2494_v7  ;;  %982 = vmatmul.mubr.f32.vlgmr.msra.gmra.mrb[4].mxu0 %v3266_v42  ;;  %v224_v42 = vld [vmem:[%s4321_s1 + $0x620] sm:$0xff]  ;;  %v262_v7 = vld [vmem:[%s4321_s1 + $0x750] sm:$0xff]  ;;  %v327_v53 = vld [vmem:[%s4321_s1 + $0x958] sm:$0xff] }
  0x65   :  { %2465 = vmatpush3.bf16.msra.mxu0 %v2464_v16  ;;  %1121 = vmatprep.mubr.f32.mxu0 %v556_v26  ;;  %v2472_v41 = vpack.c.bf16 %v225_v34, %v224_v42  ;;  %v281_v16 = vld [vmem:[%s4321_s1 + $0x7e8] sm:$0xff]  ;;  %v251_v26 = vld [vmem:[%s4321_s1 + $0x6f8] sm:$0xff]  ;;  %v234_v42 = vld [vmem:[%s4321_s1 + $0x670] sm:$0xff] }
  0x66   :  { %1052 = vmatmul.mubr.f32.vlgmr.msra.gmra.mrb[4].mxu1 %v3287_v52  ;;  %2467 = vmatprep.subr.bf16.mxu0 %v2466_v18  ;;  %v257_v52 = vld [vmem:[%s4321_s1 + $0x728] sm:$0xff]  ;;  %v2516_v18 = vpack.c.bf16 %v263_v9, %v262_v7  ;;  %v2518_v23 = vpack.c.bf16 %v281_v16, %v280_v14  ;;  %v235_v34 = vld [vmem:[%s4321_s1 + $0x678] sm:$0xff]  ;;  %v306_v16 = vld [vmem:[%s4321_s1 + $0x8b0] sm:$0xff] }
  0x67   :  { %2497 = vmatpush3.bf16.msra.mxu1 %v2496_v17  ;;  %1191 = vmatprep.mubr.f32.mxu1 %v557_v29  ;;  %v2504_v43 = vpack.c.bf16 %v257_v52, %v256_v35  ;;  %v2484_v17 = vpack.c.bf16 %v231_v6, %v230_v5  ;;  %v2488_v29 = vpack.c.bf16 %v233_v21, %v232_v20  ;;  %v266_v35 = vld [vmem:[%s4321_s1 + $0x770] sm:$0xff]  ;;  %v267_v52 = vld [vmem:[%s4321_s1 + $0x778] sm:$0xff]  ;;  %v337_v5 = vld [vmem:[%s4321_s1 + $0x9a8] sm:$0xff] }
  0x68   :  { %2499 = vmatprep.subr.bf16.mxu1 %v2498_v22  ;;  %v264_v22 = vld [vmem:[%s4321_s1 + $0x760] sm:$0xff] }
  0x69   :  { %2469 = vmatpush3.bf16.msra.mxu0 %v2468_v30  ;;  %v25_v30 = vld [vmem:[%s4320_s0 + $0x20] sm:$0xff] }
  0x6a   :  { %2471 = vmatprep.subr.bf16.mxu0 %v2470_v32  ;;  %v2490_v32 = vpack.c.bf16 %v251_v26, %v250_v25  ;;  %v3665_v54 = vrot.slane %v25_v30, %v2963_v13  ;;  %v322_v25 = vld [vmem:[%s4321_s1 + $0x930] sm:$0xff] }
  0x6b   :  { %2501 = vmatpush3.bf16.msra.mxu1 %v2500_v31  ;;  %v2520_v31 = vpack.c.bf16 %v265_v24, %v264_v22  ;;  %v291_v24 = vld [vmem:[%s4321_s1 + $0x838] sm:$0xff] }
  0x6c   :  { %2503 = vmatprep.subr.bf16.mxu1 %v2502_v36  ;;  %v2522_v36 = vpack.c.bf16 %v283_v28, %v282_v27  ;;  %v323_v27 = vld [vmem:[%s4321_s1 + $0x938] sm:$0xff]  ;;  %v308_v28 = vld [vmem:[%s4321_s1 + $0x8c0] sm:$0xff] }
  0x6d   :  { %2473 = vmatpush3.bf16.msra.mxu0 %v2472_v41  ;;  %v558_v41 = vcombine.high %v25_v30, %v25_v30  ;;  %v340_v30 = vld [vmem:[%s4321_s1 + $0x9c0] sm:$0xff] }
  0x6e   :  { %2475 = vmatprep.subr.bf16.mxu0 %v2474_v44  ;;  %v2524_v44 = vpack.c.bf16 %v267_v52, %v266_v35  ;;  %v292_v35 = vld [vmem:[%s4321_s1 + $0x840] sm:$0xff] }
  0x6f   :  { %2505 = vmatpush3.bf16.msra.mxu1 %v2504_v43  ;;  %v2492_v43 = vpack.c.bf16 %v235_v34, %v234_v42  ;;  %v2572_v42 = vpack.c.bf16 %v323_v27, %v322_v25  ;;  %v324_v52 = vld [vmem:[%s4321_s1 + $0x940] sm:$0xff] }
  0x70   :  { %2507 = vmatprep.subr.bf16.mxu1 %v2506_v49  ;;  %v316_v49 = vld [vmem:[%s4321_s1 + $0x900] sm:$0xff] }
  0x71   :  { %2477 = vmatpush3.bf16.msra.mxu0 %v2476_v55  ;;  %v334_v55 = vld [vmem:[%s4321_s1 + $0x990] sm:$0xff]  ;;  %v2560_v58 = vpack.c.bf16 %v317_v51, %v316_v49  ;;  %v295_v49 = vld [vmem:[%s4321_s1 + $0x858] sm:$0xff] }
  0x72   :  { %2479 = vmatprep.subr.bf16.mxu0 %v2478_v57  ;;  %v3674_v57 = vrot.slane %v558_v41, %v2963_v13  ;;  %v342_v41 = vld [vmem:[%s4321_s1 + $0x9d0] sm:$0xff] }
  0x73   :  { %2509 = vmatpush3.bf16.msra.mxu1 %v2508_v56  ;;  %v335_v56 = vld [vmem:[%s4321_s1 + $0x998] sm:$0xff] }
  0x74   :  { %2511 = vmatprep.subr.bf16.mxu1 %v2510_v60  ;;  %v286_v60 = vld [vmem:[%s4321_s1 + $0x810] sm:$0xff]  ;;  %v2562_v63 = vpack.c.bf16 %v335_v56, %v334_v55  ;;  %v574_v6 = vcombine.high %v3674_v57, %v3674_v57  ;;  %v313_v55 = vld [vmem:[%s4321_s1 + $0x8e8] sm:$0xff]  ;;  %v344_v56 = vld [vmem:[%s4321_s1 + $0x9e0] sm:$0xff] }
  0x75   :  { %2481 = vmatpush3.bf16.msra.mxu0 %v2480_v2  ;;  %v305_v2 = vld [vmem:[%s4321_s1 + $0x8a8] sm:$0xff]  ;;  %v2532_v7 = vpack.c.bf16 %v287_v61, %v286_v60  ;;  %v2550_v60 = vpack.c.bf16 %v313_v55, %v312_v33  ;;  %v296_v61 = vld [vmem:[%s4321_s1 + $0x860] sm:$0xff] }
  0x76   :  { %2483 = vmatprep.subr.bf16.mxu0 %v2482_v4  ;;  %v336_v4 = vld [vmem:[%s4321_s1 + $0x9a0] sm:$0xff]  ;;  %v2534_v9 = vpack.c.bf16 %v305_v2, %v304_v1  ;;  %v329_v1 = vld [vmem:[%s4321_s1 + $0x968] sm:$0xff]  ;;  %v314_v2 = vld [vmem:[%s4321_s1 + $0x8f0] sm:$0xff] }
  0x77   :  { %2513 = vmatpush3.bf16.msra.mxu1 %v2512_v3  ;;  %v573_v3 = vcombine.high %v3665_v54, %v3665_v54  ;;  %v2566_v14 = vpack.c.bf16 %v337_v5, %v336_v4  ;;  %v346_v4 = vld [vmem:[%s4321_s1 + $0x9f0] sm:$0xff]  ;;  %v347_v5 = vld [vmem:[%s4321_s1 + $0x9f8] sm:$0xff] }
  0x78   :  { %2515 = vmatprep.subr.bf16.mxu1 %v2514_v8  ;;  %v2564_v8 = vpack.c.bf16 %v319_v0, %v318_v62  ;;  %v297_v62 = vld [vmem:[%s4321_s1 + $0x868] sm:$0xff] }
  0x79   :  { %2485 = vmatpush3.bf16.msra.mxu0 %v2484_v17  ;;  %v307_v17 = vld [vmem:[%s4321_s1 + $0x8b8] sm:$0xff] }
  0x7a   :  { %2487 = vmatprep.subr.bf16.mxu0 %v2486_v19  ;;  %v339_v19 = vld [vmem:[%s4321_s1 + $0x9b8] sm:$0xff]  ;;  %v2538_v22 = vpack.c.bf16 %v307_v17, %v306_v16 }
  0x7b   :  { %2517 = vmatpush3.bf16.msra.mxu1 %v2516_v18  ;;  %v338_v18 = vld [vmem:[%s4321_s1 + $0x9b0] sm:$0xff] }
  0x7c   :  { %2519 = vmatprep.subr.bf16.mxu1 %v2518_v23  ;;  %v290_v23 = vld [vmem:[%s4321_s1 + $0x830] sm:$0xff]  ;;  %v2570_v26 = vpack.c.bf16 %v339_v19, %v338_v18 }
  0x7d   :  { %2489 = vmatpush3.bf16.msra.mxu0 %v2488_v29  ;;  %v309_v29 = vld [vmem:[%s4321_s1 + $0x8c8] sm:$0xff] }
  0x7e   :  { %2491 = vmatprep.subr.bf16.mxu0 %v2490_v32  ;;  %v2540_v32 = vpack.c.bf16 %v291_v24, %v290_v23  ;;  %v2542_v34 = vpack.c.bf16 %v309_v29, %v308_v28 }
  0x7f   :  { %2521 = vmatpush3.bf16.msra.mxu1 %v2520_v31  ;;  %v341_v31 = vld [vmem:[%s4321_s1 + $0x9c8] sm:$0xff] }
  0x80   :  { %2523 = vmatprep.subr.bf16.mxu1 %v2522_v36  ;;  %v293_v36 = vld [vmem:[%s4321_s1 + $0x848] sm:$0xff]  ;;  %v2574_v37 = vpack.c.bf16 %v341_v31, %v340_v30 }
  0x81   :  { %2493 = vmatpush3.bf16.msra.mxu0 %v2492_v43  ;;  %v343_v43 = vld [vmem:[%s4321_s1 + $0x9d8] sm:$0xff] }
  0x82   :  { %2527 = vmatprep.subr.bf16.mxu0 %v2526_v46  ;;  %v2576_v46 = vpack.c.bf16 %v325_v38, %v324_v52  ;;  %v2578_v51 = vpack.c.bf16 %v343_v43, %v342_v41 }
  0x83   :  { %2525 = vmatpush3.bf16.msra.mxu1 %v2524_v44  ;;  %v2544_v44 = vpack.c.bf16 %v293_v36, %v292_v35 }
  0x84   :  { %2559 = vmatprep.subr.bf16.mxu1 %v2558_v50  ;;  %1122 = vmatmul.mubr.f32.vlgmr.msra.gmra.mrb[6].mxu0 %v3458_v11  ;;  %v288_v11 = vld [vmem:[%s4321_s1 + $0x820] sm:$0xff]  ;;  %v326_v50 = vld [vmem:[%s4321_s1 + $0x950] sm:$0xff] }
  0x85   :  { %2529 = vmatpush3.bf16.msra.mxu0 %v2528_v45  ;;  %1261 = vmatprep.mubr.f32.mxu0 %v573_v3  ;;  %v2536_v20 = vpack.c.bf16 %v289_v10, %v288_v11  ;;  %v345_v45 = vld [vmem:[%s4321_s1 + $0x9e8] sm:$0xff]  ;;  %v315_v3 = vld [vmem:[%s4321_s1 + $0x8f8] sm:$0xff] }
  0x86   :  { %1192 = vmatmul.mubr.f32.vlgmr.msra.gmra.mrb[6].mxu1 %v3467_v15  ;;  %2531 = vmatprep.subr.bf16.mxu0 %v2530_v59  ;;  %v321_v15 = vld [vmem:[%s4321_s1 + $0x928] sm:$0xff]  ;;  %v2580_v59 = vpack.c.bf16 %v327_v53, %v326_v50  ;;  %v2582_v0 = vpack.c.bf16 %v345_v45, %v344_v56 }
  0x87   :  { %2561 = vmatpush3.bf16.msra.mxu1 %v2560_v58  ;;  %1331 = vmatprep.mubr.f32.mxu1 %v574_v6  ;;  %v2568_v21 = vpack.c.bf16 %v321_v15, %v320_v12  ;;  %v2548_v58 = vpack.c.bf16 %v295_v49, %v294_v48  ;;  %v2552_v6 = vpack.c.bf16 %v297_v62, %v296_v61 }
  0x88   :  { %2563 = vmatprep.subr.bf16.mxu1 %v2562_v63  ;;  %v328_v63 = vld [vmem:[%s4321_s1 + $0x960] sm:$0xff] }
  0x89   :  { %2533 = vmatpush3.bf16.msra.mxu0 %v2532_v7  ;;  %v26_v7 = vld [vmem:[%s4320_s0 + $0x28] sm:$0xff] }
  0x8a   :  { %2535 = vmatprep.subr.bf16.mxu0 %v2534_v9 }
  0x8b   :  { %2565 = vmatpush3.bf16.msra.mxu1 %v2564_v8 }
  0x8c   :  { %2567 = vmatprep.subr.bf16.mxu1 %v2566_v14 }
  0x8d   :  { %2537 = vmatpush3.bf16.msra.mxu0 %v2536_v20 }
  0x8e   :  { %2539 = vmatprep.subr.bf16.mxu0 %v2538_v22 }
  0x8f   :  { %2569 = vmatpush3.bf16.msra.mxu1 %v2568_v21 }
  0x90   :  { %2571 = vmatprep.subr.bf16.mxu1 %v2570_v26 }
  0x91   :  { %2541 = vmatpush3.bf16.msra.mxu0 %v2540_v32 }
  0x92   :  { %2543 = vmatprep.subr.bf16.mxu0 %v2542_v34 }
  0x93   :  { %2573 = vmatpush3.bf16.msra.mxu1 %v2572_v42 }
  0x94   :  { %2575 = vmatprep.subr.bf16.mxu1 %v2574_v37 }
  0x95   :  { %2545 = vmatpush3.bf16.msra.mxu0 %v2544_v44 }
  0x96   :  { %2547 = vmatprep.subr.bf16.mxu0 %v2546_v47 }
  0x97   :  { %2577 = vmatpush3.bf16.msra.mxu1 %v2576_v46 }
  0x98   :  { %2579 = vmatprep.subr.bf16.mxu1 %v2578_v51 }
  0x99   :  { %2549 = vmatpush3.bf16.msra.mxu0 %v2548_v58 }
  0x9a   :  { %10 = vsyncpa [#allocation3], 0  ;;  %2551 = vmatprep.subr.bf16.mxu0 %v2550_v60  ;;  %v2584_v8 = vpack.c.bf16 %v329_v1, %v328_v63  ;;  %v2554_v9 = vpack.c.bf16 %v315_v3, %v314_v2  ;;  %v298_v11 = vld [vmem:[%s4321_s1 + $0x870] sm:$0xff]  ;;  %v299_v10 = vld [vmem:[%s4321_s1 + $0x878] sm:$0xff]  ;;  %v2586_v14 = vpack.c.bf16 %v347_v5, %v346_v4  ;;  %v575_v20 = vcombine.high %v26_v7, %v26_v7  ;;  %s2782_s27 = smov [#allocation2]  }
  0x9b   :  { %2581 = vmatpush3.bf16.msra.mxu1 %v2580_v59  ;;  %v330_v12 = vld [vmem:[%s4321_s1 + $0x970] sm:$0xff]  ;;  %v331_v15 = vld [vmem:[%s4321_s1 + $0x978] sm:$0xff]  ;;  %v364_v16 = vld [vmem:[%s4321_s1 + $0xa80] sm:$0xff]  ;;  %v2556_v21 = vpack.c.bf16 %v299_v10, %v298_v11  ;;  %v3872_v31 = vrot.slane %v26_v7, %v2963_v13  ;;  %vm2780_vm0 = vmmov 0   ;;  %s1718_s28 = sshll.u32 %s2782_s27, 4  ;;  %s1719_s28 = int_to_ptr.vmem [resolvable:$true] %s1718_s28 }
  0x9c   :  { %2583 = vmatprep.subr.bf16.mxu1 %v2582_v0  ;;  %v365_v17 = vld [vmem:[%s4321_s1 + $0xa88] sm:$0xff]  ;;  %v396_v18 = vld [vmem:[%s4321_s1 + $0xb80] sm:$0xff]  ;;  %v2588_v22 = vpack.c.bf16 %v331_v15, %v330_v12  ;;  %v366_v29 = vld [vmem:[%s4321_s1 + $0xa90] sm:$0xff]  ;;  %v3881_v34 = vrot.slane %v575_v20, %v2963_v13  ;;  %s2754_s29 = scalar_lea.vmem %s1719_s28, 32  ;;  %p2759_p1 = scmp.lt.s32.totalorder %s1719_s28, %s1719_s28 }
  0x9d   :  { %v397_v19 = vld [vmem:[%s4321_s1 + $0xb88] sm:$0xff]  ;;  %2553 = vmatpush3.bf16.msra.mxu0 %v2552_v6  ;;  %v2590_v23 = vpack.c.bf16 %v365_v17, %v364_v16  ;;  %v348_v24 = vld [vmem:[%s4321_s1 + $0xa00] sm:$0xff]  ;;  %v367_v30 = vld [vmem:[%s4321_s1 + $0xa98] sm:$0xff]  ;;  %v590_v46 = vcombine.high %v3872_v31, %v3872_v31  ;;  %p2755_p0 = scmp.ne.s32.totalorder %s1719_s28, %s2754_s29  ;;  %p2760_p2 = scmp.lt.s32.totalorder %s2754_s29, %s2754_s29 }
  0x9e   :  { %2555 = vmatprep.subr.bf16.mxu0 %v2554_v9  ;;  %v349_v25 = vld [vmem:[%s4321_s1 + $0xa08] sm:$0xff]  ;;  %v380_v26 = vld [vmem:[%s4321_s1 + $0xb00] sm:$0xff]  ;;  %v2622_v27 = vpack.c.bf16 %v397_v19, %v396_v18  ;;  %v398_v32 = vld [vmem:[%s4321_s1 + $0xb90] sm:$0xff]  ;;  %v2594_v52 = vpack.c.bf16 %v367_v30, %v366_v29  ;;  %v591_v49 = vcombine.high %v3881_v34, %v3881_v34 }
  0x9f   :  { %2585 = vmatpush3.bf16.msra.mxu1 %v2584_v8  ;;  %v381_v28 = vld [vmem:[%s4321_s1 + $0xb08] sm:$0xff]  ;;  %v399_v42 = vld [vmem:[%s4321_s1 + $0xb98] sm:$0xff]  ;;  %v2592_v35 = vpack.c.bf16 %v349_v25, %v348_v24  ;;  %v350_v37 = vld [vmem:[%s4321_s1 + $0xa10] sm:$0xff]  ;;  %p2761_p3 = por %p2760_p2, %p2759_p1 }
  0xa0   :  { %2587 = vmatprep.subr.bf16.mxu1 %v2586_v14  ;;  %v2624_v36 = vpack.c.bf16 %v381_v28, %v380_v26  ;;  %v351_v38 = vld [vmem:[%s4321_s1 + $0xa18] sm:$0xff]  ;;  %v382_v39 = vld [vmem:[%s4321_s1 + $0xb10] sm:$0xff]  ;;  %v2626_v40 = vpack.c.bf16 %v399_v42, %v398_v32  ;;  %v368_v43 = vld [vmem:[%s4321_s1 + $0xaa0] sm:$0xff] }
  0xa1   :  { %2557 = vmatpush3.bf16.msra.mxu0 %v2556_v21  ;;  %v383_v41 = vld [vmem:[%s4321_s1 + $0xb18] sm:$0xff]  ;;  %v369_v44 = vld [vmem:[%s4321_s1 + $0xaa8] sm:$0xff]  ;;  %v400_v47 = vld [vmem:[%s4321_s1 + $0xba0] sm:$0xff]  ;;  %v2596_v50 = vpack.c.bf16 %v351_v38, %v350_v37  ;;  %p2762_p4 = pnand %p2761_p3, %p2755_p0 }
  0xa2   :  { %2591 = vmatprep.subr.bf16.mxu0 %v2590_v23  ;;  %v401_v48 = vld [vmem:[%s4321_s1 + $0xba8] sm:$0xff]  ;;  %v2628_v51 = vpack.c.bf16 %v383_v41, %v382_v39  ;;  %v2598_v53 = vpack.c.bf16 %v369_v44, %v368_v43  ;;  %v384_v55 = vld [vmem:[%s4321_s1 + $0xb20] sm:$0xff]  ;;  %v370_v45 = vld [vmem:[%s4321_s1 + $0xab0] sm:$0xff] }
  0xa3   :  { %2589 = vmatpush3.bf16.msra.mxu1 %v2588_v22  ;;  %v353_v33 = vld [vmem:[%s4321_s1 + $0xa28] sm:$0xff]  ;;  %v2630_v56 = vpack.c.bf16 %v401_v48, %v400_v47  ;;  %v371_v58 = vld [vmem:[%s4321_s1 + $0xab8] sm:$0xff]  ;;  %v402_v59 = vld [vmem:[%s4321_s1 + $0xbb0] sm:$0xff] }
  0xa4   :  { %2623 = vmatprep.subr.bf16.mxu1 %v2622_v27  ;;  %1262 = vmatmul.mubr.f32.vlgmr.msra.gmra.mrb[8].mxu0 %v3665_v54  ;;  %v352_v54 = vld [vmem:[%s4321_s1 + $0xa20] sm:$0xff]  ;;  %v403_v60 = vld [vmem:[%s4321_s1 + $0xbb8] sm:$0xff]  ;;  %v2602_v63 = vpack.c.bf16 %v371_v58, %v370_v45  ;;  %v354_v0 = vld [vmem:[%s4321_s1 + $0xa30] sm:$0xff] }
  0xa5   :  { %2593 = vmatpush3.bf16.msra.mxu0 %v2592_v35  ;;  %1401 = vmatprep.mubr.f32.mxu0 %v590_v46  ;;  %v2600_v61 = vpack.c.bf16 %v353_v33, %v352_v54  ;;  %v355_v1 = vld [vmem:[%s4321_s1 + $0xa38] sm:$0xff]  ;;  %v386_v2 = vld [vmem:[%s4321_s1 + $0xb30] sm:$0xff]  ;;  %v2634_v3 = vpack.c.bf16 %v403_v60, %v402_v59  ;;  %v372_v5 = vld [vmem:[%s4321_s1 + $0xac0] sm:$0xff] }
  0xa6   :  { %1332 = vmatmul.mubr.f32.vlgmr.msra.gmra.mrb[8].mxu1 %v3674_v57  ;;  %2595 = vmatprep.subr.bf16.mxu0 %v2594_v52  ;;  %v385_v57 = vld [vmem:[%s4321_s1 + $0xb28] sm:$0xff]  ;;  %v387_v4 = vld [vmem:[%s4321_s1 + $0xb38] sm:$0xff]  ;;  %v404_v7 = vld [vmem:[%s4321_s1 + $0xbc0] sm:$0xff]  ;;  %v2604_v9 = vpack.c.bf16 %v355_v1, %v354_v0 }
  0xa7   :  { %2625 = vmatpush3.bf16.msra.mxu1 %v2624_v36  ;;  %1471 = vmatprep.mubr.f32.mxu1 %v591_v49  ;;  %v2632_v62 = vpack.c.bf16 %v385_v57, %v384_v55  ;;  %v373_v6 = vld [vmem:[%s4321_s1 + $0xac8] sm:$0xff]  ;;  %v2636_v11 = vpack.c.bf16 %v387_v4, %v386_v2  ;;  %v356_v12 = vld [vmem:[%s4321_s1 + $0xa40] sm:$0xff]  ;;  %v374_v18 = vld [vmem:[%s4321_s1 + $0xad0] sm:$0xff] }
  0xa8   :  { %2627 = vmatprep.subr.bf16.mxu1 %v2626_v40  ;;  %v405_v8 = vld [vmem:[%s4321_s1 + $0xbc8] sm:$0xff]  ;;  %v2606_v10 = vpack.c.bf16 %v373_v6, %v372_v5  ;;  %v388_v15 = vld [vmem:[%s4321_s1 + $0xb40] sm:$0xff]  ;;  %v375_v19 = vld [vmem:[%s4321_s1 + $0xad8] sm:$0xff] }
  0xa9   :  { %2597 = vmatpush3.bf16.msra.mxu0 %v2596_v50  ;;  %v357_v14 = vld [vmem:[%s4321_s1 + $0xa48] sm:$0xff]  ;;  %v2638_v16 = vpack.c.bf16 %v405_v8, %v404_v7  ;;  %v406_v20 = vld [vmem:[%s4321_s1 + $0xbd0] sm:$0xff]  ;;  %v407_v21 = vld [vmem:[%s4321_s1 + $0xbd8] sm:$0xff]  ;;  %v2610_v24 = vpack.c.bf16 %v375_v19, %v374_v18 }
  0xaa   :  { %2599 = vmatprep.subr.bf16.mxu0 %v2598_v53  ;;  %v389_v17 = vld [vmem:[%s4321_s1 + $0xb48] sm:$0xff]  ;;  %v2608_v22 = vpack.c.bf16 %v357_v14, %v356_v12  ;;  %v358_v25 = vld [vmem:[%s4321_s1 + $0xa50] sm:$0xff]  ;;  %v359_v26 = vld [vmem:[%s4321_s1 + $0xa58] sm:$0xff]  ;;  %v2642_v28 = vpack.c.bf16 %v407_v21, %v406_v20 }
  0xab   :  { %2629 = vmatpush3.bf16.msra.mxu1 %v2628_v51  ;;  %v2640_v23 = vpack.c.bf16 %v389_v17, %v388_v15  ;;  %v390_v27 = vld [vmem:[%s4321_s1 + $0xb50] sm:$0xff]  ;;  %v391_v29 = vld [vmem:[%s4321_s1 + $0xb58] sm:$0xff]  ;;  %v376_v30 = vld [vmem:[%s4321_s1 + $0xae0] sm:$0xff]  ;;  %v2612_v36 = vpack.c.bf16 %v359_v26, %v358_v25 }
  0xac   :  { %2631 = vmatprep.subr.bf16.mxu1 %v2630_v56  ;;  %v377_v32 = vld [vmem:[%s4321_s1 + $0xae8] sm:$0xff]  ;;  %v408_v42 = vld [vmem:[%s4321_s1 + $0xbe0] sm:$0xff]  ;;  %v2644_v52 = vpack.c.bf16 %v391_v29, %v390_v27  ;;  %v378_v44 = vld [vmem:[%s4321_s1 + $0xaf0] sm:$0xff] }
  0xad   :  { %2601 = vmatpush3.bf16.msra.mxu0 %v2600_v61  ;;  %v409_v35 = vld [vmem:[%s4321_s1 + $0xbe8] sm:$0xff]  ;;  %v2614_v37 = vpack.c.bf16 %v377_v32, %v376_v30  ;;  %v360_v38 = vld [vmem:[%s4321_s1 + $0xa60] sm:$0xff]  ;;  %v379_v46 = vld [vmem:[%s4321_s1 + $0xaf8] sm:$0xff] }
  0xae   :  { %2603 = vmatprep.subr.bf16.mxu0 %v2602_v63  ;;  %v361_v39 = vld [vmem:[%s4321_s1 + $0xa68] sm:$0xff]  ;;  %v392_v40 = vld [vmem:[%s4321_s1 + $0xb60] sm:$0xff]  ;;  %v2646_v41 = vpack.c.bf16 %v409_v35, %v408_v42  ;;  %v410_v47 = vld [vmem:[%s4321_s1 + $0xbf0] sm:$0xff]  ;;  %v2618_v53 = vpack.c.bf16 %v379_v46, %v378_v44 }
  0xaf   :  { %2633 = vmatpush3.bf16.msra.mxu1 %v2632_v62  ;;  %v393_v43 = vld [vmem:[%s4321_s1 + $0xb68] sm:$0xff]  ;;  %v411_v48 = vld [vmem:[%s4321_s1 + $0xbf8] sm:$0xff]  ;;  %v2616_v49 = vpack.c.bf16 %v361_v39, %v360_v38  ;;  %v27_v50 = vld [vmem:[%s4320_s0 + $0x30] sm:$0xff] }
  0xb0   :  { %2635 = vmatprep.subr.bf16.mxu1 %v2634_v3  ;;  %v2648_v51 = vpack.c.bf16 %v393_v43, %v392_v40  ;;  %v362_v54 = vld [vmem:[%s4321_s1 + $0xa70] sm:$0xff]  ;;  %v363_v33 = vld [vmem:[%s4321_s1 + $0xa78] sm:$0xff]  ;;  %v2650_v56 = vpack.c.bf16 %v411_v48, %v410_v47  ;;  %v428_v45 = vld [vmem:[%s4321_s1 + $0xc80] sm:$0xff]  ;;  %v592_v61 = vcombine.high %v27_v50, %v27_v50  ;;  %v4079_v8 = vrot.slane %v27_v50, %v2963_v13 }
  0xb1   :  { %2605 = vmatpush3.bf16.msra.mxu0 %v2604_v9  ;;  %v394_v55 = vld [vmem:[%s4321_s1 + $0xb70] sm:$0xff]  ;;  %v395_v57 = vld [vmem:[%s4321_s1 + $0xb78] sm:$0xff]  ;;  %v429_v58 = vld [vmem:[%s4321_s1 + $0xc88] sm:$0xff]  ;;  %v2620_v62 = vpack.c.bf16 %v363_v33, %v362_v54 }
  0xb2   :  { %2607 = vmatprep.subr.bf16.mxu0 %v2606_v10  ;;  %v460_v59 = vld [vmem:[%s4321_s1 + $0xd80] sm:$0xff]  ;;  %v461_v60 = vld [vmem:[%s4321_s1 + $0xd88] sm:$0xff]  ;;  %v2652_v63 = vpack.c.bf16 %v395_v57, %v394_v55  ;;  %v2654_v0 = vpack.c.bf16 %v429_v58, %v428_v45  ;;  %v430_v6 = vld [vmem:[%s4321_s1 + $0xc90] sm:$0xff]  ;;  %v4088_v10 = vrot.slane %v592_v61, %v2963_v13 }
  0xb3   :  { %2637 = vmatpush3.bf16.msra.mxu1 %v2636_v11  ;;  %v412_v1 = vld [vmem:[%s4321_s1 + $0xc00] sm:$0xff]  ;;  %v413_v2 = vld [vmem:[%s4321_s1 + $0xc08] sm:$0xff]  ;;  %v2686_v4 = vpack.c.bf16 %v461_v60, %v460_v59  ;;  %v431_v7 = vld [vmem:[%s4321_s1 + $0xc98] sm:$0xff] }
  0xb4   :  { %2639 = vmatprep.subr.bf16.mxu1 %v2638_v16  ;;  %v444_v3 = vld [vmem:[%s4321_s1 + $0xd00] sm:$0xff]  ;;  %v445_v5 = vld [vmem:[%s4321_s1 + $0xd08] sm:$0xff]  ;;  %v462_v9 = vld [vmem:[%s4321_s1 + $0xd90] sm:$0xff]  ;;  %v2656_v12 = vpack.c.bf16 %v413_v2, %v412_v1  ;;  %v2658_v15 = vpack.c.bf16 %v431_v7, %v430_v6  ;;  %v608_v25 = vcombine.high %v4088_v10, %v4088_v10 }
  0xb5   :  { %2609 = vmatpush3.bf16.msra.mxu0 %v2608_v22  ;;  %v463_v11 = vld [vmem:[%s4321_s1 + $0xd98] sm:$0xff]  ;;  %v2688_v14 = vpack.c.bf16 %v445_v5, %v444_v3  ;;  %v414_v16 = vld [vmem:[%s4321_s1 + $0xc10] sm:$0xff]  ;;  %v432_v20 = vld [vmem:[%s4321_s1 + $0xca0] sm:$0xff]  ;;  %v607_v22 = vcombine.high %v4079_v8, %v4079_v8 }
  0xb6   :  { %2611 = vmatprep.subr.bf16.mxu0 %v2610_v24  ;;  %v415_v17 = vld [vmem:[%s4321_s1 + $0xc18] sm:$0xff]  ;;  %v446_v18 = vld [vmem:[%s4321_s1 + $0xd10] sm:$0xff]  ;;  %v2690_v13 = vpack.c.bf16 %v463_v11, %v462_v9  ;;  %v433_v21 = vld [vmem:[%s4321_s1 + $0xca8] sm:$0xff] }
  0xb7   :  { %2641 = vmatpush3.bf16.msra.mxu1 %v2640_v23  ;;  %v447_v19 = vld [vmem:[%s4321_s1 + $0xd18] sm:$0xff]  ;;  %v464_v23 = vld [vmem:[%s4321_s1 + $0xda0] sm:$0xff]  ;;  %v465_v24 = vld [vmem:[%s4321_s1 + $0xda8] sm:$0xff]  ;;  %v2660_v26 = vpack.c.bf16 %v415_v17, %v414_v16 }
  0xb8   :  { %2643 = vmatprep.subr.bf16.mxu1 %v2642_v28  ;;  %v2692_v27 = vpack.c.bf16 %v447_v19, %v446_v18  ;;  %v2662_v28 = vpack.c.bf16 %v433_v21, %v432_v20  ;;  %v417_v29 = vld [vmem:[%s4321_s1 + $0xc28] sm:$0xff]  ;;  %v448_v30 = vld [vmem:[%s4321_s1 + $0xd20] sm:$0xff]  ;;  %v2694_v32 = vpack.c.bf16 %v465_v24, %v464_v23  ;;  %v434_v42 = vld [vmem:[%s4321_s1 + $0xcb0] sm:$0xff] }
  0xb9   :  { %2613 = vmatpush3.bf16.msra.mxu0 %v2612_v36  ;;  %v435_v35 = vld [vmem:[%s4321_s1 + $0xcb8] sm:$0xff]  ;;  %v466_v36 = vld [vmem:[%s4321_s1 + $0xdb0] sm:$0xff]  ;;  %v436_v47 = vld [vmem:[%s4321_s1 + $0xcc0] sm:$0xff] }
  0xba   :  { %2615 = vmatprep.subr.bf16.mxu0 %v2614_v37  ;;  %v2666_v39 = vpack.c.bf16 %v435_v35, %v434_v42  ;;  %v418_v40 = vld [vmem:[%s4321_s1 + $0xc30] sm:$0xff]  ;;  %v451_v46 = vld [vmem:[%s4321_s1 + $0xd38] sm:$0xff]  ;;  %v437_v48 = vld [vmem:[%s4321_s1 + $0xcc8] sm:$0xff] }
  0xbb   :  { %2645 = vmatpush3.bf16.msra.mxu1 %v2644_v52  ;;  %v467_v52 = vld [vmem:[%s4321_s1 + $0xdb8] sm:$0xff]  ;;  %v450_v43 = vld [vmem:[%s4321_s1 + $0xd30] sm:$0xff]  ;;  %v469_v50 = vld [vmem:[%s4321_s1 + $0xdc8] sm:$0xff]  ;;  %v2670_v54 = vpack.c.bf16 %v437_v48, %v436_v47 }
  0xbc   :  { %2647 = vmatprep.subr.bf16.mxu1 %v2646_v41  ;;  %v419_v41 = vld [vmem:[%s4321_s1 + $0xc38] sm:$0xff]  ;;  %v2698_v44 = vpack.c.bf16 %v467_v52, %v466_v36  ;;  %v420_v33 = vld [vmem:[%s4321_s1 + $0xc40] sm:$0xff]  ;;  %v421_v55 = vld [vmem:[%s4321_s1 + $0xc48] sm:$0xff] }
  0xbd   :  { %2617 = vmatpush3.bf16.msra.mxu0 %v2616_v49  ;;  %v468_v49 = vld [vmem:[%s4321_s1 + $0xdc0] sm:$0xff]  ;;  %v453_v45 = vld [vmem:[%s4321_s1 + $0xd48] sm:$0xff]  ;;  %v438_v58 = vld [vmem:[%s4321_s1 + $0xcd0] sm:$0xff] }
  0xbe   :  { %2619 = vmatprep.subr.bf16.mxu0 %v2618_v53  ;;  %v2700_v53 = vpack.c.bf16 %v451_v46, %v450_v43  ;;  %v2702_v57 = vpack.c.bf16 %v469_v50, %v468_v49  ;;  %v439_v59 = vld [vmem:[%s4321_s1 + $0xcd8] sm:$0xff]  ;;  %v470_v60 = vld [vmem:[%s4321_s1 + $0xdd0] sm:$0xff]  ;;  %v440_v6 = vld [vmem:[%s4321_s1 + $0xce0] sm:$0xff] }
  0xbf   :  { %2649 = vmatpush3.bf16.msra.mxu1 %v2648_v51  ;;  %v2668_v51 = vpack.c.bf16 %v419_v41, %v418_v40  ;;  %v471_v61 = vld [vmem:[%s4321_s1 + $0xdd8] sm:$0xff]  ;;  %v422_v1 = vld [vmem:[%s4321_s1 + $0xc50] sm:$0xff]  ;;  %v441_v7 = vld [vmem:[%s4321_s1 + $0xce8] sm:$0xff] }
  0xc0   :  { %2651 = vmatprep.subr.bf16.mxu1 %v2650_v56  ;;  %v452_v56 = vld [vmem:[%s4321_s1 + $0xd40] sm:$0xff]  ;;  %v423_v2 = vld [vmem:[%s4321_s1 + $0xc58] sm:$0xff]  ;;  %v454_v3 = vld [vmem:[%s4321_s1 + $0xd50] sm:$0xff] }
  0xc1   :  { %2621 = vmatpush3.bf16.msra.mxu0 %v2620_v62  ;;  %v2672_v62 = vpack.c.bf16 %v421_v55, %v420_v33  ;;  %v455_v5 = vld [vmem:[%s4321_s1 + $0xd58] sm:$0xff]  ;;  %v472_v9 = vld [vmem:[%s4321_s1 + $0xde0] sm:$0xff]  ;;  %v473_v11 = vld [vmem:[%s4321_s1 + $0xde8] sm:$0xff] }
  0xc2   :  { %2655 = vmatprep.subr.bf16.mxu0 %v2654_v0  ;;  %v2674_v0 = vpack.c.bf16 %v439_v59, %v438_v58  ;;  %v424_v16 = vld [vmem:[%s4321_s1 + $0xc60] sm:$0xff]  ;;  %v425_v17 = vld [vmem:[%s4321_s1 + $0xc68] sm:$0xff]  ;;  %v442_v20 = vld [vmem:[%s4321_s1 + $0xcf0] sm:$0xff] }
  0xc3   :  { %2653 = vmatpush3.bf16.msra.mxu1 %v2652_v63  ;;  %v2704_v63 = vpack.c.bf16 %v453_v45, %v452_v56  ;;  %v456_v18 = vld [vmem:[%s4321_s1 + $0xd60] sm:$0xff]  ;;  %v457_v19 = vld [vmem:[%s4321_s1 + $0xd68] sm:$0xff]  ;;  %v443_v21 = vld [vmem:[%s4321_s1 + $0xcf8] sm:$0xff]  ;;  %v2680_v24 = vpack.c.bf16 %v425_v17, %v424_v16 }
  0xc4   :  { %2687 = vmatprep.subr.bf16.mxu1 %v2686_v4  ;;  %1402 = vmatmul.mubr.f32.vlgmr.msra.gmra.mrb[10].mxu0 %v3872_v31  ;;  %v416_v31 = vld [vmem:[%s4321_s1 + $0xc20] sm:$0xff]  ;;  %v2706_v4 = vpack.c.bf16 %v471_v61, %v470_v60  ;;  %v475_v23 = vld [vmem:[%s4321_s1 + $0xdf8] sm:$0xff]  ;;  %v1623_v45 = vld [vmem:[%s4323_s3 + $0x28] sm:$0xff] }
  0xc5   :  { %2657 = vmatpush3.bf16.msra.mxu0 %v2656_v12  ;;  %1541 = vmatprep.mubr.f32.mxu0 %v607_v22  ;;  %v2664_v37 = vpack.c.bf16 %v417_v29, %v416_v31  ;;  %v2676_v12 = vpack.c.bf16 %v423_v2, %v422_v1  ;;  %v474_v22 = vld [vmem:[%s4321_s1 + $0xdf0] sm:$0xff]  ;;  %v1726_v35 = vld [vmem:[%s4322_s2] ss:$0 sm:$0xff]  ;;  %v1621_v55 = vld [vmem:[%s4323_s3 + $0x18] sm:$0xff] }
  0xc6   :  { %1472 = vmatmul.mubr.f32.vlgmr.msra.gmra.mrb[10].mxu1 %v3881_v34  ;;  %2659 = vmatprep.subr.bf16.mxu0 %v2658_v15  ;;  %v449_v34 = vld [vmem:[%s4321_s1 + $0xd28] sm:$0xff]  ;;  %v2678_v15 = vpack.c.bf16 %v441_v7, %v440_v6  ;;  %v2714_v31 = vpack.c.bf16 %v475_v23, %v474_v22  ;;  %v458_v29 = vld [vmem:[%s4321_s1 + $0xd70] sm:$0xff]  ;;  %v1618_v50 = vld [vmem:[%s4323_s3] sm:$0xff] }
  0xc7   :  { %2689 = vmatpush3.bf16.msra.mxu1 %v2688_v14  ;;  %1611 = vmatprep.mubr.f32.mxu1 %v608_v25  ;;  %v2696_v38 = vpack.c.bf16 %v449_v34, %v448_v30  ;;  %v2708_v14 = vpack.c.bf16 %v455_v5, %v454_v3  ;;  %v2712_v25 = vpack.c.bf16 %v457_v19, %v456_v18  ;;  %v459_v30 = vld [vmem:[%s4321_s1 + $0xd78] sm:$0xff]  ;;  %v1624_v59 = vld [vmem:[%s4323_s3 + $0x30] sm:$0xff]  ;;  %v1630_v5 = vld [vmem:[%s4323_s3 + $0x60] sm:$0xff] }
  0xc8   :  { %2691 = vmatprep.subr.bf16.mxu1 %v2690_v13  ;;  %v2710_v13 = vpack.c.bf16 %v473_v11, %v472_v9  ;;  %v2716_v34 = vpack.c.bf16 %v459_v30, %v458_v29  ;;  %v1625_v60 = vld [vmem:[%s4323_s3 + $0x38] sm:$0xff]  ;;  %v1628_v1 = vld [vmem:[%s4323_s3 + $0x50] sm:$0xff]  ;;  %v1631_v6 = vld [vmem:[%s4323_s3 + $0x68] sm:$0xff] }
  0xc9   :  { %2661 = vmatpush3.bf16.msra.mxu0 %v2660_v26  ;;  %v2682_v26 = vpack.c.bf16 %v443_v21, %v442_v20  ;;  %v2728_v61 = vpack.c.bf16 %v1625_v60, %v1624_v59  ;;  %v1629_v2 = vld [vmem:[%s4323_s3 + $0x58] sm:$0xff]  ;;  %v2737_v11 = vpack.c.bf16 %v1631_v6, %v1630_v5  ;;  %v1632_v17 = vld [vmem:[%s4323_s3 + $0x70] sm:$0xff]  ;;  %v2781_v20 = vmov 0.0  }
  0xca   :  { %2663 = vmatprep.subr.bf16.mxu0 %v2662_v28  ;;  %v427_v28 = vld [vmem:[%s4321_s1 + $0xc78] sm:$0xff]  ;;  %v2734_v3 = vpack.c.bf16 %v1629_v2, %v1628_v1 }
  0xcb   :  { %2693 = vmatpush3.bf16.msra.mxu1 %v2692_v27  ;;  %v426_v27 = vld [vmem:[%s4321_s1 + $0xc70] sm:$0xff]  ;;  %v1633_v18 = vld [vmem:[%s4323_s3 + $0x78] sm:$0xff] }
  0xcc   :  { %2695 = vmatprep.subr.bf16.mxu1 %v2694_v32  ;;  %v2684_v32 = vpack.c.bf16 %v427_v28, %v426_v27 }
  0xcd   :  { %2665 = vmatpush3.bf16.msra.mxu0 %v2664_v37 }
  0xce   :  { %2667 = vmatprep.subr.bf16.mxu0 %v2666_v39 }
  0xcf   :  { %2697 = vmatpush3.bf16.msra.mxu1 %v2696_v38 }
  0xd0   :  { %2699 = vmatprep.subr.bf16.mxu1 %v2698_v44 }
  0xd1   :  { %2669 = vmatpush3.bf16.msra.mxu0 %v2668_v51  ;;  %v1619_v51 = vld [vmem:[%s4323_s3 + $0x8] sm:$0xff] }
  0xd2   :  { %2671 = vmatprep.subr.bf16.mxu0 %v2670_v54  ;;  %v2779_v54 = vmov 0.0|0.0   ;;  %v2719_v33 = vpack.c.bf16 %v1619_v51, %v1618_v50 }
  0xd3   :  { %2701 = vmatpush3.bf16.msra.mxu1 %v2700_v53  ;;  %v1620_v53 = vld [vmem:[%s4323_s3 + $0x10] sm:$0xff] }
  0xd4   :  { %2703 = vmatprep.subr.bf16.mxu1 %v2702_v57  ;;  %v2722_v56 = vpack.c.bf16 %v1621_v55, %v1620_v53  ;;  %v1622_v57 = vld [vmem:[%s4323_s3 + $0x20] sm:$0xff] }
  0xd5   :  { %2673 = vmatpush3.bf16.msra.mxu0 %v2672_v62  ;;  %v2725_v58 = vpack.c.bf16 %v1623_v45, %v1622_v57  ;;  %v1626_v62 = vld [vmem:[%s4323_s3 + $0x40] sm:$0xff] }
  0xd6   :  { %2675 = vmatprep.subr.bf16.mxu0 %v2674_v0 }
  0xd7   :  { %2705 = vmatpush3.bf16.msra.mxu1 %v2704_v63  ;;  %v1627_v63 = vld [vmem:[%s4323_s3 + $0x48] sm:$0xff] }
  0xd8   :  { %2707 = vmatprep.subr.bf16.mxu1 %v2706_v4  ;;  %v2731_v0 = vpack.c.bf16 %v1627_v63, %v1626_v62 }
  0xd9   :  { %2677 = vmatpush3.bf16.msra.mxu0 %v2676_v12 }
  0xda   :  { %2679 = vmatprep.subr.bf16.mxu0 %v2678_v15 }
  0xdb   :  { %2709 = vmatpush3.bf16.msra.mxu1 %v2708_v14 }
  0xdc   :  { %2711 = vmatprep.subr.bf16.mxu1 %v2710_v13  ;;  %v2740_v13 = vpack.c.bf16 %v1633_v18, %v1632_v17 }
  0xdd   :  { %2681 = vmatpush3.bf16.msra.mxu0 %v2680_v24 }
  0xde   :  { %2683 = vmatprep.subr.bf16.mxu0 %v2682_v26 }
  0xdf   :  { %2713 = vmatpush3.bf16.msra.mxu1 %v2712_v25 }
  0xe0   :  { %2715 = vmatprep.subr.bf16.mxu1 %v2714_v31 }
  0xe1   :  { %2685 = vmatpush3.bf16.msra.mxu0 %v2684_v32 }
  0xe2   :  { %2718 = vmatprep.subr.bf16.mxu0 %v2779_v54 }
  0xe3   :  { %2717 = vmatpush3.bf16.msra.mxu1 %v2716_v34 }
  0xe4   :  { %1542 = vmatmul.mubr.f32.vlgmr.msra.gmra.mrb[12].mxu0 %v4079_v8 }
  0xe5   :  { %2720 = vmatpush3.bf16.msra.mxu0 %v2719_v33  ;;  %2267 = vmatprep.mubr.msk.f32.mxu0 %vm2780_vm0, %v2781_v20 }
  0xe6   :  { %1612 = vmatmul.mubr.f32.vlgmr.msra.gmra.mrb[12].mxu1 %v4088_v10  ;;  %2721 = vmatprep.subr.bf16.mxu0 %v2779_v54 }
  0xe9   :  { %2723 = vmatpush3.bf16.msra.mxu0 %v2722_v56 }
  0xea   :  { %2724 = vmatprep.subr.bf16.mxu0 %v2779_v54 }
  0xed   :  { %2726 = vmatpush3.bf16.msra.mxu0 %v2725_v58 }
  0xee   :  { %2727 = vmatprep.subr.bf16.mxu0 %v2779_v54 }
  0xf1   :  { %2729 = vmatpush3.bf16.msra.mxu0 %v2728_v61 }
  0xf2   :  { %2730 = vmatprep.subr.bf16.mxu0 %v2779_v54 }
  0xf5   :  { %2732 = vmatpush3.bf16.msra.mxu0 %v2731_v0 }
  0xf6   :  { %2733 = vmatprep.subr.bf16.mxu0 %v2779_v54 }
  0xf7   :  { %v1760_v42 = vpop.f32.mrb[0].mxu0 }
  0xf8   :  { %v1761_v36 = vpop.f32.mrb[1].mxu0 }
  0xf9   :  { %v1795_v52 = vpop.f32.mrb[0].mxu1  ;;  %v1762_v37 = vadd.f32 %v1761_v36, %v1760_v42  ;;  %2735 = vmatpush3.bf16.msra.mxu0 %v2734_v3 }
  0xfa   :  { %v1796_v38 = vpop.f32.mrb[1].mxu1  ;;  %2736 = vmatprep.subr.bf16.mxu0 %v2779_v54 }
  0xfb   :  { %v1797_v39 = vadd.f32 %v1796_v38, %v1795_v52  ;;  %v704_v40 = vadd.f32 %v1762_v37, %v1726_v35 }
  0xfd   :  { %v774_v41 = vadd.f32 %v1797_v39, %v704_v40  ;;  %2738 = vmatpush3.bf16.msra.mxu0 %v2737_v11 }
  0xfe   :  { %2739 = vmatprep.subr.bf16.mxu0 %v2779_v54  ;;  %v1727_v54 = vld [vmem:[%s4324_s4] ss:$0 sm:$0xff] }
 0x101   :  { %2741 = vmatpush3.bf16.msra.mxu0 %v2740_v13 }
 0x117   :  { %v1830_v43 = vpop.f32.mrb[2].mxu0 }
 0x118   :  { %v1831_v44 = vpop.f32.mrb[3].mxu0 }
 0x119   :  { %v1865_v46 = vpop.f32.mrb[2].mxu1  ;;  %v1832_v47 = vadd.f32 %v1831_v44, %v1830_v43 }
 0x11a   :  { %v1866_v48 = vpop.f32.mrb[3].mxu1 }
 0x11b   :  { %v1867_v8 = vadd.f32 %v1866_v48, %v1865_v46  ;;  %v844_v49 = vadd.f32 %v1832_v47, %v774_v41 }
 0x11d   :  { %v914_v10 = vadd.f32 %v1867_v8, %v844_v49 }
 0x137   :  { %v1900_v4 = vpop.f32.mrb[4].mxu0 }
 0x138   :  { %v1901_v7 = vpop.f32.mrb[5].mxu0 }
 0x139   :  { %v1935_v9 = vpop.f32.mrb[4].mxu1  ;;  %v1902_v12 = vadd.f32 %v1901_v7, %v1900_v4 }
 0x13a   :  { %v1936_v14 = vpop.f32.mrb[5].mxu1 }
 0x13b   :  { %v1937_v15 = vadd.f32 %v1936_v14, %v1935_v9  ;;  %v984_v16 = vadd.f32 %v1902_v12, %v914_v10 }
 0x13d   :  { %v1054_v19 = vadd.f32 %v1937_v15, %v984_v16 }
 0x157   :  { %v1970_v21 = vpop.f32.mrb[6].mxu0 }
 0x158   :  { %v1971_v22 = vpop.f32.mrb[7].mxu0 }
 0x159   :  { %v2005_v23 = vpop.f32.mrb[6].mxu1  ;;  %v1972_v24 = vadd.f32 %v1971_v22, %v1970_v21 }
 0x15a   :  { %v2006_v25 = vpop.f32.mrb[7].mxu1 }
 0x15b   :  { %v2007_v26 = vadd.f32 %v2006_v25, %v2005_v23  ;;  %v1124_v27 = vadd.f32 %v1972_v24, %v1054_v19 }
 0x15d   :  { %v1194_v28 = vadd.f32 %v2007_v26, %v1124_v27 }
 0x177   :  { %v2040_v31 = vpop.f32.mrb[8].mxu0 }
 0x178   :  { %v2041_v29 = vpop.f32.mrb[9].mxu0 }
 0x179   :  { %v2075_v30 = vpop.f32.mrb[8].mxu1  ;;  %v2042_v32 = vadd.f32 %v2041_v29, %v2040_v31 }
 0x17a   :  { %v2076_v34 = vpop.f32.mrb[9].mxu1 }
 0x17b   :  { %v2077_v42 = vadd.f32 %v2076_v34, %v2075_v30  ;;  %v1264_v35 = vadd.f32 %v2042_v32, %v1194_v28 }
 0x17d   :  { %v1334_v36 = vadd.f32 %v2077_v42, %v1264_v35 }
 0x197   :  { %v2110_v52 = vpop.f32.mrb[10].mxu0 }
 0x198   :  { %v2111_v37 = vpop.f32.mrb[11].mxu0 }
 0x199   :  { %v2145_v38 = vpop.f32.mrb[10].mxu1  ;;  %v2112_v39 = vadd.f32 %v2111_v37, %v2110_v52 }
 0x19a   :  { %v2146_v40 = vpop.f32.mrb[11].mxu1 }
 0x19b   :  { %v2147_v41 = vadd.f32 %v2146_v40, %v2145_v38  ;;  %v1404_v43 = vadd.f32 %v2112_v39, %v1334_v36 }
 0x19d   :  { %v1474_v44 = vadd.f32 %v2147_v41, %v1404_v43 }
 0x1b7   :  { %v2180_v46 = vpop.f32.mrb[12].mxu0 }
 0x1b8   :  { %v2181_v47 = vpop.f32.mrb[13].mxu0 }
 0x1b9   :  { %v2215_v48 = vpop.f32.mrb[12].mxu1  ;;  %v2182_v8 = vadd.f32 %v2181_v47, %v2180_v46 }
 0x1ba   :  { %v2216_v49 = vpop.f32.mrb[13].mxu1 }
 0x1bb   :  { %v2217_v10 = vadd.f32 %v2216_v49, %v2215_v48  ;;  %v1544_v50 = vadd.f32 %v2182_v8, %v1474_v44 }
 0x1bd   :  { %v1614_v51 = vadd.f32 %v2217_v10, %v1544_v50 }
 0x1bf   :  { %v1617_v53 = vmax.f32 %v1614_v51, 0.0 }
 0x1c1   :  { %2268 = vmatmul.mubr.f32.vlgmr.msra.gmra.mrb[14].mxu0 %v1617_v53 }
 0x294   :  { %v1707_v33 = vpop.f32.mrb[14].mxu0 }
 0x295   :  { %v1708_v55 = vadd.f32 %v1727_v54, %v1707_v33  ;;  %v2269_v56 = vpop.f32.mrb[15].mxu0 }
 0x297   :  { %1711 = vst [vmem:[#allocation2] sm:$0x3] %v1708_v55 }
 0x298   :  { %2765 = shalt.err (!%p2762_p4)
}
 0x299   :  { %s2766_s7 = scalar_lea.hbm %s4325_s5, 32 }
 0x29a   :  { %p2767_p5 = scmp.ne.s32.totalorder %s4325_s5, %s2766_s7  ;;  %p2770_p6 = scmp.lt.u32.totalorder %s2766_s7, %s4325_s5 }
 0x29c   :  { %p2772_p7 = pnand %p2770_p6, %p2767_p5 }
 0x29e   :  { %2775 = shalt.err (!%p2772_p7)
}
 0x29f   :  { %1721 = dma.vmem_to_hbm [thread:$0]  %s1719_s28, 32, %s4325_s5, [#allocation3]  }
 0x2a0   :  { %2776 = dma.done.wait [#allocation3], 32  }
 0x2a1   :  { %2777 = vsyncadd [#allocation3], 4294967264 }
 0x2a2   :  { %1725 = vsyncpa [#allocation3], 1 }

// kernel: cnn_forward.4
= control target key start
LH: loop header
LB: loop body
LE: loop exit
PB: predicated region body
PF: predicated region fallthrough
CT: control target
= control target key end

     0   :  { %s4200_s16 = smov 32   ;;  %s4201_s25 = smov 64   ;;  %vm630_vm0 = vcmask 261120   ;;  %vm687_vm1 = vcmask 523264   ;;  %vm820_vm2 = vcmask 785408   ;;  %s6547_s0 = inlined_call_operand.vmem [shape: f32[2,280,32], index: 0, kind: input, shape index: {}]   ;;  %s6548_s1 = inlined_call_operand.vmem [shape: f32[288,64], index: 1, kind: input, shape index: {}]   ;;  %s6549_s2 = inlined_call_operand.vmem [shape: f32[1,64], index: 2, kind: input, shape index: {}]   ;;  %s6550_s3 = inlined_call_operand.vmem [shape: f32[2,56,64], index: 3, kind: output, shape index: {}]  }
   0x1   :  { %v72_v0 = vld [vmem:[%s6547_s0 + $0x18] sm:$0xff]  ;;  %v70_v1 = vld [vmem:[%s6547_s0 + $0x8] sm:$0xff]  ;;  %v73_v2 = vld [vmem:[%s6547_s0 + $0x20] sm:$0xff] }
   0x2   :  { %242 = vrot.lane.b32.xlu1 %v72_v0, %s4200_s16  ;;  %238 = vrot.lane.b32.xlu0 %v70_v1, %s4200_s16  ;;  %v71_v3 = vld [vmem:[%s6547_s0 + $0x10] sm:$0xff]  ;;  %v4244_v5 = vld [vmem:[%s6547_s0 + $0x28] sm:$0xff] }
   0x3   :  { %v126_v4 = vld [vmem:[%s6547_s0 + $0x9] sm:$0xff]  ;;  %v127_v6 = vld [vmem:[%s6547_s0 + $0x11] sm:$0xff]  ;;  %v128_v7 = vld [vmem:[%s6547_s0 + $0x19] sm:$0xff] }
   0x4   :  { %v4260_v8 = vld [vmem:[%s6547_s0 + $0x30] sm:$0xff]  ;;  %v129_v9 = vld [vmem:[%s6547_s0 + $0x21] sm:$0xff]  ;;  %v747_v19 = vld [vmem:[%s6548_s1 + $0x18] sm:$0xff] }
   0x5   :  { %v4271_v10 = vld [vmem:[%s6547_s0 + $0x31] sm:$0xff]  ;;  %v4276_v11 = vld [vmem:[%s6547_s0 + $0x29] sm:$0xff]  ;;  %v744_v12 = vld [vmem:[%s6548_s1] sm:$0xff] }
   0x6   :  { %244 = vrot.lane.b32.xlu1 %v73_v2, %s4200_s16  ;;  %240 = vrot.lane.b32.xlu0 %v71_v3, %s4200_s16  ;;  %v745_v13 = vld [vmem:[%s6548_s1 + $0x8] sm:$0xff]  ;;  %v808_v15 = vld [vmem:[%s6548_s1 + $0x60] sm:$0xff] }
   0x7   :  { %v4284_v14 = vpack.c.bf16 %v745_v13, %v744_v12  ;;  %v809_v16 = vld [vmem:[%s6548_s1 + $0x68] sm:$0xff]  ;;  %v746_v18 = vld [vmem:[%s6548_s1 + $0x10] sm:$0xff]  ;;  %v4305_v20 = vld [vmem:[%s6547_s0 + $0x40] sm:$0xff] }
   0x8   :  { %v4001_v17 = vpack.c.bf16 %v809_v16, %v808_v15  ;;  %v4310_v21 = vld [vmem:[%s6547_s0 + $0x38] sm:$0xff]  ;;  %v4313_v22 = vpack.c.bf16 %v747_v19, %v746_v18  ;;  %v810_v23 = vld [vmem:[%s6548_s1 + $0x70] sm:$0xff]  ;;  %v748_v25 = vld [vmem:[%s6548_s1 + $0x20] sm:$0xff] }
   0x9   :  { %4026 = vmatprep.subr.bf16.mxu0 %v4284_v14  ;;  %v811_v24 = vld [vmem:[%s6548_s1 + $0x78] sm:$0xff]  ;;  %v749_v26 = vld [vmem:[%s6548_s1 + $0x28] sm:$0xff]  ;;  %v812_v31 = vld [vmem:[%s6548_s1 + $0x80] sm:$0xff] }
   0xa   :  { %462 = vrot.lane.b32.xlu1 %v126_v4, %s4201_s25  ;;  %246 = vrot.lane.b32.xlu0 %v4244_v5, %s4200_s16  ;;  %v4331_v27 = vld [vmem:[%s6547_s0 + $0x41] sm:$0xff]  ;;  %v4005_v28 = vpack.c.bf16 %v811_v24, %v810_v23  ;;  %v4334_v29 = vpack.c.bf16 %v749_v26, %v748_v25  ;;  %v4343_v30 = vld [vmem:[%s6547_s0 + $0x39] sm:$0xff] }
   0xb   :  { %4028 = vmatpush3.bf16.msra.mxu0 %v4284_v14  ;;  %4002 = vmatprep.subr.bf16.mxu1 %v4001_v17  ;;  %v813_v32 = vld [vmem:[%s6548_s1 + $0x88] sm:$0xff]  ;;  %v750_v33 = vld [vmem:[%s6548_s1 + $0x30] sm:$0xff]  ;;  %v751_v34 = vld [vmem:[%s6548_s1 + $0x38] sm:$0xff] }
   0xc   :  { %4030 = vmatprep.subr.bf16.mxu0 %v4313_v22  ;;  %4004 = vmatpush3.bf16.msra.mxu1 %v4001_v17  ;;  %v4009_v35 = vpack.c.bf16 %v813_v32, %v812_v31  ;;  %v4359_v36 = vpack.c.bf16 %v751_v34, %v750_v33  ;;  %v814_v37 = vld [vmem:[%s6548_s1 + $0x90] sm:$0xff]  ;;  %v815_v38 = vld [vmem:[%s6548_s1 + $0x98] sm:$0xff]  ;;  %v752_v39 = vld [vmem:[%s6548_s1 + $0x40] sm:$0xff] }
   0xd   :  { %4006 = vmatprep.subr.bf16.mxu1 %v4005_v28  ;;  %v753_v40 = vld [vmem:[%s6548_s1 + $0x48] sm:$0xff]  ;;  %v4380_v41 = vld [vmem:[%s6547_s0 + $0x50] sm:$0xff]  ;;  %v4013_v43 = vpack.c.bf16 %v815_v38, %v814_v37  ;;  %v816_v44 = vld [vmem:[%s6548_s1 + $0xa0] sm:$0xff] }
   0xe   :  { %464 = vrot.lane.b32.xlu1 %v127_v6, %s4201_s25  ;;  %466 = vrot.lane.b32.xlu0 %v128_v7, %s4201_s25  ;;  %v4385_v42 = vld [vmem:[%s6547_s0 + $0x48] sm:$0xff]  ;;  %v4395_v46 = vpack.c.bf16 %v753_v40, %v752_v39  ;;  %v754_v47 = vld [vmem:[%s6548_s1 + $0x50] sm:$0xff] }
   0xf   :  { %4032 = vmatpush3.bf16.msra.mxu0 %v4313_v22  ;;  %v817_v45 = vld [vmem:[%s6548_s1 + $0xa8] sm:$0xff]  ;;  %v755_v48 = vld [vmem:[%s6548_s1 + $0x58] sm:$0xff]  ;;  %v818_v52 = vld [vmem:[%s6548_s1 + $0xb0] sm:$0xff] }
  0x10   :  { %4034 = vmatprep.subr.bf16.mxu0 %v4334_v29  ;;  %4008 = vmatpush3.bf16.msra.mxu1 %v4005_v28  ;;  %v4410_v49 = vld [vmem:[%s6547_s0 + $0x51] sm:$0xff]  ;;  %v4415_v50 = vld [vmem:[%s6547_s0 + $0x49] sm:$0xff]  ;;  %v4017_v51 = vpack.c.bf16 %v817_v45, %v816_v44  ;;  %v4425_v54 = vpack.c.bf16 %v755_v48, %v754_v47  ;;  %v4434_v55 = vld [vmem:[%s6547_s0 + $0x60] sm:$0xff] }
  0x11   :  { %4010 = vmatprep.subr.bf16.mxu1 %v4009_v35  ;;  %v819_v53 = vld [vmem:[%s6548_s1 + $0xb8] sm:$0xff]  ;;  %v4450_v58 = vld [vmem:[%s6547_s0 + $0x61] sm:$0xff]  ;;  %v4465_v60 = vld [vmem:[%s6547_s0 + $0x70] sm:$0xff] }
  0x12   :  { %248 = vrot.lane.b32.xlu1 %v4260_v8, %s4200_s16  ;;  %468 = vrot.lane.b32.xlu0 %v129_v9, %s4201_s25  ;;  %v4439_v56 = vld [vmem:[%s6547_s0 + $0x58] sm:$0xff]  ;;  %v4021_v57 = vpack.c.bf16 %v819_v53, %v818_v52  ;;  %v4470_v61 = vld [vmem:[%s6547_s0 + $0x68] sm:$0xff] }
  0x13   :  { %4036 = vmatpush3.bf16.msra.mxu0 %v4334_v29  ;;  %v4455_v59 = vld [vmem:[%s6547_s0 + $0x59] sm:$0xff]  ;;  %v4480_v62 = vld [vmem:[%s6547_s0 + $0x71] sm:$0xff]  ;;  %v4485_v63 = vld [vmem:[%s6547_s0 + $0x69] sm:$0xff] }
  0x14   :  { %4038 = vmatprep.subr.bf16.mxu0 %v4359_v36  ;;  %4012 = vmatpush3.bf16.msra.mxu1 %v4009_v35  ;;  %v4494_v0 = vld [vmem:[%s6547_s0 + $0x80] sm:$0xff]  ;;  %v4499_v1 = vld [vmem:[%s6547_s0 + $0x78] sm:$0xff]  ;;  %v4522_v4 = vld [vmem:[%s6547_s0 + $0x90] sm:$0xff] }
  0x15   :  { %4014 = vmatprep.subr.bf16.mxu1 %v4013_v43  ;;  %v4508_v2 = vld [vmem:[%s6547_s0 + $0x81] sm:$0xff]  ;;  %v4513_v3 = vld [vmem:[%s6547_s0 + $0x79] sm:$0xff]  ;;  %v4536_v7 = vld [vmem:[%s6547_s0 + $0x91] sm:$0xff] }
  0x16   :  { %472 = vrot.lane.b32.xlu1 %v4271_v10, %s4201_s25  ;;  %470 = vrot.lane.b32.xlu0 %v4276_v11, %s4201_s25  ;;  %v4527_v6 = vld [vmem:[%s6547_s0 + $0x88] sm:$0xff]  ;;  %v4550_v12 = vld [vmem:[%s6547_s0 + $0xa0] sm:$0xff] }
  0x17   :  { %4040 = vmatpush3.bf16.msra.mxu0 %v4359_v36  ;;  %v4541_v9 = vld [vmem:[%s6547_s0 + $0x89] sm:$0xff]  ;;  %v4555_v13 = vld [vmem:[%s6547_s0 + $0x98] sm:$0xff]  ;;  %v4564_v15 = vld [vmem:[%s6547_s0 + $0xa1] sm:$0xff] }
  0x18   :  { %4042 = vmatprep.subr.bf16.mxu0 %v4395_v46  ;;  %4016 = vmatpush3.bf16.msra.mxu1 %v4013_v43  ;;  %v4569_v16 = vld [vmem:[%s6547_s0 + $0x99] sm:$0xff]  ;;  %v91_v17 = vld [vmem:[%s6547_s0 + $0xb0] sm:$0xff]  ;;  %v4581_v18 = vld [vmem:[%s6547_s0 + $0xa8] sm:$0xff] }
  0x19   :  { %4018 = vmatprep.subr.bf16.mxu1 %v4017_v51  ;;  %v147_v19 = vld [vmem:[%s6547_s0 + $0xb1] sm:$0xff]  ;;  %v4592_v23 = vld [vmem:[%s6547_s0 + $0xa9] sm:$0xff]  ;;  %v93_v24 = vld [vmem:[%s6547_s0 + $0xc0] sm:$0xff] }
  0x1a   :  { %252 = vrot.lane.b32.xlu1 %v4305_v20, %s4200_s16  ;;  %250 = vrot.lane.b32.xlu0 %v4310_v21, %s4200_s16  ;;  %v92_v25 = vld [vmem:[%s6547_s0 + $0xb8] sm:$0xff]  ;;  %v149_v26 = vld [vmem:[%s6547_s0 + $0xc1] sm:$0xff] }
  0x1b   :  { %4044 = vmatpush3.bf16.msra.mxu0 %v4395_v46  ;;  %v148_v28 = vld [vmem:[%s6547_s0 + $0xb9] sm:$0xff]  ;;  %v95_v31 = vld [vmem:[%s6547_s0 + $0xd0] sm:$0xff]  ;;  %v94_v32 = vld [vmem:[%s6547_s0 + $0xc8] sm:$0xff] }
  0x1c   :  { %4046 = vmatprep.subr.bf16.mxu0 %v4425_v54  ;;  %4020 = vmatpush3.bf16.msra.mxu1 %v4017_v51  ;;  %v2419_v33 = vld [vmem:[%s6548_s1 + $0xc0] sm:$0xff]  ;;  %v2420_v34 = vld [vmem:[%s6548_s1 + $0xc8] sm:$0xff]  ;;  %v151_v37 = vld [vmem:[%s6547_s0 + $0xd1] sm:$0xff] }
  0x1d   :  { %4022 = vmatprep.subr.bf16.mxu1 %v4021_v57  ;;  %v4625_v35 = vpack.c.bf16 %v2420_v34, %v2419_v33  ;;  %v150_v38 = vld [vmem:[%s6547_s0 + $0xc9] sm:$0xff]  ;;  %v97_v39 = vld [vmem:[%s6547_s0 + $0xe0] sm:$0xff]  ;;  %v96_v40 = vld [vmem:[%s6547_s0 + $0xd8] sm:$0xff] }
  0x1e   :  { %476 = vrot.lane.b32.xlu1 %v4331_v27, %s4201_s25  ;;  %474 = vrot.lane.b32.xlu0 %v4343_v30, %s4201_s25  ;;  %v153_v43 = vld [vmem:[%s6547_s0 + $0xe1] sm:$0xff]  ;;  %v152_v44 = vld [vmem:[%s6547_s0 + $0xd9] sm:$0xff] }
  0x1f   :  { %4048 = vmatpush3.bf16.msra.mxu0 %v4425_v54  ;;  %v761_v45 = vld [vmem:[%s6547_s0 + $0xf0] sm:$0xff]  ;;  %v760_v47 = vld [vmem:[%s6547_s0 + $0xe8] sm:$0xff] }
  0x20   :  { %4024 = vmatpush3.bf16.msra.mxu1 %v4021_v57  ;;  %4050 = vmatprep.subr.bf16.mxu0 %v4625_v35  ;;  %v765_v48 = vld [vmem:[%s6547_s0 + $0xf1] sm:$0xff]  ;;  %v764_v51 = vld [vmem:[%s6547_s0 + $0xe9] sm:$0xff] }
  0x21   :  { %4073 = vmatprep.subr.bf16.mxu1 %v4284_v14  ;;  %v100_v57 = vld [vmem:[%s6547_s0 + $0x130] sm:$0xff] }
  0x22   :  { %256 = vrot.lane.b32.xlu1 %v4380_v41, %s4200_s16  ;;  %254 = vrot.lane.b32.xlu0 %v4385_v42, %s4200_s16  ;;  %v15_v33 = vld [vmem:[%s6547_s0 + $0xf] sm:$0xff] }
  0x26   :  { %480 = vrot.lane.b32.xlu1 %v4410_v49, %s4201_s25  ;;  %478 = vrot.lane.b32.xlu0 %v4415_v50, %s4201_s25 }
  0x2a   :  { %260 = vrot.lane.b32.xlu1 %v4434_v55, %s4200_s16  ;;  %258 = vrot.lane.b32.xlu0 %v4439_v56, %s4200_s16 }
  0x2e   :  { %484 = vrot.lane.b32.xlu1 %v4450_v58, %s4201_s25  ;;  %482 = vrot.lane.b32.xlu0 %v4455_v59, %s4201_s25 }
  0x32   :  { %264 = vrot.lane.b32.xlu1 %v4465_v60, %s4200_s16  ;;  %262 = vrot.lane.b32.xlu0 %v4470_v61, %s4200_s16 }
  0x36   :  { %488 = vrot.lane.b32.xlu1 %v4480_v62, %s4201_s25  ;;  %486 = vrot.lane.b32.xlu0 %v4485_v63, %s4201_s25 }
  0x3a   :  { %268 = vrot.lane.b32.xlu1 %v4494_v0, %s4200_s16  ;;  %266 = vrot.lane.b32.xlu0 %v4499_v1, %s4200_s16 }
  0x3e   :  { %492 = vrot.lane.b32.xlu1 %v4508_v2, %s4201_s25  ;;  %490 = vrot.lane.b32.xlu0 %v4513_v3, %s4201_s25 }
  0x42   :  { %272 = vrot.lane.b32.xlu1 %v4522_v4, %s4200_s16  ;;  %270 = vrot.lane.b32.xlu0 %v4527_v6, %s4200_s16 }
  0x46   :  { %496 = vrot.lane.b32.xlu1 %v4536_v7, %s4201_s25  ;;  %494 = vrot.lane.b32.xlu0 %v4541_v9, %s4201_s25 }
  0x4a   :  { %276 = vrot.lane.b32.xlu1 %v4550_v12, %s4200_s16  ;;  %274 = vrot.lane.b32.xlu0 %v4555_v13, %s4200_s16 }
  0x4e   :  { %500 = vrot.lane.b32.xlu1 %v4564_v15, %s4201_s25  ;;  %498 = vrot.lane.b32.xlu0 %v4569_v16, %s4201_s25 }
  0x52   :  { %280 = vrot.lane.b32.xlu1 %v91_v17, %s4200_s16  ;;  %278 = vrot.lane.b32.xlu0 %v4581_v18, %s4200_s16 }
  0x56   :  { %504 = vrot.lane.b32.xlu1 %v147_v19, %s4201_s25  ;;  %502 = vrot.lane.b32.xlu0 %v4592_v23, %s4201_s25 }
  0x5a   :  { %284 = vrot.lane.b32.xlu1 %v93_v24, %s4200_s16  ;;  %282 = vrot.lane.b32.xlu0 %v92_v25, %s4200_s16  ;;  %v14_v24 = vld [vmem:[%s6547_s0 + $0x7] sm:$0xff]  ;;  %v156_v25 = vld [vmem:[%s6547_s0 + $0x131] sm:$0xff] }
  0x5e   :  { %508 = vrot.lane.b32.xlu1 %v149_v26, %s4201_s25  ;;  %506 = vrot.lane.b32.xlu0 %v148_v28, %s4201_s25  ;;  %v101_v26 = vld [vmem:[%s6547_s0 + $0x138] sm:$0xff] }
  0x62   :  { %288 = vrot.lane.b32.xlu1 %v95_v31, %s4200_s16  ;;  %286 = vrot.lane.b32.xlu0 %v94_v32, %s4200_s16 }
  0x66   :  { %512 = vrot.lane.b32.xlu1 %v151_v37, %s4201_s25  ;;  %510 = vrot.lane.b32.xlu0 %v150_v38, %s4201_s25  ;;  %v2421_v37 = vld [vmem:[%s6548_s1 + $0xd0] sm:$0xff]  ;;  %v2422_v38 = vld [vmem:[%s6548_s1 + $0xd8] sm:$0xff] }
  0x6a   :  { %292 = vrot.lane.b32.xlu1 %v97_v39, %s4200_s16  ;;  %290 = vrot.lane.b32.xlu0 %v96_v40, %s4200_s16 }
  0x6e   :  { %516 = vrot.lane.b32.xlu1 %v153_v43, %s4201_s25  ;;  %514 = vrot.lane.b32.xlu0 %v152_v44, %s4201_s25 }
  0x72   :  { %774 = vrot.lane.b32.xlu1 %v761_v45, %s4200_s16  ;;  %772 = vrot.lane.b32.xlu0 %v760_v47, %s4200_s16  ;;  %v17_v45 = vld [vmem:[%s6547_s0 + $0x1f] sm:$0xff] }
  0x74   :  { %v243_v52 = vpop.permute.xlu1 %242  ;;  %v239_v53 = vpop.permute.xlu0 %238 }
  0x75   :  { %v631_v28 = vsel %vm630_vm0, %v14_v24, %v239_v53  ;;  %v2424_v53 = vld [vmem:[%s6548_s1 + $0xe8] sm:$0xff] }
  0x76   :  { %790 = vrot.lane.b32.xlu1 %v765_v48, %s4201_s25  ;;  %788 = vrot.lane.b32.xlu0 %v764_v51, %s4201_s25  ;;  %v4053_v51 = vpack.c.bf16 %v2422_v38, %v2421_v37  ;;  %v4730_v24 = vld [vmem:[%s6547_s0 + $0x27] sm:$0xff] }
  0x77   :  { %v103_v38 = vld [vmem:[%s6547_s0 + $0x148] sm:$0xff] }
  0x78   :  { %v245_v17 = vpop.permute.xlu1 %244  ;;  %v241_v19 = vpop.permute.xlu0 %240 }
  0x79   :  { %v632_v40 = vsel %vm630_vm0, %v15_v33, %v241_v19 }
  0x7a   :  { %1915 = vrot.lane.b32.xlu1 %v4244_v5, %s4200_s16  ;;  %298 = vrot.lane.b32.xlu0 %v100_v57, %s4200_s16  ;;  %v16_v5 = vld [vmem:[%s6547_s0 + $0x17] sm:$0xff] }
  0x7b   :  { %v633_v39 = vsel %vm630_vm0, %v16_v5, %v243_v52  ;;  %v2423_v52 = vld [vmem:[%s6548_s1 + $0xe0] sm:$0xff] }
  0x7c   :  { %v463_v31 = vpop.permute.xlu1 %462  ;;  %v247_v32 = vpop.permute.xlu0 %246  ;;  %v157_v57 = vld [vmem:[%s6547_s0 + $0x139] sm:$0xff] }
  0x7d   :  { %v688_v34 = vsel %vm687_vm1, %v631_v28, %v463_v31  ;;  %v635_v28 = vsel %vm630_vm0, %v4730_v24, %v247_v32 }
  0x7e   :  { %522 = vrot.lane.b32.xlu1 %v156_v25, %s4201_s25  ;;  %300 = vrot.lane.b32.xlu0 %v101_v26, %s4200_s16  ;;  %v4735_v25 = vld [vmem:[%s6547_s0 + $0x2f] sm:$0xff] }
  0x7f   :  { %3809 = vmatprep.mubr.msk.f32.mxu0 %vm820_vm2, %v688_v34  ;;  %v2426_v34 = vld [vmem:[%s6548_s1 + $0xf8] sm:$0xff] }
  0x80   :  { %v465_v43 = vpop.permute.xlu1 %464  ;;  %v467_v44 = vpop.permute.xlu0 %466 }
  0x81   :  { %v689_v47 = vsel %vm687_vm1, %v632_v40, %v465_v43  ;;  %v690_v48 = vsel %vm687_vm1, %v633_v39, %v467_v44  ;;  %v4776_v43 = vld [vmem:[%s6547_s0 + $0x3f] sm:$0xff]  ;;  %v4781_v44 = vld [vmem:[%s6547_s0 + $0x37] sm:$0xff] }
  0x82   :  { %2139 = vrot.lane.b32.xlu1 %v4276_v11, %s4201_s25  ;;  %1917 = vrot.lane.b32.xlu0 %v4260_v8, %s4200_s16  ;;  %v634_v11 = vsel %vm630_vm0, %v17_v45, %v245_v17  ;;  %v4057_v17 = vpack.c.bf16 %v2424_v53, %v2423_v52  ;;  %v2427_v45 = vld [vmem:[%s6548_s1 + $0x100] sm:$0xff] }
  0x83   :  { %3701 = vmatprep.mubr.msk.f32.mxu1 %vm820_vm2, %v690_v48  ;;  %3810 = vmatmul.mubr.msk.f32.vlgmr.msra.gmra.mrb[0].mxu0 %vm820_vm2, %v689_v47  ;;  %v2428_v47 = vld [vmem:[%s6548_s1 + $0x108] sm:$0xff] }
  0x84   :  { %3812 = vmatprep.mubr.msk.f32.mxu0 %vm820_vm2, %v690_v48  ;;  %v249_v8 = vpop.permute.xlu1 %248  ;;  %v469_v19 = vpop.permute.xlu0 %468  ;;  %4052 = vmatpush3.bf16.msra.mxu0 %v4625_v35  ;;  %v102_v35 = vld [vmem:[%s6547_s0 + $0x140] sm:$0xff] }
  0x85   :  { %v691_v26 = vsel %vm687_vm1, %v634_v11, %v469_v19  ;;  %4054 = vmatprep.subr.bf16.mxu0 %v4053_v51  ;;  %v636_v31 = vsel %vm630_vm0, %v4735_v25, %v249_v8  ;;  %v4065_v11 = vpack.c.bf16 %v2428_v47, %v2427_v45  ;;  %v2429_v8 = vld [vmem:[%s6548_s1 + $0x110] sm:$0xff]  ;;  %v2430_v19 = vld [vmem:[%s6548_s1 + $0x118] sm:$0xff] }
  0x86   :  { %2141 = vrot.lane.b32.xlu1 %v4271_v10, %s4201_s25  ;;  %524 = vrot.lane.b32.xlu0 %v157_v57, %s4201_s25  ;;  %v2425_v10 = vld [vmem:[%s6548_s1 + $0xf0] sm:$0xff] }
  0x87   :  { %3702 = vmatmul.mubr.msk.f32.vlgmr.msra.gmra.mrb[0].mxu1 %vm820_vm2, %v691_v26  ;;  %3813 = vmatmul.mubr.msk.f32.gmra.mrb[2].mxu0 %vm820_vm2, %v691_v26  ;;  %v4061_v39 = vpack.c.bf16 %v2426_v34, %v2425_v10  ;;  %v159_v26 = vld [vmem:[%s6547_s0 + $0x149] sm:$0xff] }
  0x88   :  { %v473_v5 = vpop.permute.xlu1 %472  ;;  %v471_v33 = vpop.permute.xlu0 %470  ;;  %4056 = vmatpush3.bf16.msra.mxu0 %v4053_v51  ;;  %4079 = vmatpush3.bf16.msra.mxu1 %v4284_v14  ;;  %v158_v14 = vld [vmem:[%s6547_s0 + $0x141] sm:$0xff] }
  0x89   :  { %v693_v37 = vsel %vm687_vm1, %v636_v31, %v473_v5  ;;  %v692_v32 = vsel %vm687_vm1, %v635_v28, %v471_v33  ;;  %4058 = vmatprep.subr.bf16.mxu0 %v4057_v17  ;;  %4074 = vmatprep.subr.bf16.mxu1 %v4313_v22  ;;  %v104_v28 = vld [vmem:[%s6547_s0 + $0x150] sm:$0xff] }
  0x8a   :  { %1919 = vrot.lane.b32.xlu1 %v4310_v21, %s4200_s16  ;;  %302 = vrot.lane.b32.xlu0 %v102_v35, %s4200_s16  ;;  %v4069_v35 = vpack.c.bf16 %v2430_v19, %v2429_v8 }
  0x8b   :  { %3704 = vmatprep.mubr.msk.f32.mxu1 %vm820_vm2, %v692_v32  ;;  %3815 = vmatprep.mubr.msk.f32.mxu0 %vm820_vm2, %v692_v32 }
  0x8c   :  { %3705 = vmatmul.mubr.msk.f32.gmra.mrb[2].mxu1 %vm820_vm2, %v693_v37  ;;  %3816 = vmatmul.mubr.msk.f32.gmra.mrb[4].mxu0 %vm820_vm2, %v693_v37  ;;  %v253_v21 = vpop.permute.xlu1 %252  ;;  %v251_v40 = vpop.permute.xlu0 %250  ;;  %v105_v37 = vld [vmem:[%s6547_s0 + $0x158] sm:$0xff] }
  0x8d   :  { %4060 = vmatpush3.bf16.msra.mxu0 %v4057_v17  ;;  %4080 = vmatpush3.bf16.msra.mxu1 %v4313_v22  ;;  %v638_v48 = vsel %vm630_vm0, %v4776_v43, %v253_v21  ;;  %v637_v22 = vsel %vm630_vm0, %v4781_v44, %v251_v40 }
  0x8e   :  { %526 = vrot.lane.b32.xlu1 %v158_v14, %s4201_s25  ;;  %304 = vrot.lane.b32.xlu0 %v103_v38, %s4200_s16  ;;  %v4858_v14 = vld [vmem:[%s6547_s0 + $0x5f] sm:$0xff]  ;;  %v4863_v38 = vld [vmem:[%s6547_s0 + $0x57] sm:$0xff] }
  0x8f   :  { %4062 = vmatprep.subr.bf16.mxu0 %v4061_v39  ;;  %4075 = vmatprep.subr.bf16.mxu1 %v4334_v29 }
  0x90   :  { %v477_v51 = vpop.permute.xlu1 %476  ;;  %v475_v52 = vpop.permute.xlu0 %474 }
  0x91   :  { %v695_v53 = vsel %vm687_vm1, %v638_v48, %v477_v51  ;;  %v694_v57 = vsel %vm687_vm1, %v637_v22, %v475_v52  ;;  %4064 = vmatpush3.bf16.msra.mxu0 %v4061_v39  ;;  %4081 = vmatpush3.bf16.msra.mxu1 %v4334_v29  ;;  %v106_v51 = vld [vmem:[%s6547_s0 + $0x160] sm:$0xff] }
  0x92   :  { %2143 = vrot.lane.b32.xlu1 %v4343_v30, %s4201_s25  ;;  %1921 = vrot.lane.b32.xlu0 %v4305_v20, %s4200_s16  ;;  %v4820_v30 = vld [vmem:[%s6547_s0 + $0x4f] sm:$0xff]  ;;  %v4825_v20 = vld [vmem:[%s6547_s0 + $0x47] sm:$0xff] }
  0x93   :  { %3707 = vmatprep.mubr.msk.f32.mxu1 %vm820_vm2, %v694_v57  ;;  %3818 = vmatprep.mubr.msk.f32.mxu0 %vm820_vm2, %v694_v57 }
  0x94   :  { %3708 = vmatmul.mubr.msk.f32.gmra.mrb[4].mxu1 %vm820_vm2, %v695_v53  ;;  %3819 = vmatmul.mubr.msk.f32.gmra.mrb[6].mxu0 %vm820_vm2, %v695_v53  ;;  %v257_v17 = vpop.permute.xlu1 %256  ;;  %v255_v29 = vpop.permute.xlu0 %254 }
  0x95   :  { %4066 = vmatprep.subr.bf16.mxu0 %v4065_v11  ;;  %4076 = vmatprep.subr.bf16.mxu1 %v4359_v36  ;;  %v640_v31 = vsel %vm630_vm0, %v4820_v30, %v257_v17  ;;  %v639_v5 = vsel %vm630_vm0, %v4825_v20, %v255_v29  ;;  %v4925_v29 = vld [vmem:[%s6547_s0 + $0x7f] sm:$0xff] }
  0x96   :  { %2145 = vrot.lane.b32.xlu1 %v4331_v27, %s4201_s25  ;;  %528 = vrot.lane.b32.xlu0 %v159_v26, %s4201_s25  ;;  %v107_v26 = vld [vmem:[%s6547_s0 + $0x168] sm:$0xff] }
  0x97   :  { %4068 = vmatpush3.bf16.msra.mxu0 %v4065_v11  ;;  %4082 = vmatpush3.bf16.msra.mxu1 %v4359_v36  ;;  %v160_v36 = vld [vmem:[%s6547_s0 + $0x151] sm:$0xff] }
  0x98   :  { %v481_v33 = vpop.permute.xlu1 %480  ;;  %v479_v10 = vpop.permute.xlu0 %478  ;;  %4070 = vmatprep.subr.bf16.mxu0 %v4069_v35  ;;  %4077 = vmatprep.subr.bf16.mxu1 %v4395_v46 }
  0x99   :  { %v697_v27 = vsel %vm687_vm1, %v640_v31, %v481_v33  ;;  %v696_v34 = vsel %vm687_vm1, %v639_v5, %v479_v10 }
  0x9a   :  { %1923 = vrot.lane.b32.xlu1 %v4385_v42, %s4200_s16  ;;  %306 = vrot.lane.b32.xlu0 %v104_v28, %s4200_s16 }
  0x9b   :  { %3710 = vmatprep.mubr.msk.f32.mxu1 %vm820_vm2, %v696_v34  ;;  %3821 = vmatprep.mubr.msk.f32.mxu0 %vm820_vm2, %v696_v34  ;;  %v163_v34 = vld [vmem:[%s6547_s0 + $0x169] sm:$0xff] }
  0x9c   :  { %3711 = vmatmul.mubr.msk.f32.gmra.mrb[6].mxu1 %vm820_vm2, %v697_v27  ;;  %3822 = vmatmul.mubr.msk.f32.gmra.mrb[8].mxu0 %vm820_vm2, %v697_v27  ;;  %v261_v32 = vpop.permute.xlu1 %260  ;;  %v259_v42 = vpop.permute.xlu0 %258 }
  0x9d   :  { %4072 = vmatpush3.bf16.msra.mxu0 %v4069_v35  ;;  %4083 = vmatpush3.bf16.msra.mxu1 %v4395_v46  ;;  %v642_v39 = vsel %vm630_vm0, %v4858_v14, %v261_v32  ;;  %v641_v21 = vsel %vm630_vm0, %v4863_v38, %v259_v42  ;;  %v161_v46 = vld [vmem:[%s6547_s0 + $0x159] sm:$0xff]  ;;  %v108_v32 = vld [vmem:[%s6547_s0 + $0x170] sm:$0xff] }
  0x9e   :  { %530 = vrot.lane.b32.xlu1 %v160_v36, %s4201_s25  ;;  %308 = vrot.lane.b32.xlu0 %v105_v37, %s4200_s16  ;;  %v4930_v35 = vld [vmem:[%s6547_s0 + $0x77] sm:$0xff] }
  0x9f   :  { %4078 = vmatprep.subr.bf16.mxu1 %v4425_v54 }
  0xa0   :  { %v485_v40 = vpop.permute.xlu1 %484  ;;  %v483_v45 = vpop.permute.xlu0 %482 }
  0xa1   :  { %v699_v47 = vsel %vm687_vm1, %v642_v39, %v485_v40  ;;  %v698_v48 = vsel %vm687_vm1, %v641_v21, %v483_v45  ;;  %4084 = vmatpush3.bf16.msra.mxu1 %v4425_v54 }
  0xa2   :  { %2147 = vrot.lane.b32.xlu1 %v4415_v50, %s4201_s25  ;;  %1925 = vrot.lane.b32.xlu0 %v4380_v41, %s4200_s16  ;;  %v4890_v50 = vld [vmem:[%s6547_s0 + $0x6f] sm:$0xff]  ;;  %v4895_v41 = vld [vmem:[%s6547_s0 + $0x67] sm:$0xff] }
  0xa3   :  { %3713 = vmatprep.mubr.msk.f32.mxu1 %vm820_vm2, %v698_v48  ;;  %3824 = vmatprep.mubr.msk.f32.mxu0 %vm820_vm2, %v698_v48  ;;  %v109_v48 = vld [vmem:[%s6547_s0 + $0x178] sm:$0xff] }
  0xa4   :  { %3714 = vmatmul.mubr.msk.f32.gmra.mrb[8].mxu1 %vm820_vm2, %v699_v47  ;;  %3825 = vmatmul.mubr.msk.f32.gmra.mrb[10].mxu0 %vm820_vm2, %v699_v47  ;;  %v265_v22 = vpop.permute.xlu1 %264  ;;  %v263_v54 = vpop.permute.xlu0 %262 }
  0xa5   :  { %v644_v52 = vsel %vm630_vm0, %v4890_v50, %v265_v22  ;;  %v643_v53 = vsel %vm630_vm0, %v4895_v41, %v263_v54  ;;  %v4989_v22 = vld [vmem:[%s6547_s0 + $0x9f] sm:$0xff]  ;;  %v4994_v54 = vld [vmem:[%s6547_s0 + $0x97] sm:$0xff] }
  0xa6   :  { %2149 = vrot.lane.b32.xlu1 %v4410_v49, %s4201_s25  ;;  %532 = vrot.lane.b32.xlu0 %v161_v46, %s4201_s25  ;;  %v162_v49 = vld [vmem:[%s6547_s0 + $0x161] sm:$0xff] }
  0xa8   :  { %v489_v57 = vpop.permute.xlu1 %488  ;;  %v487_v11 = vpop.permute.xlu0 %486 }
  0xa9   :  { %v701_v8 = vsel %vm687_vm1, %v644_v52, %v489_v57  ;;  %v700_v19 = vsel %vm687_vm1, %v643_v53, %v487_v11 }
  0xaa   :  { %1927 = vrot.lane.b32.xlu1 %v4439_v56, %s4200_s16  ;;  %310 = vrot.lane.b32.xlu0 %v106_v51, %s4200_s16 }
  0xab   :  { %3716 = vmatprep.mubr.msk.f32.mxu1 %vm820_vm2, %v700_v19  ;;  %3827 = vmatprep.mubr.msk.f32.mxu0 %vm820_vm2, %v700_v19  ;;  %v5013_v19 = vld [vmem:[%s6547_s0 + $0x179] sm:$0xff] }
  0xac   :  { %3717 = vmatmul.mubr.msk.f32.gmra.mrb[10].mxu1 %vm820_vm2, %v701_v8  ;;  %3828 = vmatmul.mubr.msk.f32.gmra.mrb[12].mxu0 %vm820_vm2, %v701_v8  ;;  %v269_v17 = vpop.permute.xlu1 %268  ;;  %v267_v56 = vpop.permute.xlu0 %266 }
  0xad   :  { %v646_v28 = vsel %vm630_vm0, %v4925_v29, %v269_v17  ;;  %v645_v31 = vsel %vm630_vm0, %v4930_v35, %v267_v56  ;;  %v5034_v17 = vld [vmem:[%s6547_s0 + $0x180] sm:$0xff] }
  0xae   :  { %534 = vrot.lane.b32.xlu1 %v162_v49, %s4201_s25  ;;  %312 = vrot.lane.b32.xlu0 %v107_v26, %s4200_s16 }
  0xb0   :  { %v493_v5 = vpop.permute.xlu1 %492  ;;  %v491_v33 = vpop.permute.xlu0 %490 }
  0xb1   :  { %v703_v10 = vsel %vm687_vm1, %v646_v28, %v493_v5  ;;  %v702_v27 = vsel %vm687_vm1, %v645_v31, %v491_v33 }
  0xb2   :  { %2151 = vrot.lane.b32.xlu1 %v4455_v59, %s4201_s25  ;;  %1929 = vrot.lane.b32.xlu0 %v4434_v55, %s4200_s16  ;;  %v4954_v59 = vld [vmem:[%s6547_s0 + $0x8f] sm:$0xff]  ;;  %v4959_v55 = vld [vmem:[%s6547_s0 + $0x87] sm:$0xff] }
  0xb3   :  { %3719 = vmatprep.mubr.msk.f32.mxu1 %vm820_vm2, %v702_v27  ;;  %3830 = vmatprep.mubr.msk.f32.mxu0 %vm820_vm2, %v702_v27  ;;  %v5056_v27 = vld [vmem:[%s6547_s0 + $0x188] sm:$0xff] }
  0xb4   :  { %3720 = vmatmul.mubr.msk.f32.gmra.mrb[12].mxu1 %vm820_vm2, %v703_v10  ;;  %3831 = vmatmul.mubr.msk.f32.gmra.mrb[14].mxu0 %vm820_vm2, %v703_v10  ;;  %v273_v36 = vpop.permute.xlu1 %272  ;;  %v271_v37 = vpop.permute.xlu0 %270  ;;  %v5051_v10 = vld [vmem:[%s6547_s0 + $0x181] sm:$0xff] }
  0xb5   :  { %v648_v42 = vsel %vm630_vm0, %v4954_v59, %v273_v36  ;;  %v647_v39 = vsel %vm630_vm0, %v4959_v55, %v271_v37  ;;  %v5063_v36 = vld [vmem:[%s6547_s0 + $0xbf] sm:$0xff]  ;;  %v5068_v37 = vld [vmem:[%s6547_s0 + $0xb7] sm:$0xff] }
  0xb6   :  { %2153 = vrot.lane.b32.xlu1 %v4450_v58, %s4201_s25  ;;  %536 = vrot.lane.b32.xlu0 %v163_v34, %s4201_s25  ;;  %v164_v58 = vld [vmem:[%s6547_s0 + $0x171] sm:$0xff] }
  0xb8   :  { %v497_v21 = vpop.permute.xlu1 %496  ;;  %v495_v40 = vpop.permute.xlu0 %494 }
  0xb9   :  { %v705_v45 = vsel %vm687_vm1, %v648_v42, %v497_v21  ;;  %v704_v47 = vsel %vm687_vm1, %v647_v39, %v495_v40 }
  0xba   :  { %1931 = vrot.lane.b32.xlu1 %v4470_v61, %s4200_s16  ;;  %314 = vrot.lane.b32.xlu0 %v108_v32, %s4200_s16 }
  0xbb   :  { %3722 = vmatprep.mubr.msk.f32.mxu1 %vm820_vm2, %v704_v47  ;;  %3833 = vmatprep.mubr.msk.f32.mxu0 %vm820_vm2, %v704_v47  ;;  %v5089_v47 = vld [vmem:[%s6547_s0 + $0x189] sm:$0xff] }
  0xbc   :  { %3723 = vmatmul.mubr.msk.f32.gmra.mrb[14].mxu1 %vm820_vm2, %v705_v45  ;;  %3834 = vmatmul.mubr.msk.f32.gmra.mrb[16].mxu0 %vm820_vm2, %v705_v45  ;;  %v277_v46 = vpop.permute.xlu1 %276  ;;  %v275_v61 = vpop.permute.xlu0 %274 }
  0xbd   :  { %v650_v51 = vsel %vm630_vm0, %v4989_v22, %v277_v46  ;;  %v649_v52 = vsel %vm630_vm0, %v4994_v54, %v275_v61  ;;  %v5108_v46 = vld [vmem:[%s6547_s0 + $0x190] sm:$0xff] }
  0xbe   :  { %538 = vrot.lane.b32.xlu1 %v164_v58, %s4201_s25  ;;  %316 = vrot.lane.b32.xlu0 %v109_v48, %s4200_s16 }
  0xc0   :  { %v501_v53 = vpop.permute.xlu1 %500  ;;  %v499_v57 = vpop.permute.xlu0 %498 }
  0xc1   :  { %v707_v11 = vsel %vm687_vm1, %v650_v51, %v501_v53  ;;  %v706_v8 = vsel %vm687_vm1, %v649_v52, %v499_v57 }
  0xc2   :  { %2155 = vrot.lane.b32.xlu1 %v4485_v63, %s4201_s25  ;;  %1933 = vrot.lane.b32.xlu0 %v4465_v60, %s4200_s16  ;;  %v5020_v63 = vld [vmem:[%s6547_s0 + $0xaf] sm:$0xff]  ;;  %v5025_v60 = vld [vmem:[%s6547_s0 + $0xa7] sm:$0xff] }
  0xc3   :  { %3725 = vmatprep.mubr.msk.f32.mxu1 %vm820_vm2, %v706_v8  ;;  %3836 = vmatprep.mubr.msk.f32.mxu0 %vm820_vm2, %v706_v8  ;;  %v5129_v8 = vld [vmem:[%s6547_s0 + $0x198] sm:$0xff] }
  0xc4   :  { %3726 = vmatmul.mubr.msk.f32.gmra.mrb[16].mxu1 %vm820_vm2, %v707_v11  ;;  %3837 = vmatmul.mubr.msk.f32.gmra.mrb[18].mxu0 %vm820_vm2, %v707_v11  ;;  %v281_v49 = vpop.permute.xlu1 %280  ;;  %v279_v26 = vpop.permute.xlu0 %278 }
  0xc5   :  { %v652_v56 = vsel %vm630_vm0, %v5020_v63, %v281_v49  ;;  %v651_v28 = vsel %vm630_vm0, %v5025_v60, %v279_v26  ;;  %v41_v26 = vld [vmem:[%s6547_s0 + $0xdf] sm:$0xff] }
  0xc6   :  { %2157 = vrot.lane.b32.xlu1 %v4480_v62, %s4201_s25  ;;  %540 = vrot.lane.b32.xlu0 %v5013_v19, %s4201_s25 }
  0xc8   :  { %v505_v31 = vpop.permute.xlu1 %504  ;;  %v503_v5 = vpop.permute.xlu0 %502 }
  0xc9   :  { %v709_v33 = vsel %vm687_vm1, %v652_v56, %v505_v31  ;;  %v708_v62 = vsel %vm687_vm1, %v651_v28, %v503_v5  ;;  %v40_v56 = vld [vmem:[%s6547_s0 + $0xd7] sm:$0xff] }
  0xca   :  { %1935 = vrot.lane.b32.xlu1 %v4499_v1, %s4200_s16  ;;  %318 = vrot.lane.b32.xlu0 %v5034_v17, %s4200_s16 }
  0xcb   :  { %3728 = vmatprep.mubr.msk.f32.mxu1 %vm820_vm2, %v708_v62  ;;  %3839 = vmatprep.mubr.msk.f32.mxu0 %vm820_vm2, %v708_v62 }
  0xcc   :  { %3729 = vmatmul.mubr.msk.f32.gmra.mrb[18].mxu1 %vm820_vm2, %v709_v33  ;;  %3840 = vmatmul.mubr.msk.f32.gmra.mrb[20].mxu0 %vm820_vm2, %v709_v33  ;;  %v285_v1 = vpop.permute.xlu1 %284  ;;  %v283_v34 = vpop.permute.xlu0 %282 }
  0xcd   :  { %v654_v32 = vsel %vm630_vm0, %v5063_v36, %v285_v1  ;;  %v653_v42 = vsel %vm630_vm0, %v5068_v37, %v283_v34  ;;  %v5156_v34 = vld [vmem:[%s6547_s0 + $0x199] sm:$0xff] }
  0xce   :  { %542 = vrot.lane.b32.xlu1 %v5051_v10, %s4201_s25  ;;  %320 = vrot.lane.b32.xlu0 %v5056_v27, %s4200_s16 }
  0xd0   :  { %v509_v39 = vpop.permute.xlu1 %508  ;;  %v507_v21 = vpop.permute.xlu0 %506 }
  0xd1   :  { %v711_v40 = vsel %vm687_vm1, %v654_v32, %v509_v39  ;;  %v710_v45 = vsel %vm687_vm1, %v653_v42, %v507_v21  ;;  %v5173_v39 = vld [vmem:[%s6547_s0 + $0x1a0] sm:$0xff] }
  0xd2   :  { %2159 = vrot.lane.b32.xlu1 %v4513_v3, %s4201_s25  ;;  %1937 = vrot.lane.b32.xlu0 %v4494_v0, %s4200_s16  ;;  %v39_v3 = vld [vmem:[%s6547_s0 + $0xcf] sm:$0xff]  ;;  %v5099_v0 = vld [vmem:[%s6547_s0 + $0xc7] sm:$0xff] }
  0xd3   :  { %3731 = vmatprep.mubr.msk.f32.mxu1 %vm820_vm2, %v710_v45  ;;  %3842 = vmatprep.mubr.msk.f32.mxu0 %vm820_vm2, %v710_v45 }
  0xd4   :  { %3732 = vmatmul.mubr.msk.f32.gmra.mrb[20].mxu1 %vm820_vm2, %v711_v40  ;;  %3843 = vmatmul.mubr.msk.f32.gmra.mrb[22].mxu0 %vm820_vm2, %v711_v40  ;;  %v289_v58 = vpop.permute.xlu1 %288  ;;  %v287_v48 = vpop.permute.xlu0 %286 }
  0xd5   :  { %v656_v61 = vsel %vm630_vm0, %v39_v3, %v289_v58  ;;  %v655_v51 = vsel %vm630_vm0, %v5099_v0, %v287_v48 }
  0xd6   :  { %2161 = vrot.lane.b32.xlu1 %v4508_v2, %s4201_s25  ;;  %544 = vrot.lane.b32.xlu0 %v5089_v47, %s4201_s25  ;;  %v5124_v2 = vld [vmem:[%s6547_s0 + $0x191] sm:$0xff] }
  0xd8   :  { %v513_v52 = vpop.permute.xlu1 %512  ;;  %v511_v53 = vpop.permute.xlu0 %510 }
  0xd9   :  { %v713_v57 = vsel %vm687_vm1, %v656_v61, %v513_v52  ;;  %v712_v11 = vsel %vm687_vm1, %v655_v51, %v511_v53  ;;  %v5192_v61 = vld [vmem:[%s6547_s0 + $0x1a8] sm:$0xff] }
  0xda   :  { %1939 = vrot.lane.b32.xlu1 %v4527_v6, %s4200_s16  ;;  %322 = vrot.lane.b32.xlu0 %v5108_v46, %s4200_s16 }
  0xdb   :  { %3734 = vmatprep.mubr.msk.f32.mxu1 %vm820_vm2, %v712_v11  ;;  %3845 = vmatprep.mubr.msk.f32.mxu0 %vm820_vm2, %v712_v11 }
  0xdc   :  { %3735 = vmatmul.mubr.msk.f32.gmra.mrb[22].mxu1 %vm820_vm2, %v713_v57  ;;  %3846 = vmatmul.mubr.msk.f32.gmra.mrb[24].mxu0 %vm820_vm2, %v713_v57  ;;  %v293_v6 = vpop.permute.xlu1 %292  ;;  %v291_v49 = vpop.permute.xlu0 %290 }
  0xdd   :  { %v658_v28 = vsel %vm630_vm0, %v41_v26, %v293_v6  ;;  %v657_v31 = vsel %vm630_vm0, %v40_v56, %v291_v49  ;;  %v5215_v49 = vld [vmem:[%s6547_s0 + $0x1a9] sm:$0xff] }
  0xde   :  { %546 = vrot.lane.b32.xlu1 %v5124_v2, %s4201_s25  ;;  %324 = vrot.lane.b32.xlu0 %v5129_v8, %s4200_s16 }
  0xe0   :  { %v517_v5 = vpop.permute.xlu1 %516  ;;  %v515_v33 = vpop.permute.xlu0 %514 }
  0xe1   :  { %v715_v62 = vsel %vm687_vm1, %v658_v28, %v517_v5  ;;  %v714_v1 = vsel %vm687_vm1, %v657_v31, %v515_v33 }
  0xe2   :  { %2163 = vrot.lane.b32.xlu1 %v4541_v9, %s4201_s25  ;;  %1941 = vrot.lane.b32.xlu0 %v4522_v4, %s4200_s16  ;;  %v757_v9 = vld [vmem:[%s6547_s0 + $0xef] sm:$0xff]  ;;  %v756_v4 = vld [vmem:[%s6547_s0 + $0xe7] sm:$0xff] }
  0xe3   :  { %3737 = vmatprep.mubr.msk.f32.mxu1 %vm820_vm2, %v714_v1  ;;  %3848 = vmatprep.mubr.msk.f32.mxu0 %vm820_vm2, %v714_v1 }
  0xe4   :  { %3738 = vmatmul.mubr.msk.f32.gmra.mrb[24].mxu1 %vm820_vm2, %v715_v62  ;;  %3849 = vmatmul.mubr.msk.f32.gmra.mrb[26].mxu0 %vm820_vm2, %v715_v62  ;;  %v775_v32 = vpop.permute.xlu1 %774  ;;  %v773_v42 = vpop.permute.xlu0 %772 }
  0xe5   :  { %v801_v21 = vsel %vm630_vm0, %v757_v9, %v775_v32  ;;  %v800_v40 = vsel %vm630_vm0, %v756_v4, %v773_v42  ;;  %v5255_v32 = vld [vmem:[%s6547_s0 + $0x1b8] sm:$0xff]  ;;  %v1764_v4 = vld [vmem:[%s6547_s0 + $0xb0] sm:$0xff] }
  0xe6   :  { %2165 = vrot.lane.b32.xlu1 %v4536_v7, %s4201_s25  ;;  %548 = vrot.lane.b32.xlu0 %v5156_v34, %s4201_s25  ;;  %v5187_v7 = vld [vmem:[%s6547_s0 + $0x1a1] sm:$0xff] }
  0xe7   :  { %v46_v9 = vld [vmem:[%s6547_s0 + $0x13f] sm:$0xff] }
  0xe8   :  { %v791_v45 = vpop.permute.xlu1 %790  ;;  %v789_v58 = vpop.permute.xlu0 %788 }
  0xe9   :  { %v805_v48 = vsel %vm687_vm1, %v801_v21, %v791_v45  ;;  %v804_v3 = vsel %vm687_vm1, %v800_v40, %v789_v58 }
  0xea   :  { %1943 = vrot.lane.b32.xlu1 %v4555_v13, %s4200_s16  ;;  %326 = vrot.lane.b32.xlu0 %v5173_v39, %s4200_s16  ;;  %v44_v13 = vld [vmem:[%s6547_s0 + $0x12f] sm:$0xff] }
  0xeb   :  { %3740 = vmatprep.mubr.msk.f32.mxu1 %vm820_vm2, %v804_v3  ;;  %v5282_v3 = vld [vmem:[%s6547_s0 + $0x1b9] sm:$0xff] }
  0xec   :  { %3741 = vmatmul.mubr.msk.f32.gmra.mrb[26].mxu1 %vm820_vm2, %v805_v48  ;;  %v1916_v51 = vpop.permute.xlu1 %1915  ;;  %v299_v52 = vpop.permute.xlu0 %298  ;;  %v1820_v48 = vld [vmem:[%s6547_s0 + $0xb1] sm:$0xff] }
  0xed   :  { %v661_v53 = vsel %vm630_vm0, %v44_v13, %v299_v52  ;;  %v2307_v26 = vsel %vm630_vm0, %v4730_v24, %v1916_v51 }
  0xee   :  { %550 = vrot.lane.b32.xlu1 %v5187_v7, %s4201_s25  ;;  %328 = vrot.lane.b32.xlu0 %v5192_v61, %s4200_s16 }
  0xf0   :  { %v523_v57 = vpop.permute.xlu1 %522  ;;  %v301_v11 = vpop.permute.xlu0 %300 }
  0xf1   :  { %v5204_v6 = vsel %vm687_vm1, %v661_v53, %v523_v57  ;;  %v1765_v57 = vld [vmem:[%s6547_s0 + $0xb8] sm:$0xff] }
  0xf2   :  { %2167 = vrot.lane.b32.xlu1 %v4569_v16, %s4201_s25  ;;  %1945 = vrot.lane.b32.xlu0 %v4550_v12, %s4200_s16  ;;  %v45_v16 = vld [vmem:[%s6547_s0 + $0x137] sm:$0xff] }
  0xf3   :  { %3743 = vmatprep.mubr.msk.f32.mxu1 %vm820_vm2, %v5204_v6  ;;  %v5231_v12 = vld [vmem:[%s6547_s0 + $0x1b0] sm:$0xff]  ;;  %v662_v24 = vsel %vm630_vm0, %v45_v16, %v301_v11 }
  0xf4   :  { %v2140_v56 = vpop.permute.xlu1 %2139  ;;  %v1918_v28 = vpop.permute.xlu0 %1917 }
  0xf5   :  { %v2363_v31 = vsel %vm687_vm1, %v2307_v26, %v2140_v56  ;;  %v2308_v5 = vsel %vm630_vm0, %v4735_v25, %v1918_v28  ;;  %v5250_v25 = vld [vmem:[%s6547_s0 + $0x1b1] sm:$0xff] }
  0xf6   :  { %2169 = vrot.lane.b32.xlu1 %v4564_v15, %s4201_s25  ;;  %552 = vrot.lane.b32.xlu0 %v5215_v49, %s4201_s25 }
  0xf7   :  { %3917 = vmatprep.mubr.msk.f32.mxu0 %vm820_vm2, %v2363_v31 }
  0xf8   :  { %v2142_v33 = vpop.permute.xlu1 %2141  ;;  %v525_v62 = vpop.permute.xlu0 %524 }
  0xf9   :  { %v2364_v1 = vsel %vm687_vm1, %v2308_v5, %v2142_v33  ;;  %v5238_v15 = vsel %vm687_vm1, %v662_v24, %v525_v62  ;;  %v5323_v24 = vld [vmem:[%s6547_s0 + $0x1c8] sm:$0xff] }
  0xfa   :  { %1947 = vrot.lane.b32.xlu1 %v4581_v18, %s4200_s16  ;;  %330 = vrot.lane.b32.xlu0 %v5231_v12, %s4200_s16  ;;  %v48_v62 = vld [vmem:[%s6547_s0 + $0x14f] sm:$0xff] }
  0xfb   :  { %3744 = vmatmul.mubr.msk.f32.gmra.mrb[28].mxu1 %vm820_vm2, %v5238_v15  ;;  %3918 = vmatmul.mubr.msk.f32.vlgmr.msra.gmra.mrb[0].mxu0 %vm820_vm2, %v2364_v1  ;;  %v1821_v1 = vld [vmem:[%s6547_s0 + $0xb9] sm:$0xff] }
  0xfc   :  { %v1920_v42 = vpop.permute.xlu1 %1919  ;;  %v303_v18 = vpop.permute.xlu0 %302 }
  0xfd   :  { %v663_v21 = vsel %vm630_vm0, %v46_v9, %v303_v18  ;;  %v2309_v51 = vsel %vm630_vm0, %v4781_v44, %v1920_v42  ;;  %v5300_v44 = vld [vmem:[%s6547_s0 + $0x1c0] sm:$0xff] }
  0xfe   :  { %554 = vrot.lane.b32.xlu1 %v5250_v25, %s4201_s25  ;;  %332 = vrot.lane.b32.xlu0 %v5255_v32, %s4200_s16  ;;  %v1766_v42 = vld [vmem:[%s6547_s0 + $0xc0] sm:$0xff] }
 0x100   :  { %v527_v40 = vpop.permute.xlu1 %526  ;;  %v305_v45 = vpop.permute.xlu0 %304 }
 0x101   :  { %v5269_v58 = vsel %vm687_vm1, %v663_v21, %v527_v40  ;;  %v1822_v40 = vld [vmem:[%s6547_s0 + $0xc1] sm:$0xff] }
 0x102   :  { %2171 = vrot.lane.b32.xlu1 %v4592_v23, %s4201_s25  ;;  %1949 = vrot.lane.b32.xlu0 %v1764_v4, %s4200_s16  ;;  %v47_v23 = vld [vmem:[%s6547_s0 + $0x147] sm:$0xff] }
 0x103   :  { %3746 = vmatprep.mubr.msk.f32.mxu1 %vm820_vm2, %v5269_v58  ;;  %v664_v11 = vsel %vm630_vm0, %v47_v23, %v305_v45  ;;  %v5352_v45 = vld [vmem:[%s6547_s0 + $0x1c9] sm:$0xff] }
 0x104   :  { %v2144_v52 = vpop.permute.xlu1 %2143  ;;  %v1922_v13 = vpop.permute.xlu0 %1921 }
 0x105   :  { %v2365_v53 = vsel %vm687_vm1, %v2309_v51, %v2144_v52  ;;  %v2310_v26 = vsel %vm630_vm0, %v4776_v43, %v1922_v13  ;;  %v5318_v43 = vld [vmem:[%s6547_s0 + $0x1c1] sm:$0xff]  ;;  %v49_v13 = vld [vmem:[%s6547_s0 + $0x157] sm:$0xff] }
 0x106   :  { %2173 = vrot.lane.b32.xlu1 %v1820_v48, %s4201_s25  ;;  %556 = vrot.lane.b32.xlu0 %v5282_v3, %s4201_s25 }
 0x107   :  { %3920 = vmatprep.mubr.msk.f32.mxu0 %vm820_vm2, %v2365_v53  ;;  %v1767_v53 = vld [vmem:[%s6547_s0 + $0xc8] sm:$0xff] }
 0x108   :  { %v2146_v56 = vpop.permute.xlu1 %2145  ;;  %v529_v28 = vpop.permute.xlu0 %528 }
 0x109   :  { %v2366_v16 = vsel %vm687_vm1, %v2310_v26, %v2146_v56  ;;  %v5307_v31 = vsel %vm687_vm1, %v664_v11, %v529_v28 }
 0x10a   :  { %1951 = vrot.lane.b32.xlu1 %v1765_v57, %s4200_s16  ;;  %334 = vrot.lane.b32.xlu0 %v5300_v44, %s4200_s16 }
 0x10b   :  { %3747 = vmatmul.mubr.msk.f32.gmra.mrb[30].mxu1 %vm820_vm2, %v5307_v31  ;;  %3921 = vmatmul.mubr.msk.f32.gmra.mrb[2].mxu0 %vm820_vm2, %v2366_v16 }
 0x10c   :  { %v1924_v5 = vpop.permute.xlu1 %1923  ;;  %v307_v33 = vpop.permute.xlu0 %306 }
 0x10d   :  { %v665_v18 = vsel %vm630_vm0, %v48_v62, %v307_v33  ;;  %v2311_v48 = vsel %vm630_vm0, %v4825_v20, %v1924_v5  ;;  %v5370_v20 = vld [vmem:[%s6547_s0 + $0x1d0] sm:$0xff]  ;;  %v5393_v5 = vld [vmem:[%s6547_s0 + $0x1d8] sm:$0xff] }
 0x10e   :  { %558 = vrot.lane.b32.xlu1 %v5318_v43, %s4201_s25  ;;  %336 = vrot.lane.b32.xlu0 %v5323_v24, %s4200_s16 }
 0x110   :  { %v531_v9 = vpop.permute.xlu1 %530  ;;  %v309_v4 = vpop.permute.xlu0 %308 }
 0x111   :  { %v5340_v21 = vsel %vm687_vm1, %v665_v18, %v531_v9  ;;  %v666_v57 = vsel %vm630_vm0, %v49_v13, %v309_v4  ;;  %v1768_v18 = vld [vmem:[%s6547_s0 + $0xd0] sm:$0xff] }
 0x112   :  { %2175 = vrot.lane.b32.xlu1 %v1821_v1, %s4201_s25  ;;  %1953 = vrot.lane.b32.xlu0 %v1766_v42, %s4200_s16  ;;  %v50_v1 = vld [vmem:[%s6547_s0 + $0x15f] sm:$0xff]  ;;  %v1823_v42 = vld [vmem:[%s6547_s0 + $0xc9] sm:$0xff] }
 0x113   :  { %3749 = vmatprep.mubr.msk.f32.mxu1 %vm820_vm2, %v5340_v21 }
 0x114   :  { %v2148_v51 = vpop.permute.xlu1 %2147  ;;  %v1926_v52 = vpop.permute.xlu0 %1925 }
 0x115   :  { %v2367_v23 = vsel %vm687_vm1, %v2311_v48, %v2148_v51  ;;  %v2312_v11 = vsel %vm630_vm0, %v4820_v30, %v1926_v52  ;;  %v5388_v30 = vld [vmem:[%s6547_s0 + $0x1d1] sm:$0xff]  ;;  %v5422_v52 = vld [vmem:[%s6547_s0 + $0x1d9] sm:$0xff] }
 0x116   :  { %2177 = vrot.lane.b32.xlu1 %v1822_v40, %s4201_s25  ;;  %560 = vrot.lane.b32.xlu0 %v5352_v45, %s4201_s25  ;;  %v1824_v51 = vld [vmem:[%s6547_s0 + $0xd1] sm:$0xff] }
 0x117   :  { %3923 = vmatprep.mubr.msk.f32.mxu0 %vm820_vm2, %v2367_v23 }
 0x118   :  { %v2150_v26 = vpop.permute.xlu1 %2149  ;;  %v533_v56 = vpop.permute.xlu0 %532 }
 0x119   :  { %v2368_v28 = vsel %vm687_vm1, %v2312_v11, %v2150_v26  ;;  %v5377_v16 = vsel %vm687_vm1, %v666_v57, %v533_v56  ;;  %v51_v57 = vld [vmem:[%s6547_s0 + $0x167] sm:$0xff]  ;;  %v1769_v26 = vld [vmem:[%s6547_s0 + $0xd8] sm:$0xff] }
 0x11a   :  { %6568 = vst [vmem:[#allocation3_spill] sm:$0xff] %v5377_v16  ;;  %1955 = vrot.lane.b32.xlu1 %v1767_v53, %s4200_s16  ;;  %338 = vrot.lane.b32.xlu0 %v5370_v20, %s4200_s16 }
 0x11b   :  { %3750 = vmatmul.mubr.msk.f32.gmra.mrb[32].mxu1 %vm820_vm2, %v5377_v16  ;;  %3924 = vmatmul.mubr.msk.f32.gmra.mrb[4].mxu0 %vm820_vm2, %v2368_v28 }
 0x11c   :  { %v1928_v33 = vpop.permute.xlu1 %1927  ;;  %v311_v62 = vpop.permute.xlu0 %310 }
 0x11d   :  { %v667_v9 = vsel %vm630_vm0, %v50_v1, %v311_v62  ;;  %v2313_v13 = vsel %vm630_vm0, %v4863_v38, %v1928_v33  ;;  %v5440_v38 = vld [vmem:[%s6547_s0 + $0x1e0] sm:$0xff] }
 0x11e   :  { %562 = vrot.lane.b32.xlu1 %v5388_v30, %s4201_s25  ;;  %340 = vrot.lane.b32.xlu0 %v5393_v5, %s4200_s16 }
 0x120   :  { %v535_v4 = vpop.permute.xlu1 %534  ;;  %v313_v40 = vpop.permute.xlu0 %312 }
 0x121   :  { %v5410_v48 = vsel %vm687_vm1, %v667_v9, %v535_v4  ;;  %v668_v56 = vsel %vm630_vm0, %v51_v57, %v313_v40  ;;  %v52_v40 = vld [vmem:[%s6547_s0 + $0x16f] sm:$0xff] }
 0x122   :  { %6569 = vst [vmem:[#allocation4_spill] sm:$0xff] %v5410_v48  ;;  %2179 = vrot.lane.b32.xlu1 %v1823_v42, %s4201_s25  ;;  %1957 = vrot.lane.b32.xlu0 %v1768_v18, %s4200_s16  ;;  %v5463_v18 = vld [vmem:[%s6547_s0 + $0x1e8] sm:$0xff] }
 0x123   :  { %3752 = vmatprep.mubr.msk.f32.mxu1 %vm820_vm2, %v5410_v48 }
 0x124   :  { %v2152_v23 = vpop.permute.xlu1 %2151  ;;  %v1930_v53 = vpop.permute.xlu0 %1929 }
 0x125   :  { %v2369_v11 = vsel %vm687_vm1, %v2313_v13, %v2152_v23  ;;  %v2314_v28 = vsel %vm630_vm0, %v4858_v14, %v1930_v53  ;;  %v5458_v14 = vld [vmem:[%s6547_s0 + $0x1e1] sm:$0xff] }
 0x126   :  { %2181 = vrot.lane.b32.xlu1 %v1824_v51, %s4201_s25  ;;  %564 = vrot.lane.b32.xlu0 %v5422_v52, %s4201_s25  ;;  %v1825_v51 = vld [vmem:[%s6547_s0 + $0xd9] sm:$0xff] }
 0x127   :  { %3926 = vmatprep.mubr.msk.f32.mxu0 %vm820_vm2, %v2369_v11  ;;  %v1770_v13 = vld [vmem:[%s6547_s0 + $0xe0] sm:$0xff] }
 0x128   :  { %v2154_v33 = vpop.permute.xlu1 %2153  ;;  %v537_v62 = vpop.permute.xlu0 %536 }
 0x129   :  { %v2370_v1 = vsel %vm687_vm1, %v2314_v28, %v2154_v33  ;;  %v5447_v42 = vsel %vm687_vm1, %v668_v56, %v537_v62  ;;  %v5492_v56 = vld [vmem:[%s6547_s0 + $0x1e9] sm:$0xff] }
 0x12a   :  { %6570 = vst [vmem:[#allocation5_spill] sm:$0xff] %v5447_v42  ;;  %1959 = vrot.lane.b32.xlu1 %v1769_v26, %s4200_s16  ;;  %342 = vrot.lane.b32.xlu0 %v5440_v38, %s4200_s16  ;;  %v1826_v26 = vld [vmem:[%s6547_s0 + $0xe1] sm:$0xff] }
 0x12b   :  { %3753 = vmatmul.mubr.msk.f32.gmra.mrb[34].mxu1 %vm820_vm2, %v5447_v42  ;;  %3927 = vmatmul.mubr.msk.f32.gmra.mrb[6].mxu0 %vm820_vm2, %v2370_v1  ;;  %v53_v1 = vld [vmem:[%s6547_s0 + $0x177] sm:$0xff] }
 0x12c   :  { %v1932_v9 = vpop.permute.xlu1 %1931  ;;  %v315_v4 = vpop.permute.xlu0 %314 }
 0x12d   :  { %v669_v23 = vsel %vm630_vm0, %v52_v40, %v315_v4  ;;  %v2315_v28 = vsel %vm630_vm0, %v4895_v41, %v1932_v9  ;;  %v1771_v40 = vld [vmem:[%s6547_s0 + $0xe8] sm:$0xff]  ;;  %v5510_v41 = vld [vmem:[%s6547_s0 + $0x1f0] sm:$0xff] }
 0x12e   :  { %566 = vrot.lane.b32.xlu1 %v5458_v14, %s4201_s25  ;;  %344 = vrot.lane.b32.xlu0 %v5463_v18, %s4200_s16 }
 0x130   :  { %v539_v53 = vpop.permute.xlu1 %538  ;;  %v317_v57 = vpop.permute.xlu0 %316 }
 0x131   :  { %v5480_v11 = vsel %vm687_vm1, %v669_v23, %v539_v53  ;;  %v670_v9 = vsel %vm630_vm0, %v53_v1, %v317_v57  ;;  %v5533_v57 = vld [vmem:[%s6547_s0 + $0x1f8] sm:$0xff]  ;;  %v1827_v1 = vld [vmem:[%s6547_s0 + $0xe9] sm:$0xff] }
 0x132   :  { %6571 = vst [vmem:[#allocation6_spill] sm:$0xff] %v5480_v11  ;;  %2183 = vrot.lane.b32.xlu1 %v1825_v51, %s4201_s25  ;;  %1961 = vrot.lane.b32.xlu0 %v1770_v13, %s4200_s16 }
 0x133   :  { %3755 = vmatprep.mubr.msk.f32.mxu1 %vm820_vm2, %v5480_v11 }
 0x134   :  { %v2156_v33 = vpop.permute.xlu1 %2155  ;;  %v1934_v62 = vpop.permute.xlu0 %1933 }
 0x135   :  { %v2371_v4 = vsel %vm687_vm1, %v2315_v28, %v2156_v33  ;;  %v2316_v51 = vsel %vm630_vm0, %v4890_v50, %v1934_v62  ;;  %v5528_v50 = vld [vmem:[%s6547_s0 + $0x1f1] sm:$0xff]  ;;  %v54_v62 = vld [vmem:[%s6547_s0 + $0x17f] sm:$0xff] }
 0x136   :  { %2185 = vrot.lane.b32.xlu1 %v1826_v26, %s4201_s25  ;;  %568 = vrot.lane.b32.xlu0 %v5492_v56, %s4201_s25 }
 0x137   :  { %3929 = vmatprep.mubr.msk.f32.mxu0 %vm820_vm2, %v2371_v4  ;;  %v1772_v4 = vld [vmem:[%s6547_s0 + $0xf0] sm:$0xff] }
 0x138   :  { %v2158_v13 = vpop.permute.xlu1 %2157  ;;  %v541_v23 = vpop.permute.xlu0 %540 }
 0x139   :  { %v2372_v53 = vsel %vm687_vm1, %v2316_v51, %v2158_v13  ;;  %v5517_v26 = vsel %vm687_vm1, %v670_v9, %v541_v23  ;;  %v1828_v23 = vld [vmem:[%s6547_s0 + $0xf1] sm:$0xff] }
 0x13a   :  { %6572 = vst [vmem:[#allocation7_spill] sm:$0xff] %v5517_v26  ;;  %1963 = vrot.lane.b32.xlu1 %v1771_v40, %s4200_s16  ;;  %346 = vrot.lane.b32.xlu0 %v5510_v41, %s4200_s16 }
 0x13b   :  { %3756 = vmatmul.mubr.msk.f32.gmra.mrb[36].mxu1 %vm820_vm2, %v5517_v26  ;;  %3930 = vmatmul.mubr.msk.f32.gmra.mrb[8].mxu0 %vm820_vm2, %v2372_v53  ;;  %v5562_v53 = vld [vmem:[%s6547_s0 + $0x1f9] sm:$0xff]  ;;  %v1830_v26 = vld [vmem:[%s6547_s0 + $0x101] sm:$0xff] }
 0x13c   :  { %v1936_v28 = vpop.permute.xlu1 %1935  ;;  %v319_v33 = vpop.permute.xlu0 %318 }
 0x13d   :  { %v671_v40 = vsel %vm630_vm0, %v54_v62, %v319_v33  ;;  %v2317_v33 = vsel %vm630_vm0, %v4930_v35, %v1936_v28  ;;  %v1773_v35 = vld [vmem:[%s6547_s0 + $0xf8] sm:$0xff]  ;;  %v5582_v28 = vld [vmem:[%s6547_s0 + $0x200] sm:$0xff] }
 0x13e   :  { %570 = vrot.lane.b32.xlu1 %v5528_v50, %s4201_s25  ;;  %348 = vrot.lane.b32.xlu0 %v5533_v57, %s4200_s16 }
 0x140   :  { %v543_v9 = vpop.permute.xlu1 %542  ;;  %v321_v51 = vpop.permute.xlu0 %320 }
 0x141   :  { %v5550_v13 = vsel %vm687_vm1, %v671_v40, %v543_v9 }
 0x142   :  { %6573 = vst [vmem:[#allocation8_spill] sm:$0xff] %v5550_v13  ;;  %2187 = vrot.lane.b32.xlu1 %v1827_v1, %s4201_s25  ;;  %1965 = vrot.lane.b32.xlu0 %v1772_v4, %s4200_s16  ;;  %v5569_v1 = vld [vmem:[%s6547_s0 + $0x187] sm:$0xff] }
 0x143   :  { %3758 = vmatprep.mubr.msk.f32.mxu1 %vm820_vm2, %v5550_v13  ;;  %6574 = vst [vmem:[#allocation9_spill] sm:$0xff] %v5569_v1  ;;  %v672_v9 = vsel %vm630_vm0, %v5569_v1, %v321_v51  ;;  %v5606_v51 = vld [vmem:[%s6547_s0 + $0x208] sm:$0xff] }
 0x144   :  { %v2160_v62 = vpop.permute.xlu1 %2159  ;;  %v1938_v40 = vpop.permute.xlu0 %1937 }
 0x145   :  { %v2373_v4 = vsel %vm687_vm1, %v2317_v33, %v2160_v62 }
 0x146   :  { %2189 = vrot.lane.b32.xlu1 %v1828_v23, %s4201_s25  ;;  %572 = vrot.lane.b32.xlu0 %v5562_v53, %s4201_s25  ;;  %v2318_v23 = vsel %vm630_vm0, %v4925_v29, %v1938_v40  ;;  %v5601_v29 = vld [vmem:[%s6547_s0 + $0x201] sm:$0xff] }
 0x147   :  { %3932 = vmatprep.mubr.msk.f32.mxu0 %vm820_vm2, %v2373_v4 }
 0x148   :  { %v2162_v33 = vpop.permute.xlu1 %2161  ;;  %v545_v62 = vpop.permute.xlu0 %544 }
 0x149   :  { %v2374_v13 = vsel %vm687_vm1, %v2318_v23, %v2162_v33  ;;  %v5590_v4 = vsel %vm687_vm1, %v672_v9, %v545_v62  ;;  %v5611_v9 = vld [vmem:[%s6547_s0 + $0x18f] sm:$0xff]  ;;  %v1774_v23 = vld [vmem:[%s6547_s0 + $0x100] sm:$0xff] }
 0x14a   :  { %6575 = vst [vmem:[#allocation10_spill] sm:$0xff] %v5590_v4  ;;  %1967 = vrot.lane.b32.xlu1 %v1773_v35, %s4200_s16  ;;  %776 = vrot.lane.b32.xlu0 %v5582_v28, %s4200_s16  ;;  %6576 = vst [vmem:[#allocation11_spill] sm:$0xff] %v5611_v9 }
 0x14b   :  { %3759 = vmatmul.mubr.msk.f32.gmra.mrb[38].mxu1 %vm820_vm2, %v5590_v4  ;;  %3933 = vmatmul.mubr.msk.f32.gmra.mrb[10].mxu0 %vm820_vm2, %v2374_v13  ;;  %v1829_v13 = vld [vmem:[%s6547_s0 + $0xf9] sm:$0xff] }
 0x14c   :  { %v1940_v40 = vpop.permute.xlu1 %1939  ;;  %v323_v35 = vpop.permute.xlu0 %322 }
 0x14d   :  { %v673_v33 = vsel %vm630_vm0, %v5611_v9, %v323_v35  ;;  %v5638_v35 = vld [vmem:[%s6547_s0 + $0x209] sm:$0xff] }
 0x14e   :  { %792 = vrot.lane.b32.xlu1 %v5601_v29, %s4201_s25  ;;  %778 = vrot.lane.b32.xlu0 %v5606_v51, %s4200_s16 }
 0x150   :  { %v547_v62 = vpop.permute.xlu1 %546  ;;  %v325_v1 = vpop.permute.xlu0 %324 }
 0x151   :  { %v5626_v4 = vsel %vm687_vm1, %v673_v33, %v547_v62  ;;  %v2319_v33 = vsel %vm630_vm0, %v4959_v55, %v1940_v40  ;;  %v1775_v55 = vld [vmem:[%s6547_s0 + $0x140] sm:$0xff] }
 0x152   :  { %6577 = vst [vmem:[#allocation12_spill] sm:$0xff] %v5626_v4  ;;  %2191 = vrot.lane.b32.xlu1 %v1829_v13, %s4201_s25  ;;  %1969 = vrot.lane.b32.xlu0 %v1774_v23, %s4200_s16  ;;  %v5645_v13 = vld [vmem:[%s6547_s0 + $0x197] sm:$0xff]  ;;  %v98_v40 = vld [vmem:[%s6547_s0 + $0x120] sm:$0xff] }
 0x153   :  { %3761 = vmatprep.mubr.msk.f32.mxu1 %vm820_vm2, %v5626_v4  ;;  %6578 = vst [vmem:[#allocation13_spill] sm:$0xff] %v5645_v13  ;;  %v674_v4 = vsel %vm630_vm0, %v5645_v13, %v325_v1  ;;  %v99_v1 = vld [vmem:[%s6547_s0 + $0x128] sm:$0xff] }
 0x154   :  { %v2164_v62 = vpop.permute.xlu1 %2163  ;;  %v1942_v9 = vpop.permute.xlu0 %1941 }
 0x155   :  { %v2375_v23 = vsel %vm687_vm1, %v2319_v33, %v2164_v62  ;;  %v2320_v33 = vsel %vm630_vm0, %v4954_v59, %v1942_v9  ;;  %v154_v59 = vld [vmem:[%s6547_s0 + $0x121] sm:$0xff] }
 0x156   :  { %2193 = vrot.lane.b32.xlu1 %v1830_v26, %s4201_s25  ;;  %794 = vrot.lane.b32.xlu0 %v5638_v35, %s4201_s25 }
 0x157   :  { %3935 = vmatprep.mubr.msk.f32.mxu0 %vm820_vm2, %v2375_v23 }
 0x158   :  { %v2166_v26 = vpop.permute.xlu1 %2165  ;;  %v549_v62 = vpop.permute.xlu0 %548 }
 0x159   :  { %v2376_v11 = vsel %vm687_vm1, %v2320_v33, %v2166_v26  ;;  %v5664_v23 = vsel %vm687_vm1, %v674_v4, %v549_v62  ;;  %v1776_v33 = vld [vmem:[%s6547_s0 + $0x148] sm:$0xff] }
 0x15a   :  { %6579 = vst [vmem:[#allocation14_spill] sm:$0xff] %v5664_v23  ;;  %v5666_v42 = vpop.f32.mrb[0].mxu1  ;;  %1971 = vrot.lane.b32.xlu1 %v1775_v55, %s4200_s16  ;;  %294 = vrot.lane.b32.xlu0 %v98_v40, %s4200_s16  ;;  %v5684_v55 = vld [vmem:[%s6547_s0 + $0x19f] sm:$0xff] }
 0x15b   :  { %v5670_v48 = vpop.f32.mrb[1].mxu1  ;;  %3762 = vmatmul.mubr.msk.f32.gmra.mrb[40].mxu1 %vm820_vm2, %v5664_v23  ;;  %3936 = vmatmul.mubr.msk.f32.gmra.mrb[12].mxu0 %vm820_vm2, %v2376_v11  ;;  %6580 = vst [vmem:[#allocation15_spill] sm:$0xff] %v5684_v55  ;;  %v1831_v40 = vld [vmem:[%s6547_s0 + $0x141] sm:$0xff]  ;;  %v1832_v23 = vld [vmem:[%s6547_s0 + $0x149] sm:$0xff] }
 0x15c   :  { %v1944_v4 = vpop.permute.xlu1 %1943  ;;  %v327_v9 = vpop.permute.xlu0 %326 }
 0x15d   :  { %v675_v26 = vsel %vm630_vm0, %v5684_v55, %v327_v9  ;;  %v155_v9 = vld [vmem:[%s6547_s0 + $0x129] sm:$0xff] }
 0x15e   :  { %518 = vrot.lane.b32.xlu1 %v154_v59, %s4201_s25  ;;  %296 = vrot.lane.b32.xlu0 %v99_v1, %s4200_s16 }
 0x15f   :  { %v5688_v11 = vpop.f32.mrb[2].mxu1 }
 0x160   :  { %v5698_v62 = vpop.f32.mrb[3].mxu1  ;;  %v551_v13 = vpop.permute.xlu1 %550 }
 0x161   :  { %v5701_v59 = vsel %vm687_vm1, %v675_v26, %v551_v13  ;;  %v329_v1 = vpop.permute.xlu0 %328  ;;  %v2321_v13 = vsel %vm630_vm0, %v4994_v54, %v1944_v4  ;;  %v1778_v54 = vld [vmem:[%s6547_s0 + $0x158] sm:$0xff]  ;;  %v1777_v4 = vld [vmem:[%s6547_s0 + $0x150] sm:$0xff] }
 0x162   :  { %6581 = vst [vmem:[#allocation16_spill] sm:$0xff] %v5701_v59  ;;  %2195 = vrot.lane.b32.xlu1 %v1831_v40, %s4201_s25  ;;  %1973 = vrot.lane.b32.xlu0 %v1776_v33, %s4200_s16  ;;  %v5719_v33 = vld [vmem:[%s6547_s0 + $0x1a7] sm:$0xff] }
 0x163   :  { %3764 = vmatprep.mubr.msk.f32.mxu1 %vm820_vm2, %v5701_v59  ;;  %6582 = vst [vmem:[#allocation17_spill] sm:$0xff] %v5719_v33 }
 0x164   :  { %v2168_v26 = vpop.permute.xlu1 %2167 }
 0x165   :  { %v2377_v55 = vsel %vm687_vm1, %v2321_v13, %v2168_v26  ;;  %v1946_v40 = vpop.permute.xlu0 %1945 }
 0x166   :  { %2197 = vrot.lane.b32.xlu1 %v1832_v23, %s4201_s25  ;;  %520 = vrot.lane.b32.xlu0 %v155_v9, %s4201_s25  ;;  %v2322_v13 = vsel %vm630_vm0, %v4989_v22, %v1946_v40  ;;  %v676_v9 = vsel %vm630_vm0, %v5719_v33, %v329_v1  ;;  %v1834_v22 = vld [vmem:[%s6547_s0 + $0x159] sm:$0xff]  ;;  %v1833_v1 = vld [vmem:[%s6547_s0 + $0x151] sm:$0xff] }
 0x167   :  { %v5723_v59 = vpop.f32.mrb[4].mxu1  ;;  %3938 = vmatprep.mubr.msk.f32.mxu0 %vm820_vm2, %v2377_v55 }
 0x168   :  { %6583 = vst [vmem:[#allocation18_spill] sm:$0xff] %v5723_v59  ;;  %v5734_v26 = vpop.f32.mrb[5].mxu1  ;;  %v2170_v23 = vpop.permute.xlu1 %2169 }
 0x169   :  { %v2378_v59 = vsel %vm687_vm1, %v2322_v13, %v2170_v23  ;;  %v553_v55 = vpop.permute.xlu0 %552  ;;  %v1779_v23 = vld [vmem:[%s6547_s0 + $0x160] sm:$0xff] }
 0x16a   :  { %v5740_v16 = vsel %vm687_vm1, %v676_v9, %v553_v55  ;;  %1977 = vrot.lane.b32.xlu1 %v1778_v54, %s4200_s16  ;;  %1975 = vrot.lane.b32.xlu0 %v1777_v4, %s4200_s16  ;;  %v5756_v54 = vld [vmem:[%s6547_s0 + $0x1af] sm:$0xff] }
 0x16b   :  { %3765 = vmatmul.mubr.msk.f32.gmra.mrb[42].mxu1 %vm820_vm2, %v5740_v16  ;;  %3939 = vmatmul.mubr.msk.f32.gmra.mrb[14].mxu0 %vm820_vm2, %v2378_v59  ;;  %6584 = vst [vmem:[#allocation19_spill] sm:$0xff] %v5756_v54  ;;  %v1780_v4 = vld [vmem:[%s6547_s0 + $0x168] sm:$0xff] }
 0x16c   :  { %v1948_v40 = vpop.permute.xlu1 %1947 }
 0x16d   :  { %v331_v13 = vpop.permute.xlu0 %330 }
 0x16e   :  { %2201 = vrot.lane.b32.xlu1 %v1834_v22, %s4201_s25  ;;  %2199 = vrot.lane.b32.xlu0 %v1833_v1, %s4201_s25  ;;  %v677_v9 = vsel %vm630_vm0, %v5756_v54, %v331_v13  ;;  %v1835_v13 = vld [vmem:[%s6547_s0 + $0x161] sm:$0xff] }
 0x16f   :  { %v5760_v59 = vpop.f32.mrb[6].mxu1 }
 0x170   :  { %6585 = vst [vmem:[#allocation20_spill] sm:$0xff] %v5760_v59  ;;  %v5770_v55 = vpop.f32.mrb[7].mxu1  ;;  %v555_v33 = vpop.permute.xlu1 %554  ;;  %v1836_v59 = vld [vmem:[%s6547_s0 + $0x169] sm:$0xff] }
 0x171   :  { %6586 = vst [vmem:[#allocation21_spill] sm:$0xff] %v5770_v55  ;;  %v5773_v22 = vsel %vm687_vm1, %v677_v9, %v555_v33  ;;  %v333_v1 = vpop.permute.xlu0 %332  ;;  %v2323_v33 = vsel %vm630_vm0, %v5025_v60, %v1948_v40  ;;  %v1782_v60 = vld [vmem:[%s6547_s0 + $0x178] sm:$0xff]  ;;  %v1781_v40 = vld [vmem:[%s6547_s0 + $0x170] sm:$0xff] }
 0x172   :  { %6587 = vst [vmem:[#allocation22_spill] sm:$0xff] %v5773_v22  ;;  %1981 = vrot.lane.b32.xlu1 %v1780_v4, %s4200_s16  ;;  %1979 = vrot.lane.b32.xlu0 %v1779_v23, %s4200_s16  ;;  %v5791_v23 = vld [vmem:[%s6547_s0 + $0x1b7] sm:$0xff] }
 0x173   :  { %3767 = vmatprep.mubr.msk.f32.mxu1 %vm820_vm2, %v5773_v22 }
 0x174   :  { %v2172_v9 = vpop.permute.xlu1 %2171 }
 0x175   :  { %v2379_v54 = vsel %vm687_vm1, %v2323_v33, %v2172_v9  ;;  %v1950_v4 = vpop.permute.xlu0 %1949 }
 0x176   :  { %2205 = vrot.lane.b32.xlu1 %v1836_v59, %s4201_s25  ;;  %2203 = vrot.lane.b32.xlu0 %v1835_v13, %s4201_s25  ;;  %v2324_v33 = vsel %vm630_vm0, %v5020_v63, %v1950_v4  ;;  %v678_v13 = vsel %vm630_vm0, %v5791_v23, %v333_v1  ;;  %v1837_v63 = vld [vmem:[%s6547_s0 + $0x171] sm:$0xff] }
 0x177   :  { %v5795_v55 = vpop.f32.mrb[8].mxu1  ;;  %3941 = vmatprep.mubr.msk.f32.mxu0 %vm820_vm2, %v2379_v54 }
 0x178   :  { %6588 = vst [vmem:[#allocation23_spill] sm:$0xff] %v5795_v55  ;;  %v5806_v9 = vpop.f32.mrb[9].mxu1  ;;  %v2174_v59 = vpop.permute.xlu1 %2173 }
 0x179   :  { %v2380_v55 = vsel %vm687_vm1, %v2324_v33, %v2174_v59  ;;  %v557_v54 = vpop.permute.xlu0 %556  ;;  %v5825_v33 = vld [vmem:[%s6547_s0 + $0x1bf] sm:$0xff] }
 0x17a   :  { %v5812_v22 = vsel %vm687_vm1, %v678_v13, %v557_v54  ;;  %1985 = vrot.lane.b32.xlu1 %v1782_v60, %s4200_s16  ;;  %1983 = vrot.lane.b32.xlu0 %v1781_v40, %s4200_s16 }
 0x17b   :  { %3768 = vmatmul.mubr.msk.f32.gmra.mrb[44].mxu1 %vm820_vm2, %v5812_v22  ;;  %3942 = vmatmul.mubr.msk.f32.gmra.mrb[16].mxu0 %vm820_vm2, %v2380_v55 }
 0x17c   :  { %v1952_v1 = vpop.permute.xlu1 %1951 }
 0x17d   :  { %v335_v4 = vpop.permute.xlu0 %334 }
 0x17e   :  { %2209 = vrot.lane.b32.xlu1 %v5013_v19, %s4201_s25  ;;  %2207 = vrot.lane.b32.xlu0 %v1837_v63, %s4201_s25  ;;  %v679_v55 = vsel %vm630_vm0, %v5825_v33, %v335_v4  ;;  %v2325_v19 = vsel %vm630_vm0, %v5068_v37, %v1952_v1 }
 0x17f   :  { %v5830_v60 = vpop.f32.mrb[10].mxu1 }
 0x180   :  { %v5834_v40 = vpop.f32.mrb[11].mxu1  ;;  %v559_v59 = vpop.permute.xlu1 %558 }
 0x181   :  { %6589 = vst [vmem:[#allocation24_spill] sm:$0xff] %v5834_v40  ;;  %v5837_v13 = vsel %vm687_vm1, %v679_v55, %v559_v59  ;;  %v337_v54 = vpop.permute.xlu0 %336  ;;  %v5851_v55 = vld [vmem:[%s6547_s0 + $0x1c7] sm:$0xff] }
 0x182   :  { %1989 = vrot.lane.b32.xlu1 %v5056_v27, %s4200_s16  ;;  %1987 = vrot.lane.b32.xlu0 %v5034_v17, %s4200_s16  ;;  %v680_v59 = vsel %vm630_vm0, %v5851_v55, %v337_v54 }
 0x183   :  { %3770 = vmatprep.mubr.msk.f32.mxu1 %vm820_vm2, %v5837_v13 }
 0x184   :  { %v2176_v63 = vpop.permute.xlu1 %2175 }
 0x185   :  { %v2381_v4 = vsel %vm687_vm1, %v2325_v19, %v2176_v63  ;;  %v1954_v40 = vpop.permute.xlu0 %1953 }
 0x186   :  { %2213 = vrot.lane.b32.xlu1 %v5089_v47, %s4201_s25  ;;  %2211 = vrot.lane.b32.xlu0 %v5051_v10, %s4201_s25  ;;  %v2326_v27 = vsel %vm630_vm0, %v5063_v36, %v1954_v40  ;;  %v5880_v40 = vld [vmem:[%s6547_s0 + $0x1cf] sm:$0xff] }
 0x187   :  { %v5857_v17 = vpop.f32.mrb[12].mxu1  ;;  %3944 = vmatprep.mubr.msk.f32.mxu0 %vm820_vm2, %v2381_v4 }
 0x188   :  { %v5862_v37 = vpop.f32.mrb[13].mxu1  ;;  %v2178_v1 = vpop.permute.xlu1 %2177 }
 0x189   :  { %v2382_v19 = vsel %vm687_vm1, %v2326_v27, %v2178_v1  ;;  %v561_v63 = vpop.permute.xlu0 %560 }
 0x18a   :  { %v5868_v47 = vsel %vm687_vm1, %v680_v59, %v561_v63  ;;  %1993 = vrot.lane.b32.xlu1 %v5129_v8, %s4200_s16  ;;  %1991 = vrot.lane.b32.xlu0 %v5108_v46, %s4200_s16 }
 0x18b   :  { %3771 = vmatmul.mubr.msk.f32.gmra.mrb[46].mxu1 %vm820_vm2, %v5868_v47  ;;  %3945 = vmatmul.mubr.msk.f32.gmra.mrb[18].mxu0 %vm820_vm2, %v2382_v19  ;;  %v1712_v19 = vld [vmem:[%s6547_s0 + $0xcf] sm:$0xff] }
 0x18c   :  { %v1956_v10 = vpop.permute.xlu1 %1955 }
 0x18d   :  { %v339_v36 = vpop.permute.xlu0 %338 }
 0x18e   :  { %2217 = vrot.lane.b32.xlu1 %v5156_v34, %s4201_s25  ;;  %2215 = vrot.lane.b32.xlu0 %v5124_v2, %s4201_s25  ;;  %v681_v46 = vsel %vm630_vm0, %v5880_v40, %v339_v36  ;;  %v2327_v2 = vsel %vm630_vm0, %v5099_v0, %v1956_v10 }
 0x18f   :  { %v5886_v8 = vpop.f32.mrb[14].mxu1 }
 0x190   :  { %v5890_v54 = vpop.f32.mrb[15].mxu1  ;;  %v563_v4 = vpop.permute.xlu1 %562 }
 0x191   :  { %v5893_v27 = vsel %vm687_vm1, %v681_v46, %v563_v4  ;;  %v341_v1 = vpop.permute.xlu0 %340 }
 0x192   :  { %1997 = vrot.lane.b32.xlu1 %v5192_v61, %s4200_s16  ;;  %1995 = vrot.lane.b32.xlu0 %v5173_v39, %s4200_s16  ;;  %v5910_v61 = vld [vmem:[%s6547_s0 + $0x1d7] sm:$0xff] }
 0x193   :  { %3773 = vmatprep.mubr.msk.f32.mxu1 %vm820_vm2, %v5893_v27  ;;  %v682_v46 = vsel %vm630_vm0, %v5910_v61, %v341_v1  ;;  %v5938_v1 = vld [vmem:[%s6547_s0 + $0x1df] sm:$0xff] }
 0x194   :  { %v2180_v34 = vpop.permute.xlu1 %2179 }
 0x195   :  { %v2383_v59 = vsel %vm687_vm1, %v2327_v2, %v2180_v34  ;;  %v1958_v63 = vpop.permute.xlu0 %1957 }
 0x196   :  { %2221 = vrot.lane.b32.xlu1 %v5215_v49, %s4201_s25  ;;  %2219 = vrot.lane.b32.xlu0 %v5187_v7, %s4201_s25  ;;  %v2328_v39 = vsel %vm630_vm0, %v1712_v19, %v1958_v63  ;;  %v1713_v63 = vld [vmem:[%s6547_s0 + $0xd7] sm:$0xff] }
 0x197   :  { %v5916_v0 = vpop.f32.mrb[16].mxu1  ;;  %3947 = vmatprep.mubr.msk.f32.mxu0 %vm820_vm2, %v2383_v59 }
 0x198   :  { %v5920_v10 = vpop.f32.mrb[17].mxu1  ;;  %v2182_v36 = vpop.permute.xlu1 %2181 }
 0x199   :  { %v2384_v4 = vsel %vm687_vm1, %v2328_v39, %v2182_v36  ;;  %v565_v2 = vpop.permute.xlu0 %564 }
 0x19a   :  { %v5926_v49 = vsel %vm687_vm1, %v682_v46, %v565_v2  ;;  %2001 = vrot.lane.b32.xlu1 %v5255_v32, %s4200_s16  ;;  %1999 = vrot.lane.b32.xlu0 %v5231_v12, %s4200_s16 }
 0x19b   :  { %3774 = vmatmul.mubr.msk.f32.gmra.mrb[48].mxu1 %vm820_vm2, %v5926_v49  ;;  %3948 = vmatmul.mubr.msk.f32.gmra.mrb[20].mxu0 %vm820_vm2, %v2384_v4  ;;  %v1714_v4 = vld [vmem:[%s6547_s0 + $0xdf] sm:$0xff] }
 0x19c   :  { %v1960_v7 = vpop.permute.xlu1 %1959 }
 0x19d   :  { %v343_v34 = vpop.permute.xlu0 %342 }
 0x19e   :  { %2225 = vrot.lane.b32.xlu1 %v5282_v3, %s4201_s25  ;;  %2223 = vrot.lane.b32.xlu0 %v5250_v25, %s4201_s25  ;;  %v683_v12 = vsel %vm630_vm0, %v5938_v1, %v343_v34  ;;  %v2329_v25 = vsel %vm630_vm0, %v1713_v63, %v1960_v7 }
 0x19f   :  { %v5944_v32 = vpop.f32.mrb[18].mxu1 }
 0x1a0   :  { %v5948_v59 = vpop.f32.mrb[19].mxu1  ;;  %v567_v19 = vpop.permute.xlu1 %566 }
 0x1a1   :  { %v5954_v39 = vsel %vm687_vm1, %v683_v12, %v567_v19  ;;  %v345_v36 = vpop.permute.xlu0 %344 }
 0x1a2   :  { %2005 = vrot.lane.b32.xlu1 %v5323_v24, %s4200_s16  ;;  %2003 = vrot.lane.b32.xlu0 %v5300_v44, %s4200_s16  ;;  %v5970_v24 = vld [vmem:[%s6547_s0 + $0x1e7] sm:$0xff] }
 0x1a3   :  { %3776 = vmatprep.mubr.msk.f32.mxu1 %vm820_vm2, %v5954_v39  ;;  %v684_v19 = vsel %vm630_vm0, %v5970_v24, %v345_v36  ;;  %v5998_v36 = vld [vmem:[%s6547_s0 + $0x1ef] sm:$0xff] }
 0x1a4   :  { %v2184_v3 = vpop.permute.xlu1 %2183 }
 0x1a5   :  { %v2385_v46 = vsel %vm687_vm1, %v2329_v25, %v2184_v3  ;;  %v1962_v2 = vpop.permute.xlu0 %1961 }
 0x1a6   :  { %2229 = vrot.lane.b32.xlu1 %v5352_v45, %s4201_s25  ;;  %2227 = vrot.lane.b32.xlu0 %v5318_v43, %s4201_s25  ;;  %v2330_v7 = vsel %vm630_vm0, %v1714_v4, %v1962_v2  ;;  %v1715_v2 = vld [vmem:[%s6547_s0 + $0xe7] sm:$0xff] }
 0x1a7   :  { %v5976_v44 = vpop.f32.mrb[20].mxu1  ;;  %3950 = vmatprep.mubr.msk.f32.mxu0 %vm820_vm2, %v2385_v46 }
 0x1a8   :  { %v5980_v34 = vpop.f32.mrb[21].mxu1  ;;  %v2186_v12 = vpop.permute.xlu1 %2185 }
 0x1a9   :  { %v2386_v63 = vsel %vm687_vm1, %v2330_v7, %v2186_v12  ;;  %v569_v25 = vpop.permute.xlu0 %568 }
 0x1aa   :  { %v5986_v45 = vsel %vm687_vm1, %v684_v19, %v569_v25  ;;  %2009 = vrot.lane.b32.xlu1 %v5393_v5, %s4200_s16  ;;  %2007 = vrot.lane.b32.xlu0 %v5370_v20, %s4200_s16 }
 0x1ab   :  { %3777 = vmatmul.mubr.msk.f32.gmra.mrb[50].mxu1 %vm820_vm2, %v5986_v45  ;;  %3951 = vmatmul.mubr.msk.f32.gmra.mrb[22].mxu0 %vm820_vm2, %v2386_v63  ;;  %v1716_v63 = vld [vmem:[%s6547_s0 + $0xef] sm:$0xff] }
 0x1ac   :  { %v1964_v43 = vpop.permute.xlu1 %1963 }
 0x1ad   :  { %v347_v3 = vpop.permute.xlu0 %346 }
 0x1ae   :  { %2233 = vrot.lane.b32.xlu1 %v5422_v52, %s4201_s25  ;;  %2231 = vrot.lane.b32.xlu0 %v5388_v30, %s4201_s25  ;;  %v685_v20 = vsel %vm630_vm0, %v5998_v36, %v347_v3  ;;  %v2331_v30 = vsel %vm630_vm0, %v1715_v2, %v1964_v43 }
 0x1af   :  { %v6004_v5 = vpop.f32.mrb[22].mxu1 }
 0x1b0   :  { %v6008_v46 = vpop.f32.mrb[23].mxu1  ;;  %v571_v4 = vpop.permute.xlu1 %570 }
 0x1b1   :  { %v6014_v7 = vsel %vm687_vm1, %v685_v20, %v571_v4  ;;  %v349_v12 = vpop.permute.xlu0 %348 }
 0x1b2   :  { %2013 = vrot.lane.b32.xlu1 %v5463_v18, %s4200_s16  ;;  %2011 = vrot.lane.b32.xlu0 %v5440_v38, %s4200_s16  ;;  %v6030_v18 = vld [vmem:[%s6547_s0 + $0x1f7] sm:$0xff] }
 0x1b3   :  { %3779 = vmatprep.mubr.msk.f32.mxu1 %vm820_vm2, %v6014_v7  ;;  %v686_v4 = vsel %vm630_vm0, %v6030_v18, %v349_v12  ;;  %v6058_v12 = vld [vmem:[%s6547_s0 + $0x1ff] sm:$0xff] }
 0x1b4   :  { %v2188_v52 = vpop.permute.xlu1 %2187 }
 0x1b5   :  { %v2387_v19 = vsel %vm687_vm1, %v2331_v30, %v2188_v52  ;;  %v1966_v25 = vpop.permute.xlu0 %1965 }
 0x1b6   :  { %2237 = vrot.lane.b32.xlu1 %v5492_v56, %s4201_s25  ;;  %2235 = vrot.lane.b32.xlu0 %v5458_v14, %s4201_s25  ;;  %v2332_v43 = vsel %vm630_vm0, %v1716_v63, %v1966_v25  ;;  %v1717_v25 = vld [vmem:[%s6547_s0 + $0xf7] sm:$0xff] }
 0x1b7   :  { %v6036_v38 = vpop.f32.mrb[24].mxu1  ;;  %3953 = vmatprep.mubr.msk.f32.mxu0 %vm820_vm2, %v2387_v19 }
 0x1b8   :  { %v6040_v3 = vpop.f32.mrb[25].mxu1  ;;  %v2190_v20 = vpop.permute.xlu1 %2189 }
 0x1b9   :  { %v2388_v2 = vsel %vm687_vm1, %v2332_v43, %v2190_v20  ;;  %v573_v30 = vpop.permute.xlu0 %572 }
 0x1ba   :  { %v6046_v56 = vsel %vm687_vm1, %v686_v4, %v573_v30  ;;  %2017 = vrot.lane.b32.xlu1 %v5533_v57, %s4200_s16  ;;  %2015 = vrot.lane.b32.xlu0 %v5510_v41, %s4200_s16 }
 0x1bb   :  { %3780 = vmatmul.mubr.msk.f32.gmra.mrb[52].mxu1 %vm820_vm2, %v6046_v56  ;;  %3954 = vmatmul.mubr.msk.f32.gmra.mrb[24].mxu0 %vm820_vm2, %v2388_v2  ;;  %v1718_v2 = vld [vmem:[%s6547_s0 + $0xff] sm:$0xff] }
 0x1bc   :  { %v1968_v14 = vpop.permute.xlu1 %1967 }
 0x1bd   :  { %v777_v52 = vpop.permute.xlu0 %776 }
 0x1be   :  { %2241 = vrot.lane.b32.xlu1 %v5562_v53, %s4201_s25  ;;  %2239 = vrot.lane.b32.xlu0 %v5528_v50, %s4201_s25  ;;  %v802_v41 = vsel %vm630_vm0, %v6058_v12, %v777_v52  ;;  %v2333_v50 = vsel %vm630_vm0, %v1717_v25, %v1968_v14  ;;  %v6087_v52 = vld [vmem:[%s6547_s0 + $0x207] sm:$0xff] }
 0x1bf   :  { %v6064_v57 = vpop.f32.mrb[26].mxu1 }
 0x1c0   :  { %v6068_v19 = vpop.f32.mrb[27].mxu1  ;;  %v793_v63 = vpop.permute.xlu1 %792 }
 0x1c1   :  { %6590 = vst [vmem:[#allocation25_spill] sm:$0xff] %v6068_v19  ;;  %v806_v43 = vsel %vm687_vm1, %v802_v41, %v793_v63  ;;  %v779_v20 = vpop.permute.xlu0 %778 }
 0x1c2   :  { %2021 = vrot.lane.b32.xlu1 %v5606_v51, %s4200_s16  ;;  %2019 = vrot.lane.b32.xlu0 %v5582_v28, %s4200_s16  ;;  %v1802_v28 = vld [vmem:[%s6547_s0 + $0x218] sm:$0xff]  ;;  %v1801_v51 = vld [vmem:[%s6547_s0 + $0x210] sm:$0xff]  ;;  %v803_v63 = vsel %vm630_vm0, %v6087_v52, %v779_v20 }
 0x1c3   :  { %3782 = vmatprep.mubr.msk.f32.mxu1 %vm820_vm2, %v806_v43  ;;  %v1858_v43 = vld [vmem:[%s6547_s0 + $0x219] sm:$0xff]  ;;  %v1857_v20 = vld [vmem:[%s6547_s0 + $0x211] sm:$0xff] }
 0x1c4   :  { %v2192_v53 = vpop.permute.xlu1 %2191 }
 0x1c5   :  { %v2389_v4 = vsel %vm687_vm1, %v2333_v50, %v2192_v53  ;;  %v1970_v30 = vpop.permute.xlu0 %1969 }
 0x1c6   :  { %2245 = vrot.lane.b32.xlu1 %v5638_v35, %s4201_s25  ;;  %2243 = vrot.lane.b32.xlu0 %v5601_v29, %s4201_s25  ;;  %v2334_v14 = vsel %vm630_vm0, %v1718_v2, %v1970_v30  ;;  %v6121_v30 = vld [vmem:[%s6549_s2] ss:$0 sm:$0xff] }
 0x1c7   :  { %3956 = vmatprep.mubr.msk.f32.mxu0 %vm820_vm2, %v2389_v4  ;;  %v42_v4 = vld [vmem:[%s6547_s0 + $0x11f] sm:$0xff] }
 0x1c8   :  { %v2194_v41 = vpop.permute.xlu1 %2193 }
 0x1c9   :  { %v2390_v35 = vsel %vm687_vm1, %v2334_v14, %v2194_v41  ;;  %v795_v25 = vpop.permute.xlu0 %794 }
 0x1ca   :  { %v807_v29 = vsel %vm687_vm1, %v803_v63, %v795_v25  ;;  %2025 = vrot.lane.b32.xlu1 %v1802_v28, %s4200_s16  ;;  %2023 = vrot.lane.b32.xlu0 %v1801_v51, %s4200_s16 }
 0x1cb   :  { %3783 = vmatmul.mubr.msk.f32.gmra.mrb[54].mxu1 %vm820_vm2, %v807_v29  ;;  %3957 = vmatmul.mubr.msk.f32.gmra.mrb[26].mxu0 %vm820_vm2, %v2390_v35  ;;  %v1719_v35 = vld [vmem:[%s6547_s0 + $0x13f] sm:$0xff] }
 0x1cc   :  { %v1972_v50 = vpop.permute.xlu1 %1971 }
 0x1cd   :  { %v295_v53 = vpop.permute.xlu0 %294 }
 0x1ce   :  { %v3919_v2 = vpop.f32.mrb[0].mxu0  ;;  %2249 = vrot.lane.b32.xlu1 %v1858_v43, %s4201_s25  ;;  %2247 = vrot.lane.b32.xlu0 %v1857_v20, %s4201_s25  ;;  %v659_v14 = vsel %vm630_vm0, %v42_v4, %v295_v53  ;;  %v1720_v53 = vld [vmem:[%s6547_s0 + $0x147] sm:$0xff] }
 0x1cf   :  { %v4085_v28 = vadd.f32 %v3919_v2, %v5666_v42  ;;  %v2665_v51 = vpop.f32.mrb[1].mxu0  ;;  %v2335_v42 = vsel %vm630_vm0, %v1719_v35, %v1972_v50  ;;  %v43_v2 = vld [vmem:[%s6547_s0 + $0x127] sm:$0xff] }
 0x1d0   :  { %v4086_v41 = vadd.f32 %v2665_v51, %v5670_v48  ;;  %v519_v63 = vpop.permute.xlu1 %518 }
 0x1d1   :  { %v3008_v25 = vadd.f32 %v4085_v28, %v6121_v30  ;;  %v716_v29 = vsel %vm687_vm1, %v659_v14, %v519_v63  ;;  %v297_v19 = vpop.permute.xlu0 %296 }
 0x1d2   :  { %v3007_v43 = vadd.f32 %v4086_v41, %v6121_v30  ;;  %3851 = vmatprep.mubr.msk.f32.mxu1 %vm820_vm2, %v716_v29  ;;  %v660_v50 = vsel %vm630_vm0, %v43_v2, %v297_v19  ;;  %v1721_v19 = vld [vmem:[%s6547_s0 + $0x14f] sm:$0xff] }
 0x1d3   :  { %3064 = vst.msk [vmem:[#allocation2 + $0x8] sm:$0xff] %vm687_vm1, %v3008_v25  ;;  %v1722_v25 = vld [vmem:[%s6547_s0 + $0x157] sm:$0xff] }
 0x1d4   :  { %3063 = vst.msk [vmem:[#allocation2] sm:$0xff] %vm687_vm1, %v3007_v43  ;;  %v2196_v48 = vpop.permute.xlu1 %2195 }
 0x1d5   :  { %v2391_v20 = vsel %vm687_vm1, %v2335_v42, %v2196_v48  ;;  %v1974_v4 = vpop.permute.xlu0 %1973 }
 0x1d6   :  { %3959 = vmatprep.mubr.msk.f32.mxu0 %vm820_vm2, %v2391_v20  ;;  %v2336_v28 = vsel %vm630_vm0, %v1720_v53, %v1974_v4 }
 0x1d8   :  { %v2198_v51 = vpop.permute.xlu1 %2197 }
 0x1d9   :  { %v2392_v14 = vsel %vm687_vm1, %v2336_v28, %v2198_v51  ;;  %v521_v41 = vpop.permute.xlu0 %520 }
 0x1da   :  { %v717_v63 = vsel %vm687_vm1, %v660_v50, %v521_v41  ;;  %3960 = vmatmul.mubr.msk.f32.gmra.mrb[28].mxu0 %vm820_vm2, %v2392_v14  ;;  %v1723_v14 = vld [vmem:[%s6547_s0 + $0x15f] sm:$0xff] }
 0x1db   :  { %3852 = vmatmul.mubr.msk.f32.vlgmr.msra.gmra.mrb[28].mxu1 %vm820_vm2, %v717_v63  ;;  %v6592_v63 = vld [vmem:[#allocation4_spill] sm:$0xff] }
 0x1dc   :  { %3854 = vmatprep.mubr.msk.f32.mxu1 %vm820_vm2, %v5204_v6  ;;  %v1978_v35 = vpop.permute.xlu1 %1977 }
 0x1dd   :  { %v1976_v29 = vpop.permute.xlu0 %1975  ;;  %v2338_v20 = vsel %vm630_vm0, %v1722_v25, %v1978_v35  ;;  %v3119_v35 = vld [vmem:[#allocation2] ss:$2 sm:$0xff]  ;;  %v3175_v25 = vld [vmem:[#allocation2 + $0x1] ss:$2 sm:$0xff] }
 0x1de   :  { %v3922_v43 = vpop.f32.mrb[2].mxu0  ;;  %v2337_v4 = vsel %vm630_vm0, %v1721_v19, %v1976_v29 }
 0x1df   :  { %v4087_v42 = vadd.f32 %v3922_v43, %v5688_v11  ;;  %3855 = vmatmul.mubr.msk.f32.gmra.mrb[30].mxu1 %vm820_vm2, %v5238_v15  ;;  %v2675_v48 = vpop.f32.mrb[3].mxu0 }
 0x1e0   :  { %v4088_v6 = vadd.f32 %v2675_v48, %v5698_v62  ;;  %3857 = vmatprep.mubr.msk.f32.mxu1 %vm820_vm2, %v5269_v58  ;;  %v2202_v53 = vpop.permute.xlu1 %2201  ;;  %v1724_v62 = vld [vmem:[%s6547_s0 + $0x167] sm:$0xff] }
 0x1e1   :  { %v3010_v2 = vadd.f32 %v4087_v42, %v6121_v30  ;;  %v2394_v28 = vsel %vm687_vm1, %v2338_v20, %v2202_v53  ;;  %v2200_v51 = vpop.permute.xlu0 %2199  ;;  %v3230_v53 = vmax.f32 %v3119_v35, %v3175_v25  ;;  %v6597_v25 = vld [vmem:[#allocation8_spill] sm:$0xff] }
 0x1e2   :  { %v3009_v11 = vadd.f32 %v4088_v6, %v6121_v30  ;;  %v2393_v15 = vsel %vm687_vm1, %v2337_v4, %v2200_v51  ;;  %v6593_v6 = vld [vmem:[#allocation5_spill] sm:$0xff] }
 0x1e3   :  { %3066 = vst.msk [vmem:[#allocation2 + $0x18] sm:$0xff] %vm687_vm1, %v3010_v2  ;;  %3858 = vmatmul.mubr.msk.f32.gmra.mrb[32].mxu1 %vm820_vm2, %v5307_v31  ;;  %3962 = vmatprep.mubr.msk.f32.mxu0 %vm820_vm2, %v2393_v15  ;;  %v6591_v31 = vld [vmem:[#allocation3_spill] sm:$0xff]  ;;  %v6594_v2 = vld [vmem:[#allocation6_spill] sm:$0xff] }
 0x1e4   :  { %3065 = vst.msk [vmem:[#allocation2 + $0x10] sm:$0xff] %vm687_vm1, %v3009_v11  ;;  %3860 = vmatprep.mubr.msk.f32.mxu1 %vm820_vm2, %v5340_v21  ;;  %3963 = vmatmul.mubr.msk.f32.gmra.mrb[30].mxu0 %vm820_vm2, %v2394_v28  ;;  %v1982_v58 = vpop.permute.xlu1 %1981  ;;  %v1726_v51 = vld [vmem:[%s6547_s0 + $0x177] sm:$0xff] }
 0x1e5   :  { %v1980_v50 = vpop.permute.xlu0 %1979  ;;  %v2340_v41 = vsel %vm630_vm0, %v1724_v62, %v1982_v58  ;;  %v1725_v58 = vld [vmem:[%s6547_s0 + $0x16f] sm:$0xff] }
 0x1e6   :  { %v2339_v29 = vsel %vm630_vm0, %v1723_v14, %v1980_v50  ;;  %v6595_v50 = vld [vmem:[#allocation18_spill] sm:$0xff] }
 0x1e7   :  { %3861 = vmatmul.mubr.msk.f32.gmra.mrb[34].mxu1 %vm820_vm2, %v6591_v31  ;;  %v6596_v31 = vld [vmem:[#allocation7_spill] sm:$0xff] }
 0x1e8   :  { %3863 = vmatprep.mubr.msk.f32.mxu1 %vm820_vm2, %v6592_v63  ;;  %v2206_v21 = vpop.permute.xlu1 %2205 }
 0x1e9   :  { %v2396_v19 = vsel %vm687_vm1, %v2340_v41, %v2206_v21  ;;  %v2204_v43 = vpop.permute.xlu0 %2203 }
 0x1ea   :  { %v2395_v42 = vsel %vm687_vm1, %v2339_v29, %v2204_v43 }
 0x1eb   :  { %v3121_v48 = vld [vmem:[#allocation2 + $0x10] ss:$2 sm:$0xff]  ;;  %v3177_v20 = vld [vmem:[#allocation2 + $0x11] ss:$2 sm:$0xff]  ;;  %3864 = vmatmul.mubr.msk.f32.gmra.mrb[36].mxu1 %vm820_vm2, %v6593_v6  ;;  %3965 = vmatprep.mubr.msk.f32.mxu0 %vm820_vm2, %v2395_v42 }
 0x1ec   :  { %v3231_v4 = vmax.f32 %v3121_v48, %v3177_v20  ;;  %3866 = vmatprep.mubr.msk.f32.mxu1 %vm820_vm2, %v6594_v2  ;;  %3966 = vmatmul.mubr.msk.f32.gmra.mrb[32].mxu0 %vm820_vm2, %v2396_v19  ;;  %v1986_v28 = vpop.permute.xlu1 %1985  ;;  %v6598_v6 = vld [vmem:[#allocation10_spill] sm:$0xff] }
 0x1ed   :  { %v1984_v11 = vpop.permute.xlu0 %1983  ;;  %v2342_v21 = vsel %vm630_vm0, %v1726_v51, %v1986_v28  ;;  %v1727_v28 = vld [vmem:[%s6547_s0 + $0x17f] sm:$0xff] }
 0x1ee   :  { %v3258_v15 = vmax.f32 %v3230_v53, %v3231_v4  ;;  %v3925_v62 = vpop.f32.mrb[4].mxu0  ;;  %v2341_v19 = vsel %vm630_vm0, %v1725_v58, %v1984_v11  ;;  %v6599_v53 = vld [vmem:[#allocation12_spill] sm:$0xff]  ;;  %v6600_v51 = vld [vmem:[#allocation14_spill] sm:$0xff]  ;;  %v6601_v11 = vld [vmem:[#allocation9_spill] sm:$0xff] }
 0x1ef   :  { %v4089_v14 = vadd.f32 %v3925_v62, %v6595_v50  ;;  %3867 = vmatmul.mubr.msk.f32.gmra.mrb[38].mxu1 %vm820_vm2, %v6596_v31  ;;  %v2685_v41 = vpop.f32.mrb[5].mxu0  ;;  %v6602_v58 = vld [vmem:[#allocation16_spill] sm:$0xff] }
 0x1f0   :  { %v3272_v63 = vmax.f32 %v3258_v15, 0.0  ;;  %v4090_v35 = vadd.f32 %v2685_v41, %v5734_v26  ;;  %3869 = vmatprep.mubr.msk.f32.mxu1 %vm820_vm2, %v6597_v25  ;;  %v2210_v29 = vpop.permute.xlu1 %2209 }
 0x1f1   :  { %v3012_v43 = vadd.f32 %v4089_v14, %v6121_v30  ;;  %v2398_v42 = vsel %vm687_vm1, %v2342_v21, %v2210_v29  ;;  %v2208_v48 = vpop.permute.xlu0 %2207  ;;  %v6604_v29 = vld [vmem:[#allocation20_spill] sm:$0xff] }
 0x1f2   :  { %3286 = vst.msk [vmem:[%s6550_s3] sm:$0xff] %vm687_vm1, %v3272_v63  ;;  %v3011_v20 = vadd.f32 %v4090_v35, %v6121_v30  ;;  %v2397_v26 = vsel %vm687_vm1, %v2341_v19, %v2208_v48  ;;  %v6603_v63 = vld [vmem:[#allocation22_spill] sm:$0xff] }
 0x1f3   :  { %3068 = vst.msk [vmem:[#allocation2 + $0x28] sm:$0xff] %vm687_vm1, %v3012_v43  ;;  %3870 = vmatmul.mubr.msk.f32.gmra.mrb[40].mxu1 %vm820_vm2, %v6598_v6  ;;  %3968 = vmatprep.mubr.msk.f32.mxu0 %vm820_vm2, %v2397_v26  ;;  %v6607_v6 = vld [vmem:[#allocation11_spill] sm:$0xff] }
 0x1f4   :  { %3067 = vst.msk [vmem:[#allocation2 + $0x20] sm:$0xff] %vm687_vm1, %v3011_v20  ;;  %3872 = vmatprep.mubr.msk.f32.mxu1 %vm820_vm2, %v6599_v53  ;;  %3969 = vmatmul.mubr.msk.f32.gmra.mrb[34].mxu0 %vm820_vm2, %v2398_v42  ;;  %v1990_v4 = vpop.permute.xlu1 %1989  ;;  %v6605_v42 = vld [vmem:[#allocation13_spill] sm:$0xff] }
 0x1f5   :  { %v1988_v2 = vpop.permute.xlu0 %1987  ;;  %v2344_v15 = vsel %vm630_vm0, %v6601_v11, %v1990_v4 }
 0x1f6   :  { %v2343_v50 = vsel %vm630_vm0, %v1727_v28, %v1988_v2 }
 0x1f7   :  { %3873 = vmatmul.mubr.msk.f32.gmra.mrb[42].mxu1 %vm820_vm2, %v6600_v51 }
 0x1f8   :  { %3875 = vmatprep.mubr.msk.f32.mxu1 %vm820_vm2, %v6602_v58  ;;  %v2214_v62 = vpop.permute.xlu1 %2213 }
 0x1f9   :  { %v2400_v14 = vsel %vm687_vm1, %v2344_v15, %v2214_v62  ;;  %v2212_v31 = vpop.permute.xlu0 %2211  ;;  %v6608_v15 = vld [vmem:[#allocation17_spill] sm:$0xff] }
 0x1fa   :  { %v2399_v41 = vsel %vm687_vm1, %v2343_v50, %v2212_v31 }
 0x1fb   :  { %3876 = vmatmul.mubr.msk.f32.gmra.mrb[44].mxu1 %vm820_vm2, %v5740_v16  ;;  %3971 = vmatprep.mubr.msk.f32.mxu0 %vm820_vm2, %v2399_v41  ;;  %v6606_v16 = vld [vmem:[#allocation21_spill] sm:$0xff]  ;;  %v3123_v62 = vld [vmem:[#allocation2 + $0x20] ss:$2 sm:$0xff]  ;;  %v3179_v50 = vld [vmem:[#allocation2 + $0x21] ss:$2 sm:$0xff] }
 0x1fc   :  { %3878 = vmatprep.mubr.msk.f32.mxu1 %vm820_vm2, %v6603_v63  ;;  %3972 = vmatmul.mubr.msk.f32.gmra.mrb[36].mxu0 %vm820_vm2, %v2400_v14  ;;  %v1994_v21 = vpop.permute.xlu1 %1993  ;;  %v6609_v14 = vld [vmem:[#allocation15_spill] sm:$0xff] }
 0x1fd   :  { %v1992_v35 = vpop.permute.xlu0 %1991  ;;  %v2346_v48 = vsel %vm630_vm0, %v6605_v42, %v1994_v21  ;;  %v6610_v42 = vld [vmem:[#allocation23_spill] sm:$0xff] }
 0x1fe   :  { %v3928_v25 = vpop.f32.mrb[6].mxu0  ;;  %v2345_v53 = vsel %vm630_vm0, %v6607_v6, %v1992_v35 }
 0x1ff   :  { %v4091_v19 = vadd.f32 %v3928_v25, %v6604_v29  ;;  %3879 = vmatmul.mubr.msk.f32.gmra.mrb[46].mxu1 %vm820_vm2, %v5812_v22  ;;  %v2695_v43 = vpop.f32.mrb[7].mxu0 }
 0x200   :  { %v4092_v20 = vadd.f32 %v2695_v43, %v6606_v16  ;;  %3881 = vmatprep.mubr.msk.f32.mxu1 %vm820_vm2, %v5837_v13  ;;  %v2218_v26 = vpop.permute.xlu1 %2217 }
 0x201   :  { %v3014_v4 = vadd.f32 %v4091_v19, %v6121_v30  ;;  %v2402_v2 = vsel %vm687_vm1, %v2346_v48, %v2218_v26  ;;  %v2216_v28 = vpop.permute.xlu0 %2215 }
 0x202   :  { %v3013_v22 = vadd.f32 %v4092_v20, %v6121_v30  ;;  %v2401_v51 = vsel %vm687_vm1, %v2345_v53, %v2216_v28 }
 0x203   :  { %3070 = vst.msk [vmem:[#allocation2 + $0x38] sm:$0xff] %vm687_vm1, %v3014_v4  ;;  %3882 = vmatmul.mubr.msk.f32.gmra.mrb[48].mxu1 %vm820_vm2, %v5868_v47  ;;  %3974 = vmatprep.mubr.msk.f32.mxu0 %vm820_vm2, %v2401_v51 }
 0x204   :  { %3069 = vst.msk [vmem:[#allocation2 + $0x30] sm:$0xff] %vm687_vm1, %v3013_v22  ;;  %3884 = vmatprep.mubr.msk.f32.mxu1 %vm820_vm2, %v5893_v27  ;;  %3975 = vmatmul.mubr.msk.f32.gmra.mrb[38].mxu0 %vm820_vm2, %v2402_v2  ;;  %v1998_v13 = vpop.permute.xlu1 %1997 }
 0x205   :  { %v1996_v11 = vpop.permute.xlu0 %1995  ;;  %v2348_v58 = vsel %vm630_vm0, %v6608_v15, %v1998_v13 }
 0x206   :  { %v2347_v31 = vsel %vm630_vm0, %v6609_v14, %v1996_v11 }
 0x207   :  { %3885 = vmatmul.mubr.msk.f32.gmra.mrb[50].mxu1 %vm820_vm2, %v5926_v49  ;;  %v3232_v49 = vmax.f32 %v3123_v62, %v3179_v50 }
 0x208   :  { %3887 = vmatprep.mubr.msk.f32.mxu1 %vm820_vm2, %v5954_v39  ;;  %v2222_v47 = vpop.permute.xlu1 %2221 }
 0x209   :  { %v2404_v27 = vsel %vm687_vm1, %v2348_v58, %v2222_v47  ;;  %v2220_v41 = vpop.permute.xlu0 %2219 }
 0x20a   :  { %v2403_v63 = vsel %vm687_vm1, %v2347_v31, %v2220_v41  ;;  %v6612_v41 = vld [vmem:[#allocation24_spill] sm:$0xff] }
 0x20b   :  { %v3125_v21 = vld [vmem:[#allocation2 + $0x30] ss:$2 sm:$0xff]  ;;  %v3181_v35 = vld [vmem:[#allocation2 + $0x31] ss:$2 sm:$0xff]  ;;  %3888 = vmatmul.mubr.msk.f32.gmra.mrb[52].mxu1 %vm820_vm2, %v5986_v45  ;;  %3977 = vmatprep.mubr.msk.f32.mxu0 %vm820_vm2, %v2403_v63 }
 0x20c   :  { %v3233_v39 = vmax.f32 %v3125_v21, %v3181_v35  ;;  %3890 = vmatprep.mubr.msk.f32.mxu1 %vm820_vm2, %v6014_v7  ;;  %3978 = vmatmul.mubr.msk.f32.gmra.mrb[40].mxu0 %vm820_vm2, %v2404_v27  ;;  %v2002_v25 = vpop.permute.xlu1 %2001  ;;  %v6611_v7 = vld [vmem:[#allocation19_spill] sm:$0xff] }
 0x20d   :  { %v2000_v29 = vpop.permute.xlu0 %1999  ;;  %v2350_v20 = vsel %vm630_vm0, %v5791_v23, %v2002_v25 }
 0x20e   :  { %v3259_v19 = vmax.f32 %v3232_v49, %v3233_v39  ;;  %v3931_v43 = vpop.f32.mrb[8].mxu0  ;;  %v2349_v53 = vsel %vm630_vm0, %v6611_v7, %v2000_v29 }
 0x20f   :  { %v4093_v48 = vadd.f32 %v3931_v43, %v6610_v42  ;;  %3891 = vmatmul.mubr.msk.f32.gmra.mrb[54].mxu1 %vm820_vm2, %v6046_v56  ;;  %v2705_v16 = vpop.f32.mrb[9].mxu0 }
 0x210   :  { %v3273_v45 = vmax.f32 %v3259_v19, 0.0  ;;  %v4094_v26 = vadd.f32 %v2705_v16, %v5806_v9  ;;  %v2226_v6 = vpop.permute.xlu1 %2225 }
 0x211   :  { %v3016_v4 = vadd.f32 %v4093_v48, %v6121_v30  ;;  %v2406_v2 = vsel %vm687_vm1, %v2350_v20, %v2226_v6  ;;  %v2224_v28 = vpop.permute.xlu0 %2223 }
 0x212   :  { %3287 = vst.msk [vmem:[%s6550_s3 + $0x8] sm:$0xff] %vm687_vm1, %v3273_v45  ;;  %v3015_v56 = vadd.f32 %v4094_v26, %v6121_v30  ;;  %v2405_v23 = vsel %vm687_vm1, %v2349_v53, %v2224_v28 }
 0x213   :  { %3072 = vst.msk [vmem:[#allocation2 + $0x48] sm:$0xff] %vm687_vm1, %v3016_v4  ;;  %3980 = vmatprep.mubr.msk.f32.mxu0 %vm820_vm2, %v2405_v23 }
 0x214   :  { %3071 = vst.msk [vmem:[#allocation2 + $0x40] sm:$0xff] %vm687_vm1, %v3015_v56  ;;  %3981 = vmatmul.mubr.msk.f32.gmra.mrb[42].mxu0 %vm820_vm2, %v2406_v2  ;;  %v2006_v9 = vpop.permute.xlu1 %2005 }
 0x215   :  { %v2004_v22 = vpop.permute.xlu0 %2003  ;;  %v2352_v51 = vsel %vm630_vm0, %v5851_v55, %v2006_v9 }
 0x216   :  { %v2351_v11 = vsel %vm630_vm0, %v5825_v33, %v2004_v22 }
 0x218   :  { %v2230_v13 = vpop.permute.xlu1 %2229 }
 0x219   :  { %v2408_v15 = vsel %vm687_vm1, %v2352_v51, %v2230_v13  ;;  %v2228_v58 = vpop.permute.xlu0 %2227 }
 0x21a   :  { %v2407_v47 = vsel %vm687_vm1, %v2351_v11, %v2228_v58 }
 0x21b   :  { %3983 = vmatprep.mubr.msk.f32.mxu0 %vm820_vm2, %v2407_v47  ;;  %v3127_v43 = vld [vmem:[#allocation2 + $0x40] ss:$2 sm:$0xff]  ;;  %v3183_v42 = vld [vmem:[#allocation2 + $0x41] ss:$2 sm:$0xff] }
 0x21c   :  { %3984 = vmatmul.mubr.msk.f32.gmra.mrb[44].mxu0 %vm820_vm2, %v2408_v15  ;;  %v2010_v62 = vpop.permute.xlu1 %2009  ;;  %v3234_v7 = vmax.f32 %v3127_v43, %v3183_v42 }
 0x21d   :  { %v2008_v50 = vpop.permute.xlu0 %2007  ;;  %v2354_v55 = vsel %vm630_vm0, %v5910_v61, %v2010_v62 }
 0x21e   :  { %v3934_v14 = vpop.f32.mrb[10].mxu0  ;;  %v2353_v21 = vsel %vm630_vm0, %v5880_v40, %v2008_v50 }
 0x21f   :  { %v4095_v31 = vadd.f32 %v3934_v14, %v5830_v60  ;;  %v2715_v27 = vpop.f32.mrb[11].mxu0 }
 0x220   :  { %v4096_v33 = vadd.f32 %v2715_v27, %v6612_v41  ;;  %v2234_v63 = vpop.permute.xlu1 %2233  ;;  %v1746_v41 = vld [vmem:[%s6547_s0 + $0x217] sm:$0xff] }
 0x221   :  { %v3018_v35 = vadd.f32 %v4095_v31, %v6121_v30  ;;  %v2410_v49 = vsel %vm687_vm1, %v2354_v55, %v2234_v63  ;;  %v2232_v39 = vpop.permute.xlu0 %2231 }
 0x222   :  { %v3017_v25 = vadd.f32 %v4096_v33, %v6121_v30  ;;  %v2409_v29 = vsel %vm687_vm1, %v2353_v21, %v2232_v39 }
 0x223   :  { %3074 = vst.msk [vmem:[#allocation2 + $0x58] sm:$0xff] %vm687_vm1, %v3018_v35  ;;  %3986 = vmatprep.mubr.msk.f32.mxu0 %vm820_vm2, %v2409_v29 }
 0x224   :  { %3073 = vst.msk [vmem:[#allocation2 + $0x50] sm:$0xff] %vm687_vm1, %v3017_v25  ;;  %3987 = vmatmul.mubr.msk.f32.gmra.mrb[46].mxu0 %vm820_vm2, %v2410_v49  ;;  %v2014_v60 = vpop.permute.xlu1 %2013 }
 0x225   :  { %v2012_v61 = vpop.permute.xlu0 %2011  ;;  %v2356_v40 = vsel %vm630_vm0, %v5970_v24, %v2014_v60 }
 0x226   :  { %v2355_v48 = vsel %vm630_vm0, %v5938_v1, %v2012_v61 }
 0x228   :  { %v2238_v19 = vpop.permute.xlu1 %2237 }
 0x229   :  { %v2412_v16 = vsel %vm687_vm1, %v2356_v40, %v2238_v19  ;;  %v2236_v45 = vpop.permute.xlu0 %2235 }
 0x22a   :  { %v2411_v20 = vsel %vm687_vm1, %v2355_v48, %v2236_v45 }
 0x22b   :  { %v3129_v26 = vld [vmem:[#allocation2 + $0x50] ss:$2 sm:$0xff]  ;;  %v3185_v6 = vld [vmem:[#allocation2 + $0x51] ss:$2 sm:$0xff]  ;;  %3989 = vmatprep.mubr.msk.f32.mxu0 %vm820_vm2, %v2411_v20 }
 0x22c   :  { %v3235_v53 = vmax.f32 %v3129_v26, %v3185_v6  ;;  %3990 = vmatmul.mubr.msk.f32.gmra.mrb[48].mxu0 %vm820_vm2, %v2412_v16  ;;  %v2018_v24 = vpop.permute.xlu1 %2017 }
 0x22d   :  { %v2016_v4 = vpop.permute.xlu0 %2015  ;;  %v2358_v9 = vsel %vm630_vm0, %v6030_v18, %v2018_v24 }
 0x22e   :  { %v3260_v2 = vmax.f32 %v3234_v7, %v3235_v53  ;;  %v3937_v28 = vpop.f32.mrb[12].mxu0  ;;  %v2357_v13 = vsel %vm630_vm0, %v5998_v36, %v2016_v4 }
 0x22f   :  { %v4097_v56 = vadd.f32 %v3937_v28, %v5857_v17  ;;  %v2725_v1 = vpop.f32.mrb[13].mxu0 }
 0x230   :  { %v3274_v23 = vmax.f32 %v3260_v2, 0.0  ;;  %v4098_v22 = vadd.f32 %v2725_v1, %v5862_v37  ;;  %v2242_v51 = vpop.permute.xlu1 %2241 }
 0x231   :  { %v3020_v11 = vadd.f32 %v4097_v56, %v6121_v30  ;;  %v2414_v15 = vsel %vm687_vm1, %v2358_v9, %v2242_v51  ;;  %v2240_v58 = vpop.permute.xlu0 %2239 }
 0x232   :  { %3288 = vst.msk [vmem:[%s6550_s3 + $0x10] sm:$0xff] %vm687_vm1, %v3274_v23  ;;  %v3019_v17 = vadd.f32 %v4098_v22, %v6121_v30  ;;  %v2413_v18 = vsel %vm687_vm1, %v2357_v13, %v2240_v58 }
 0x233   :  { %3076 = vst.msk [vmem:[#allocation2 + $0x68] sm:$0xff] %vm687_vm1, %v3020_v11  ;;  %3992 = vmatprep.mubr.msk.f32.mxu0 %vm820_vm2, %v2413_v18 }
 0x234   :  { %3075 = vst.msk [vmem:[#allocation2 + $0x60] sm:$0xff] %vm687_vm1, %v3019_v17  ;;  %3993 = vmatmul.mubr.msk.f32.gmra.mrb[50].mxu0 %vm820_vm2, %v2414_v15  ;;  %v2022_v37 = vpop.permute.xlu1 %2021 }
 0x235   :  { %v2020_v36 = vpop.permute.xlu0 %2019  ;;  %v2360_v47 = vsel %vm630_vm0, %v6087_v52, %v2022_v37  ;;  %v1745_v52 = vld [vmem:[%s6547_s0 + $0x20f] sm:$0xff] }
 0x236   :  { %v2359_v50 = vsel %vm630_vm0, %v6058_v12, %v2020_v36 }
 0x238   :  { %v2246_v62 = vpop.permute.xlu1 %2245 }
 0x239   :  { %v2416_v14 = vsel %vm687_vm1, %v2360_v47, %v2246_v62  ;;  %v2244_v31 = vpop.permute.xlu0 %2243 }
 0x23a   :  { %v2415_v27 = vsel %vm687_vm1, %v2359_v50, %v2244_v31 }
 0x23b   :  { %3995 = vmatprep.mubr.msk.f32.mxu0 %vm820_vm2, %v2415_v27 }
 0x23c   :  { %3996 = vmatmul.mubr.msk.f32.gmra.mrb[52].mxu0 %vm820_vm2, %v2416_v14  ;;  %v2026_v55 = vpop.permute.xlu1 %2025 }
 0x23d   :  { %v2024_v33 = vpop.permute.xlu0 %2023  ;;  %v2362_v35 = vsel %vm630_vm0, %v1746_v41, %v2026_v55 }
 0x23e   :  { %v3940_v12 = vpop.f32.mrb[14].mxu0  ;;  %v2361_v25 = vsel %vm630_vm0, %v1745_v52, %v2024_v33 }
 0x23f   :  { %v4099_v63 = vadd.f32 %v3940_v12, %v5886_v8  ;;  %v2735_v21 = vpop.f32.mrb[15].mxu0  ;;  %v3131_v8 = vld [vmem:[#allocation2 + $0x60] ss:$2 sm:$0xff] }
 0x240   :  { %v4100_v49 = vadd.f32 %v2735_v21, %v5890_v54  ;;  %v2250_v39 = vpop.permute.xlu1 %2249  ;;  %v3187_v54 = vld [vmem:[#allocation2 + $0x61] ss:$2 sm:$0xff] }
 0x241   :  { %v3022_v29 = vadd.f32 %v4099_v63, %v6121_v30  ;;  %v2418_v60 = vsel %vm687_vm1, %v2362_v35, %v2250_v39  ;;  %v2248_v61 = vpop.permute.xlu0 %2247  ;;  %v3236_v48 = vmax.f32 %v3131_v8, %v3187_v54 }
 0x242   :  { %v3021_v40 = vadd.f32 %v4100_v49, %v6121_v30  ;;  %v2417_v19 = vsel %vm687_vm1, %v2361_v25, %v2248_v61 }
 0x243   :  { %3078 = vst.msk [vmem:[#allocation2 + $0x78] sm:$0xff] %vm687_vm1, %v3022_v29  ;;  %3998 = vmatprep.mubr.msk.f32.mxu0 %vm820_vm2, %v2417_v19 }
 0x244   :  { %3077 = vst.msk [vmem:[#allocation2 + $0x70] sm:$0xff] %vm687_vm1, %v3021_v40  ;;  %3999 = vmatmul.mubr.msk.f32.gmra.mrb[54].mxu0 %vm820_vm2, %v2418_v60  ;;  %v6613_v60 = vld [vmem:[#allocation25_spill] sm:$0xff] }
 0x24b   :  { %v3133_v43 = vld [vmem:[#allocation2 + $0x70] ss:$2 sm:$0xff]  ;;  %v3189_v42 = vld [vmem:[#allocation2 + $0x71] ss:$2 sm:$0xff] }
 0x24c   :  { %v3237_v16 = vmax.f32 %v3133_v43, %v3189_v42 }
 0x24e   :  { %v3261_v45 = vmax.f32 %v3236_v48, %v3237_v16  ;;  %v3943_v20 = vpop.f32.mrb[16].mxu0 }
 0x24f   :  { %v4101_v26 = vadd.f32 %v3943_v20, %v5916_v0  ;;  %v2745_v6 = vpop.f32.mrb[17].mxu0 }
 0x250   :  { %v3275_v7 = vmax.f32 %v3261_v45, 0.0  ;;  %v4102_v53 = vadd.f32 %v2745_v6, %v5920_v10 }
 0x251   :  { %v3024_v24 = vadd.f32 %v4101_v26, %v6121_v30 }
 0x252   :  { %3289 = vst.msk [vmem:[%s6550_s3 + $0x18] sm:$0xff] %vm687_vm1, %v3275_v7  ;;  %v3023_v4 = vadd.f32 %v4102_v53, %v6121_v30 }
 0x253   :  { %3080 = vst.msk [vmem:[#allocation2 + $0x88] sm:$0xff] %vm687_vm1, %v3024_v24 }
 0x254   :  { %3079 = vst.msk [vmem:[#allocation2 + $0x80] sm:$0xff] %vm687_vm1, %v3023_v4 }
 0x25b   :  { %v3135_v23 = vld [vmem:[#allocation2 + $0x80] ss:$2 sm:$0xff]  ;;  %v3191_v9 = vld [vmem:[#allocation2 + $0x81] ss:$2 sm:$0xff] }
 0x25c   :  { %v3238_v13 = vmax.f32 %v3135_v23, %v3191_v9 }
 0x25e   :  { %v3946_v2 = vpop.f32.mrb[18].mxu0 }
 0x25f   :  { %v4103_v0 = vadd.f32 %v3946_v2, %v5944_v32  ;;  %v2755_v28 = vpop.f32.mrb[19].mxu0 }
 0x260   :  { %v4104_v56 = vadd.f32 %v2755_v28, %v5948_v59 }
 0x261   :  { %v3026_v10 = vadd.f32 %v4103_v0, %v6121_v30 }
 0x262   :  { %v3025_v1 = vadd.f32 %v4104_v56, %v6121_v30 }
 0x263   :  { %3082 = vst.msk [vmem:[#allocation2 + $0x98] sm:$0xff] %vm687_vm1, %v3026_v10 }
 0x264   :  { %3081 = vst.msk [vmem:[#allocation2 + $0x90] sm:$0xff] %vm687_vm1, %v3025_v1 }
 0x26b   :  { %v3137_v22 = vld [vmem:[#allocation2 + $0x90] ss:$2 sm:$0xff]  ;;  %v3193_v51 = vld [vmem:[#allocation2 + $0x91] ss:$2 sm:$0xff] }
 0x26c   :  { %v3239_v11 = vmax.f32 %v3137_v22, %v3193_v51 }
 0x26e   :  { %v3262_v15 = vmax.f32 %v3238_v13, %v3239_v11  ;;  %v3949_v58 = vpop.f32.mrb[20].mxu0 }
 0x26f   :  { %v4105_v32 = vadd.f32 %v3949_v58, %v5976_v44  ;;  %v2765_v17 = vpop.f32.mrb[21].mxu0 }
 0x270   :  { %v3276_v59 = vmax.f32 %v3262_v15, 0.0  ;;  %v4106_v18 = vadd.f32 %v2765_v17, %v5980_v34 }
 0x271   :  { %v3028_v37 = vadd.f32 %v4105_v32, %v6121_v30 }
 0x272   :  { %3290 = vst.msk [vmem:[%s6550_s3 + $0x20] sm:$0xff] %vm687_vm1, %v3276_v59  ;;  %v3027_v36 = vadd.f32 %v4106_v18, %v6121_v30 }
 0x273   :  { %3084 = vst.msk [vmem:[#allocation2 + $0xa8] sm:$0xff] %vm687_vm1, %v3028_v37 }
 0x274   :  { %3083 = vst.msk [vmem:[#allocation2 + $0xa0] sm:$0xff] %vm687_vm1, %v3027_v36 }
 0x27b   :  { %v3139_v31 = vld [vmem:[#allocation2 + $0xa0] ss:$2 sm:$0xff]  ;;  %v3195_v27 = vld [vmem:[#allocation2 + $0xa1] ss:$2 sm:$0xff] }
 0x27c   :  { %v3240_v33 = vmax.f32 %v3139_v31, %v3195_v27 }
 0x27e   :  { %v3952_v47 = vpop.f32.mrb[22].mxu0 }
 0x27f   :  { %v4107_v44 = vadd.f32 %v3952_v47, %v6004_v5  ;;  %v2775_v62 = vpop.f32.mrb[23].mxu0 }
 0x280   :  { %v4108_v50 = vadd.f32 %v2775_v62, %v6008_v46 }
 0x281   :  { %v3030_v34 = vadd.f32 %v4107_v44, %v6121_v30 }
 0x282   :  { %v3029_v14 = vadd.f32 %v4108_v50, %v6121_v30 }
 0x283   :  { %3086 = vst.msk [vmem:[#allocation2 + $0xb8] sm:$0xff] %vm687_vm1, %v3030_v34 }
 0x284   :  { %3085 = vst.msk [vmem:[#allocation2 + $0xb0] sm:$0xff] %vm687_vm1, %v3029_v14 }
 0x28b   :  { %v3141_v55 = vld [vmem:[#allocation2 + $0xb0] ss:$2 sm:$0xff]  ;;  %v3197_v41 = vld [vmem:[#allocation2 + $0xb1] ss:$2 sm:$0xff] }
 0x28c   :  { %v3241_v52 = vmax.f32 %v3141_v55, %v3197_v41 }
 0x28e   :  { %v3263_v12 = vmax.f32 %v3240_v33, %v3241_v52  ;;  %v3955_v63 = vpop.f32.mrb[24].mxu0 }
 0x28f   :  { %v4109_v5 = vadd.f32 %v3955_v63, %v6036_v38  ;;  %v2785_v21 = vpop.f32.mrb[25].mxu0 }
 0x290   :  { %v3277_v46 = vmax.f32 %v3263_v12, 0.0  ;;  %v4110_v35 = vadd.f32 %v2785_v21, %v6040_v3 }
 0x291   :  { %v3032_v49 = vadd.f32 %v4109_v5, %v6121_v30 }
 0x292   :  { %3291 = vst.msk [vmem:[%s6550_s3 + $0x28] sm:$0xff] %vm687_vm1, %v3277_v46  ;;  %v3031_v39 = vadd.f32 %v4110_v35, %v6121_v30 }
 0x293   :  { %3088 = vst.msk [vmem:[#allocation2 + $0xc8] sm:$0xff] %vm687_vm1, %v3032_v49 }
 0x294   :  { %3087 = vst.msk [vmem:[#allocation2 + $0xc0] sm:$0xff] %vm687_vm1, %v3031_v39 }
 0x29b   :  { %v3143_v19 = vld [vmem:[#allocation2 + $0xc0] ss:$2 sm:$0xff]  ;;  %v3199_v8 = vld [vmem:[#allocation2 + $0xc1] ss:$2 sm:$0xff] }
 0x29c   :  { %v3242_v42 = vmax.f32 %v3143_v19, %v3199_v8 }
 0x29e   :  { %v3958_v25 = vpop.f32.mrb[26].mxu0 }
 0x29f   :  { %v4111_v38 = vadd.f32 %v3958_v25, %v6064_v57  ;;  %v2795_v29 = vpop.f32.mrb[27].mxu0 }
 0x2a0   :  { %v4112_v61 = vadd.f32 %v2795_v29, %v6613_v60 }
 0x2a1   :  { %v3034_v3 = vadd.f32 %v4111_v38, %v6121_v30 }
 0x2a2   :  { %v3033_v40 = vadd.f32 %v4112_v61, %v6121_v30 }
 0x2a3   :  { %3090 = vst.msk [vmem:[#allocation2 + $0xd8] sm:$0xff] %vm687_vm1, %v3034_v3 }
 0x2a4   :  { %3089 = vst.msk [vmem:[#allocation2 + $0xd0] sm:$0xff] %vm687_vm1, %v3033_v40 }
 0x2ab   :  { %v3145_v54 = vld [vmem:[#allocation2 + $0xd0] ss:$2 sm:$0xff]  ;;  %v3201_v43 = vld [vmem:[#allocation2 + $0xd1] ss:$2 sm:$0xff] }
 0x2ac   :  { %v3243_v48 = vmax.f32 %v3145_v54, %v3201_v43 }
 0x2ad   :  { %v3961_v16 = vpop.f32.mrb[28].mxu0 }
 0x2ae   :  { %v3264_v45 = vmax.f32 %v3242_v42, %v3243_v48  ;;  %v3853_v57 = vpop.f32.mrb[28].mxu1  ;;  %v2805_v20 = vpop.f32.mrb[29].mxu0 }
 0x2af   :  { %v4113_v26 = vadd.f32 %v3961_v16, %v3853_v57  ;;  %v1552_v6 = vpop.f32.mrb[29].mxu1 }
 0x2b0   :  { %v3278_v7 = vmax.f32 %v3264_v45, 0.0  ;;  %v4114_v53 = vadd.f32 %v2805_v20, %v1552_v6 }
 0x2b1   :  { %v3036_v24 = vadd.f32 %v4113_v26, %v6121_v30 }
 0x2b2   :  { %3292 = vst.msk [vmem:[%s6550_s3 + $0x30] sm:$0xff] %vm687_vm1, %v3278_v7  ;;  %v3035_v4 = vadd.f32 %v4114_v53, %v6121_v30  ;;  %v3856_v2 = vpop.f32.mrb[30].mxu1 }
 0x2b3   :  { %3092 = vst.msk [vmem:[#allocation2 + $0xe8] sm:$0xff] %vm687_vm1, %v3036_v24  ;;  %v1562_v0 = vpop.f32.mrb[31].mxu1 }
 0x2b4   :  { %3091 = vst.msk [vmem:[#allocation2 + $0xe0] sm:$0xff] %vm687_vm1, %v3035_v4 }
 0x2b6   :  { %v3859_v28 = vpop.f32.mrb[32].mxu1 }
 0x2b7   :  { %v1572_v56 = vpop.f32.mrb[33].mxu1  ;;  %v3964_v10 = vpop.f32.mrb[30].mxu0 }
 0x2b8   :  { %v4115_v1 = vadd.f32 %v3964_v10, %v3856_v2  ;;  %v2815_v23 = vpop.f32.mrb[31].mxu0 }
 0x2b9   :  { %v4116_v9 = vadd.f32 %v2815_v23, %v1562_v0 }
 0x2ba   :  { %v3038_v22 = vadd.f32 %v4115_v1, %v6121_v30  ;;  %v3862_v51 = vpop.f32.mrb[34].mxu1 }
 0x2bb   :  { %v3037_v13 = vadd.f32 %v4116_v9, %v6121_v30  ;;  %v1582_v11 = vpop.f32.mrb[35].mxu1  ;;  %v3147_v37 = vld [vmem:[#allocation2 + $0xe0] ss:$2 sm:$0xff]  ;;  %v3203_v36 = vld [vmem:[#allocation2 + $0xe1] ss:$2 sm:$0xff] }
 0x2bc   :  { %3094 = vst.msk [vmem:[#allocation2 + $0xf8] sm:$0xff] %vm687_vm1, %v3038_v22  ;;  %v3244_v31 = vmax.f32 %v3147_v37, %v3203_v36 }
 0x2bd   :  { %3093 = vst.msk [vmem:[#allocation2 + $0xf0] sm:$0xff] %vm687_vm1, %v3037_v13 }
 0x2be   :  { %v3865_v15 = vpop.f32.mrb[36].mxu1 }
 0x2bf   :  { %v1592_v58 = vpop.f32.mrb[37].mxu1  ;;  %v3967_v32 = vpop.f32.mrb[32].mxu0 }
 0x2c0   :  { %v4117_v17 = vadd.f32 %v3967_v32, %v3859_v28  ;;  %v2825_v59 = vpop.f32.mrb[33].mxu0 }
 0x2c1   :  { %v4118_v18 = vadd.f32 %v2825_v59, %v1572_v56 }
 0x2c2   :  { %v3040_v47 = vadd.f32 %v4117_v17, %v6121_v30  ;;  %v3868_v44 = vpop.f32.mrb[38].mxu1 }
 0x2c3   :  { %v3039_v62 = vadd.f32 %v4118_v18, %v6121_v30  ;;  %v1602_v50 = vpop.f32.mrb[39].mxu1 }
 0x2c4   :  { %v3149_v34 = vld [vmem:[#allocation2 + $0xf0] ss:$2 sm:$0xff]  ;;  %v3205_v14 = vld [vmem:[#allocation2 + $0xf1] ss:$2 sm:$0xff]  ;;  %3096 = vst.msk [vmem:[#allocation2 + $0x108] sm:$0xff] %vm687_vm1, %v3040_v47 }
 0x2c5   :  { %v3245_v27 = vmax.f32 %v3149_v34, %v3205_v14  ;;  %3095 = vst.msk [vmem:[#allocation2 + $0x100] sm:$0xff] %vm687_vm1, %v3039_v62 }
 0x2c6   :  { %v3871_v55 = vpop.f32.mrb[40].mxu1 }
 0x2c7   :  { %v3265_v41 = vmax.f32 %v3244_v31, %v3245_v27  ;;  %v1612_v33 = vpop.f32.mrb[41].mxu1  ;;  %v3970_v52 = vpop.f32.mrb[34].mxu0 }
 0x2c8   :  { %v4119_v12 = vadd.f32 %v3970_v52, %v3862_v51  ;;  %v2835_v63 = vpop.f32.mrb[35].mxu0 }
 0x2c9   :  { %v3279_v5 = vmax.f32 %v3265_v41, 0.0  ;;  %v4120_v21 = vadd.f32 %v2835_v63, %v1582_v11 }
 0x2ca   :  { %v3042_v46 = vadd.f32 %v4119_v12, %v6121_v30  ;;  %v3874_v35 = vpop.f32.mrb[42].mxu1 }
 0x2cb   :  { %3293 = vst.msk [vmem:[%s6550_s3 + $0x38] sm:$0xff] %vm687_vm1, %v3279_v5  ;;  %v3041_v49 = vadd.f32 %v4120_v21, %v6121_v30  ;;  %v1622_v39 = vpop.f32.mrb[43].mxu1 }
 0x2cc   :  { %3098 = vst.msk [vmem:[#allocation2 + $0x118] sm:$0xff] %vm687_vm1, %v3042_v46  ;;  %v3151_v40 = vld [vmem:[#allocation2 + $0x100] ss:$2 sm:$0xff]  ;;  %v3207_v19 = vld [vmem:[#allocation2 + $0x101] ss:$2 sm:$0xff] }
 0x2cd   :  { %3097 = vst.msk [vmem:[#allocation2 + $0x110] sm:$0xff] %vm687_vm1, %v3041_v49  ;;  %v3246_v45 = vmax.f32 %v3151_v40, %v3207_v19 }
 0x2ce   :  { %v6452_v25 = vpop.f32.mrb[44].mxu1 }
 0x2cf   :  { %v6454_v38 = vpop.f32.mrb[45].mxu1  ;;  %v3973_v29 = vpop.f32.mrb[36].mxu0 }
 0x2d0   :  { %v4121_v60 = vadd.f32 %v3973_v29, %v3865_v15  ;;  %v2845_v61 = vpop.f32.mrb[37].mxu0 }
 0x2d1   :  { %v4122_v3 = vadd.f32 %v2845_v61, %v1592_v58 }
 0x2d2   :  { %v3044_v8 = vadd.f32 %v4121_v60, %v6121_v30  ;;  %v6457_v54 = vpop.f32.mrb[46].mxu1 }
 0x2d3   :  { %v3043_v43 = vadd.f32 %v4122_v3, %v6121_v30  ;;  %v6460_v42 = vpop.f32.mrb[47].mxu1 }
 0x2d4   :  { %v3153_v48 = vld [vmem:[#allocation2 + $0x110] ss:$2 sm:$0xff]  ;;  %v3209_v16 = vld [vmem:[#allocation2 + $0x111] ss:$2 sm:$0xff]  ;;  %3100 = vst.msk [vmem:[#allocation2 + $0x128] sm:$0xff] %vm687_vm1, %v3044_v8 }
 0x2d5   :  { %v3247_v57 = vmax.f32 %v3153_v48, %v3209_v16  ;;  %3099 = vst.msk [vmem:[#allocation2 + $0x120] sm:$0xff] %vm687_vm1, %v3043_v43 }
 0x2d6   :  { %v6464_v20 = vpop.f32.mrb[48].mxu1 }
 0x2d7   :  { %v3266_v26 = vmax.f32 %v3246_v45, %v3247_v57  ;;  %v6466_v6 = vpop.f32.mrb[49].mxu1  ;;  %v3976_v7 = vpop.f32.mrb[38].mxu0  ;;  %v4199_v57 = vld [vmem:[%s6549_s2] ss:$0 sm:$0xff] }
 0x2d8   :  { %v4123_v53 = vadd.f32 %v3976_v7, %v3868_v44  ;;  %v2855_v24 = vpop.f32.mrb[39].mxu0 }
 0x2d9   :  { %v3280_v4 = vmax.f32 %v3266_v26, 0.0  ;;  %v4124_v2 = vadd.f32 %v2855_v24, %v1602_v50 }
 0x2da   :  { %v3046_v0 = vadd.f32 %v4123_v53, %v6121_v30  ;;  %v6469_v28 = vpop.f32.mrb[50].mxu1 }
 0x2db   :  { %3294 = vst.msk [vmem:[%s6550_s3 + $0x40] sm:$0xff] %vm687_vm1, %v3280_v4  ;;  %v3045_v56 = vadd.f32 %v4124_v2, %v6121_v30  ;;  %v6476_v10 = vpop.f32.mrb[51].mxu1 }
 0x2dc   :  { %3102 = vst.msk [vmem:[#allocation2 + $0x138] sm:$0xff] %vm687_vm1, %v3046_v0  ;;  %v3155_v11 = vld [vmem:[#allocation2 + $0x120] ss:$2 sm:$0xff]  ;;  %v3211_v15 = vld [vmem:[#allocation2 + $0x121] ss:$2 sm:$0xff] }
 0x2dd   :  { %3101 = vst.msk [vmem:[#allocation2 + $0x130] sm:$0xff] %vm687_vm1, %v3045_v56  ;;  %v3248_v36 = vmax.f32 %v3155_v11, %v3211_v15 }
 0x2de   :  { %v6480_v1 = vpop.f32.mrb[52].mxu1 }
 0x2df   :  { %v6482_v23 = vpop.f32.mrb[53].mxu1  ;;  %v3979_v9 = vpop.f32.mrb[40].mxu0 }
 0x2e0   :  { %v4125_v22 = vadd.f32 %v3979_v9, %v3871_v55  ;;  %v2865_v51 = vpop.f32.mrb[41].mxu0 }
 0x2e1   :  { %v4126_v13 = vadd.f32 %v2865_v51, %v1612_v33 }
 0x2e2   :  { %v3048_v58 = vadd.f32 %v4125_v22, %v6121_v30  ;;  %v6485_v32 = vpop.f32.mrb[54].mxu1 }
 0x2e3   :  { %v3047_v17 = vadd.f32 %v4126_v13, %v6121_v30  ;;  %v6488_v59 = vpop.f32.mrb[55].mxu1 }
 0x2e4   :  { %v3157_v18 = vld [vmem:[#allocation2 + $0x130] ss:$2 sm:$0xff]  ;;  %v3213_v37 = vld [vmem:[#allocation2 + $0x131] ss:$2 sm:$0xff]  ;;  %3104 = vst.msk [vmem:[#allocation2 + $0x148] sm:$0xff] %vm687_vm1, %v3048_v58 }
 0x2e5   :  { %v3249_v47 = vmax.f32 %v3157_v18, %v3213_v37  ;;  %3103 = vst.msk [vmem:[#allocation2 + $0x140] sm:$0xff] %vm687_vm1, %v3047_v17 }
 0x2e7   :  { %v3267_v44 = vmax.f32 %v3248_v36, %v3249_v47  ;;  %v3982_v62 = vpop.f32.mrb[42].mxu0 }
 0x2e8   :  { %v4127_v50 = vadd.f32 %v3982_v62, %v3874_v35  ;;  %v2875_v34 = vpop.f32.mrb[43].mxu0 }
 0x2e9   :  { %v3281_v14 = vmax.f32 %v3267_v44, 0.0  ;;  %v4128_v31 = vadd.f32 %v2875_v34, %v1622_v39 }
 0x2ea   :  { %v3050_v27 = vadd.f32 %v4127_v50, %v6121_v30 }
 0x2eb   :  { %3295 = vst.msk [vmem:[%s6550_s3 + $0x48] sm:$0xff] %vm687_vm1, %v3281_v14  ;;  %v3049_v55 = vadd.f32 %v4128_v31, %v6121_v30 }
 0x2ec   :  { %3106 = vst.msk [vmem:[#allocation2 + $0x158] sm:$0xff] %vm687_vm1, %v3050_v27  ;;  %v3159_v63 = vld [vmem:[#allocation2 + $0x140] ss:$2 sm:$0xff]  ;;  %v3215_v5 = vld [vmem:[#allocation2 + $0x141] ss:$2 sm:$0xff] }
 0x2ed   :  { %3105 = vst.msk [vmem:[#allocation2 + $0x150] sm:$0xff] %vm687_vm1, %v3049_v55  ;;  %v3250_v39 = vmax.f32 %v3159_v63, %v3215_v5 }
 0x2ef   :  { %v3985_v41 = vpop.f32.mrb[44].mxu0 }
 0x2f0   :  { %v4129_v33 = vadd.f32 %v3985_v41, %v6452_v25  ;;  %v2885_v52 = vpop.f32.mrb[45].mxu0 }
 0x2f1   :  { %v4130_v12 = vadd.f32 %v2885_v52, %v6454_v38 }
 0x2f2   :  { %v3052_v21 = vadd.f32 %v4129_v33, %v6121_v30 }
 0x2f3   :  { %v3051_v46 = vadd.f32 %v4130_v12, %v6121_v30 }
 0x2f4   :  { %v3161_v35 = vld [vmem:[#allocation2 + $0x150] ss:$2 sm:$0xff]  ;;  %v3217_v49 = vld [vmem:[#allocation2 + $0x151] ss:$2 sm:$0xff]  ;;  %3108 = vst.msk [vmem:[#allocation2 + $0x168] sm:$0xff] %vm687_vm1, %v3052_v21 }
 0x2f5   :  { %v3251_v29 = vmax.f32 %v3161_v35, %v3217_v49  ;;  %3107 = vst.msk [vmem:[#allocation2 + $0x160] sm:$0xff] %vm687_vm1, %v3051_v46 }
 0x2f7   :  { %v3268_v60 = vmax.f32 %v3250_v39, %v3251_v29  ;;  %v3988_v61 = vpop.f32.mrb[46].mxu0 }
 0x2f8   :  { %v4131_v25 = vadd.f32 %v3988_v61, %v6457_v54  ;;  %v2895_v3 = vpop.f32.mrb[47].mxu0 }
 0x2f9   :  { %v3282_v38 = vmax.f32 %v3268_v60, 0.0  ;;  %v4132_v40 = vadd.f32 %v2895_v3, %v6460_v42 }
 0x2fa   :  { %v3054_v19 = vadd.f32 %v4131_v25, %v6121_v30 }
 0x2fb   :  { %3296 = vst.msk [vmem:[%s6550_s3 + $0x50] sm:$0xff] %vm687_vm1, %v3282_v38  ;;  %v3053_v8 = vadd.f32 %v4132_v40, %v6121_v30 }
 0x2fc   :  { %3110 = vst.msk [vmem:[#allocation2 + $0x178] sm:$0xff] %vm687_vm1, %v3054_v19  ;;  %v3163_v42 = vld [vmem:[#allocation2 + $0x160] ss:$2 sm:$0xff]  ;;  %v3219_v45 = vld [vmem:[#allocation2 + $0x161] ss:$2 sm:$0xff] }
 0x2fd   :  { %3109 = vst.msk [vmem:[#allocation2 + $0x170] sm:$0xff] %vm687_vm1, %v3053_v8  ;;  %v3252_v24 = vmax.f32 %v3163_v42, %v3219_v45 }
 0x2ff   :  { %v3991_v43 = vpop.f32.mrb[48].mxu0 }
 0x300   :  { %v4133_v54 = vadd.f32 %v3991_v43, %v6464_v20  ;;  %v2905_v48 = vpop.f32.mrb[49].mxu0 }
 0x301   :  { %v4134_v16 = vadd.f32 %v2905_v48, %v6466_v6 }
 0x302   :  { %v3056_v26 = vadd.f32 %v4199_v57, %v4133_v54 }
 0x303   :  { %v3055_v7 = vadd.f32 %v4199_v57, %v4134_v16 }
 0x304   :  { %v3165_v53 = vld [vmem:[#allocation2 + $0x170] ss:$2 sm:$0xff]  ;;  %v3221_v30 = vld [vmem:[#allocation2 + $0x171] ss:$2 sm:$0xff]  ;;  %3112 = vst.msk [vmem:[#allocation2 + $0x188] sm:$0xff] %vm687_vm1, %v3056_v26 }
 0x305   :  { %v3253_v4 = vmax.f32 %v3165_v53, %v3221_v30  ;;  %3111 = vst.msk [vmem:[#allocation2 + $0x180] sm:$0xff] %vm687_vm1, %v3055_v7 }
 0x307   :  { %v3269_v20 = vmax.f32 %v3252_v24, %v3253_v4  ;;  %v3994_v2 = vpop.f32.mrb[50].mxu0 }
 0x308   :  { %v4135_v6 = vadd.f32 %v3994_v2, %v6469_v28  ;;  %v2915_v0 = vpop.f32.mrb[51].mxu0 }
 0x309   :  { %v3283_v56 = vmax.f32 %v3269_v20, 0.0  ;;  %v4136_v9 = vadd.f32 %v2915_v0, %v6476_v10 }
 0x30a   :  { %v3058_v22 = vadd.f32 %v4199_v57, %v4135_v6 }
 0x30b   :  { %3297 = vst.msk [vmem:[%s6550_s3 + $0x58] sm:$0xff] %vm687_vm1, %v3283_v56  ;;  %v3057_v51 = vadd.f32 %v4199_v57, %v4136_v9 }
 0x30c   :  { %3114 = vst.msk [vmem:[#allocation2 + $0x198] sm:$0xff] %vm687_vm1, %v3058_v22  ;;  %v3167_v58 = vld [vmem:[#allocation2 + $0x180] ss:$2 sm:$0xff]  ;;  %v3223_v17 = vld [vmem:[#allocation2 + $0x181] ss:$2 sm:$0xff] }
 0x30d   :  { %3113 = vst.msk [vmem:[#allocation2 + $0x190] sm:$0xff] %vm687_vm1, %v3057_v51  ;;  %v3254_v47 = vmax.f32 %v3167_v58, %v3223_v17 }
 0x30f   :  { %v3997_v13 = vpop.f32.mrb[52].mxu0 }
 0x310   :  { %v4137_v11 = vadd.f32 %v3997_v13, %v6480_v1  ;;  %v2925_v15 = vpop.f32.mrb[53].mxu0 }
 0x311   :  { %v4138_v28 = vadd.f32 %v2925_v15, %v6482_v23 }
 0x312   :  { %v3060_v10 = vadd.f32 %v4199_v57, %v4137_v11 }
 0x313   :  { %v3059_v18 = vadd.f32 %v4199_v57, %v4138_v28 }
 0x314   :  { %v3169_v37 = vld [vmem:[#allocation2 + $0x190] ss:$2 sm:$0xff]  ;;  %v3225_v36 = vld [vmem:[#allocation2 + $0x191] ss:$2 sm:$0xff]  ;;  %3116 = vst.msk [vmem:[#allocation2 + $0x1a8] sm:$0xff] %vm687_vm1, %v3060_v10 }
 0x315   :  { %v3255_v44 = vmax.f32 %v3169_v37, %v3225_v36  ;;  %3115 = vst.msk [vmem:[#allocation2 + $0x1a0] sm:$0xff] %vm687_vm1, %v3059_v18 }
 0x317   :  { %v3270_v62 = vmax.f32 %v3254_v47, %v3255_v44  ;;  %v4000_v50 = vpop.f32.mrb[54].mxu0 }
 0x318   :  { %v4139_v34 = vadd.f32 %v4000_v50, %v6485_v32  ;;  %v2935_v1 = vpop.f32.mrb[55].mxu0 }
 0x319   :  { %v3284_v14 = vmax.f32 %v3270_v62, 0.0  ;;  %v4140_v23 = vadd.f32 %v2935_v1, %v6488_v59 }
 0x31a   :  { %v3062_v31 = vadd.f32 %v4199_v57, %v4139_v34 }
 0x31b   :  { %3298 = vst.msk [vmem:[%s6550_s3 + $0x60] sm:$0xff] %vm687_vm1, %v3284_v14  ;;  %v3061_v27 = vadd.f32 %v4199_v57, %v4140_v23 }
 0x31c   :  { %3118 = vst.msk [vmem:[#allocation2 + $0x1b8] sm:$0xff] %vm687_vm1, %v3062_v31  ;;  %v3171_v55 = vld [vmem:[#allocation2 + $0x1a0] ss:$2 sm:$0xff]  ;;  %v3227_v41 = vld [vmem:[#allocation2 + $0x1a1] ss:$2 sm:$0xff] }
 0x31d   :  { %3117 = vst.msk [vmem:[#allocation2 + $0x1b0] sm:$0xff] %vm687_vm1, %v3061_v27  ;;  %v3256_v32 = vmax.f32 %v3171_v55, %v3227_v41 }
 0x324   :  { %v3173_v33 = vld [vmem:[#allocation2 + $0x1b0] ss:$2 sm:$0xff]  ;;  %v3229_v52 = vld [vmem:[#allocation2 + $0x1b1] ss:$2 sm:$0xff] }
 0x325   :  { %v3257_v12 = vmax.f32 %v3173_v33, %v3229_v52 }
 0x327   :  { %v3271_v63 = vmax.f32 %v3256_v32, %v3257_v12 }
 0x329   :  { %v3285_v5 = vmax.f32 %v3271_v63, 0.0 }
 0x32b   :  { %3299 = vst.msk [vmem:[%s6550_s3 + $0x68] sm:$0xff] %vm687_vm1, %v3285_v5 }

</bundles_post_ra>
